<compile_context>
chip_gen: v5e
topology: v5e:2x2
jax: 0.10.0
libtpu: 0.0.40
codegen_flags: <defaults>
</compile_context>

<pallas_src>
import jax
import jax.numpy as jnp
from jax import lax
from jax.experimental import pallas as pl
from jax.experimental.pallas import tpu as pltpu

LEAKY_SLOPE = 0.2
BN_EPS = 1e-5
GATHER_UNROLL = 8


def _round_up(x, m):
    return (x + m - 1) // m * m


def _foreach(n, body, unroll=GATHER_UNROLL):
    """Run body(row) for row in [0, n): unrolled fori_loop main part + static Python tail."""
    n_main = (n // unroll) * unroll
    if n_main:
        def outer(i, carry):
            for u in range(unroll):
                body(i * unroll + u)
            return carry
        lax.fori_loop(0, n // unroll, outer, 0)
    for r in range(n_main, n):          # static tail rows
        body(r)


# ---------------------------------------------------------------------------
# Fused up_block kernel (everything VMEM/SMEM resident, single grid step)
# ---------------------------------------------------------------------------
def _make_up_block_kernel(n_low, n_high, in_ch, out_ch, stride_low):
    """Build the fused kernel; all shape parameters are Python-static."""
    n_down = n_high - n_low
    inv_n = 1.0 / float(n_high)

    def kernel(neigh_ref, top_ref, down_ref,               # SMEM (scalar prefetch) index tables
               x1_ref, x2_ref,                             # VMEM activations (coarse + skip)
               wup_ref, bup_ref,                           # upconv params (cin, 7*out), (1, 7*out)
               w1_ref, g1_ref, be1_ref,                    # conv1 weight (7*in_ch, out), bn1 gamma/beta
               w2_ref, g2_ref, be2_ref,                    # conv2 weight (7*out_ch, out), bn2 gamma/beta
               o_ref,                                      # output (n_high, out_ch)
               yup_s, cat_s, x7sub_s, x7f1_s, x7f2_s, h1_s):   # VMEM scratch
        # ---- 1) upconv: ONE fused matmul (bf16 in / f32 acc), then distribute the 7 lane
        #         groups into a row-addressable padded layout.  Flat PyTorch row t of
        #         y.view(n_low*7, out) lives at yup_s[(t%7)*stride_low + t//7] (host remap).
        yflat = jnp.dot(x1_ref[...].astype(jnp.bfloat16), wup_ref[...],
                        preferred_element_type=jnp.float32) + bup_ref[...]
        for k in range(7):
            yup_s[k * stride_low:k * stride_low + n_low, :] = \
                yflat[:, k * out_ch:(k + 1) * out_ch]

        # ---- 2) top copies + down pair-averages into the first out_ch lanes of cat_s ------
        def top_body(i):
            r = top_ref[i]
            cat_s[pl.ds(i, 1), 0:out_ch] = yup_s[pl.ds(r, 1), :]
        _foreach(n_low, top_body)

        def down_body(j):
            r0 = down_ref[2 * j]
            r1 = down_ref[2 * j + 1]
            cat_s[pl.ds(n_low + j, 1), 0:out_ch] = \
                0.5 * (yup_s[pl.ds(r0, 1), :] + yup_s[pl.ds(r1, 1), :])
        _foreach(n_down, down_body)

        # skip-connection channels (torch.cat dim=1): one vectorized lane-offset slab store.
        cat_s[:, out_ch:in_ch] = x2_ref[...]

        # ---- 3) fused (1-ring gather -> single K=7c matmul -> BN -> LeakyReLU), used twice --
        def onering_conv_bn_lrelu(src_ref, c, flat_ref, w_ref, gamma_ref, beta_ref):
            # (a) gather the 7-neighbourhood rows (lane-aligned stores, 8-row-unrolled loop).
            def gather_body(n):
                base = n * 7
                for k in range(7):
                    idx = neigh_ref[base + k]
                    x7sub_s[k, pl.ds(n, 1), 0:c] = src_ref[pl.ds(idx, 1), 0:c]
            _foreach(n_high, gather_body)

            # (b) assemble the (n_high, 7c) flat slab with 7 vectorized lane-group copies
            #     so the conv is a single matmul in the PyTorch weight layout.
            for k in range(7):
                flat_ref[:, k * c:(k + 1) * c] = x7sub_s[k, :, 0:c]

            # (c) one K=7c MXU matmul: bf16 inputs, f32 accumulation.
            #     (conv bias dropped: cancels exactly with batch-stat BatchNorm below.)
            acc = jnp.dot(flat_ref[...].astype(jnp.bfloat16), w_ref[...],
                          preferred_element_type=jnp.float32)

            # (d) single-pass BatchNorm1d over nodes (sum & sumsq) + LeakyReLU(0.2), all f32.
            s1 = jnp.sum(acc, axis=0, keepdims=True)
            s2 = jnp.sum(acc * acc, axis=0, keepdims=True)
            mean = s1 * inv_n
            var = jnp.maximum(s2 * inv_n - mean * mean, 0.0)
            z = gamma_ref[...] * (acc - mean) * lax.rsqrt(var + BN_EPS) + beta_ref[...]
            return jnp.where(z >= 0, z, LEAKY_SLOPE * z)

        h1_s[...] = onering_conv_bn_lrelu(cat_s, in_ch, x7f1_s, w1_ref, g1_ref, be1_ref)
        o_ref[...] = onering_conv_bn_lrelu(h1_s, out_ch, x7f2_s,
                                           w2_ref, g2_ref, be2_ref).astype(o_ref.dtype)

    return kernel


def up_block_forward(params, x1, x2, neigh_orders, top_idx, down_idx, out_ch):
    """Fused up_block forward: one pallas_call for the whole block."""
    n_low, cin = x1.shape
    n_high, skip_ch = x2.shape
    in_ch = out_ch + skip_ch
    stride_low = _round_up(n_low, 8)

    # Host-side precompute (index remap into the padded upconv layout + dtype casts).
    # Mirrors the PyTorch module's __init__-time Get_upconv_index() preprocessing.
    neigh = neigh_orders.astype(jnp.int32)
    top_flat = (top_idx % 7).astype(jnp.int32) * stride_low + (top_idx // 7).astype(jnp.int32)
    down_flat = (down_idx % 7).astype(jnp.int32) * stride_low + (down_idx // 7).astype(jnp.int32)

    wup = params["up"]["w"].astype(jnp.bfloat16)                       # (cin, 7*out_ch)
    bup = params["up"]["b"].reshape(1, 7 * out_ch).astype(jnp.float32)  # (1, 7*out_ch)
    w1 = params["conv1"]["w"].astype(jnp.bfloat16)                     # (7*in_ch, out_ch)
    w2 = params["conv2"]["w"].astype(jnp.bfloat16)                     # (7*out_ch, out_ch)
    # conv biases intentionally NOT passed: bias + BatchNorm(batch stats) == BatchNorm.
    g1 = params["bn1"]["gamma"].reshape(1, out_ch).astype(jnp.float32)
    be1 = params["bn1"]["beta"].reshape(1, out_ch).astype(jnp.float32)
    g2 = params["bn2"]["gamma"].reshape(1, out_ch).astype(jnp.float32)
    be2 = params["bn2"]["beta"].reshape(1, out_ch).astype(jnp.float32)

    kernel = _make_up_block_kernel(n_low, n_high, in_ch, out_ch, stride_low)

    # index_maps receive (grid index, *scalar_prefetch_refs)
    def im2(i, nr, tr, dr):
        return (0, 0)

    grid_spec = pltpu.PrefetchScalarGridSpec(
        num_scalar_prefetch=3,                         # neigh_orders, top_idx, down_idx -> SMEM
        grid=(1,),
        in_specs=[
            pl.BlockSpec((n_low, cin), im2),           # x1
            pl.BlockSpec((n_high, skip_ch), im2),      # x2 (skip)
            pl.BlockSpec((cin, 7 * out_ch), im2),      # Wup (bf16, fused)
            pl.BlockSpec((1, 7 * out_ch), im2),        # bup
            pl.BlockSpec((7 * in_ch, out_ch), im2),    # W1 (bf16)
            pl.BlockSpec((1, out_ch), im2),            # gamma1
            pl.BlockSpec((1, out_ch), im2),            # beta1
            pl.BlockSpec((7 * out_ch, out_ch), im2),   # W2 (bf16)
            pl.BlockSpec((1, out_ch), im2),            # gamma2
            pl.BlockSpec((1, out_ch), im2),            # beta2
        ],
        out_specs=pl.BlockSpec((n_high, out_ch), im2),
        scratch_shapes=[
            pltpu.VMEM((7 * stride_low, out_ch), jnp.float32),   # upconv result (padded flat)
            pltpu.VMEM((n_high, in_ch), jnp.float32),            # concat(up(x1), x2)
            pltpu.VMEM((7, n_high, in_ch), jnp.float32),         # lane-aligned gathered sub-slabs
            pltpu.VMEM((n_high, 7 * in_ch), jnp.float32),        # flat K=7*in_ch slab (conv1)
            pltpu.VMEM((n_high, 7 * out_ch), jnp.float32),       # flat K=7*out_ch slab (conv2)
            pltpu.VMEM((n_high, out_ch), jnp.float32),           # conv1 output (never hits HBM)
        ],
    )

    return pl.pallas_call(
        kernel,
        out_shape=jax.ShapeDtypeStruct((n_high, out_ch), jnp.float32),
        grid_spec=grid_spec,
        compiler_params=pltpu.CompilerParams(
            # TODO(synk): at real scale use a node-tile grid axis marked "parallel" (v7x 2 TCs)
            # and re-derive vmem_limit_bytes per chip generation.
            dimension_semantics=("arbitrary",),
            vmem_limit_bytes=32 * 1024 * 1024,
        ),
    )(neigh, top_flat, down_flat, x1, x2, wup, bup, w1, g1, be1, w2, g2, be2)


# ---------------------------------------------------------------------------
# Pure-JAX reference (same math as the PyTorch module, biases included).
# dot_dtype=None       -> exact f32 reference (PyTorch semantics)
# dot_dtype=bfloat16   -> emulates the kernel's bf16-in / f32-accumulate matmuls
# ---------------------------------------------------------------------------
def _gather_onering_ref(x, neigh_orders):
    n, c = x.shape
    return x[neigh_orders].reshape(n, 7 * c)


def _ref_bn_lrelu(y, gamma, beta):
    mean = y.mean(0, keepdims=True)
    var = ((y - mean) ** 2).mean(0, keepdims=True)
    z = gamma * (y - mean) * lax.rsqrt(var + BN_EPS) + beta
    return jnp.where(z >= 0, z, LEAKY_SLOPE * z)


def up_block_reference(params, x1, x2, neigh_orders, top_idx, down_idx, out_ch, dot_dtype=None):
    def mm(a, b):
        if dot_dtype is not None:
            a, b = a.astype(dot_dtype), b.astype(dot_dtype)
        return jnp.dot(a, b, preferred_element_type=jnp.float32)

    n_low = x1.shape[0]
    y = mm(x1, params["up"]["w"]) + params["up"]["b"]
    y = y.reshape(n_low * 7, out_ch)
    x1u = jnp.concatenate([y[top_idx], y[down_idx].reshape(-1, 2, out_ch).mean(1)], 0)
    x = jnp.concatenate([x1u, x2], 1)
    h = mm(_gather_onering_ref(x, neigh_orders), params["conv1"]["w"]) + params["conv1"]["b"]
    h = _ref_bn_lrelu(h, params["bn1"]["gamma"], params["bn1"]["beta"])
    h = mm(_gather_onering_ref(h, neigh_orders), params["conv2"]["w"]) + params["conv2"]["b"]
    h = _ref_bn_lrelu(h, params["bn2"]["gamma"], params["bn2"]["beta"])
    return h


# ---------------------------------------------------------------------------
if __name__ == "__main__":
    # Small icosahedral mesh pair: coarse 42 vertices -> fine 4*42 - 6 = 162 vertices.
    # Channel shape mirrors Unet_40k's up4 block (in 64 -> out 32, skip 32).
    n_low, n_high = 42, 162
    in_ch, out_ch = 64, 32
    skip_ch = in_ch - out_ch

    key = jax.random.PRNGKey(0)
    keys = jax.random.split(key, 12)

    # Deterministic synthetic parameters (module __init__ shapes), all f32.
    params = {
        "up": {"w": 0.1 * jax.random.normal(keys[0], (in_ch, 7 * out_ch), jnp.float32),
               "b": 0.1 * jax.random.normal(keys[1], (7 * out_ch,), jnp.float32)},
        "conv1": {"w": 0.1 * jax.random.normal(keys[2], (7 * in_ch, out_ch), jnp.float32),
                  "b": 0.1 * jax.random.normal(keys[3], (out_ch,), jnp.float32)},
        "bn1": {"gamma": 1.0 + 0.1 * jax.random.normal(keys[4], (out_ch,), jnp.float32),
                "beta": 0.1 * jax.random.normal(keys[5], (out_ch,), jnp.float32)},
        "conv2": {"w": 0.1 * jax.random.normal(keys[6], (7 * out_ch, out_ch), jnp.float32),
                  "b": 0.1 * jax.random.normal(keys[7], (out_ch,), jnp.float32)},
        "bn2": {"gamma": 1.0 + 0.1 * jax.random.normal(keys[8], (out_ch,), jnp.float32),
                "beta": 0.1 * jax.random.normal(keys[9], (out_ch,), jnp.float32)},
    }

    # Synthetic deterministic mesh-topology index tensors.
    top_idx = jnp.arange(n_low, dtype=jnp.int32) * 7                            # (n_low,)
    down_idx = jax.random.randint(keys[10], ((n_high - n_low) * 2,), 0,
                                  n_low * 7, dtype=jnp.int32)                   # 2 parents / new node
    neigh_orders = jax.random.randint(keys[11], (n_high * 7,), 0,
                                      n_high, dtype=jnp.int32)                  # 7 neighbors / node

    # Inputs: x1 coarse features (n_low, in_ch), x2 skip features (n_high, skip_ch).
    kx1, kx2 = jax.random.split(jax.random.PRNGKey(1))
    x1 = jax.random.normal(kx1, (n_low, in_ch), jnp.float32)
    x2 = jax.random.normal(kx2, (n_high, skip_ch), jnp.float32)

    fwd = jax.jit(lambda p, a, b: up_block_forward(p, a, b, neigh_orders,
                                                   top_idx, down_idx, out_ch))
    out = fwd(params, x1, x2)
    jax.block_until_ready(out)

    ref_bf16 = up_block_reference(params, x1, x2, neigh_orders, top_idx, down_idx, out_ch,
                                  dot_dtype=jnp.bfloat16)
    ref_f32 = up_block_reference(params, x1, x2, neigh_orders, top_idx, down_idx, out_ch,
                                 dot_dtype=None)

    assert out.shape == (n_high, out_ch)
    err16 = float(jnp.max(jnp.abs(out - ref_bf16)))
    err32 = float(jnp.max(jnp.abs(out - ref_f32)))
    # Tight check vs. a reference that uses the same bf16 matmul inputs / f32 accumulation.
    assert jnp.allclose(out, ref_bf16, rtol=2e-3, atol=2e-3), err16
    # Looser sanity check vs. the exact f32 (PyTorch-semantics) reference.
    assert jnp.allclose(out, ref_f32, rtol=5e-2, atol=5e-2), err32

    print("KERNEL_OK")
</pallas_src>

<mosaic_0001>
module attributes {stable_mosaic.version = 11 : i64} {
  func.func @kernel(%arg0: i32, %arg1: memref<1134xi32, #tpu.memory_space<smem>>, %arg2: memref<42xi32, #tpu.memory_space<smem>>, %arg3: memref<240xi32, #tpu.memory_space<smem>>, %arg4: memref<42x64xf32, #tpu.memory_space<vmem>>, %arg5: memref<162x32xf32, #tpu.memory_space<vmem>>, %arg6: memref<64x224xbf16, #tpu.memory_space<vmem>>, %arg7: memref<1x224xf32, #tpu.memory_space<vmem>>, %arg8: memref<448x32xbf16, #tpu.memory_space<vmem>>, %arg9: memref<1x32xf32, #tpu.memory_space<vmem>>, %arg10: memref<1x32xf32, #tpu.memory_space<vmem>>, %arg11: memref<224x32xbf16, #tpu.memory_space<vmem>>, %arg12: memref<1x32xf32, #tpu.memory_space<vmem>>, %arg13: memref<1x32xf32, #tpu.memory_space<vmem>>, %arg14: memref<162x32xf32, #tpu.memory_space<vmem>>, %arg15: memref<336x32xf32, #tpu.memory_space<vmem>>, %arg16: memref<162x64xf32, #tpu.memory_space<vmem>>, %arg17: memref<7x162x64xf32, #tpu.memory_space<vmem>>, %arg18: memref<162x448xf32, #tpu.memory_space<vmem>>, %arg19: memref<162x224xf32, #tpu.memory_space<vmem>>, %arg20: memref<162x32xf32, #tpu.memory_space<vmem>>) attributes {dimension_semantics = [#tpu.dimension_semantics<arbitrary>], iteration_bounds = array<i64: 1>, scalar_prefetch = 3 : i64, scratch_operands = 6 : i64, tpu.core_type = #tpu.core_type<tc>, window_params = [{pipeline_mode = #tpu.pipeline_mode<synchronous>, transform_indices = @transform_0, window_bounds = array<i64: 42, 64>}, {pipeline_mode = #tpu.pipeline_mode<synchronous>, transform_indices = @transform_1, window_bounds = array<i64: 162, 32>}, {pipeline_mode = #tpu.pipeline_mode<synchronous>, transform_indices = @transform_2, window_bounds = array<i64: 64, 224>}, {pipeline_mode = #tpu.pipeline_mode<synchronous>, transform_indices = @transform_3, window_bounds = array<i64: 1, 224>}, {pipeline_mode = #tpu.pipeline_mode<synchronous>, transform_indices = @transform_4, window_bounds = array<i64: 448, 32>}, {pipeline_mode = #tpu.pipeline_mode<synchronous>, transform_indices = @transform_5, window_bounds = array<i64: 1, 32>}, {pipeline_mode = #tpu.pipeline_mode<synchronous>, transform_indices = @transform_6, window_bounds = array<i64: 1, 32>}, {pipeline_mode = #tpu.pipeline_mode<synchronous>, transform_indices = @transform_7, window_bounds = array<i64: 224, 32>}, {pipeline_mode = #tpu.pipeline_mode<synchronous>, transform_indices = @transform_8, window_bounds = array<i64: 1, 32>}, {pipeline_mode = #tpu.pipeline_mode<synchronous>, transform_indices = @transform_9, window_bounds = array<i64: 1, 32>}, {pipeline_mode = #tpu.pipeline_mode<synchronous>, transform_indices = @transform_10, window_bounds = array<i64: 162, 32>}]} {
    %c0 = arith.constant 0 : index
    %c0_0 = arith.constant 0 : index
    %0 = vector.load %arg4[%c0, %c0_0] : memref<42x64xf32, #tpu.memory_space<vmem>>, vector<42x64xf32>
    %1 = arith.truncf %0 : vector<42x64xf32> to vector<42x64xbf16>
    %c0_1 = arith.constant 0 : index
    %c0_2 = arith.constant 0 : index
    %2 = vector.load %arg6[%c0_1, %c0_2] : memref<64x224xbf16, #tpu.memory_space<vmem>>, vector<64x224xbf16>
    %cst = arith.constant dense<0.000000e+00> : vector<42x224xf32>
    %3 = tpu.matmul %1, %2, %cst {dimension_numbers = #tpu.dot_dimension_numbers<[1], [0], [0], [1], [0, 0, 1, 1], [], []>} : vector<42x64xbf16>, vector<64x224xbf16>, vector<42x224xf32> -> vector<42x224xf32>
    %c0_3 = arith.constant 0 : index
    %c0_4 = arith.constant 0 : index
    %4 = vector.load %arg7[%c0_3, %c0_4] : memref<1x224xf32, #tpu.memory_space<vmem>>, vector<1x224xf32>
    %5 = vector.broadcast %4 : vector<1x224xf32> to vector<42x224xf32>
    %6 = arith.addf %3, %5 : vector<42x224xf32>
    %7 = vector.extract_strided_slice %6 {offsets = [0, 0], sizes = [42, 32], strides = [1, 1]} : vector<42x224xf32> to vector<42x32xf32>
    %c0_5 = arith.constant 0 : index
    %c0_6 = arith.constant 0 : index
    %8 = vector.load %arg15[%c0_5, %c0_6] : memref<336x32xf32, #tpu.memory_space<vmem>>, vector<42x32xf32>
    tpu.vector_store %arg15[%c0_5, %c0_6], %7 {strides = array<i32>} : memref<336x32xf32, #tpu.memory_space<vmem>>, vector<42x32xf32>,
    %9 = vector.extract_strided_slice %6 {offsets = [0, 32], sizes = [42, 32], strides = [1, 1]} : vector<42x224xf32> to vector<42x32xf32>
    %c48 = arith.constant 48 : index
    %c0_7 = arith.constant 0 : index
    %10 = vector.load %arg15[%c48, %c0_7] : memref<336x32xf32, #tpu.memory_space<vmem>>, vector<42x32xf32>
    tpu.vector_store %arg15[%c48, %c0_7], %9 {strides = array<i32>} : memref<336x32xf32, #tpu.memory_space<vmem>>, vector<42x32xf32>,
    %11 = vector.extract_strided_slice %6 {offsets = [0, 64], sizes = [42, 32], strides = [1, 1]} : vector<42x224xf32> to vector<42x32xf32>
    %c96 = arith.constant 96 : index
    %c0_8 = arith.constant 0 : index
    %12 = vector.load %arg15[%c96, %c0_8] : memref<336x32xf32, #tpu.memory_space<vmem>>, vector<42x32xf32>
    tpu.vector_store %arg15[%c96, %c0_8], %11 {strides = array<i32>} : memref<336x32xf32, #tpu.memory_space<vmem>>, vector<42x32xf32>,
    %13 = vector.extract_strided_slice %6 {offsets = [0, 96], sizes = [42, 32], strides = [1, 1]} : vector<42x224xf32> to vector<42x32xf32>
    %c144 = arith.constant 144 : index
    %c0_9 = arith.constant 0 : index
    %14 = vector.load %arg15[%c144, %c0_9] : memref<336x32xf32, #tpu.memory_space<vmem>>, vector<42x32xf32>
    tpu.vector_store %arg15[%c144, %c0_9], %13 {strides = array<i32>} : memref<336x32xf32, #tpu.memory_space<vmem>>, vector<42x32xf32>,
    %15 = vector.extract_strided_slice %6 {offsets = [0, 128], sizes = [42, 32], strides = [1, 1]} : vector<42x224xf32> to vector<42x32xf32>
    %c192 = arith.constant 192 : index
    %c0_10 = arith.constant 0 : index
    %16 = vector.load %arg15[%c192, %c0_10] : memref<336x32xf32, #tpu.memory_space<vmem>>, vector<42x32xf32>
    tpu.vector_store %arg15[%c192, %c0_10], %15 {strides = array<i32>} : memref<336x32xf32, #tpu.memory_space<vmem>>, vector<42x32xf32>,
    %17 = vector.extract_strided_slice %6 {offsets = [0, 160], sizes = [42, 32], strides = [1, 1]} : vector<42x224xf32> to vector<42x32xf32>
    %c240 = arith.constant 240 : index
    %c0_11 = arith.constant 0 : index
    %18 = vector.load %arg15[%c240, %c0_11] : memref<336x32xf32, #tpu.memory_space<vmem>>, vector<42x32xf32>
    tpu.vector_store %arg15[%c240, %c0_11], %17 {strides = array<i32>} : memref<336x32xf32, #tpu.memory_space<vmem>>, vector<42x32xf32>,
    %19 = vector.extract_strided_slice %6 {offsets = [0, 192], sizes = [42, 32], strides = [1, 1]} : vector<42x224xf32> to vector<42x32xf32>
    %c288 = arith.constant 288 : index
    %c0_12 = arith.constant 0 : index
    %20 = vector.load %arg15[%c288, %c0_12] : memref<336x32xf32, #tpu.memory_space<vmem>>, vector<42x32xf32>
    tpu.vector_store %arg15[%c288, %c0_12], %19 {strides = array<i32>} : memref<336x32xf32, #tpu.memory_space<vmem>>, vector<42x32xf32>,
    %c0_i32 = arith.constant 0 : i32
    %c5_i32 = arith.constant 5 : i32
    %21 = arith.addi %c0_i32, %c5_i32 : i32
    %c1_i32 = arith.constant 1 : i32
    scf.for %arg21 = %c0_i32 to %21 step %c1_i32  : i32 {
      %c8_i32 = arith.constant 8 : i32
      %317 = arith.muli %arg21, %c8_i32 : i32
      %c0_i32_254 = arith.constant 0 : i32
      %318 = arith.addi %317, %c0_i32_254 : i32
      %319 = arith.index_cast %318 : i32 to index
      %320 = memref.load %arg2[%319] : memref<42xi32, #tpu.memory_space<smem>>
      %321 = arith.index_cast %320 : i32 to index
      %c0_255 = arith.constant 0 : index
      %322 = vector.load %arg15[%321, %c0_255] : memref<336x32xf32, #tpu.memory_space<vmem>>, vector<1x32xf32>
      %323 = arith.index_cast %318 : i32 to index
      %c0_256 = arith.constant 0 : index
      %324 = vector.load %arg16[%323, %c0_256] : memref<162x64xf32, #tpu.memory_space<vmem>>, vector<1x32xf32>
      tpu.vector_store %arg16[%323, %c0_256], %322 {strides = array<i32>} : memref<162x64xf32, #tpu.memory_space<vmem>>, vector<1x32xf32>,
      %c8_i32_257 = arith.constant 8 : i32
      %325 = arith.muli %arg21, %c8_i32_257 : i32
      %c1_i32_258 = arith.constant 1 : i32
      %326 = arith.addi %325, %c1_i32_258 : i32
      %327 = arith.index_cast %326 : i32 to index
      %328 = memref.load %arg2[%327] : memref<42xi32, #tpu.memory_space<smem>>
      %329 = arith.index_cast %328 : i32 to index
      %c0_259 = arith.constant 0 : index
      %330 = vector.load %arg15[%329, %c0_259] : memref<336x32xf32, #tpu.memory_space<vmem>>, vector<1x32xf32>
      %331 = arith.index_cast %326 : i32 to index
      %c0_260 = arith.constant 0 : index
      %332 = vector.load %arg16[%331, %c0_260] : memref<162x64xf32, #tpu.memory_space<vmem>>, vector<1x32xf32>
      tpu.vector_store %arg16[%331, %c0_260], %330 {strides = array<i32>} : memref<162x64xf32, #tpu.memory_space<vmem>>, vector<1x32xf32>,
      %c8_i32_261 = arith.constant 8 : i32
      %333 = arith.muli %arg21, %c8_i32_261 : i32
      %c2_i32 = arith.constant 2 : i32
      %334 = arith.addi %333, %c2_i32 : i32
      %335 = arith.index_cast %334 : i32 to index
      %336 = memref.load %arg2[%335] : memref<42xi32, #tpu.memory_space<smem>>
      %337 = arith.index_cast %336 : i32 to index
      %c0_262 = arith.constant 0 : index
      %338 = vector.load %arg15[%337, %c0_262] : memref<336x32xf32, #tpu.memory_space<vmem>>, vector<1x32xf32>
      %339 = arith.index_cast %334 : i32 to index
      %c0_263 = arith.constant 0 : index
      %340 = vector.load %arg16[%339, %c0_263] : memref<162x64xf32, #tpu.memory_space<vmem>>, vector<1x32xf32>
      tpu.vector_store %arg16[%339, %c0_263], %338 {strides = array<i32>} : memref<162x64xf32, #tpu.memory_space<vmem>>, vector<1x32xf32>,
      %c8_i32_264 = arith.constant 8 : i32
      %341 = arith.muli %arg21, %c8_i32_264 : i32
      %c3_i32 = arith.constant 3 : i32
      %342 = arith.addi %341, %c3_i32 : i32
      %343 = arith.index_cast %342 : i32 to index
      %344 = memref.load %arg2[%343] : memref<42xi32, #tpu.memory_space<smem>>
      %345 = arith.index_cast %344 : i32 to index
      %c0_265 = arith.constant 0 : index
      %346 = vector.load %arg15[%345, %c0_265] : memref<336x32xf32, #tpu.memory_space<vmem>>, vector<1x32xf32>
      %347 = arith.index_cast %342 : i32 to index
      %c0_266 = arith.constant 0 : index
      %348 = vector.load %arg16[%347, %c0_266] : memref<162x64xf32, #tpu.memory_space<vmem>>, vector<1x32xf32>
      tpu.vector_store %arg16[%347, %c0_266], %346 {strides = array<i32>} : memref<162x64xf32, #tpu.memory_space<vmem>>, vector<1x32xf32>,
      %c8_i32_267 = arith.constant 8 : i32
      %349 = arith.muli %arg21, %c8_i32_267 : i32
      %c4_i32 = arith.constant 4 : i32
      %350 = arith.addi %349, %c4_i32 : i32
      %351 = arith.index_cast %350 : i32 to index
      %352 = memref.load %arg2[%351] : memref<42xi32, #tpu.memory_space<smem>>
      %353 = arith.index_cast %352 : i32 to index
      %c0_268 = arith.constant 0 : index
      %354 = vector.load %arg15[%353, %c0_268] : memref<336x32xf32, #tpu.memory_space<vmem>>, vector<1x32xf32>
      %355 = arith.index_cast %350 : i32 to index
      %c0_269 = arith.constant 0 : index
      %356 = vector.load %arg16[%355, %c0_269] : memref<162x64xf32, #tpu.memory_space<vmem>>, vector<1x32xf32>
      tpu.vector_store %arg16[%355, %c0_269], %354 {strides = array<i32>} : memref<162x64xf32, #tpu.memory_space<vmem>>, vector<1x32xf32>,
      %c8_i32_270 = arith.constant 8 : i32
      %357 = arith.muli %arg21, %c8_i32_270 : i32
      %c5_i32_271 = arith.constant 5 : i32
      %358 = arith.addi %357, %c5_i32_271 : i32
      %359 = arith.index_cast %358 : i32 to index
      %360 = memref.load %arg2[%359] : memref<42xi32, #tpu.memory_space<smem>>
      %361 = arith.index_cast %360 : i32 to index
      %c0_272 = arith.constant 0 : index
      %362 = vector.load %arg15[%361, %c0_272] : memref<336x32xf32, #tpu.memory_space<vmem>>, vector<1x32xf32>
      %363 = arith.index_cast %358 : i32 to index
      %c0_273 = arith.constant 0 : index
      %364 = vector.load %arg16[%363, %c0_273] : memref<162x64xf32, #tpu.memory_space<vmem>>, vector<1x32xf32>
      tpu.vector_store %arg16[%363, %c0_273], %362 {strides = array<i32>} : memref<162x64xf32, #tpu.memory_space<vmem>>, vector<1x32xf32>,
      %c8_i32_274 = arith.constant 8 : i32
      %365 = arith.muli %arg21, %c8_i32_274 : i32
      %c6_i32 = arith.constant 6 : i32
      %366 = arith.addi %365, %c6_i32 : i32
      %367 = arith.index_cast %366 : i32 to index
      %368 = memref.load %arg2[%367] : memref<42xi32, #tpu.memory_space<smem>>
      %369 = arith.index_cast %368 : i32 to index
      %c0_275 = arith.constant 0 : index
      %370 = vector.load %arg15[%369, %c0_275] : memref<336x32xf32, #tpu.memory_space<vmem>>, vector<1x32xf32>
      %371 = arith.index_cast %366 : i32 to index
      %c0_276 = arith.constant 0 : index
      %372 = vector.load %arg16[%371, %c0_276] : memref<162x64xf32, #tpu.memory_space<vmem>>, vector<1x32xf32>
      tpu.vector_store %arg16[%371, %c0_276], %370 {strides = array<i32>} : memref<162x64xf32, #tpu.memory_space<vmem>>, vector<1x32xf32>,
      %c8_i32_277 = arith.constant 8 : i32
      %373 = arith.muli %arg21, %c8_i32_277 : i32
      %c7_i32 = arith.constant 7 : i32
      %374 = arith.addi %373, %c7_i32 : i32
      %375 = arith.index_cast %374 : i32 to index
      %376 = memref.load %arg2[%375] : memref<42xi32, #tpu.memory_space<smem>>
      %377 = arith.index_cast %376 : i32 to index
      %c0_278 = arith.constant 0 : index
      %378 = vector.load %arg15[%377, %c0_278] : memref<336x32xf32, #tpu.memory_space<vmem>>, vector<1x32xf32>
      %379 = arith.index_cast %374 : i32 to index
      %c0_279 = arith.constant 0 : index
      %380 = vector.load %arg16[%379, %c0_279] : memref<162x64xf32, #tpu.memory_space<vmem>>, vector<1x32xf32>
      tpu.vector_store %arg16[%379, %c0_279], %378 {strides = array<i32>} : memref<162x64xf32, #tpu.memory_space<vmem>>, vector<1x32xf32>,
    }
    %c5_i32_13 = arith.constant 5 : i32
    %c40 = arith.constant 40 : index
    %22 = memref.load %arg2[%c40] : memref<42xi32, #tpu.memory_space<smem>>
    %23 = arith.index_cast %22 : i32 to index
    %c0_14 = arith.constant 0 : index
    %24 = vector.load %arg15[%23, %c0_14] : memref<336x32xf32, #tpu.memory_space<vmem>>, vector<1x32xf32>
    %c40_15 = arith.constant 40 : index
    %c0_16 = arith.constant 0 : index
    %25 = vector.load %arg16[%c40_15, %c0_16] : memref<162x64xf32, #tpu.memory_space<vmem>>, vector<1x32xf32>
    tpu.vector_store %arg16[%c40_15, %c0_16], %24 {strides = array<i32>} : memref<162x64xf32, #tpu.memory_space<vmem>>, vector<1x32xf32>,
    %c41 = arith.constant 41 : index
    %26 = memref.load %arg2[%c41] : memref<42xi32, #tpu.memory_space<smem>>
    %27 = arith.index_cast %26 : i32 to index
    %c0_17 = arith.constant 0 : index
    %28 = vector.load %arg15[%27, %c0_17] : memref<336x32xf32, #tpu.memory_space<vmem>>, vector<1x32xf32>
    %c41_18 = arith.constant 41 : index
    %c0_19 = arith.constant 0 : index
    %29 = vector.load %arg16[%c41_18, %c0_19] : memref<162x64xf32, #tpu.memory_space<vmem>>, vector<1x32xf32>
    tpu.vector_store %arg16[%c41_18, %c0_19], %28 {strides = array<i32>} : memref<162x64xf32, #tpu.memory_space<vmem>>, vector<1x32xf32>,
    %c0_i32_20 = arith.constant 0 : i32
    %c15_i32 = arith.constant 15 : i32
    %30 = arith.addi %c0_i32_20, %c15_i32 : i32
    %c1_i32_21 = arith.constant 1 : i32
    scf.for %arg21 = %c0_i32_20 to %30 step %c1_i32_21  : i32 {
      %c8_i32 = arith.constant 8 : i32
      %317 = arith.muli %arg21, %c8_i32 : i32
      %c0_i32_254 = arith.constant 0 : i32
      %318 = arith.addi %317, %c0_i32_254 : i32
      %c2_i32 = arith.constant 2 : i32
      %319 = arith.muli %c2_i32, %318 : i32
      %320 = arith.index_cast %319 : i32 to index
      %321 = memref.load %arg3[%320] : memref<240xi32, #tpu.memory_space<smem>>
      %c2_i32_255 = arith.constant 2 : i32
      %322 = arith.muli %c2_i32_255, %318 : i32
      %c1_i32_256 = arith.constant 1 : i32
      %323 = arith.addi %322, %c1_i32_256 : i32
      %324 = arith.index_cast %323 : i32 to index
      %325 = memref.load %arg3[%324] : memref<240xi32, #tpu.memory_space<smem>>
      %326 = arith.index_cast %321 : i32 to index
      %c0_257 = arith.constant 0 : index
      %327 = vector.load %arg15[%326, %c0_257] : memref<336x32xf32, #tpu.memory_space<vmem>>, vector<1x32xf32>
      %328 = arith.index_cast %325 : i32 to index
      %c0_258 = arith.constant 0 : index
      %329 = vector.load %arg15[%328, %c0_258] : memref<336x32xf32, #tpu.memory_space<vmem>>, vector<1x32xf32>
      %330 = arith.addf %327, %329 : vector<1x32xf32>
      %cst_259 = arith.constant 5.000000e-01 : f32
      %331 = vector.broadcast %cst_259 : f32 to vector<1x32xf32>
      %332 = arith.mulf %331, %330 : vector<1x32xf32>
      %c42_i32 = arith.constant 42 : i32
      %333 = arith.addi %c42_i32, %318 : i32
      %334 = arith.index_cast %333 : i32 to index
      %c0_260 = arith.constant 0 : index
      %335 = vector.load %arg16[%334, %c0_260] : memref<162x64xf32, #tpu.memory_space<vmem>>, vector<1x32xf32>
      tpu.vector_store %arg16[%334, %c0_260], %332 {strides = array<i32>} : memref<162x64xf32, #tpu.memory_space<vmem>>, vector<1x32xf32>,
      %c8_i32_261 = arith.constant 8 : i32
      %336 = arith.muli %arg21, %c8_i32_261 : i32
      %c1_i32_262 = arith.constant 1 : i32
      %337 = arith.addi %336, %c1_i32_262 : i32
      %c2_i32_263 = arith.constant 2 : i32
      %338 = arith.muli %c2_i32_263, %337 : i32
      %339 = arith.index_cast %338 : i32 to index
      %340 = memref.load %arg3[%339] : memref<240xi32, #tpu.memory_space<smem>>
      %c2_i32_264 = arith.constant 2 : i32
      %341 = arith.muli %c2_i32_264, %337 : i32
      %c1_i32_265 = arith.constant 1 : i32
      %342 = arith.addi %341, %c1_i32_265 : i32
      %343 = arith.index_cast %342 : i32 to index
      %344 = memref.load %arg3[%343] : memref<240xi32, #tpu.memory_space<smem>>
      %345 = arith.index_cast %340 : i32 to index
      %c0_266 = arith.constant 0 : index
      %346 = vector.load %arg15[%345, %c0_266] : memref<336x32xf32, #tpu.memory_space<vmem>>, vector<1x32xf32>
      %347 = arith.index_cast %344 : i32 to index
      %c0_267 = arith.constant 0 : index
      %348 = vector.load %arg15[%347, %c0_267] : memref<336x32xf32, #tpu.memory_space<vmem>>, vector<1x32xf32>
      %349 = arith.addf %346, %348 : vector<1x32xf32>
      %cst_268 = arith.constant 5.000000e-01 : f32
      %350 = vector.broadcast %cst_268 : f32 to vector<1x32xf32>
      %351 = arith.mulf %350, %349 : vector<1x32xf32>
      %c42_i32_269 = arith.constant 42 : i32
      %352 = arith.addi %c42_i32_269, %337 : i32
      %353 = arith.index_cast %352 : i32 to index
      %c0_270 = arith.constant 0 : index
      %354 = vector.load %arg16[%353, %c0_270] : memref<162x64xf32, #tpu.memory_space<vmem>>, vector<1x32xf32>
      tpu.vector_store %arg16[%353, %c0_270], %351 {strides = array<i32>} : memref<162x64xf32, #tpu.memory_space<vmem>>, vector<1x32xf32>,
      %c8_i32_271 = arith.constant 8 : i32
      %355 = arith.muli %arg21, %c8_i32_271 : i32
      %c2_i32_272 = arith.constant 2 : i32
      %356 = arith.addi %355, %c2_i32_272 : i32
      %c2_i32_273 = arith.constant 2 : i32
      %357 = arith.muli %c2_i32_273, %356 : i32
      %358 = arith.index_cast %357 : i32 to index
      %359 = memref.load %arg3[%358] : memref<240xi32, #tpu.memory_space<smem>>
      %c2_i32_274 = arith.constant 2 : i32
      %360 = arith.muli %c2_i32_274, %356 : i32
      %c1_i32_275 = arith.constant 1 : i32
      %361 = arith.addi %360, %c1_i32_275 : i32
      %362 = arith.index_cast %361 : i32 to index
      %363 = memref.load %arg3[%362] : memref<240xi32, #tpu.memory_space<smem>>
      %364 = arith.index_cast %359 : i32 to index
      %c0_276 = arith.constant 0 : index
      %365 = vector.load %arg15[%364, %c0_276] : memref<336x32xf32, #tpu.memory_space<vmem>>, vector<1x32xf32>
      %366 = arith.index_cast %363 : i32 to index
      %c0_277 = arith.constant 0 : index
      %367 = vector.load %arg15[%366, %c0_277] : memref<336x32xf32, #tpu.memory_space<vmem>>, vector<1x32xf32>
      %368 = arith.addf %365, %367 : vector<1x32xf32>
      %cst_278 = arith.constant 5.000000e-01 : f32
      %369 = vector.broadcast %cst_278 : f32 to vector<1x32xf32>
      %370 = arith.mulf %369, %368 : vector<1x32xf32>
      %c42_i32_279 = arith.constant 42 : i32
      %371 = arith.addi %c42_i32_279, %356 : i32
      %372 = arith.index_cast %371 : i32 to index
      %c0_280 = arith.constant 0 : index
      %373 = vector.load %arg16[%372, %c0_280] : memref<162x64xf32, #tpu.memory_space<vmem>>, vector<1x32xf32>
      tpu.vector_store %arg16[%372, %c0_280], %370 {strides = array<i32>} : memref<162x64xf32, #tpu.memory_space<vmem>>, vector<1x32xf32>,
      %c8_i32_281 = arith.constant 8 : i32
      %374 = arith.muli %arg21, %c8_i32_281 : i32
      %c3_i32 = arith.constant 3 : i32
      %375 = arith.addi %374, %c3_i32 : i32
      %c2_i32_282 = arith.constant 2 : i32
      %376 = arith.muli %c2_i32_282, %375 : i32
      %377 = arith.index_cast %376 : i32 to index
      %378 = memref.load %arg3[%377] : memref<240xi32, #tpu.memory_space<smem>>
      %c2_i32_283 = arith.constant 2 : i32
      %379 = arith.muli %c2_i32_283, %375 : i32
      %c1_i32_284 = arith.constant 1 : i32
      %380 = arith.addi %379, %c1_i32_284 : i32
      %381 = arith.index_cast %380 : i32 to index
      %382 = memref.load %arg3[%381] : memref<240xi32, #tpu.memory_space<smem>>
      %383 = arith.index_cast %378 : i32 to index
      %c0_285 = arith.constant 0 : index
      %384 = vector.load %arg15[%383, %c0_285] : memref<336x32xf32, #tpu.memory_space<vmem>>, vector<1x32xf32>
      %385 = arith.index_cast %382 : i32 to index
      %c0_286 = arith.constant 0 : index
      %386 = vector.load %arg15[%385, %c0_286] : memref<336x32xf32, #tpu.memory_space<vmem>>, vector<1x32xf32>
      %387 = arith.addf %384, %386 : vector<1x32xf32>
      %cst_287 = arith.constant 5.000000e-01 : f32
      %388 = vector.broadcast %cst_287 : f32 to vector<1x32xf32>
      %389 = arith.mulf %388, %387 : vector<1x32xf32>
      %c42_i32_288 = arith.constant 42 : i32
      %390 = arith.addi %c42_i32_288, %375 : i32
      %391 = arith.index_cast %390 : i32 to index
      %c0_289 = arith.constant 0 : index
      %392 = vector.load %arg16[%391, %c0_289] : memref<162x64xf32, #tpu.memory_space<vmem>>, vector<1x32xf32>
      tpu.vector_store %arg16[%391, %c0_289], %389 {strides = array<i32>} : memref<162x64xf32, #tpu.memory_space<vmem>>, vector<1x32xf32>,
      %c8_i32_290 = arith.constant 8 : i32
      %393 = arith.muli %arg21, %c8_i32_290 : i32
      %c4_i32 = arith.constant 4 : i32
      %394 = arith.addi %393, %c4_i32 : i32
      %c2_i32_291 = arith.constant 2 : i32
      %395 = arith.muli %c2_i32_291, %394 : i32
      %396 = arith.index_cast %395 : i32 to index
      %397 = memref.load %arg3[%396] : memref<240xi32, #tpu.memory_space<smem>>
      %c2_i32_292 = arith.constant 2 : i32
      %398 = arith.muli %c2_i32_292, %394 : i32
      %c1_i32_293 = arith.constant 1 : i32
      %399 = arith.addi %398, %c1_i32_293 : i32
      %400 = arith.index_cast %399 : i32 to index
      %401 = memref.load %arg3[%400] : memref<240xi32, #tpu.memory_space<smem>>
      %402 = arith.index_cast %397 : i32 to index
      %c0_294 = arith.constant 0 : index
      %403 = vector.load %arg15[%402, %c0_294] : memref<336x32xf32, #tpu.memory_space<vmem>>, vector<1x32xf32>
      %404 = arith.index_cast %401 : i32 to index
      %c0_295 = arith.constant 0 : index
      %405 = vector.load %arg15[%404, %c0_295] : memref<336x32xf32, #tpu.memory_space<vmem>>, vector<1x32xf32>
      %406 = arith.addf %403, %405 : vector<1x32xf32>
      %cst_296 = arith.constant 5.000000e-01 : f32
      %407 = vector.broadcast %cst_296 : f32 to vector<1x32xf32>
      %408 = arith.mulf %407, %406 : vector<1x32xf32>
      %c42_i32_297 = arith.constant 42 : i32
      %409 = arith.addi %c42_i32_297, %394 : i32
      %410 = arith.index_cast %409 : i32 to index
      %c0_298 = arith.constant 0 : index
      %411 = vector.load %arg16[%410, %c0_298] : memref<162x64xf32, #tpu.memory_space<vmem>>, vector<1x32xf32>
      tpu.vector_store %arg16[%410, %c0_298], %408 {strides = array<i32>} : memref<162x64xf32, #tpu.memory_space<vmem>>, vector<1x32xf32>,
      %c8_i32_299 = arith.constant 8 : i32
      %412 = arith.muli %arg21, %c8_i32_299 : i32
      %c5_i32_300 = arith.constant 5 : i32
      %413 = arith.addi %412, %c5_i32_300 : i32
      %c2_i32_301 = arith.constant 2 : i32
      %414 = arith.muli %c2_i32_301, %413 : i32
      %415 = arith.index_cast %414 : i32 to index
      %416 = memref.load %arg3[%415] : memref<240xi32, #tpu.memory_space<smem>>
      %c2_i32_302 = arith.constant 2 : i32
      %417 = arith.muli %c2_i32_302, %413 : i32
      %c1_i32_303 = arith.constant 1 : i32
      %418 = arith.addi %417, %c1_i32_303 : i32
      %419 = arith.index_cast %418 : i32 to index
      %420 = memref.load %arg3[%419] : memref<240xi32, #tpu.memory_space<smem>>
      %421 = arith.index_cast %416 : i32 to index
      %c0_304 = arith.constant 0 : index
      %422 = vector.load %arg15[%421, %c0_304] : memref<336x32xf32, #tpu.memory_space<vmem>>, vector<1x32xf32>
      %423 = arith.index_cast %420 : i32 to index
      %c0_305 = arith.constant 0 : index
      %424 = vector.load %arg15[%423, %c0_305] : memref<336x32xf32, #tpu.memory_space<vmem>>, vector<1x32xf32>
      %425 = arith.addf %422, %424 : vector<1x32xf32>
      %cst_306 = arith.constant 5.000000e-01 : f32
      %426 = vector.broadcast %cst_306 : f32 to vector<1x32xf32>
      %427 = arith.mulf %426, %425 : vector<1x32xf32>
      %c42_i32_307 = arith.constant 42 : i32
      %428 = arith.addi %c42_i32_307, %413 : i32
      %429 = arith.index_cast %428 : i32 to index
      %c0_308 = arith.constant 0 : index
      %430 = vector.load %arg16[%429, %c0_308] : memref<162x64xf32, #tpu.memory_space<vmem>>, vector<1x32xf32>
      tpu.vector_store %arg16[%429, %c0_308], %427 {strides = array<i32>} : memref<162x64xf32, #tpu.memory_space<vmem>>, vector<1x32xf32>,
      %c8_i32_309 = arith.constant 8 : i32
      %431 = arith.muli %arg21, %c8_i32_309 : i32
      %c6_i32 = arith.constant 6 : i32
      %432 = arith.addi %431, %c6_i32 : i32
      %c2_i32_310 = arith.constant 2 : i32
      %433 = arith.muli %c2_i32_310, %432 : i32
      %434 = arith.index_cast %433 : i32 to index
      %435 = memref.load %arg3[%434] : memref<240xi32, #tpu.memory_space<smem>>
      %c2_i32_311 = arith.constant 2 : i32
      %436 = arith.muli %c2_i32_311, %432 : i32
      %c1_i32_312 = arith.constant 1 : i32
      %437 = arith.addi %436, %c1_i32_312 : i32
      %438 = arith.index_cast %437 : i32 to index
      %439 = memref.load %arg3[%438] : memref<240xi32, #tpu.memory_space<smem>>
      %440 = arith.index_cast %435 : i32 to index
      %c0_313 = arith.constant 0 : index
      %441 = vector.load %arg15[%440, %c0_313] : memref<336x32xf32, #tpu.memory_space<vmem>>, vector<1x32xf32>
      %442 = arith.index_cast %439 : i32 to index
      %c0_314 = arith.constant 0 : index
      %443 = vector.load %arg15[%442, %c0_314] : memref<336x32xf32, #tpu.memory_space<vmem>>, vector<1x32xf32>
      %444 = arith.addf %441, %443 : vector<1x32xf32>
      %cst_315 = arith.constant 5.000000e-01 : f32
      %445 = vector.broadcast %cst_315 : f32 to vector<1x32xf32>
      %446 = arith.mulf %445, %444 : vector<1x32xf32>
      %c42_i32_316 = arith.constant 42 : i32
      %447 = arith.addi %c42_i32_316, %432 : i32
      %448 = arith.index_cast %447 : i32 to index
      %c0_317 = arith.constant 0 : index
      %449 = vector.load %arg16[%448, %c0_317] : memref<162x64xf32, #tpu.memory_space<vmem>>, vector<1x32xf32>
      tpu.vector_store %arg16[%448, %c0_317], %446 {strides = array<i32>} : memref<162x64xf32, #tpu.memory_space<vmem>>, vector<1x32xf32>,
      %c8_i32_318 = arith.constant 8 : i32
      %450 = arith.muli %arg21, %c8_i32_318 : i32
      %c7_i32 = arith.constant 7 : i32
      %451 = arith.addi %450, %c7_i32 : i32
      %c2_i32_319 = arith.constant 2 : i32
      %452 = arith.muli %c2_i32_319, %451 : i32
      %453 = arith.index_cast %452 : i32 to index
      %454 = memref.load %arg3[%453] : memref<240xi32, #tpu.memory_space<smem>>
      %c2_i32_320 = arith.constant 2 : i32
      %455 = arith.muli %c2_i32_320, %451 : i32
      %c1_i32_321 = arith.constant 1 : i32
      %456 = arith.addi %455, %c1_i32_321 : i32
      %457 = arith.index_cast %456 : i32 to index
      %458 = memref.load %arg3[%457] : memref<240xi32, #tpu.memory_space<smem>>
      %459 = arith.index_cast %454 : i32 to index
      %c0_322 = arith.constant 0 : index
      %460 = vector.load %arg15[%459, %c0_322] : memref<336x32xf32, #tpu.memory_space<vmem>>, vector<1x32xf32>
      %461 = arith.index_cast %458 : i32 to index
      %c0_323 = arith.constant 0 : index
      %462 = vector.load %arg15[%461, %c0_323] : memref<336x32xf32, #tpu.memory_space<vmem>>, vector<1x32xf32>
      %463 = arith.addf %460, %462 : vector<1x32xf32>
      %cst_324 = arith.constant 5.000000e-01 : f32
      %464 = vector.broadcast %cst_324 : f32 to vector<1x32xf32>
      %465 = arith.mulf %464, %463 : vector<1x32xf32>
      %c42_i32_325 = arith.constant 42 : i32
      %466 = arith.addi %c42_i32_325, %451 : i32
      %467 = arith.index_cast %466 : i32 to index
      %c0_326 = arith.constant 0 : index
      %468 = vector.load %arg16[%467, %c0_326] : memref<162x64xf32, #tpu.memory_space<vmem>>, vector<1x32xf32>
      tpu.vector_store %arg16[%467, %c0_326], %465 {strides = array<i32>} : memref<162x64xf32, #tpu.memory_space<vmem>>, vector<1x32xf32>,
    }
    %c15_i32_22 = arith.constant 15 : i32
    %c0_23 = arith.constant 0 : index
    %c0_24 = arith.constant 0 : index
    %31 = vector.load %arg5[%c0_23, %c0_24] : memref<162x32xf32, #tpu.memory_space<vmem>>, vector<162x32xf32>
    %c0_25 = arith.constant 0 : index
    %c32 = arith.constant 32 : index
    %32 = vector.load %arg16[%c0_25, %c32] : memref<162x64xf32, #tpu.memory_space<vmem>>, vector<162x32xf32>
    tpu.vector_store %arg16[%c0_25, %c32], %31 {strides = array<i32>} : memref<162x64xf32, #tpu.memory_space<vmem>>, vector<162x32xf32>,
    %c0_i32_26 = arith.constant 0 : i32
    %c20_i32 = arith.constant 20 : i32
    %33 = arith.addi %c0_i32_26, %c20_i32 : i32
    %c1_i32_27 = arith.constant 1 : i32
    scf.for %arg21 = %c0_i32_26 to %33 step %c1_i32_27  : i32 {
      %c8_i32 = arith.constant 8 : i32
      %317 = arith.muli %arg21, %c8_i32 : i32
      %c0_i32_254 = arith.constant 0 : i32
      %318 = arith.addi %317, %c0_i32_254 : i32
      %c7_i32 = arith.constant 7 : i32
      %319 = arith.muli %318, %c7_i32 : i32
      %c0_i32_255 = arith.constant 0 : i32
      %320 = arith.addi %319, %c0_i32_255 : i32
      %321 = arith.index_cast %320 : i32 to index
      %322 = memref.load %arg1[%321] : memref<1134xi32, #tpu.memory_space<smem>>
      %323 = arith.index_cast %322 : i32 to index
      %c0_256 = arith.constant 0 : index
      %324 = vector.load %arg16[%323, %c0_256] : memref<162x64xf32, #tpu.memory_space<vmem>>, vector<1x64xf32>
      %c0_257 = arith.constant 0 : index
      %325 = arith.index_cast %318 : i32 to index
      %c0_258 = arith.constant 0 : index
      %326 = vector.load %arg17[%c0_257, %325, %c0_258] : memref<7x162x64xf32, #tpu.memory_space<vmem>>, vector<1x1x64xf32>
      %327 = vector.shape_cast %326 : vector<1x1x64xf32> to vector<1x64xf32>
      %328 = vector.shape_cast %324 : vector<1x64xf32> to vector<1x1x64xf32>
      tpu.vector_store %arg17[%c0_257, %325, %c0_258], %328 {strides = array<i32>} : memref<7x162x64xf32, #tpu.memory_space<vmem>>, vector<1x1x64xf32>,
      %c1_i32_259 = arith.constant 1 : i32
      %329 = arith.addi %319, %c1_i32_259 : i32
      %330 = arith.index_cast %329 : i32 to index
      %331 = memref.load %arg1[%330] : memref<1134xi32, #tpu.memory_space<smem>>
      %332 = arith.index_cast %331 : i32 to index
      %c0_260 = arith.constant 0 : index
      %333 = vector.load %arg16[%332, %c0_260] : memref<162x64xf32, #tpu.memory_space<vmem>>, vector<1x64xf32>
      %c1_261 = arith.constant 1 : index
      %334 = arith.index_cast %318 : i32 to index
      %c0_262 = arith.constant 0 : index
      %335 = vector.load %arg17[%c1_261, %334, %c0_262] : memref<7x162x64xf32, #tpu.memory_space<vmem>>, vector<1x1x64xf32>
      %336 = vector.shape_cast %335 : vector<1x1x64xf32> to vector<1x64xf32>
      %337 = vector.shape_cast %333 : vector<1x64xf32> to vector<1x1x64xf32>
      tpu.vector_store %arg17[%c1_261, %334, %c0_262], %337 {strides = array<i32>} : memref<7x162x64xf32, #tpu.memory_space<vmem>>, vector<1x1x64xf32>,
      %c2_i32 = arith.constant 2 : i32
      %338 = arith.addi %319, %c2_i32 : i32
      %339 = arith.index_cast %338 : i32 to index
      %340 = memref.load %arg1[%339] : memref<1134xi32, #tpu.memory_space<smem>>
      %341 = arith.index_cast %340 : i32 to index
      %c0_263 = arith.constant 0 : index
      %342 = vector.load %arg16[%341, %c0_263] : memref<162x64xf32, #tpu.memory_space<vmem>>, vector<1x64xf32>
      %c2_264 = arith.constant 2 : index
      %343 = arith.index_cast %318 : i32 to index
      %c0_265 = arith.constant 0 : index
      %344 = vector.load %arg17[%c2_264, %343, %c0_265] : memref<7x162x64xf32, #tpu.memory_space<vmem>>, vector<1x1x64xf32>
      %345 = vector.shape_cast %344 : vector<1x1x64xf32> to vector<1x64xf32>
      %346 = vector.shape_cast %342 : vector<1x64xf32> to vector<1x1x64xf32>
      tpu.vector_store %arg17[%c2_264, %343, %c0_265], %346 {strides = array<i32>} : memref<7x162x64xf32, #tpu.memory_space<vmem>>, vector<1x1x64xf32>,
      %c3_i32 = arith.constant 3 : i32
      %347 = arith.addi %319, %c3_i32 : i32
      %348 = arith.index_cast %347 : i32 to index
      %349 = memref.load %arg1[%348] : memref<1134xi32, #tpu.memory_space<smem>>
      %350 = arith.index_cast %349 : i32 to index
      %c0_266 = arith.constant 0 : index
      %351 = vector.load %arg16[%350, %c0_266] : memref<162x64xf32, #tpu.memory_space<vmem>>, vector<1x64xf32>
      %c3_267 = arith.constant 3 : index
      %352 = arith.index_cast %318 : i32 to index
      %c0_268 = arith.constant 0 : index
      %353 = vector.load %arg17[%c3_267, %352, %c0_268] : memref<7x162x64xf32, #tpu.memory_space<vmem>>, vector<1x1x64xf32>
      %354 = vector.shape_cast %353 : vector<1x1x64xf32> to vector<1x64xf32>
      %355 = vector.shape_cast %351 : vector<1x64xf32> to vector<1x1x64xf32>
      tpu.vector_store %arg17[%c3_267, %352, %c0_268], %355 {strides = array<i32>} : memref<7x162x64xf32, #tpu.memory_space<vmem>>, vector<1x1x64xf32>,
      %c4_i32 = arith.constant 4 : i32
      %356 = arith.addi %319, %c4_i32 : i32
      %357 = arith.index_cast %356 : i32 to index
      %358 = memref.load %arg1[%357] : memref<1134xi32, #tpu.memory_space<smem>>
      %359 = arith.index_cast %358 : i32 to index
      %c0_269 = arith.constant 0 : index
      %360 = vector.load %arg16[%359, %c0_269] : memref<162x64xf32, #tpu.memory_space<vmem>>, vector<1x64xf32>
      %c4_270 = arith.constant 4 : index
      %361 = arith.index_cast %318 : i32 to index
      %c0_271 = arith.constant 0 : index
      %362 = vector.load %arg17[%c4_270, %361, %c0_271] : memref<7x162x64xf32, #tpu.memory_space<vmem>>, vector<1x1x64xf32>
      %363 = vector.shape_cast %362 : vector<1x1x64xf32> to vector<1x64xf32>
      %364 = vector.shape_cast %360 : vector<1x64xf32> to vector<1x1x64xf32>
      tpu.vector_store %arg17[%c4_270, %361, %c0_271], %364 {strides = array<i32>} : memref<7x162x64xf32, #tpu.memory_space<vmem>>, vector<1x1x64xf32>,
      %c5_i32_272 = arith.constant 5 : i32
      %365 = arith.addi %319, %c5_i32_272 : i32
      %366 = arith.index_cast %365 : i32 to index
      %367 = memref.load %arg1[%366] : memref<1134xi32, #tpu.memory_space<smem>>
      %368 = arith.index_cast %367 : i32 to index
      %c0_273 = arith.constant 0 : index
      %369 = vector.load %arg16[%368, %c0_273] : memref<162x64xf32, #tpu.memory_space<vmem>>, vector<1x64xf32>
      %c5_274 = arith.constant 5 : index
      %370 = arith.index_cast %318 : i32 to index
      %c0_275 = arith.constant 0 : index
      %371 = vector.load %arg17[%c5_274, %370, %c0_275] : memref<7x162x64xf32, #tpu.memory_space<vmem>>, vector<1x1x64xf32>
      %372 = vector.shape_cast %371 : vector<1x1x64xf32> to vector<1x64xf32>
      %373 = vector.shape_cast %369 : vector<1x64xf32> to vector<1x1x64xf32>
      tpu.vector_store %arg17[%c5_274, %370, %c0_275], %373 {strides = array<i32>} : memref<7x162x64xf32, #tpu.memory_space<vmem>>, vector<1x1x64xf32>,
      %c6_i32 = arith.constant 6 : i32
      %374 = arith.addi %319, %c6_i32 : i32
      %375 = arith.index_cast %374 : i32 to index
      %376 = memref.load %arg1[%375] : memref<1134xi32, #tpu.memory_space<smem>>
      %377 = arith.index_cast %376 : i32 to index
      %c0_276 = arith.constant 0 : index
      %378 = vector.load %arg16[%377, %c0_276] : memref<162x64xf32, #tpu.memory_space<vmem>>, vector<1x64xf32>
      %c6_277 = arith.constant 6 : index
      %379 = arith.index_cast %318 : i32 to index
      %c0_278 = arith.constant 0 : index
      %380 = vector.load %arg17[%c6_277, %379, %c0_278] : memref<7x162x64xf32, #tpu.memory_space<vmem>>, vector<1x1x64xf32>
      %381 = vector.shape_cast %380 : vector<1x1x64xf32> to vector<1x64xf32>
      %382 = vector.shape_cast %378 : vector<1x64xf32> to vector<1x1x64xf32>
      tpu.vector_store %arg17[%c6_277, %379, %c0_278], %382 {strides = array<i32>} : memref<7x162x64xf32, #tpu.memory_space<vmem>>, vector<1x1x64xf32>,
      %c8_i32_279 = arith.constant 8 : i32
      %383 = arith.muli %arg21, %c8_i32_279 : i32
      %c1_i32_280 = arith.constant 1 : i32
      %384 = arith.addi %383, %c1_i32_280 : i32
      %c7_i32_281 = arith.constant 7 : i32
      %385 = arith.muli %384, %c7_i32_281 : i32
      %c0_i32_282 = arith.constant 0 : i32
      %386 = arith.addi %385, %c0_i32_282 : i32
      %387 = arith.index_cast %386 : i32 to index
      %388 = memref.load %arg1[%387] : memref<1134xi32, #tpu.memory_space<smem>>
      %389 = arith.index_cast %388 : i32 to index
      %c0_283 = arith.constant 0 : index
      %390 = vector.load %arg16[%389, %c0_283] : memref<162x64xf32, #tpu.memory_space<vmem>>, vector<1x64xf32>
      %c0_284 = arith.constant 0 : index
      %391 = arith.index_cast %384 : i32 to index
      %c0_285 = arith.constant 0 : index
      %392 = vector.load %arg17[%c0_284, %391, %c0_285] : memref<7x162x64xf32, #tpu.memory_space<vmem>>, vector<1x1x64xf32>
      %393 = vector.shape_cast %392 : vector<1x1x64xf32> to vector<1x64xf32>
      %394 = vector.shape_cast %390 : vector<1x64xf32> to vector<1x1x64xf32>
      tpu.vector_store %arg17[%c0_284, %391, %c0_285], %394 {strides = array<i32>} : memref<7x162x64xf32, #tpu.memory_space<vmem>>, vector<1x1x64xf32>,
      %c1_i32_286 = arith.constant 1 : i32
      %395 = arith.addi %385, %c1_i32_286 : i32
      %396 = arith.index_cast %395 : i32 to index
      %397 = memref.load %arg1[%396] : memref<1134xi32, #tpu.memory_space<smem>>
      %398 = arith.index_cast %397 : i32 to index
      %c0_287 = arith.constant 0 : index
      %399 = vector.load %arg16[%398, %c0_287] : memref<162x64xf32, #tpu.memory_space<vmem>>, vector<1x64xf32>
      %c1_288 = arith.constant 1 : index
      %400 = arith.index_cast %384 : i32 to index
      %c0_289 = arith.constant 0 : index
      %401 = vector.load %arg17[%c1_288, %400, %c0_289] : memref<7x162x64xf32, #tpu.memory_space<vmem>>, vector<1x1x64xf32>
      %402 = vector.shape_cast %401 : vector<1x1x64xf32> to vector<1x64xf32>
      %403 = vector.shape_cast %399 : vector<1x64xf32> to vector<1x1x64xf32>
      tpu.vector_store %arg17[%c1_288, %400, %c0_289], %403 {strides = array<i32>} : memref<7x162x64xf32, #tpu.memory_space<vmem>>, vector<1x1x64xf32>,
      %c2_i32_290 = arith.constant 2 : i32
      %404 = arith.addi %385, %c2_i32_290 : i32
      %405 = arith.index_cast %404 : i32 to index
      %406 = memref.load %arg1[%405] : memref<1134xi32, #tpu.memory_space<smem>>
      %407 = arith.index_cast %406 : i32 to index
      %c0_291 = arith.constant 0 : index
      %408 = vector.load %arg16[%407, %c0_291] : memref<162x64xf32, #tpu.memory_space<vmem>>, vector<1x64xf32>
      %c2_292 = arith.constant 2 : index
      %409 = arith.index_cast %384 : i32 to index
      %c0_293 = arith.constant 0 : index
      %410 = vector.load %arg17[%c2_292, %409, %c0_293] : memref<7x162x64xf32, #tpu.memory_space<vmem>>, vector<1x1x64xf32>
      %411 = vector.shape_cast %410 : vector<1x1x64xf32> to vector<1x64xf32>
      %412 = vector.shape_cast %408 : vector<1x64xf32> to vector<1x1x64xf32>
      tpu.vector_store %arg17[%c2_292, %409, %c0_293], %412 {strides = array<i32>} : memref<7x162x64xf32, #tpu.memory_space<vmem>>, vector<1x1x64xf32>,
      %c3_i32_294 = arith.constant 3 : i32
      %413 = arith.addi %385, %c3_i32_294 : i32
      %414 = arith.index_cast %413 : i32 to index
      %415 = memref.load %arg1[%414] : memref<1134xi32, #tpu.memory_space<smem>>
      %416 = arith.index_cast %415 : i32 to index
      %c0_295 = arith.constant 0 : index
      %417 = vector.load %arg16[%416, %c0_295] : memref<162x64xf32, #tpu.memory_space<vmem>>, vector<1x64xf32>
      %c3_296 = arith.constant 3 : index
      %418 = arith.index_cast %384 : i32 to index
      %c0_297 = arith.constant 0 : index
      %419 = vector.load %arg17[%c3_296, %418, %c0_297] : memref<7x162x64xf32, #tpu.memory_space<vmem>>, vector<1x1x64xf32>
      %420 = vector.shape_cast %419 : vector<1x1x64xf32> to vector<1x64xf32>
      %421 = vector.shape_cast %417 : vector<1x64xf32> to vector<1x1x64xf32>
      tpu.vector_store %arg17[%c3_296, %418, %c0_297], %421 {strides = array<i32>} : memref<7x162x64xf32, #tpu.memory_space<vmem>>, vector<1x1x64xf32>,
      %c4_i32_298 = arith.constant 4 : i32
      %422 = arith.addi %385, %c4_i32_298 : i32
      %423 = arith.index_cast %422 : i32 to index
      %424 = memref.load %arg1[%423] : memref<1134xi32, #tpu.memory_space<smem>>
      %425 = arith.index_cast %424 : i32 to index
      %c0_299 = arith.constant 0 : index
      %426 = vector.load %arg16[%425, %c0_299] : memref<162x64xf32, #tpu.memory_space<vmem>>, vector<1x64xf32>
      %c4_300 = arith.constant 4 : index
      %427 = arith.index_cast %384 : i32 to index
      %c0_301 = arith.constant 0 : index
      %428 = vector.load %arg17[%c4_300, %427, %c0_301] : memref<7x162x64xf32, #tpu.memory_space<vmem>>, vector<1x1x64xf32>
      %429 = vector.shape_cast %428 : vector<1x1x64xf32> to vector<1x64xf32>
      %430 = vector.shape_cast %426 : vector<1x64xf32> to vector<1x1x64xf32>
      tpu.vector_store %arg17[%c4_300, %427, %c0_301], %430 {strides = array<i32>} : memref<7x162x64xf32, #tpu.memory_space<vmem>>, vector<1x1x64xf32>,
      %c5_i32_302 = arith.constant 5 : i32
      %431 = arith.addi %385, %c5_i32_302 : i32
      %432 = arith.index_cast %431 : i32 to index
      %433 = memref.load %arg1[%432] : memref<1134xi32, #tpu.memory_space<smem>>
      %434 = arith.index_cast %433 : i32 to index
      %c0_303 = arith.constant 0 : index
      %435 = vector.load %arg16[%434, %c0_303] : memref<162x64xf32, #tpu.memory_space<vmem>>, vector<1x64xf32>
      %c5_304 = arith.constant 5 : index
      %436 = arith.index_cast %384 : i32 to index
      %c0_305 = arith.constant 0 : index
      %437 = vector.load %arg17[%c5_304, %436, %c0_305] : memref<7x162x64xf32, #tpu.memory_space<vmem>>, vector<1x1x64xf32>
      %438 = vector.shape_cast %437 : vector<1x1x64xf32> to vector<1x64xf32>
      %439 = vector.shape_cast %435 : vector<1x64xf32> to vector<1x1x64xf32>
      tpu.vector_store %arg17[%c5_304, %436, %c0_305], %439 {strides = array<i32>} : memref<7x162x64xf32, #tpu.memory_space<vmem>>, vector<1x1x64xf32>,
      %c6_i32_306 = arith.constant 6 : i32
      %440 = arith.addi %385, %c6_i32_306 : i32
      %441 = arith.index_cast %440 : i32 to index
      %442 = memref.load %arg1[%441] : memref<1134xi32, #tpu.memory_space<smem>>
      %443 = arith.index_cast %442 : i32 to index
      %c0_307 = arith.constant 0 : index
      %444 = vector.load %arg16[%443, %c0_307] : memref<162x64xf32, #tpu.memory_space<vmem>>, vector<1x64xf32>
      %c6_308 = arith.constant 6 : index
      %445 = arith.index_cast %384 : i32 to index
      %c0_309 = arith.constant 0 : index
      %446 = vector.load %arg17[%c6_308, %445, %c0_309] : memref<7x162x64xf32, #tpu.memory_space<vmem>>, vector<1x1x64xf32>
      %447 = vector.shape_cast %446 : vector<1x1x64xf32> to vector<1x64xf32>
      %448 = vector.shape_cast %444 : vector<1x64xf32> to vector<1x1x64xf32>
      tpu.vector_store %arg17[%c6_308, %445, %c0_309], %448 {strides = array<i32>} : memref<7x162x64xf32, #tpu.memory_space<vmem>>, vector<1x1x64xf32>,
      %c8_i32_310 = arith.constant 8 : i32
      %449 = arith.muli %arg21, %c8_i32_310 : i32
      %c2_i32_311 = arith.constant 2 : i32
      %450 = arith.addi %449, %c2_i32_311 : i32
      %c7_i32_312 = arith.constant 7 : i32
      %451 = arith.muli %450, %c7_i32_312 : i32
      %c0_i32_313 = arith.constant 0 : i32
      %452 = arith.addi %451, %c0_i32_313 : i32
      %453 = arith.index_cast %452 : i32 to index
      %454 = memref.load %arg1[%453] : memref<1134xi32, #tpu.memory_space<smem>>
      %455 = arith.index_cast %454 : i32 to index
      %c0_314 = arith.constant 0 : index
      %456 = vector.load %arg16[%455, %c0_314] : memref<162x64xf32, #tpu.memory_space<vmem>>, vector<1x64xf32>
      %c0_315 = arith.constant 0 : index
      %457 = arith.index_cast %450 : i32 to index
      %c0_316 = arith.constant 0 : index
      %458 = vector.load %arg17[%c0_315, %457, %c0_316] : memref<7x162x64xf32, #tpu.memory_space<vmem>>, vector<1x1x64xf32>
      %459 = vector.shape_cast %458 : vector<1x1x64xf32> to vector<1x64xf32>
      %460 = vector.shape_cast %456 : vector<1x64xf32> to vector<1x1x64xf32>
      tpu.vector_store %arg17[%c0_315, %457, %c0_316], %460 {strides = array<i32>} : memref<7x162x64xf32, #tpu.memory_space<vmem>>, vector<1x1x64xf32>,
      %c1_i32_317 = arith.constant 1 : i32
      %461 = arith.addi %451, %c1_i32_317 : i32
      %462 = arith.index_cast %461 : i32 to index
      %463 = memref.load %arg1[%462] : memref<1134xi32, #tpu.memory_space<smem>>
      %464 = arith.index_cast %463 : i32 to index
      %c0_318 = arith.constant 0 : index
      %465 = vector.load %arg16[%464, %c0_318] : memref<162x64xf32, #tpu.memory_space<vmem>>, vector<1x64xf32>
      %c1_319 = arith.constant 1 : index
      %466 = arith.index_cast %450 : i32 to index
      %c0_320 = arith.constant 0 : index
      %467 = vector.load %arg17[%c1_319, %466, %c0_320] : memref<7x162x64xf32, #tpu.memory_space<vmem>>, vector<1x1x64xf32>
      %468 = vector.shape_cast %467 : vector<1x1x64xf32> to vector<1x64xf32>
      %469 = vector.shape_cast %465 : vector<1x64xf32> to vector<1x1x64xf32>
      tpu.vector_store %arg17[%c1_319, %466, %c0_320], %469 {strides = array<i32>} : memref<7x162x64xf32, #tpu.memory_space<vmem>>, vector<1x1x64xf32>,
      %c2_i32_321 = arith.constant 2 : i32
      %470 = arith.addi %451, %c2_i32_321 : i32
      %471 = arith.index_cast %470 : i32 to index
      %472 = memref.load %arg1[%471] : memref<1134xi32, #tpu.memory_space<smem>>
      %473 = arith.index_cast %472 : i32 to index
      %c0_322 = arith.constant 0 : index
      %474 = vector.load %arg16[%473, %c0_322] : memref<162x64xf32, #tpu.memory_space<vmem>>, vector<1x64xf32>
      %c2_323 = arith.constant 2 : index
      %475 = arith.index_cast %450 : i32 to index
      %c0_324 = arith.constant 0 : index
      %476 = vector.load %arg17[%c2_323, %475, %c0_324] : memref<7x162x64xf32, #tpu.memory_space<vmem>>, vector<1x1x64xf32>
      %477 = vector.shape_cast %476 : vector<1x1x64xf32> to vector<1x64xf32>
      %478 = vector.shape_cast %474 : vector<1x64xf32> to vector<1x1x64xf32>
      tpu.vector_store %arg17[%c2_323, %475, %c0_324], %478 {strides = array<i32>} : memref<7x162x64xf32, #tpu.memory_space<vmem>>, vector<1x1x64xf32>,
      %c3_i32_325 = arith.constant 3 : i32
      %479 = arith.addi %451, %c3_i32_325 : i32
      %480 = arith.index_cast %479 : i32 to index
      %481 = memref.load %arg1[%480] : memref<1134xi32, #tpu.memory_space<smem>>
      %482 = arith.index_cast %481 : i32 to index
      %c0_326 = arith.constant 0 : index
      %483 = vector.load %arg16[%482, %c0_326] : memref<162x64xf32, #tpu.memory_space<vmem>>, vector<1x64xf32>
      %c3_327 = arith.constant 3 : index
      %484 = arith.index_cast %450 : i32 to index
      %c0_328 = arith.constant 0 : index
      %485 = vector.load %arg17[%c3_327, %484, %c0_328] : memref<7x162x64xf32, #tpu.memory_space<vmem>>, vector<1x1x64xf32>
      %486 = vector.shape_cast %485 : vector<1x1x64xf32> to vector<1x64xf32>
      %487 = vector.shape_cast %483 : vector<1x64xf32> to vector<1x1x64xf32>
      tpu.vector_store %arg17[%c3_327, %484, %c0_328], %487 {strides = array<i32>} : memref<7x162x64xf32, #tpu.memory_space<vmem>>, vector<1x1x64xf32>,
      %c4_i32_329 = arith.constant 4 : i32
      %488 = arith.addi %451, %c4_i32_329 : i32
      %489 = arith.index_cast %488 : i32 to index
      %490 = memref.load %arg1[%489] : memref<1134xi32, #tpu.memory_space<smem>>
      %491 = arith.index_cast %490 : i32 to index
      %c0_330 = arith.constant 0 : index
      %492 = vector.load %arg16[%491, %c0_330] : memref<162x64xf32, #tpu.memory_space<vmem>>, vector<1x64xf32>
      %c4_331 = arith.constant 4 : index
      %493 = arith.index_cast %450 : i32 to index
      %c0_332 = arith.constant 0 : index
      %494 = vector.load %arg17[%c4_331, %493, %c0_332] : memref<7x162x64xf32, #tpu.memory_space<vmem>>, vector<1x1x64xf32>
      %495 = vector.shape_cast %494 : vector<1x1x64xf32> to vector<1x64xf32>
      %496 = vector.shape_cast %492 : vector<1x64xf32> to vector<1x1x64xf32>
      tpu.vector_store %arg17[%c4_331, %493, %c0_332], %496 {strides = array<i32>} : memref<7x162x64xf32, #tpu.memory_space<vmem>>, vector<1x1x64xf32>,
      %c5_i32_333 = arith.constant 5 : i32
      %497 = arith.addi %451, %c5_i32_333 : i32
      %498 = arith.index_cast %497 : i32 to index
      %499 = memref.load %arg1[%498] : memref<1134xi32, #tpu.memory_space<smem>>
      %500 = arith.index_cast %499 : i32 to index
      %c0_334 = arith.constant 0 : index
      %501 = vector.load %arg16[%500, %c0_334] : memref<162x64xf32, #tpu.memory_space<vmem>>, vector<1x64xf32>
      %c5_335 = arith.constant 5 : index
      %502 = arith.index_cast %450 : i32 to index
      %c0_336 = arith.constant 0 : index
      %503 = vector.load %arg17[%c5_335, %502, %c0_336] : memref<7x162x64xf32, #tpu.memory_space<vmem>>, vector<1x1x64xf32>
      %504 = vector.shape_cast %503 : vector<1x1x64xf32> to vector<1x64xf32>
      %505 = vector.shape_cast %501 : vector<1x64xf32> to vector<1x1x64xf32>
      tpu.vector_store %arg17[%c5_335, %502, %c0_336], %505 {strides = array<i32>} : memref<7x162x64xf32, #tpu.memory_space<vmem>>, vector<1x1x64xf32>,
      %c6_i32_337 = arith.constant 6 : i32
      %506 = arith.addi %451, %c6_i32_337 : i32
      %507 = arith.index_cast %506 : i32 to index
      %508 = memref.load %arg1[%507] : memref<1134xi32, #tpu.memory_space<smem>>
      %509 = arith.index_cast %508 : i32 to index
      %c0_338 = arith.constant 0 : index
      %510 = vector.load %arg16[%509, %c0_338] : memref<162x64xf32, #tpu.memory_space<vmem>>, vector<1x64xf32>
      %c6_339 = arith.constant 6 : index
      %511 = arith.index_cast %450 : i32 to index
      %c0_340 = arith.constant 0 : index
      %512 = vector.load %arg17[%c6_339, %511, %c0_340] : memref<7x162x64xf32, #tpu.memory_space<vmem>>, vector<1x1x64xf32>
      %513 = vector.shape_cast %512 : vector<1x1x64xf32> to vector<1x64xf32>
      %514 = vector.shape_cast %510 : vector<1x64xf32> to vector<1x1x64xf32>
      tpu.vector_store %arg17[%c6_339, %511, %c0_340], %514 {strides = array<i32>} : memref<7x162x64xf32, #tpu.memory_space<vmem>>, vector<1x1x64xf32>,
      %c8_i32_341 = arith.constant 8 : i32
      %515 = arith.muli %arg21, %c8_i32_341 : i32
      %c3_i32_342 = arith.constant 3 : i32
      %516 = arith.addi %515, %c3_i32_342 : i32
      %c7_i32_343 = arith.constant 7 : i32
      %517 = arith.muli %516, %c7_i32_343 : i32
      %c0_i32_344 = arith.constant 0 : i32
      %518 = arith.addi %517, %c0_i32_344 : i32
      %519 = arith.index_cast %518 : i32 to index
      %520 = memref.load %arg1[%519] : memref<1134xi32, #tpu.memory_space<smem>>
      %521 = arith.index_cast %520 : i32 to index
      %c0_345 = arith.constant 0 : index
      %522 = vector.load %arg16[%521, %c0_345] : memref<162x64xf32, #tpu.memory_space<vmem>>, vector<1x64xf32>
      %c0_346 = arith.constant 0 : index
      %523 = arith.index_cast %516 : i32 to index
      %c0_347 = arith.constant 0 : index
      %524 = vector.load %arg17[%c0_346, %523, %c0_347] : memref<7x162x64xf32, #tpu.memory_space<vmem>>, vector<1x1x64xf32>
      %525 = vector.shape_cast %524 : vector<1x1x64xf32> to vector<1x64xf32>
      %526 = vector.shape_cast %522 : vector<1x64xf32> to vector<1x1x64xf32>
      tpu.vector_store %arg17[%c0_346, %523, %c0_347], %526 {strides = array<i32>} : memref<7x162x64xf32, #tpu.memory_space<vmem>>, vector<1x1x64xf32>,
      %c1_i32_348 = arith.constant 1 : i32
      %527 = arith.addi %517, %c1_i32_348 : i32
      %528 = arith.index_cast %527 : i32 to index
      %529 = memref.load %arg1[%528] : memref<1134xi32, #tpu.memory_space<smem>>
      %530 = arith.index_cast %529 : i32 to index
      %c0_349 = arith.constant 0 : index
      %531 = vector.load %arg16[%530, %c0_349] : memref<162x64xf32, #tpu.memory_space<vmem>>, vector<1x64xf32>
      %c1_350 = arith.constant 1 : index
      %532 = arith.index_cast %516 : i32 to index
      %c0_351 = arith.constant 0 : index
      %533 = vector.load %arg17[%c1_350, %532, %c0_351] : memref<7x162x64xf32, #tpu.memory_space<vmem>>, vector<1x1x64xf32>
      %534 = vector.shape_cast %533 : vector<1x1x64xf32> to vector<1x64xf32>
      %535 = vector.shape_cast %531 : vector<1x64xf32> to vector<1x1x64xf32>
      tpu.vector_store %arg17[%c1_350, %532, %c0_351], %535 {strides = array<i32>} : memref<7x162x64xf32, #tpu.memory_space<vmem>>, vector<1x1x64xf32>,
      %c2_i32_352 = arith.constant 2 : i32
      %536 = arith.addi %517, %c2_i32_352 : i32
      %537 = arith.index_cast %536 : i32 to index
      %538 = memref.load %arg1[%537] : memref<1134xi32, #tpu.memory_space<smem>>
      %539 = arith.index_cast %538 : i32 to index
      %c0_353 = arith.constant 0 : index
      %540 = vector.load %arg16[%539, %c0_353] : memref<162x64xf32, #tpu.memory_space<vmem>>, vector<1x64xf32>
      %c2_354 = arith.constant 2 : index
      %541 = arith.index_cast %516 : i32 to index
      %c0_355 = arith.constant 0 : index
      %542 = vector.load %arg17[%c2_354, %541, %c0_355] : memref<7x162x64xf32, #tpu.memory_space<vmem>>, vector<1x1x64xf32>
      %543 = vector.shape_cast %542 : vector<1x1x64xf32> to vector<1x64xf32>
      %544 = vector.shape_cast %540 : vector<1x64xf32> to vector<1x1x64xf32>
      tpu.vector_store %arg17[%c2_354, %541, %c0_355], %544 {strides = array<i32>} : memref<7x162x64xf32, #tpu.memory_space<vmem>>, vector<1x1x64xf32>,
      %c3_i32_356 = arith.constant 3 : i32
      %545 = arith.addi %517, %c3_i32_356 : i32
      %546 = arith.index_cast %545 : i32 to index
      %547 = memref.load %arg1[%546] : memref<1134xi32, #tpu.memory_space<smem>>
      %548 = arith.index_cast %547 : i32 to index
      %c0_357 = arith.constant 0 : index
      %549 = vector.load %arg16[%548, %c0_357] : memref<162x64xf32, #tpu.memory_space<vmem>>, vector<1x64xf32>
      %c3_358 = arith.constant 3 : index
      %550 = arith.index_cast %516 : i32 to index
      %c0_359 = arith.constant 0 : index
      %551 = vector.load %arg17[%c3_358, %550, %c0_359] : memref<7x162x64xf32, #tpu.memory_space<vmem>>, vector<1x1x64xf32>
      %552 = vector.shape_cast %551 : vector<1x1x64xf32> to vector<1x64xf32>
      %553 = vector.shape_cast %549 : vector<1x64xf32> to vector<1x1x64xf32>
      tpu.vector_store %arg17[%c3_358, %550, %c0_359], %553 {strides = array<i32>} : memref<7x162x64xf32, #tpu.memory_space<vmem>>, vector<1x1x64xf32>,
      %c4_i32_360 = arith.constant 4 : i32
      %554 = arith.addi %517, %c4_i32_360 : i32
      %555 = arith.index_cast %554 : i32 to index
      %556 = memref.load %arg1[%555] : memref<1134xi32, #tpu.memory_space<smem>>
      %557 = arith.index_cast %556 : i32 to index
      %c0_361 = arith.constant 0 : index
      %558 = vector.load %arg16[%557, %c0_361] : memref<162x64xf32, #tpu.memory_space<vmem>>, vector<1x64xf32>
      %c4_362 = arith.constant 4 : index
      %559 = arith.index_cast %516 : i32 to index
      %c0_363 = arith.constant 0 : index
      %560 = vector.load %arg17[%c4_362, %559, %c0_363] : memref<7x162x64xf32, #tpu.memory_space<vmem>>, vector<1x1x64xf32>
      %561 = vector.shape_cast %560 : vector<1x1x64xf32> to vector<1x64xf32>
      %562 = vector.shape_cast %558 : vector<1x64xf32> to vector<1x1x64xf32>
      tpu.vector_store %arg17[%c4_362, %559, %c0_363], %562 {strides = array<i32>} : memref<7x162x64xf32, #tpu.memory_space<vmem>>, vector<1x1x64xf32>,
      %c5_i32_364 = arith.constant 5 : i32
      %563 = arith.addi %517, %c5_i32_364 : i32
      %564 = arith.index_cast %563 : i32 to index
      %565 = memref.load %arg1[%564] : memref<1134xi32, #tpu.memory_space<smem>>
      %566 = arith.index_cast %565 : i32 to index
      %c0_365 = arith.constant 0 : index
      %567 = vector.load %arg16[%566, %c0_365] : memref<162x64xf32, #tpu.memory_space<vmem>>, vector<1x64xf32>
      %c5_366 = arith.constant 5 : index
      %568 = arith.index_cast %516 : i32 to index
      %c0_367 = arith.constant 0 : index
      %569 = vector.load %arg17[%c5_366, %568, %c0_367] : memref<7x162x64xf32, #tpu.memory_space<vmem>>, vector<1x1x64xf32>
      %570 = vector.shape_cast %569 : vector<1x1x64xf32> to vector<1x64xf32>
      %571 = vector.shape_cast %567 : vector<1x64xf32> to vector<1x1x64xf32>
      tpu.vector_store %arg17[%c5_366, %568, %c0_367], %571 {strides = array<i32>} : memref<7x162x64xf32, #tpu.memory_space<vmem>>, vector<1x1x64xf32>,
      %c6_i32_368 = arith.constant 6 : i32
      %572 = arith.addi %517, %c6_i32_368 : i32
      %573 = arith.index_cast %572 : i32 to index
      %574 = memref.load %arg1[%573] : memref<1134xi32, #tpu.memory_space<smem>>
      %575 = arith.index_cast %574 : i32 to index
      %c0_369 = arith.constant 0 : index
      %576 = vector.load %arg16[%575, %c0_369] : memref<162x64xf32, #tpu.memory_space<vmem>>, vector<1x64xf32>
      %c6_370 = arith.constant 6 : index
      %577 = arith.index_cast %516 : i32 to index
      %c0_371 = arith.constant 0 : index
      %578 = vector.load %arg17[%c6_370, %577, %c0_371] : memref<7x162x64xf32, #tpu.memory_space<vmem>>, vector<1x1x64xf32>
      %579 = vector.shape_cast %578 : vector<1x1x64xf32> to vector<1x64xf32>
      %580 = vector.shape_cast %576 : vector<1x64xf32> to vector<1x1x64xf32>
      tpu.vector_store %arg17[%c6_370, %577, %c0_371], %580 {strides = array<i32>} : memref<7x162x64xf32, #tpu.memory_space<vmem>>, vector<1x1x64xf32>,
      %c8_i32_372 = arith.constant 8 : i32
      %581 = arith.muli %arg21, %c8_i32_372 : i32
      %c4_i32_373 = arith.constant 4 : i32
      %582 = arith.addi %581, %c4_i32_373 : i32
      %c7_i32_374 = arith.constant 7 : i32
      %583 = arith.muli %582, %c7_i32_374 : i32
      %c0_i32_375 = arith.constant 0 : i32
      %584 = arith.addi %583, %c0_i32_375 : i32
      %585 = arith.index_cast %584 : i32 to index
      %586 = memref.load %arg1[%585] : memref<1134xi32, #tpu.memory_space<smem>>
      %587 = arith.index_cast %586 : i32 to index
      %c0_376 = arith.constant 0 : index
      %588 = vector.load %arg16[%587, %c0_376] : memref<162x64xf32, #tpu.memory_space<vmem>>, vector<1x64xf32>
      %c0_377 = arith.constant 0 : index
      %589 = arith.index_cast %582 : i32 to index
      %c0_378 = arith.constant 0 : index
      %590 = vector.load %arg17[%c0_377, %589, %c0_378] : memref<7x162x64xf32, #tpu.memory_space<vmem>>, vector<1x1x64xf32>
      %591 = vector.shape_cast %590 : vector<1x1x64xf32> to vector<1x64xf32>
      %592 = vector.shape_cast %588 : vector<1x64xf32> to vector<1x1x64xf32>
      tpu.vector_store %arg17[%c0_377, %589, %c0_378], %592 {strides = array<i32>} : memref<7x162x64xf32, #tpu.memory_space<vmem>>, vector<1x1x64xf32>,
      %c1_i32_379 = arith.constant 1 : i32
      %593 = arith.addi %583, %c1_i32_379 : i32
      %594 = arith.index_cast %593 : i32 to index
      %595 = memref.load %arg1[%594] : memref<1134xi32, #tpu.memory_space<smem>>
      %596 = arith.index_cast %595 : i32 to index
      %c0_380 = arith.constant 0 : index
      %597 = vector.load %arg16[%596, %c0_380] : memref<162x64xf32, #tpu.memory_space<vmem>>, vector<1x64xf32>
      %c1_381 = arith.constant 1 : index
      %598 = arith.index_cast %582 : i32 to index
      %c0_382 = arith.constant 0 : index
      %599 = vector.load %arg17[%c1_381, %598, %c0_382] : memref<7x162x64xf32, #tpu.memory_space<vmem>>, vector<1x1x64xf32>
      %600 = vector.shape_cast %599 : vector<1x1x64xf32> to vector<1x64xf32>
      %601 = vector.shape_cast %597 : vector<1x64xf32> to vector<1x1x64xf32>
      tpu.vector_store %arg17[%c1_381, %598, %c0_382], %601 {strides = array<i32>} : memref<7x162x64xf32, #tpu.memory_space<vmem>>, vector<1x1x64xf32>,
      %c2_i32_383 = arith.constant 2 : i32
      %602 = arith.addi %583, %c2_i32_383 : i32
      %603 = arith.index_cast %602 : i32 to index
      %604 = memref.load %arg1[%603] : memref<1134xi32, #tpu.memory_space<smem>>
      %605 = arith.index_cast %604 : i32 to index
      %c0_384 = arith.constant 0 : index
      %606 = vector.load %arg16[%605, %c0_384] : memref<162x64xf32, #tpu.memory_space<vmem>>, vector<1x64xf32>
      %c2_385 = arith.constant 2 : index
      %607 = arith.index_cast %582 : i32 to index
      %c0_386 = arith.constant 0 : index
      %608 = vector.load %arg17[%c2_385, %607, %c0_386] : memref<7x162x64xf32, #tpu.memory_space<vmem>>, vector<1x1x64xf32>
      %609 = vector.shape_cast %608 : vector<1x1x64xf32> to vector<1x64xf32>
      %610 = vector.shape_cast %606 : vector<1x64xf32> to vector<1x1x64xf32>
      tpu.vector_store %arg17[%c2_385, %607, %c0_386], %610 {strides = array<i32>} : memref<7x162x64xf32, #tpu.memory_space<vmem>>, vector<1x1x64xf32>,
      %c3_i32_387 = arith.constant 3 : i32
      %611 = arith.addi %583, %c3_i32_387 : i32
      %612 = arith.index_cast %611 : i32 to index
      %613 = memref.load %arg1[%612] : memref<1134xi32, #tpu.memory_space<smem>>
      %614 = arith.index_cast %613 : i32 to index
      %c0_388 = arith.constant 0 : index
      %615 = vector.load %arg16[%614, %c0_388] : memref<162x64xf32, #tpu.memory_space<vmem>>, vector<1x64xf32>
      %c3_389 = arith.constant 3 : index
      %616 = arith.index_cast %582 : i32 to index
      %c0_390 = arith.constant 0 : index
      %617 = vector.load %arg17[%c3_389, %616, %c0_390] : memref<7x162x64xf32, #tpu.memory_space<vmem>>, vector<1x1x64xf32>
      %618 = vector.shape_cast %617 : vector<1x1x64xf32> to vector<1x64xf32>
      %619 = vector.shape_cast %615 : vector<1x64xf32> to vector<1x1x64xf32>
      tpu.vector_store %arg17[%c3_389, %616, %c0_390], %619 {strides = array<i32>} : memref<7x162x64xf32, #tpu.memory_space<vmem>>, vector<1x1x64xf32>,
      %c4_i32_391 = arith.constant 4 : i32
      %620 = arith.addi %583, %c4_i32_391 : i32
      %621 = arith.index_cast %620 : i32 to index
      %622 = memref.load %arg1[%621] : memref<1134xi32, #tpu.memory_space<smem>>
      %623 = arith.index_cast %622 : i32 to index
      %c0_392 = arith.constant 0 : index
      %624 = vector.load %arg16[%623, %c0_392] : memref<162x64xf32, #tpu.memory_space<vmem>>, vector<1x64xf32>
      %c4_393 = arith.constant 4 : index
      %625 = arith.index_cast %582 : i32 to index
      %c0_394 = arith.constant 0 : index
      %626 = vector.load %arg17[%c4_393, %625, %c0_394] : memref<7x162x64xf32, #tpu.memory_space<vmem>>, vector<1x1x64xf32>
      %627 = vector.shape_cast %626 : vector<1x1x64xf32> to vector<1x64xf32>
      %628 = vector.shape_cast %624 : vector<1x64xf32> to vector<1x1x64xf32>
      tpu.vector_store %arg17[%c4_393, %625, %c0_394], %628 {strides = array<i32>} : memref<7x162x64xf32, #tpu.memory_space<vmem>>, vector<1x1x64xf32>,
      %c5_i32_395 = arith.constant 5 : i32
      %629 = arith.addi %583, %c5_i32_395 : i32
      %630 = arith.index_cast %629 : i32 to index
      %631 = memref.load %arg1[%630] : memref<1134xi32, #tpu.memory_space<smem>>
      %632 = arith.index_cast %631 : i32 to index
      %c0_396 = arith.constant 0 : index
      %633 = vector.load %arg16[%632, %c0_396] : memref<162x64xf32, #tpu.memory_space<vmem>>, vector<1x64xf32>
      %c5_397 = arith.constant 5 : index
      %634 = arith.index_cast %582 : i32 to index
      %c0_398 = arith.constant 0 : index
      %635 = vector.load %arg17[%c5_397, %634, %c0_398] : memref<7x162x64xf32, #tpu.memory_space<vmem>>, vector<1x1x64xf32>
      %636 = vector.shape_cast %635 : vector<1x1x64xf32> to vector<1x64xf32>
      %637 = vector.shape_cast %633 : vector<1x64xf32> to vector<1x1x64xf32>
      tpu.vector_store %arg17[%c5_397, %634, %c0_398], %637 {strides = array<i32>} : memref<7x162x64xf32, #tpu.memory_space<vmem>>, vector<1x1x64xf32>,
      %c6_i32_399 = arith.constant 6 : i32
      %638 = arith.addi %583, %c6_i32_399 : i32
      %639 = arith.index_cast %638 : i32 to index
      %640 = memref.load %arg1[%639] : memref<1134xi32, #tpu.memory_space<smem>>
      %641 = arith.index_cast %640 : i32 to index
      %c0_400 = arith.constant 0 : index
      %642 = vector.load %arg16[%641, %c0_400] : memref<162x64xf32, #tpu.memory_space<vmem>>, vector<1x64xf32>
      %c6_401 = arith.constant 6 : index
      %643 = arith.index_cast %582 : i32 to index
      %c0_402 = arith.constant 0 : index
      %644 = vector.load %arg17[%c6_401, %643, %c0_402] : memref<7x162x64xf32, #tpu.memory_space<vmem>>, vector<1x1x64xf32>
      %645 = vector.shape_cast %644 : vector<1x1x64xf32> to vector<1x64xf32>
      %646 = vector.shape_cast %642 : vector<1x64xf32> to vector<1x1x64xf32>
      tpu.vector_store %arg17[%c6_401, %643, %c0_402], %646 {strides = array<i32>} : memref<7x162x64xf32, #tpu.memory_space<vmem>>, vector<1x1x64xf32>,
      %c8_i32_403 = arith.constant 8 : i32
      %647 = arith.muli %arg21, %c8_i32_403 : i32
      %c5_i32_404 = arith.constant 5 : i32
      %648 = arith.addi %647, %c5_i32_404 : i32
      %c7_i32_405 = arith.constant 7 : i32
      %649 = arith.muli %648, %c7_i32_405 : i32
      %c0_i32_406 = arith.constant 0 : i32
      %650 = arith.addi %649, %c0_i32_406 : i32
      %651 = arith.index_cast %650 : i32 to index
      %652 = memref.load %arg1[%651] : memref<1134xi32, #tpu.memory_space<smem>>
      %653 = arith.index_cast %652 : i32 to index
      %c0_407 = arith.constant 0 : index
      %654 = vector.load %arg16[%653, %c0_407] : memref<162x64xf32, #tpu.memory_space<vmem>>, vector<1x64xf32>
      %c0_408 = arith.constant 0 : index
      %655 = arith.index_cast %648 : i32 to index
      %c0_409 = arith.constant 0 : index
      %656 = vector.load %arg17[%c0_408, %655, %c0_409] : memref<7x162x64xf32, #tpu.memory_space<vmem>>, vector<1x1x64xf32>
      %657 = vector.shape_cast %656 : vector<1x1x64xf32> to vector<1x64xf32>
      %658 = vector.shape_cast %654 : vector<1x64xf32> to vector<1x1x64xf32>
      tpu.vector_store %arg17[%c0_408, %655, %c0_409], %658 {strides = array<i32>} : memref<7x162x64xf32, #tpu.memory_space<vmem>>, vector<1x1x64xf32>,
      %c1_i32_410 = arith.constant 1 : i32
      %659 = arith.addi %649, %c1_i32_410 : i32
      %660 = arith.index_cast %659 : i32 to index
      %661 = memref.load %arg1[%660] : memref<1134xi32, #tpu.memory_space<smem>>
      %662 = arith.index_cast %661 : i32 to index
      %c0_411 = arith.constant 0 : index
      %663 = vector.load %arg16[%662, %c0_411] : memref<162x64xf32, #tpu.memory_space<vmem>>, vector<1x64xf32>
      %c1_412 = arith.constant 1 : index
      %664 = arith.index_cast %648 : i32 to index
      %c0_413 = arith.constant 0 : index
      %665 = vector.load %arg17[%c1_412, %664, %c0_413] : memref<7x162x64xf32, #tpu.memory_space<vmem>>, vector<1x1x64xf32>
      %666 = vector.shape_cast %665 : vector<1x1x64xf32> to vector<1x64xf32>
      %667 = vector.shape_cast %663 : vector<1x64xf32> to vector<1x1x64xf32>
      tpu.vector_store %arg17[%c1_412, %664, %c0_413], %667 {strides = array<i32>} : memref<7x162x64xf32, #tpu.memory_space<vmem>>, vector<1x1x64xf32>,
      %c2_i32_414 = arith.constant 2 : i32
      %668 = arith.addi %649, %c2_i32_414 : i32
      %669 = arith.index_cast %668 : i32 to index
      %670 = memref.load %arg1[%669] : memref<1134xi32, #tpu.memory_space<smem>>
      %671 = arith.index_cast %670 : i32 to index
      %c0_415 = arith.constant 0 : index
      %672 = vector.load %arg16[%671, %c0_415] : memref<162x64xf32, #tpu.memory_space<vmem>>, vector<1x64xf32>
      %c2_416 = arith.constant 2 : index
      %673 = arith.index_cast %648 : i32 to index
      %c0_417 = arith.constant 0 : index
      %674 = vector.load %arg17[%c2_416, %673, %c0_417] : memref<7x162x64xf32, #tpu.memory_space<vmem>>, vector<1x1x64xf32>
      %675 = vector.shape_cast %674 : vector<1x1x64xf32> to vector<1x64xf32>
      %676 = vector.shape_cast %672 : vector<1x64xf32> to vector<1x1x64xf32>
      tpu.vector_store %arg17[%c2_416, %673, %c0_417], %676 {strides = array<i32>} : memref<7x162x64xf32, #tpu.memory_space<vmem>>, vector<1x1x64xf32>,
      %c3_i32_418 = arith.constant 3 : i32
      %677 = arith.addi %649, %c3_i32_418 : i32
      %678 = arith.index_cast %677 : i32 to index
      %679 = memref.load %arg1[%678] : memref<1134xi32, #tpu.memory_space<smem>>
      %680 = arith.index_cast %679 : i32 to index
      %c0_419 = arith.constant 0 : index
      %681 = vector.load %arg16[%680, %c0_419] : memref<162x64xf32, #tpu.memory_space<vmem>>, vector<1x64xf32>
      %c3_420 = arith.constant 3 : index
      %682 = arith.index_cast %648 : i32 to index
      %c0_421 = arith.constant 0 : index
      %683 = vector.load %arg17[%c3_420, %682, %c0_421] : memref<7x162x64xf32, #tpu.memory_space<vmem>>, vector<1x1x64xf32>
      %684 = vector.shape_cast %683 : vector<1x1x64xf32> to vector<1x64xf32>
      %685 = vector.shape_cast %681 : vector<1x64xf32> to vector<1x1x64xf32>
      tpu.vector_store %arg17[%c3_420, %682, %c0_421], %685 {strides = array<i32>} : memref<7x162x64xf32, #tpu.memory_space<vmem>>, vector<1x1x64xf32>,
      %c4_i32_422 = arith.constant 4 : i32
      %686 = arith.addi %649, %c4_i32_422 : i32
      %687 = arith.index_cast %686 : i32 to index
      %688 = memref.load %arg1[%687] : memref<1134xi32, #tpu.memory_space<smem>>
      %689 = arith.index_cast %688 : i32 to index
      %c0_423 = arith.constant 0 : index
      %690 = vector.load %arg16[%689, %c0_423] : memref<162x64xf32, #tpu.memory_space<vmem>>, vector<1x64xf32>
      %c4_424 = arith.constant 4 : index
      %691 = arith.index_cast %648 : i32 to index
      %c0_425 = arith.constant 0 : index
      %692 = vector.load %arg17[%c4_424, %691, %c0_425] : memref<7x162x64xf32, #tpu.memory_space<vmem>>, vector<1x1x64xf32>
      %693 = vector.shape_cast %692 : vector<1x1x64xf32> to vector<1x64xf32>
      %694 = vector.shape_cast %690 : vector<1x64xf32> to vector<1x1x64xf32>
      tpu.vector_store %arg17[%c4_424, %691, %c0_425], %694 {strides = array<i32>} : memref<7x162x64xf32, #tpu.memory_space<vmem>>, vector<1x1x64xf32>,
      %c5_i32_426 = arith.constant 5 : i32
      %695 = arith.addi %649, %c5_i32_426 : i32
      %696 = arith.index_cast %695 : i32 to index
      %697 = memref.load %arg1[%696] : memref<1134xi32, #tpu.memory_space<smem>>
      %698 = arith.index_cast %697 : i32 to index
      %c0_427 = arith.constant 0 : index
      %699 = vector.load %arg16[%698, %c0_427] : memref<162x64xf32, #tpu.memory_space<vmem>>, vector<1x64xf32>
      %c5_428 = arith.constant 5 : index
      %700 = arith.index_cast %648 : i32 to index
      %c0_429 = arith.constant 0 : index
      %701 = vector.load %arg17[%c5_428, %700, %c0_429] : memref<7x162x64xf32, #tpu.memory_space<vmem>>, vector<1x1x64xf32>
      %702 = vector.shape_cast %701 : vector<1x1x64xf32> to vector<1x64xf32>
      %703 = vector.shape_cast %699 : vector<1x64xf32> to vector<1x1x64xf32>
      tpu.vector_store %arg17[%c5_428, %700, %c0_429], %703 {strides = array<i32>} : memref<7x162x64xf32, #tpu.memory_space<vmem>>, vector<1x1x64xf32>,
      %c6_i32_430 = arith.constant 6 : i32
      %704 = arith.addi %649, %c6_i32_430 : i32
      %705 = arith.index_cast %704 : i32 to index
      %706 = memref.load %arg1[%705] : memref<1134xi32, #tpu.memory_space<smem>>
      %707 = arith.index_cast %706 : i32 to index
      %c0_431 = arith.constant 0 : index
      %708 = vector.load %arg16[%707, %c0_431] : memref<162x64xf32, #tpu.memory_space<vmem>>, vector<1x64xf32>
      %c6_432 = arith.constant 6 : index
      %709 = arith.index_cast %648 : i32 to index
      %c0_433 = arith.constant 0 : index
      %710 = vector.load %arg17[%c6_432, %709, %c0_433] : memref<7x162x64xf32, #tpu.memory_space<vmem>>, vector<1x1x64xf32>
      %711 = vector.shape_cast %710 : vector<1x1x64xf32> to vector<1x64xf32>
      %712 = vector.shape_cast %708 : vector<1x64xf32> to vector<1x1x64xf32>
      tpu.vector_store %arg17[%c6_432, %709, %c0_433], %712 {strides = array<i32>} : memref<7x162x64xf32, #tpu.memory_space<vmem>>, vector<1x1x64xf32>,
      %c8_i32_434 = arith.constant 8 : i32
      %713 = arith.muli %arg21, %c8_i32_434 : i32
      %c6_i32_435 = arith.constant 6 : i32
      %714 = arith.addi %713, %c6_i32_435 : i32
      %c7_i32_436 = arith.constant 7 : i32
      %715 = arith.muli %714, %c7_i32_436 : i32
      %c0_i32_437 = arith.constant 0 : i32
      %716 = arith.addi %715, %c0_i32_437 : i32
      %717 = arith.index_cast %716 : i32 to index
      %718 = memref.load %arg1[%717] : memref<1134xi32, #tpu.memory_space<smem>>
      %719 = arith.index_cast %718 : i32 to index
      %c0_438 = arith.constant 0 : index
      %720 = vector.load %arg16[%719, %c0_438] : memref<162x64xf32, #tpu.memory_space<vmem>>, vector<1x64xf32>
      %c0_439 = arith.constant 0 : index
      %721 = arith.index_cast %714 : i32 to index
      %c0_440 = arith.constant 0 : index
      %722 = vector.load %arg17[%c0_439, %721, %c0_440] : memref<7x162x64xf32, #tpu.memory_space<vmem>>, vector<1x1x64xf32>
      %723 = vector.shape_cast %722 : vector<1x1x64xf32> to vector<1x64xf32>
      %724 = vector.shape_cast %720 : vector<1x64xf32> to vector<1x1x64xf32>
      tpu.vector_store %arg17[%c0_439, %721, %c0_440], %724 {strides = array<i32>} : memref<7x162x64xf32, #tpu.memory_space<vmem>>, vector<1x1x64xf32>,
      %c1_i32_441 = arith.constant 1 : i32
      %725 = arith.addi %715, %c1_i32_441 : i32
      %726 = arith.index_cast %725 : i32 to index
      %727 = memref.load %arg1[%726] : memref<1134xi32, #tpu.memory_space<smem>>
      %728 = arith.index_cast %727 : i32 to index
      %c0_442 = arith.constant 0 : index
      %729 = vector.load %arg16[%728, %c0_442] : memref<162x64xf32, #tpu.memory_space<vmem>>, vector<1x64xf32>
      %c1_443 = arith.constant 1 : index
      %730 = arith.index_cast %714 : i32 to index
      %c0_444 = arith.constant 0 : index
      %731 = vector.load %arg17[%c1_443, %730, %c0_444] : memref<7x162x64xf32, #tpu.memory_space<vmem>>, vector<1x1x64xf32>
      %732 = vector.shape_cast %731 : vector<1x1x64xf32> to vector<1x64xf32>
      %733 = vector.shape_cast %729 : vector<1x64xf32> to vector<1x1x64xf32>
      tpu.vector_store %arg17[%c1_443, %730, %c0_444], %733 {strides = array<i32>} : memref<7x162x64xf32, #tpu.memory_space<vmem>>, vector<1x1x64xf32>,
      %c2_i32_445 = arith.constant 2 : i32
      %734 = arith.addi %715, %c2_i32_445 : i32
      %735 = arith.index_cast %734 : i32 to index
      %736 = memref.load %arg1[%735] : memref<1134xi32, #tpu.memory_space<smem>>
      %737 = arith.index_cast %736 : i32 to index
      %c0_446 = arith.constant 0 : index
      %738 = vector.load %arg16[%737, %c0_446] : memref<162x64xf32, #tpu.memory_space<vmem>>, vector<1x64xf32>
      %c2_447 = arith.constant 2 : index
      %739 = arith.index_cast %714 : i32 to index
      %c0_448 = arith.constant 0 : index
      %740 = vector.load %arg17[%c2_447, %739, %c0_448] : memref<7x162x64xf32, #tpu.memory_space<vmem>>, vector<1x1x64xf32>
      %741 = vector.shape_cast %740 : vector<1x1x64xf32> to vector<1x64xf32>
      %742 = vector.shape_cast %738 : vector<1x64xf32> to vector<1x1x64xf32>
      tpu.vector_store %arg17[%c2_447, %739, %c0_448], %742 {strides = array<i32>} : memref<7x162x64xf32, #tpu.memory_space<vmem>>, vector<1x1x64xf32>,
      %c3_i32_449 = arith.constant 3 : i32
      %743 = arith.addi %715, %c3_i32_449 : i32
      %744 = arith.index_cast %743 : i32 to index
      %745 = memref.load %arg1[%744] : memref<1134xi32, #tpu.memory_space<smem>>
      %746 = arith.index_cast %745 : i32 to index
      %c0_450 = arith.constant 0 : index
      %747 = vector.load %arg16[%746, %c0_450] : memref<162x64xf32, #tpu.memory_space<vmem>>, vector<1x64xf32>
      %c3_451 = arith.constant 3 : index
      %748 = arith.index_cast %714 : i32 to index
      %c0_452 = arith.constant 0 : index
      %749 = vector.load %arg17[%c3_451, %748, %c0_452] : memref<7x162x64xf32, #tpu.memory_space<vmem>>, vector<1x1x64xf32>
      %750 = vector.shape_cast %749 : vector<1x1x64xf32> to vector<1x64xf32>
      %751 = vector.shape_cast %747 : vector<1x64xf32> to vector<1x1x64xf32>
      tpu.vector_store %arg17[%c3_451, %748, %c0_452], %751 {strides = array<i32>} : memref<7x162x64xf32, #tpu.memory_space<vmem>>, vector<1x1x64xf32>,
      %c4_i32_453 = arith.constant 4 : i32
      %752 = arith.addi %715, %c4_i32_453 : i32
      %753 = arith.index_cast %752 : i32 to index
      %754 = memref.load %arg1[%753] : memref<1134xi32, #tpu.memory_space<smem>>
      %755 = arith.index_cast %754 : i32 to index
      %c0_454 = arith.constant 0 : index
      %756 = vector.load %arg16[%755, %c0_454] : memref<162x64xf32, #tpu.memory_space<vmem>>, vector<1x64xf32>
      %c4_455 = arith.constant 4 : index
      %757 = arith.index_cast %714 : i32 to index
      %c0_456 = arith.constant 0 : index
      %758 = vector.load %arg17[%c4_455, %757, %c0_456] : memref<7x162x64xf32, #tpu.memory_space<vmem>>, vector<1x1x64xf32>
      %759 = vector.shape_cast %758 : vector<1x1x64xf32> to vector<1x64xf32>
      %760 = vector.shape_cast %756 : vector<1x64xf32> to vector<1x1x64xf32>
      tpu.vector_store %arg17[%c4_455, %757, %c0_456], %760 {strides = array<i32>} : memref<7x162x64xf32, #tpu.memory_space<vmem>>, vector<1x1x64xf32>,
      %c5_i32_457 = arith.constant 5 : i32
      %761 = arith.addi %715, %c5_i32_457 : i32
      %762 = arith.index_cast %761 : i32 to index
      %763 = memref.load %arg1[%762] : memref<1134xi32, #tpu.memory_space<smem>>
      %764 = arith.index_cast %763 : i32 to index
      %c0_458 = arith.constant 0 : index
      %765 = vector.load %arg16[%764, %c0_458] : memref<162x64xf32, #tpu.memory_space<vmem>>, vector<1x64xf32>
      %c5_459 = arith.constant 5 : index
      %766 = arith.index_cast %714 : i32 to index
      %c0_460 = arith.constant 0 : index
      %767 = vector.load %arg17[%c5_459, %766, %c0_460] : memref<7x162x64xf32, #tpu.memory_space<vmem>>, vector<1x1x64xf32>
      %768 = vector.shape_cast %767 : vector<1x1x64xf32> to vector<1x64xf32>
      %769 = vector.shape_cast %765 : vector<1x64xf32> to vector<1x1x64xf32>
      tpu.vector_store %arg17[%c5_459, %766, %c0_460], %769 {strides = array<i32>} : memref<7x162x64xf32, #tpu.memory_space<vmem>>, vector<1x1x64xf32>,
      %c6_i32_461 = arith.constant 6 : i32
      %770 = arith.addi %715, %c6_i32_461 : i32
      %771 = arith.index_cast %770 : i32 to index
      %772 = memref.load %arg1[%771] : memref<1134xi32, #tpu.memory_space<smem>>
      %773 = arith.index_cast %772 : i32 to index
      %c0_462 = arith.constant 0 : index
      %774 = vector.load %arg16[%773, %c0_462] : memref<162x64xf32, #tpu.memory_space<vmem>>, vector<1x64xf32>
      %c6_463 = arith.constant 6 : index
      %775 = arith.index_cast %714 : i32 to index
      %c0_464 = arith.constant 0 : index
      %776 = vector.load %arg17[%c6_463, %775, %c0_464] : memref<7x162x64xf32, #tpu.memory_space<vmem>>, vector<1x1x64xf32>
      %777 = vector.shape_cast %776 : vector<1x1x64xf32> to vector<1x64xf32>
      %778 = vector.shape_cast %774 : vector<1x64xf32> to vector<1x1x64xf32>
      tpu.vector_store %arg17[%c6_463, %775, %c0_464], %778 {strides = array<i32>} : memref<7x162x64xf32, #tpu.memory_space<vmem>>, vector<1x1x64xf32>,
      %c8_i32_465 = arith.constant 8 : i32
      %779 = arith.muli %arg21, %c8_i32_465 : i32
      %c7_i32_466 = arith.constant 7 : i32
      %780 = arith.addi %779, %c7_i32_466 : i32
      %c7_i32_467 = arith.constant 7 : i32
      %781 = arith.muli %780, %c7_i32_467 : i32
      %c0_i32_468 = arith.constant 0 : i32
      %782 = arith.addi %781, %c0_i32_468 : i32
      %783 = arith.index_cast %782 : i32 to index
      %784 = memref.load %arg1[%783] : memref<1134xi32, #tpu.memory_space<smem>>
      %785 = arith.index_cast %784 : i32 to index
      %c0_469 = arith.constant 0 : index
      %786 = vector.load %arg16[%785, %c0_469] : memref<162x64xf32, #tpu.memory_space<vmem>>, vector<1x64xf32>
      %c0_470 = arith.constant 0 : index
      %787 = arith.index_cast %780 : i32 to index
      %c0_471 = arith.constant 0 : index
      %788 = vector.load %arg17[%c0_470, %787, %c0_471] : memref<7x162x64xf32, #tpu.memory_space<vmem>>, vector<1x1x64xf32>
      %789 = vector.shape_cast %788 : vector<1x1x64xf32> to vector<1x64xf32>
      %790 = vector.shape_cast %786 : vector<1x64xf32> to vector<1x1x64xf32>
      tpu.vector_store %arg17[%c0_470, %787, %c0_471], %790 {strides = array<i32>} : memref<7x162x64xf32, #tpu.memory_space<vmem>>, vector<1x1x64xf32>,
      %c1_i32_472 = arith.constant 1 : i32
      %791 = arith.addi %781, %c1_i32_472 : i32
      %792 = arith.index_cast %791 : i32 to index
      %793 = memref.load %arg1[%792] : memref<1134xi32, #tpu.memory_space<smem>>
      %794 = arith.index_cast %793 : i32 to index
      %c0_473 = arith.constant 0 : index
      %795 = vector.load %arg16[%794, %c0_473] : memref<162x64xf32, #tpu.memory_space<vmem>>, vector<1x64xf32>
      %c1_474 = arith.constant 1 : index
      %796 = arith.index_cast %780 : i32 to index
      %c0_475 = arith.constant 0 : index
      %797 = vector.load %arg17[%c1_474, %796, %c0_475] : memref<7x162x64xf32, #tpu.memory_space<vmem>>, vector<1x1x64xf32>
      %798 = vector.shape_cast %797 : vector<1x1x64xf32> to vector<1x64xf32>
      %799 = vector.shape_cast %795 : vector<1x64xf32> to vector<1x1x64xf32>
      tpu.vector_store %arg17[%c1_474, %796, %c0_475], %799 {strides = array<i32>} : memref<7x162x64xf32, #tpu.memory_space<vmem>>, vector<1x1x64xf32>,
      %c2_i32_476 = arith.constant 2 : i32
      %800 = arith.addi %781, %c2_i32_476 : i32
      %801 = arith.index_cast %800 : i32 to index
      %802 = memref.load %arg1[%801] : memref<1134xi32, #tpu.memory_space<smem>>
      %803 = arith.index_cast %802 : i32 to index
      %c0_477 = arith.constant 0 : index
      %804 = vector.load %arg16[%803, %c0_477] : memref<162x64xf32, #tpu.memory_space<vmem>>, vector<1x64xf32>
      %c2_478 = arith.constant 2 : index
      %805 = arith.index_cast %780 : i32 to index
      %c0_479 = arith.constant 0 : index
      %806 = vector.load %arg17[%c2_478, %805, %c0_479] : memref<7x162x64xf32, #tpu.memory_space<vmem>>, vector<1x1x64xf32>
      %807 = vector.shape_cast %806 : vector<1x1x64xf32> to vector<1x64xf32>
      %808 = vector.shape_cast %804 : vector<1x64xf32> to vector<1x1x64xf32>
      tpu.vector_store %arg17[%c2_478, %805, %c0_479], %808 {strides = array<i32>} : memref<7x162x64xf32, #tpu.memory_space<vmem>>, vector<1x1x64xf32>,
      %c3_i32_480 = arith.constant 3 : i32
      %809 = arith.addi %781, %c3_i32_480 : i32
      %810 = arith.index_cast %809 : i32 to index
      %811 = memref.load %arg1[%810] : memref<1134xi32, #tpu.memory_space<smem>>
      %812 = arith.index_cast %811 : i32 to index
      %c0_481 = arith.constant 0 : index
      %813 = vector.load %arg16[%812, %c0_481] : memref<162x64xf32, #tpu.memory_space<vmem>>, vector<1x64xf32>
      %c3_482 = arith.constant 3 : index
      %814 = arith.index_cast %780 : i32 to index
      %c0_483 = arith.constant 0 : index
      %815 = vector.load %arg17[%c3_482, %814, %c0_483] : memref<7x162x64xf32, #tpu.memory_space<vmem>>, vector<1x1x64xf32>
      %816 = vector.shape_cast %815 : vector<1x1x64xf32> to vector<1x64xf32>
      %817 = vector.shape_cast %813 : vector<1x64xf32> to vector<1x1x64xf32>
      tpu.vector_store %arg17[%c3_482, %814, %c0_483], %817 {strides = array<i32>} : memref<7x162x64xf32, #tpu.memory_space<vmem>>, vector<1x1x64xf32>,
      %c4_i32_484 = arith.constant 4 : i32
      %818 = arith.addi %781, %c4_i32_484 : i32
      %819 = arith.index_cast %818 : i32 to index
      %820 = memref.load %arg1[%819] : memref<1134xi32, #tpu.memory_space<smem>>
      %821 = arith.index_cast %820 : i32 to index
      %c0_485 = arith.constant 0 : index
      %822 = vector.load %arg16[%821, %c0_485] : memref<162x64xf32, #tpu.memory_space<vmem>>, vector<1x64xf32>
      %c4_486 = arith.constant 4 : index
      %823 = arith.index_cast %780 : i32 to index
      %c0_487 = arith.constant 0 : index
      %824 = vector.load %arg17[%c4_486, %823, %c0_487] : memref<7x162x64xf32, #tpu.memory_space<vmem>>, vector<1x1x64xf32>
      %825 = vector.shape_cast %824 : vector<1x1x64xf32> to vector<1x64xf32>
      %826 = vector.shape_cast %822 : vector<1x64xf32> to vector<1x1x64xf32>
      tpu.vector_store %arg17[%c4_486, %823, %c0_487], %826 {strides = array<i32>} : memref<7x162x64xf32, #tpu.memory_space<vmem>>, vector<1x1x64xf32>,
      %c5_i32_488 = arith.constant 5 : i32
      %827 = arith.addi %781, %c5_i32_488 : i32
      %828 = arith.index_cast %827 : i32 to index
      %829 = memref.load %arg1[%828] : memref<1134xi32, #tpu.memory_space<smem>>
      %830 = arith.index_cast %829 : i32 to index
      %c0_489 = arith.constant 0 : index
      %831 = vector.load %arg16[%830, %c0_489] : memref<162x64xf32, #tpu.memory_space<vmem>>, vector<1x64xf32>
      %c5_490 = arith.constant 5 : index
      %832 = arith.index_cast %780 : i32 to index
      %c0_491 = arith.constant 0 : index
      %833 = vector.load %arg17[%c5_490, %832, %c0_491] : memref<7x162x64xf32, #tpu.memory_space<vmem>>, vector<1x1x64xf32>
      %834 = vector.shape_cast %833 : vector<1x1x64xf32> to vector<1x64xf32>
      %835 = vector.shape_cast %831 : vector<1x64xf32> to vector<1x1x64xf32>
      tpu.vector_store %arg17[%c5_490, %832, %c0_491], %835 {strides = array<i32>} : memref<7x162x64xf32, #tpu.memory_space<vmem>>, vector<1x1x64xf32>,
      %c6_i32_492 = arith.constant 6 : i32
      %836 = arith.addi %781, %c6_i32_492 : i32
      %837 = arith.index_cast %836 : i32 to index
      %838 = memref.load %arg1[%837] : memref<1134xi32, #tpu.memory_space<smem>>
      %839 = arith.index_cast %838 : i32 to index
      %c0_493 = arith.constant 0 : index
      %840 = vector.load %arg16[%839, %c0_493] : memref<162x64xf32, #tpu.memory_space<vmem>>, vector<1x64xf32>
      %c6_494 = arith.constant 6 : index
      %841 = arith.index_cast %780 : i32 to index
      %c0_495 = arith.constant 0 : index
      %842 = vector.load %arg17[%c6_494, %841, %c0_495] : memref<7x162x64xf32, #tpu.memory_space<vmem>>, vector<1x1x64xf32>
      %843 = vector.shape_cast %842 : vector<1x1x64xf32> to vector<1x64xf32>
      %844 = vector.shape_cast %840 : vector<1x64xf32> to vector<1x1x64xf32>
      tpu.vector_store %arg17[%c6_494, %841, %c0_495], %844 {strides = array<i32>} : memref<7x162x64xf32, #tpu.memory_space<vmem>>, vector<1x1x64xf32>,
    }
    %c20_i32_28 = arith.constant 20 : i32
    %c1120 = arith.constant 1120 : index
    %34 = memref.load %arg1[%c1120] : memref<1134xi32, #tpu.memory_space<smem>>
    %35 = arith.index_cast %34 : i32 to index
    %c0_29 = arith.constant 0 : index
    %36 = vector.load %arg16[%35, %c0_29] : memref<162x64xf32, #tpu.memory_space<vmem>>, vector<1x64xf32>
    %c0_30 = arith.constant 0 : index
    %c160 = arith.constant 160 : index
    %c0_31 = arith.constant 0 : index
    %37 = vector.load %arg17[%c0_30, %c160, %c0_31] : memref<7x162x64xf32, #tpu.memory_space<vmem>>, vector<1x1x64xf32>
    %38 = vector.shape_cast %37 : vector<1x1x64xf32> to vector<1x64xf32>
    %39 = vector.shape_cast %36 : vector<1x64xf32> to vector<1x1x64xf32>
    tpu.vector_store %arg17[%c0_30, %c160, %c0_31], %39 {strides = array<i32>} : memref<7x162x64xf32, #tpu.memory_space<vmem>>, vector<1x1x64xf32>,
    %c1121 = arith.constant 1121 : index
    %40 = memref.load %arg1[%c1121] : memref<1134xi32, #tpu.memory_space<smem>>
    %41 = arith.index_cast %40 : i32 to index
    %c0_32 = arith.constant 0 : index
    %42 = vector.load %arg16[%41, %c0_32] : memref<162x64xf32, #tpu.memory_space<vmem>>, vector<1x64xf32>
    %c1 = arith.constant 1 : index
    %c160_33 = arith.constant 160 : index
    %c0_34 = arith.constant 0 : index
    %43 = vector.load %arg17[%c1, %c160_33, %c0_34] : memref<7x162x64xf32, #tpu.memory_space<vmem>>, vector<1x1x64xf32>
    %44 = vector.shape_cast %43 : vector<1x1x64xf32> to vector<1x64xf32>
    %45 = vector.shape_cast %42 : vector<1x64xf32> to vector<1x1x64xf32>
    tpu.vector_store %arg17[%c1, %c160_33, %c0_34], %45 {strides = array<i32>} : memref<7x162x64xf32, #tpu.memory_space<vmem>>, vector<1x1x64xf32>,
    %c1122 = arith.constant 1122 : index
    %46 = memref.load %arg1[%c1122] : memref<1134xi32, #tpu.memory_space<smem>>
    %47 = arith.index_cast %46 : i32 to index
    %c0_35 = arith.constant 0 : index
    %48 = vector.load %arg16[%47, %c0_35] : memref<162x64xf32, #tpu.memory_space<vmem>>, vector<1x64xf32>
    %c2 = arith.constant 2 : index
    %c160_36 = arith.constant 160 : index
    %c0_37 = arith.constant 0 : index
    %49 = vector.load %arg17[%c2, %c160_36, %c0_37] : memref<7x162x64xf32, #tpu.memory_space<vmem>>, vector<1x1x64xf32>
    %50 = vector.shape_cast %49 : vector<1x1x64xf32> to vector<1x64xf32>
    %51 = vector.shape_cast %48 : vector<1x64xf32> to vector<1x1x64xf32>
    tpu.vector_store %arg17[%c2, %c160_36, %c0_37], %51 {strides = array<i32>} : memref<7x162x64xf32, #tpu.memory_space<vmem>>, vector<1x1x64xf32>,
    %c1123 = arith.constant 1123 : index
    %52 = memref.load %arg1[%c1123] : memref<1134xi32, #tpu.memory_space<smem>>
    %53 = arith.index_cast %52 : i32 to index
    %c0_38 = arith.constant 0 : index
    %54 = vector.load %arg16[%53, %c0_38] : memref<162x64xf32, #tpu.memory_space<vmem>>, vector<1x64xf32>
    %c3 = arith.constant 3 : index
    %c160_39 = arith.constant 160 : index
    %c0_40 = arith.constant 0 : index
    %55 = vector.load %arg17[%c3, %c160_39, %c0_40] : memref<7x162x64xf32, #tpu.memory_space<vmem>>, vector<1x1x64xf32>
    %56 = vector.shape_cast %55 : vector<1x1x64xf32> to vector<1x64xf32>
    %57 = vector.shape_cast %54 : vector<1x64xf32> to vector<1x1x64xf32>
    tpu.vector_store %arg17[%c3, %c160_39, %c0_40], %57 {strides = array<i32>} : memref<7x162x64xf32, #tpu.memory_space<vmem>>, vector<1x1x64xf32>,
    %c1124 = arith.constant 1124 : index
    %58 = memref.load %arg1[%c1124] : memref<1134xi32, #tpu.memory_space<smem>>
    %59 = arith.index_cast %58 : i32 to index
    %c0_41 = arith.constant 0 : index
    %60 = vector.load %arg16[%59, %c0_41] : memref<162x64xf32, #tpu.memory_space<vmem>>, vector<1x64xf32>
    %c4 = arith.constant 4 : index
    %c160_42 = arith.constant 160 : index
    %c0_43 = arith.constant 0 : index
    %61 = vector.load %arg17[%c4, %c160_42, %c0_43] : memref<7x162x64xf32, #tpu.memory_space<vmem>>, vector<1x1x64xf32>
    %62 = vector.shape_cast %61 : vector<1x1x64xf32> to vector<1x64xf32>
    %63 = vector.shape_cast %60 : vector<1x64xf32> to vector<1x1x64xf32>
    tpu.vector_store %arg17[%c4, %c160_42, %c0_43], %63 {strides = array<i32>} : memref<7x162x64xf32, #tpu.memory_space<vmem>>, vector<1x1x64xf32>,
    %c1125 = arith.constant 1125 : index
    %64 = memref.load %arg1[%c1125] : memref<1134xi32, #tpu.memory_space<smem>>
    %65 = arith.index_cast %64 : i32 to index
    %c0_44 = arith.constant 0 : index
    %66 = vector.load %arg16[%65, %c0_44] : memref<162x64xf32, #tpu.memory_space<vmem>>, vector<1x64xf32>
    %c5 = arith.constant 5 : index
    %c160_45 = arith.constant 160 : index
    %c0_46 = arith.constant 0 : index
    %67 = vector.load %arg17[%c5, %c160_45, %c0_46] : memref<7x162x64xf32, #tpu.memory_space<vmem>>, vector<1x1x64xf32>
    %68 = vector.shape_cast %67 : vector<1x1x64xf32> to vector<1x64xf32>
    %69 = vector.shape_cast %66 : vector<1x64xf32> to vector<1x1x64xf32>
    tpu.vector_store %arg17[%c5, %c160_45, %c0_46], %69 {strides = array<i32>} : memref<7x162x64xf32, #tpu.memory_space<vmem>>, vector<1x1x64xf32>,
    %c1126 = arith.constant 1126 : index
    %70 = memref.load %arg1[%c1126] : memref<1134xi32, #tpu.memory_space<smem>>
    %71 = arith.index_cast %70 : i32 to index
    %c0_47 = arith.constant 0 : index
    %72 = vector.load %arg16[%71, %c0_47] : memref<162x64xf32, #tpu.memory_space<vmem>>, vector<1x64xf32>
    %c6 = arith.constant 6 : index
    %c160_48 = arith.constant 160 : index
    %c0_49 = arith.constant 0 : index
    %73 = vector.load %arg17[%c6, %c160_48, %c0_49] : memref<7x162x64xf32, #tpu.memory_space<vmem>>, vector<1x1x64xf32>
    %74 = vector.shape_cast %73 : vector<1x1x64xf32> to vector<1x64xf32>
    %75 = vector.shape_cast %72 : vector<1x64xf32> to vector<1x1x64xf32>
    tpu.vector_store %arg17[%c6, %c160_48, %c0_49], %75 {strides = array<i32>} : memref<7x162x64xf32, #tpu.memory_space<vmem>>, vector<1x1x64xf32>,
    %c1127 = arith.constant 1127 : index
    %76 = memref.load %arg1[%c1127] : memref<1134xi32, #tpu.memory_space<smem>>
    %77 = arith.index_cast %76 : i32 to index
    %c0_50 = arith.constant 0 : index
    %78 = vector.load %arg16[%77, %c0_50] : memref<162x64xf32, #tpu.memory_space<vmem>>, vector<1x64xf32>
    %c0_51 = arith.constant 0 : index
    %c161 = arith.constant 161 : index
    %c0_52 = arith.constant 0 : index
    %79 = vector.load %arg17[%c0_51, %c161, %c0_52] : memref<7x162x64xf32, #tpu.memory_space<vmem>>, vector<1x1x64xf32>
    %80 = vector.shape_cast %79 : vector<1x1x64xf32> to vector<1x64xf32>
    %81 = vector.shape_cast %78 : vector<1x64xf32> to vector<1x1x64xf32>
    tpu.vector_store %arg17[%c0_51, %c161, %c0_52], %81 {strides = array<i32>} : memref<7x162x64xf32, #tpu.memory_space<vmem>>, vector<1x1x64xf32>,
    %c1128 = arith.constant 1128 : index
    %82 = memref.load %arg1[%c1128] : memref<1134xi32, #tpu.memory_space<smem>>
    %83 = arith.index_cast %82 : i32 to index
    %c0_53 = arith.constant 0 : index
    %84 = vector.load %arg16[%83, %c0_53] : memref<162x64xf32, #tpu.memory_space<vmem>>, vector<1x64xf32>
    %c1_54 = arith.constant 1 : index
    %c161_55 = arith.constant 161 : index
    %c0_56 = arith.constant 0 : index
    %85 = vector.load %arg17[%c1_54, %c161_55, %c0_56] : memref<7x162x64xf32, #tpu.memory_space<vmem>>, vector<1x1x64xf32>
    %86 = vector.shape_cast %85 : vector<1x1x64xf32> to vector<1x64xf32>
    %87 = vector.shape_cast %84 : vector<1x64xf32> to vector<1x1x64xf32>
    tpu.vector_store %arg17[%c1_54, %c161_55, %c0_56], %87 {strides = array<i32>} : memref<7x162x64xf32, #tpu.memory_space<vmem>>, vector<1x1x64xf32>,
    %c1129 = arith.constant 1129 : index
    %88 = memref.load %arg1[%c1129] : memref<1134xi32, #tpu.memory_space<smem>>
    %89 = arith.index_cast %88 : i32 to index
    %c0_57 = arith.constant 0 : index
    %90 = vector.load %arg16[%89, %c0_57] : memref<162x64xf32, #tpu.memory_space<vmem>>, vector<1x64xf32>
    %c2_58 = arith.constant 2 : index
    %c161_59 = arith.constant 161 : index
    %c0_60 = arith.constant 0 : index
    %91 = vector.load %arg17[%c2_58, %c161_59, %c0_60] : memref<7x162x64xf32, #tpu.memory_space<vmem>>, vector<1x1x64xf32>
    %92 = vector.shape_cast %91 : vector<1x1x64xf32> to vector<1x64xf32>
    %93 = vector.shape_cast %90 : vector<1x64xf32> to vector<1x1x64xf32>
    tpu.vector_store %arg17[%c2_58, %c161_59, %c0_60], %93 {strides = array<i32>} : memref<7x162x64xf32, #tpu.memory_space<vmem>>, vector<1x1x64xf32>,
    %c1130 = arith.constant 1130 : index
    %94 = memref.load %arg1[%c1130] : memref<1134xi32, #tpu.memory_space<smem>>
    %95 = arith.index_cast %94 : i32 to index
    %c0_61 = arith.constant 0 : index
    %96 = vector.load %arg16[%95, %c0_61] : memref<162x64xf32, #tpu.memory_space<vmem>>, vector<1x64xf32>
    %c3_62 = arith.constant 3 : index
    %c161_63 = arith.constant 161 : index
    %c0_64 = arith.constant 0 : index
    %97 = vector.load %arg17[%c3_62, %c161_63, %c0_64] : memref<7x162x64xf32, #tpu.memory_space<vmem>>, vector<1x1x64xf32>
    %98 = vector.shape_cast %97 : vector<1x1x64xf32> to vector<1x64xf32>
    %99 = vector.shape_cast %96 : vector<1x64xf32> to vector<1x1x64xf32>
    tpu.vector_store %arg17[%c3_62, %c161_63, %c0_64], %99 {strides = array<i32>} : memref<7x162x64xf32, #tpu.memory_space<vmem>>, vector<1x1x64xf32>,
    %c1131 = arith.constant 1131 : index
    %100 = memref.load %arg1[%c1131] : memref<1134xi32, #tpu.memory_space<smem>>
    %101 = arith.index_cast %100 : i32 to index
    %c0_65 = arith.constant 0 : index
    %102 = vector.load %arg16[%101, %c0_65] : memref<162x64xf32, #tpu.memory_space<vmem>>, vector<1x64xf32>
    %c4_66 = arith.constant 4 : index
    %c161_67 = arith.constant 161 : index
    %c0_68 = arith.constant 0 : index
    %103 = vector.load %arg17[%c4_66, %c161_67, %c0_68] : memref<7x162x64xf32, #tpu.memory_space<vmem>>, vector<1x1x64xf32>
    %104 = vector.shape_cast %103 : vector<1x1x64xf32> to vector<1x64xf32>
    %105 = vector.shape_cast %102 : vector<1x64xf32> to vector<1x1x64xf32>
    tpu.vector_store %arg17[%c4_66, %c161_67, %c0_68], %105 {strides = array<i32>} : memref<7x162x64xf32, #tpu.memory_space<vmem>>, vector<1x1x64xf32>,
    %c1132 = arith.constant 1132 : index
    %106 = memref.load %arg1[%c1132] : memref<1134xi32, #tpu.memory_space<smem>>
    %107 = arith.index_cast %106 : i32 to index
    %c0_69 = arith.constant 0 : index
    %108 = vector.load %arg16[%107, %c0_69] : memref<162x64xf32, #tpu.memory_space<vmem>>, vector<1x64xf32>
    %c5_70 = arith.constant 5 : index
    %c161_71 = arith.constant 161 : index
    %c0_72 = arith.constant 0 : index
    %109 = vector.load %arg17[%c5_70, %c161_71, %c0_72] : memref<7x162x64xf32, #tpu.memory_space<vmem>>, vector<1x1x64xf32>
    %110 = vector.shape_cast %109 : vector<1x1x64xf32> to vector<1x64xf32>
    %111 = vector.shape_cast %108 : vector<1x64xf32> to vector<1x1x64xf32>
    tpu.vector_store %arg17[%c5_70, %c161_71, %c0_72], %111 {strides = array<i32>} : memref<7x162x64xf32, #tpu.memory_space<vmem>>, vector<1x1x64xf32>,
    %c1133 = arith.constant 1133 : index
    %112 = memref.load %arg1[%c1133] : memref<1134xi32, #tpu.memory_space<smem>>
    %113 = arith.index_cast %112 : i32 to index
    %c0_73 = arith.constant 0 : index
    %114 = vector.load %arg16[%113, %c0_73] : memref<162x64xf32, #tpu.memory_space<vmem>>, vector<1x64xf32>
    %c6_74 = arith.constant 6 : index
    %c161_75 = arith.constant 161 : index
    %c0_76 = arith.constant 0 : index
    %115 = vector.load %arg17[%c6_74, %c161_75, %c0_76] : memref<7x162x64xf32, #tpu.memory_space<vmem>>, vector<1x1x64xf32>
    %116 = vector.shape_cast %115 : vector<1x1x64xf32> to vector<1x64xf32>
    %117 = vector.shape_cast %114 : vector<1x64xf32> to vector<1x1x64xf32>
    tpu.vector_store %arg17[%c6_74, %c161_75, %c0_76], %117 {strides = array<i32>} : memref<7x162x64xf32, #tpu.memory_space<vmem>>, vector<1x1x64xf32>,
    %c0_77 = arith.constant 0 : index
    %c0_78 = arith.constant 0 : index
    %c0_79 = arith.constant 0 : index
    %118 = vector.load %arg17[%c0_77, %c0_78, %c0_79] : memref<7x162x64xf32, #tpu.memory_space<vmem>>, vector<1x162x64xf32>
    %119 = vector.shape_cast %118 : vector<1x162x64xf32> to vector<162x64xf32>
    %c0_80 = arith.constant 0 : index
    %c0_81 = arith.constant 0 : index
    %120 = vector.load %arg18[%c0_80, %c0_81] : memref<162x448xf32, #tpu.memory_space<vmem>>, vector<162x64xf32>
    tpu.vector_store %arg18[%c0_80, %c0_81], %119 {strides = array<i32>} : memref<162x448xf32, #tpu.memory_space<vmem>>, vector<162x64xf32>,
    %c1_82 = arith.constant 1 : index
    %c0_83 = arith.constant 0 : index
    %c0_84 = arith.constant 0 : index
    %121 = vector.load %arg17[%c1_82, %c0_83, %c0_84] : memref<7x162x64xf32, #tpu.memory_space<vmem>>, vector<1x162x64xf32>
    %122 = vector.shape_cast %121 : vector<1x162x64xf32> to vector<162x64xf32>
    %c0_85 = arith.constant 0 : index
    %c64 = arith.constant 64 : index
    %123 = vector.load %arg18[%c0_85, %c64] : memref<162x448xf32, #tpu.memory_space<vmem>>, vector<162x64xf32>
    tpu.vector_store %arg18[%c0_85, %c64], %122 {strides = array<i32>} : memref<162x448xf32, #tpu.memory_space<vmem>>, vector<162x64xf32>,
    %c2_86 = arith.constant 2 : index
    %c0_87 = arith.constant 0 : index
    %c0_88 = arith.constant 0 : index
    %124 = vector.load %arg17[%c2_86, %c0_87, %c0_88] : memref<7x162x64xf32, #tpu.memory_space<vmem>>, vector<1x162x64xf32>
    %125 = vector.shape_cast %124 : vector<1x162x64xf32> to vector<162x64xf32>
    %c0_89 = arith.constant 0 : index
    %c128 = arith.constant 128 : index
    %126 = vector.load %arg18[%c0_89, %c128] : memref<162x448xf32, #tpu.memory_space<vmem>>, vector<162x64xf32>
    tpu.vector_store %arg18[%c0_89, %c128], %125 {strides = array<i32>} : memref<162x448xf32, #tpu.memory_space<vmem>>, vector<162x64xf32>,
    %c3_90 = arith.constant 3 : index
    %c0_91 = arith.constant 0 : index
    %c0_92 = arith.constant 0 : index
    %127 = vector.load %arg17[%c3_90, %c0_91, %c0_92] : memref<7x162x64xf32, #tpu.memory_space<vmem>>, vector<1x162x64xf32>
    %128 = vector.shape_cast %127 : vector<1x162x64xf32> to vector<162x64xf32>
    %c0_93 = arith.constant 0 : index
    %c192_94 = arith.constant 192 : index
    %129 = vector.load %arg18[%c0_93, %c192_94] : memref<162x448xf32, #tpu.memory_space<vmem>>, vector<162x64xf32>
    tpu.vector_store %arg18[%c0_93, %c192_94], %128 {strides = array<i32>} : memref<162x448xf32, #tpu.memory_space<vmem>>, vector<162x64xf32>,
    %c4_95 = arith.constant 4 : index
    %c0_96 = arith.constant 0 : index
    %c0_97 = arith.constant 0 : index
    %130 = vector.load %arg17[%c4_95, %c0_96, %c0_97] : memref<7x162x64xf32, #tpu.memory_space<vmem>>, vector<1x162x64xf32>
    %131 = vector.shape_cast %130 : vector<1x162x64xf32> to vector<162x64xf32>
    %c0_98 = arith.constant 0 : index
    %c256 = arith.constant 256 : index
    %132 = vector.load %arg18[%c0_98, %c256] : memref<162x448xf32, #tpu.memory_space<vmem>>, vector<162x64xf32>
    tpu.vector_store %arg18[%c0_98, %c256], %131 {strides = array<i32>} : memref<162x448xf32, #tpu.memory_space<vmem>>, vector<162x64xf32>,
    %c5_99 = arith.constant 5 : index
    %c0_100 = arith.constant 0 : index
    %c0_101 = arith.constant 0 : index
    %133 = vector.load %arg17[%c5_99, %c0_100, %c0_101] : memref<7x162x64xf32, #tpu.memory_space<vmem>>, vector<1x162x64xf32>
    %134 = vector.shape_cast %133 : vector<1x162x64xf32> to vector<162x64xf32>
    %c0_102 = arith.constant 0 : index
    %c320 = arith.constant 320 : index
    %135 = vector.load %arg18[%c0_102, %c320] : memref<162x448xf32, #tpu.memory_space<vmem>>, vector<162x64xf32>
    tpu.vector_store %arg18[%c0_102, %c320], %134 {strides = array<i32>} : memref<162x448xf32, #tpu.memory_space<vmem>>, vector<162x64xf32>,
    %c6_103 = arith.constant 6 : index
    %c0_104 = arith.constant 0 : index
    %c0_105 = arith.constant 0 : index
    %136 = vector.load %arg17[%c6_103, %c0_104, %c0_105] : memref<7x162x64xf32, #tpu.memory_space<vmem>>, vector<1x162x64xf32>
    %137 = vector.shape_cast %136 : vector<1x162x64xf32> to vector<162x64xf32>
    %c0_106 = arith.constant 0 : index
    %c384 = arith.constant 384 : index
    %138 = vector.load %arg18[%c0_106, %c384] : memref<162x448xf32, #tpu.memory_space<vmem>>, vector<162x64xf32>
    tpu.vector_store %arg18[%c0_106, %c384], %137 {strides = array<i32>} : memref<162x448xf32, #tpu.memory_space<vmem>>, vector<162x64xf32>,
    %c0_107 = arith.constant 0 : index
    %c0_108 = arith.constant 0 : index
    %139 = vector.load %arg18[%c0_107, %c0_108] : memref<162x448xf32, #tpu.memory_space<vmem>>, vector<162x448xf32>
    %140 = arith.truncf %139 : vector<162x448xf32> to vector<162x448xbf16>
    %c0_109 = arith.constant 0 : index
    %c0_110 = arith.constant 0 : index
    %141 = vector.load %arg8[%c0_109, %c0_110] : memref<448x32xbf16, #tpu.memory_space<vmem>>, vector<448x32xbf16>
    %cst_111 = arith.constant dense<0.000000e+00> : vector<162x32xf32>
    %142 = tpu.matmul %140, %141, %cst_111 {dimension_numbers = #tpu.dot_dimension_numbers<[1], [0], [0], [1], [0, 0, 1, 1], [], []>} : vector<162x448xbf16>, vector<448x32xbf16>, vector<162x32xf32> -> vector<162x32xf32>
    %cst_112 = arith.constant dense<0.000000e+00> : vector<32xf32>
    %143 = vector.multi_reduction <add>, %142, %cst_112 [0] : vector<162x32xf32> to vector<32xf32>
    %144 = vector.shape_cast %143 : vector<32xf32> to vector<1x32xf32>
    %145 = arith.mulf %142, %142 : vector<162x32xf32>
    %cst_113 = arith.constant dense<0.000000e+00> : vector<32xf32>
    %146 = vector.multi_reduction <add>, %145, %cst_113 [0] : vector<162x32xf32> to vector<32xf32>
    %147 = vector.shape_cast %146 : vector<32xf32> to vector<1x32xf32>
    %cst_114 = arith.constant 0.00617283955 : f32
    %148 = vector.broadcast %cst_114 : f32 to vector<1x32xf32>
    %149 = arith.mulf %144, %148 : vector<1x32xf32>
    %cst_115 = arith.constant 0.00617283955 : f32
    %150 = vector.broadcast %cst_115 : f32 to vector<1x32xf32>
    %151 = arith.mulf %147, %150 : vector<1x32xf32>
    %152 = arith.mulf %149, %149 : vector<1x32xf32>
    %153 = arith.subf %151, %152 : vector<1x32xf32>
    %cst_116 = arith.constant 0.000000e+00 : f32
    %154 = vector.broadcast %cst_116 : f32 to vector<1x32xf32>
    %155 = arith.maximumf %153, %154 : vector<1x32xf32>
    %c0_117 = arith.constant 0 : index
    %c0_118 = arith.constant 0 : index
    %156 = vector.load %arg9[%c0_117, %c0_118] : memref<1x32xf32, #tpu.memory_space<vmem>>, vector<1x32xf32>
    %157 = vector.broadcast %149 : vector<1x32xf32> to vector<162x32xf32>
    %158 = arith.subf %142, %157 : vector<162x32xf32>
    %159 = vector.broadcast %156 : vector<1x32xf32> to vector<162x32xf32>
    %160 = arith.mulf %159, %158 : vector<162x32xf32>
    %cst_119 = arith.constant 9.99999974E-6 : f32
    %161 = vector.broadcast %cst_119 : f32 to vector<1x32xf32>
    %162 = arith.addf %155, %161 : vector<1x32xf32>
    %163 = math.rsqrt %162 : vector<1x32xf32>
    %164 = vector.broadcast %163 : vector<1x32xf32> to vector<162x32xf32>
    %165 = arith.mulf %160, %164 : vector<162x32xf32>
    %c0_120 = arith.constant 0 : index
    %c0_121 = arith.constant 0 : index
    %166 = vector.load %arg10[%c0_120, %c0_121] : memref<1x32xf32, #tpu.memory_space<vmem>>, vector<1x32xf32>
    %167 = vector.broadcast %166 : vector<1x32xf32> to vector<162x32xf32>
    %168 = arith.addf %165, %167 : vector<162x32xf32>
    %cst_122 = arith.constant 0.000000e+00 : f32
    %169 = vector.broadcast %cst_122 : f32 to vector<162x32xf32>
    %170 = arith.cmpf oge, %168, %169 : vector<162x32xf32>
    %cst_123 = arith.constant 2.000000e-01 : f32
    %171 = vector.broadcast %cst_123 : f32 to vector<162x32xf32>
    %172 = arith.mulf %171, %168 : vector<162x32xf32>
    %173 = arith.select %170, %168, %172 : vector<162x32xi1>, vector<162x32xf32>
    %c0_124 = arith.constant 0 : index
    %c0_125 = arith.constant 0 : index
    %174 = vector.load %arg20[%c0_124, %c0_125] : memref<162x32xf32, #tpu.memory_space<vmem>>, vector<162x32xf32>
    tpu.vector_store %arg20[%c0_124, %c0_125], %173 {strides = array<i32>} : memref<162x32xf32, #tpu.memory_space<vmem>>, vector<162x32xf32>,
    %c0_i32_126 = arith.constant 0 : i32
    %c20_i32_127 = arith.constant 20 : i32
    %175 = arith.addi %c0_i32_126, %c20_i32_127 : i32
    %c1_i32_128 = arith.constant 1 : i32
    scf.for %arg21 = %c0_i32_126 to %175 step %c1_i32_128  : i32 {
      %c8_i32 = arith.constant 8 : i32
      %317 = arith.muli %arg21, %c8_i32 : i32
      %c0_i32_254 = arith.constant 0 : i32
      %318 = arith.addi %317, %c0_i32_254 : i32
      %c7_i32 = arith.constant 7 : i32
      %319 = arith.muli %318, %c7_i32 : i32
      %c0_i32_255 = arith.constant 0 : i32
      %320 = arith.addi %319, %c0_i32_255 : i32
      %321 = arith.index_cast %320 : i32 to index
      %322 = memref.load %arg1[%321] : memref<1134xi32, #tpu.memory_space<smem>>
      %323 = arith.index_cast %322 : i32 to index
      %c0_256 = arith.constant 0 : index
      %324 = vector.load %arg20[%323, %c0_256] : memref<162x32xf32, #tpu.memory_space<vmem>>, vector<1x32xf32>
      %c0_257 = arith.constant 0 : index
      %325 = arith.index_cast %318 : i32 to index
      %c0_258 = arith.constant 0 : index
      %326 = vector.load %arg17[%c0_257, %325, %c0_258] : memref<7x162x64xf32, #tpu.memory_space<vmem>>, vector<1x1x32xf32>
      %327 = vector.shape_cast %326 : vector<1x1x32xf32> to vector<1x32xf32>
      %328 = vector.shape_cast %324 : vector<1x32xf32> to vector<1x1x32xf32>
      tpu.vector_store %arg17[%c0_257, %325, %c0_258], %328 {strides = array<i32>} : memref<7x162x64xf32, #tpu.memory_space<vmem>>, vector<1x1x32xf32>,
      %c1_i32_259 = arith.constant 1 : i32
      %329 = arith.addi %319, %c1_i32_259 : i32
      %330 = arith.index_cast %329 : i32 to index
      %331 = memref.load %arg1[%330] : memref<1134xi32, #tpu.memory_space<smem>>
      %332 = arith.index_cast %331 : i32 to index
      %c0_260 = arith.constant 0 : index
      %333 = vector.load %arg20[%332, %c0_260] : memref<162x32xf32, #tpu.memory_space<vmem>>, vector<1x32xf32>
      %c1_261 = arith.constant 1 : index
      %334 = arith.index_cast %318 : i32 to index
      %c0_262 = arith.constant 0 : index
      %335 = vector.load %arg17[%c1_261, %334, %c0_262] : memref<7x162x64xf32, #tpu.memory_space<vmem>>, vector<1x1x32xf32>
      %336 = vector.shape_cast %335 : vector<1x1x32xf32> to vector<1x32xf32>
      %337 = vector.shape_cast %333 : vector<1x32xf32> to vector<1x1x32xf32>
      tpu.vector_store %arg17[%c1_261, %334, %c0_262], %337 {strides = array<i32>} : memref<7x162x64xf32, #tpu.memory_space<vmem>>, vector<1x1x32xf32>,
      %c2_i32 = arith.constant 2 : i32
      %338 = arith.addi %319, %c2_i32 : i32
      %339 = arith.index_cast %338 : i32 to index
      %340 = memref.load %arg1[%339] : memref<1134xi32, #tpu.memory_space<smem>>
      %341 = arith.index_cast %340 : i32 to index
      %c0_263 = arith.constant 0 : index
      %342 = vector.load %arg20[%341, %c0_263] : memref<162x32xf32, #tpu.memory_space<vmem>>, vector<1x32xf32>
      %c2_264 = arith.constant 2 : index
      %343 = arith.index_cast %318 : i32 to index
      %c0_265 = arith.constant 0 : index
      %344 = vector.load %arg17[%c2_264, %343, %c0_265] : memref<7x162x64xf32, #tpu.memory_space<vmem>>, vector<1x1x32xf32>
      %345 = vector.shape_cast %344 : vector<1x1x32xf32> to vector<1x32xf32>
      %346 = vector.shape_cast %342 : vector<1x32xf32> to vector<1x1x32xf32>
      tpu.vector_store %arg17[%c2_264, %343, %c0_265], %346 {strides = array<i32>} : memref<7x162x64xf32, #tpu.memory_space<vmem>>, vector<1x1x32xf32>,
      %c3_i32 = arith.constant 3 : i32
      %347 = arith.addi %319, %c3_i32 : i32
      %348 = arith.index_cast %347 : i32 to index
      %349 = memref.load %arg1[%348] : memref<1134xi32, #tpu.memory_space<smem>>
      %350 = arith.index_cast %349 : i32 to index
      %c0_266 = arith.constant 0 : index
      %351 = vector.load %arg20[%350, %c0_266] : memref<162x32xf32, #tpu.memory_space<vmem>>, vector<1x32xf32>
      %c3_267 = arith.constant 3 : index
      %352 = arith.index_cast %318 : i32 to index
      %c0_268 = arith.constant 0 : index
      %353 = vector.load %arg17[%c3_267, %352, %c0_268] : memref<7x162x64xf32, #tpu.memory_space<vmem>>, vector<1x1x32xf32>
      %354 = vector.shape_cast %353 : vector<1x1x32xf32> to vector<1x32xf32>
      %355 = vector.shape_cast %351 : vector<1x32xf32> to vector<1x1x32xf32>
      tpu.vector_store %arg17[%c3_267, %352, %c0_268], %355 {strides = array<i32>} : memref<7x162x64xf32, #tpu.memory_space<vmem>>, vector<1x1x32xf32>,
      %c4_i32 = arith.constant 4 : i32
      %356 = arith.addi %319, %c4_i32 : i32
      %357 = arith.index_cast %356 : i32 to index
      %358 = memref.load %arg1[%357] : memref<1134xi32, #tpu.memory_space<smem>>
      %359 = arith.index_cast %358 : i32 to index
      %c0_269 = arith.constant 0 : index
      %360 = vector.load %arg20[%359, %c0_269] : memref<162x32xf32, #tpu.memory_space<vmem>>, vector<1x32xf32>
      %c4_270 = arith.constant 4 : index
      %361 = arith.index_cast %318 : i32 to index
      %c0_271 = arith.constant 0 : index
      %362 = vector.load %arg17[%c4_270, %361, %c0_271] : memref<7x162x64xf32, #tpu.memory_space<vmem>>, vector<1x1x32xf32>
      %363 = vector.shape_cast %362 : vector<1x1x32xf32> to vector<1x32xf32>
      %364 = vector.shape_cast %360 : vector<1x32xf32> to vector<1x1x32xf32>
      tpu.vector_store %arg17[%c4_270, %361, %c0_271], %364 {strides = array<i32>} : memref<7x162x64xf32, #tpu.memory_space<vmem>>, vector<1x1x32xf32>,
      %c5_i32_272 = arith.constant 5 : i32
      %365 = arith.addi %319, %c5_i32_272 : i32
      %366 = arith.index_cast %365 : i32 to index
      %367 = memref.load %arg1[%366] : memref<1134xi32, #tpu.memory_space<smem>>
      %368 = arith.index_cast %367 : i32 to index
      %c0_273 = arith.constant 0 : index
      %369 = vector.load %arg20[%368, %c0_273] : memref<162x32xf32, #tpu.memory_space<vmem>>, vector<1x32xf32>
      %c5_274 = arith.constant 5 : index
      %370 = arith.index_cast %318 : i32 to index
      %c0_275 = arith.constant 0 : index
      %371 = vector.load %arg17[%c5_274, %370, %c0_275] : memref<7x162x64xf32, #tpu.memory_space<vmem>>, vector<1x1x32xf32>
      %372 = vector.shape_cast %371 : vector<1x1x32xf32> to vector<1x32xf32>
      %373 = vector.shape_cast %369 : vector<1x32xf32> to vector<1x1x32xf32>
      tpu.vector_store %arg17[%c5_274, %370, %c0_275], %373 {strides = array<i32>} : memref<7x162x64xf32, #tpu.memory_space<vmem>>, vector<1x1x32xf32>,
      %c6_i32 = arith.constant 6 : i32
      %374 = arith.addi %319, %c6_i32 : i32
      %375 = arith.index_cast %374 : i32 to index
      %376 = memref.load %arg1[%375] : memref<1134xi32, #tpu.memory_space<smem>>
      %377 = arith.index_cast %376 : i32 to index
      %c0_276 = arith.constant 0 : index
      %378 = vector.load %arg20[%377, %c0_276] : memref<162x32xf32, #tpu.memory_space<vmem>>, vector<1x32xf32>
      %c6_277 = arith.constant 6 : index
      %379 = arith.index_cast %318 : i32 to index
      %c0_278 = arith.constant 0 : index
      %380 = vector.load %arg17[%c6_277, %379, %c0_278] : memref<7x162x64xf32, #tpu.memory_space<vmem>>, vector<1x1x32xf32>
      %381 = vector.shape_cast %380 : vector<1x1x32xf32> to vector<1x32xf32>
      %382 = vector.shape_cast %378 : vector<1x32xf32> to vector<1x1x32xf32>
      tpu.vector_store %arg17[%c6_277, %379, %c0_278], %382 {strides = array<i32>} : memref<7x162x64xf32, #tpu.memory_space<vmem>>, vector<1x1x32xf32>,
      %c8_i32_279 = arith.constant 8 : i32
      %383 = arith.muli %arg21, %c8_i32_279 : i32
      %c1_i32_280 = arith.constant 1 : i32
      %384 = arith.addi %383, %c1_i32_280 : i32
      %c7_i32_281 = arith.constant 7 : i32
      %385 = arith.muli %384, %c7_i32_281 : i32
      %c0_i32_282 = arith.constant 0 : i32
      %386 = arith.addi %385, %c0_i32_282 : i32
      %387 = arith.index_cast %386 : i32 to index
      %388 = memref.load %arg1[%387] : memref<1134xi32, #tpu.memory_space<smem>>
      %389 = arith.index_cast %388 : i32 to index
      %c0_283 = arith.constant 0 : index
      %390 = vector.load %arg20[%389, %c0_283] : memref<162x32xf32, #tpu.memory_space<vmem>>, vector<1x32xf32>
      %c0_284 = arith.constant 0 : index
      %391 = arith.index_cast %384 : i32 to index
      %c0_285 = arith.constant 0 : index
      %392 = vector.load %arg17[%c0_284, %391, %c0_285] : memref<7x162x64xf32, #tpu.memory_space<vmem>>, vector<1x1x32xf32>
      %393 = vector.shape_cast %392 : vector<1x1x32xf32> to vector<1x32xf32>
      %394 = vector.shape_cast %390 : vector<1x32xf32> to vector<1x1x32xf32>
      tpu.vector_store %arg17[%c0_284, %391, %c0_285], %394 {strides = array<i32>} : memref<7x162x64xf32, #tpu.memory_space<vmem>>, vector<1x1x32xf32>,
      %c1_i32_286 = arith.constant 1 : i32
      %395 = arith.addi %385, %c1_i32_286 : i32
      %396 = arith.index_cast %395 : i32 to index
      %397 = memref.load %arg1[%396] : memref<1134xi32, #tpu.memory_space<smem>>
      %398 = arith.index_cast %397 : i32 to index
      %c0_287 = arith.constant 0 : index
      %399 = vector.load %arg20[%398, %c0_287] : memref<162x32xf32, #tpu.memory_space<vmem>>, vector<1x32xf32>
      %c1_288 = arith.constant 1 : index
      %400 = arith.index_cast %384 : i32 to index
      %c0_289 = arith.constant 0 : index
      %401 = vector.load %arg17[%c1_288, %400, %c0_289] : memref<7x162x64xf32, #tpu.memory_space<vmem>>, vector<1x1x32xf32>
      %402 = vector.shape_cast %401 : vector<1x1x32xf32> to vector<1x32xf32>
      %403 = vector.shape_cast %399 : vector<1x32xf32> to vector<1x1x32xf32>
      tpu.vector_store %arg17[%c1_288, %400, %c0_289], %403 {strides = array<i32>} : memref<7x162x64xf32, #tpu.memory_space<vmem>>, vector<1x1x32xf32>,
      %c2_i32_290 = arith.constant 2 : i32
      %404 = arith.addi %385, %c2_i32_290 : i32
      %405 = arith.index_cast %404 : i32 to index
      %406 = memref.load %arg1[%405] : memref<1134xi32, #tpu.memory_space<smem>>
      %407 = arith.index_cast %406 : i32 to index
      %c0_291 = arith.constant 0 : index
      %408 = vector.load %arg20[%407, %c0_291] : memref<162x32xf32, #tpu.memory_space<vmem>>, vector<1x32xf32>
      %c2_292 = arith.constant 2 : index
      %409 = arith.index_cast %384 : i32 to index
      %c0_293 = arith.constant 0 : index
      %410 = vector.load %arg17[%c2_292, %409, %c0_293] : memref<7x162x64xf32, #tpu.memory_space<vmem>>, vector<1x1x32xf32>
      %411 = vector.shape_cast %410 : vector<1x1x32xf32> to vector<1x32xf32>
      %412 = vector.shape_cast %408 : vector<1x32xf32> to vector<1x1x32xf32>
      tpu.vector_store %arg17[%c2_292, %409, %c0_293], %412 {strides = array<i32>} : memref<7x162x64xf32, #tpu.memory_space<vmem>>, vector<1x1x32xf32>,
      %c3_i32_294 = arith.constant 3 : i32
      %413 = arith.addi %385, %c3_i32_294 : i32
      %414 = arith.index_cast %413 : i32 to index
      %415 = memref.load %arg1[%414] : memref<1134xi32, #tpu.memory_space<smem>>
      %416 = arith.index_cast %415 : i32 to index
      %c0_295 = arith.constant 0 : index
      %417 = vector.load %arg20[%416, %c0_295] : memref<162x32xf32, #tpu.memory_space<vmem>>, vector<1x32xf32>
      %c3_296 = arith.constant 3 : index
      %418 = arith.index_cast %384 : i32 to index
      %c0_297 = arith.constant 0 : index
      %419 = vector.load %arg17[%c3_296, %418, %c0_297] : memref<7x162x64xf32, #tpu.memory_space<vmem>>, vector<1x1x32xf32>
      %420 = vector.shape_cast %419 : vector<1x1x32xf32> to vector<1x32xf32>
      %421 = vector.shape_cast %417 : vector<1x32xf32> to vector<1x1x32xf32>
      tpu.vector_store %arg17[%c3_296, %418, %c0_297], %421 {strides = array<i32>} : memref<7x162x64xf32, #tpu.memory_space<vmem>>, vector<1x1x32xf32>,
      %c4_i32_298 = arith.constant 4 : i32
      %422 = arith.addi %385, %c4_i32_298 : i32
      %423 = arith.index_cast %422 : i32 to index
      %424 = memref.load %arg1[%423] : memref<1134xi32, #tpu.memory_space<smem>>
      %425 = arith.index_cast %424 : i32 to index
      %c0_299 = arith.constant 0 : index
      %426 = vector.load %arg20[%425, %c0_299] : memref<162x32xf32, #tpu.memory_space<vmem>>, vector<1x32xf32>
      %c4_300 = arith.constant 4 : index
      %427 = arith.index_cast %384 : i32 to index
      %c0_301 = arith.constant 0 : index
      %428 = vector.load %arg17[%c4_300, %427, %c0_301] : memref<7x162x64xf32, #tpu.memory_space<vmem>>, vector<1x1x32xf32>
      %429 = vector.shape_cast %428 : vector<1x1x32xf32> to vector<1x32xf32>
      %430 = vector.shape_cast %426 : vector<1x32xf32> to vector<1x1x32xf32>
      tpu.vector_store %arg17[%c4_300, %427, %c0_301], %430 {strides = array<i32>} : memref<7x162x64xf32, #tpu.memory_space<vmem>>, vector<1x1x32xf32>,
      %c5_i32_302 = arith.constant 5 : i32
      %431 = arith.addi %385, %c5_i32_302 : i32
      %432 = arith.index_cast %431 : i32 to index
      %433 = memref.load %arg1[%432] : memref<1134xi32, #tpu.memory_space<smem>>
      %434 = arith.index_cast %433 : i32 to index
      %c0_303 = arith.constant 0 : index
      %435 = vector.load %arg20[%434, %c0_303] : memref<162x32xf32, #tpu.memory_space<vmem>>, vector<1x32xf32>
      %c5_304 = arith.constant 5 : index
      %436 = arith.index_cast %384 : i32 to index
      %c0_305 = arith.constant 0 : index
      %437 = vector.load %arg17[%c5_304, %436, %c0_305] : memref<7x162x64xf32, #tpu.memory_space<vmem>>, vector<1x1x32xf32>
      %438 = vector.shape_cast %437 : vector<1x1x32xf32> to vector<1x32xf32>
      %439 = vector.shape_cast %435 : vector<1x32xf32> to vector<1x1x32xf32>
      tpu.vector_store %arg17[%c5_304, %436, %c0_305], %439 {strides = array<i32>} : memref<7x162x64xf32, #tpu.memory_space<vmem>>, vector<1x1x32xf32>,
      %c6_i32_306 = arith.constant 6 : i32
      %440 = arith.addi %385, %c6_i32_306 : i32
      %441 = arith.index_cast %440 : i32 to index
      %442 = memref.load %arg1[%441] : memref<1134xi32, #tpu.memory_space<smem>>
      %443 = arith.index_cast %442 : i32 to index
      %c0_307 = arith.constant 0 : index
      %444 = vector.load %arg20[%443, %c0_307] : memref<162x32xf32, #tpu.memory_space<vmem>>, vector<1x32xf32>
      %c6_308 = arith.constant 6 : index
      %445 = arith.index_cast %384 : i32 to index
      %c0_309 = arith.constant 0 : index
      %446 = vector.load %arg17[%c6_308, %445, %c0_309] : memref<7x162x64xf32, #tpu.memory_space<vmem>>, vector<1x1x32xf32>
      %447 = vector.shape_cast %446 : vector<1x1x32xf32> to vector<1x32xf32>
      %448 = vector.shape_cast %444 : vector<1x32xf32> to vector<1x1x32xf32>
      tpu.vector_store %arg17[%c6_308, %445, %c0_309], %448 {strides = array<i32>} : memref<7x162x64xf32, #tpu.memory_space<vmem>>, vector<1x1x32xf32>,
      %c8_i32_310 = arith.constant 8 : i32
      %449 = arith.muli %arg21, %c8_i32_310 : i32
      %c2_i32_311 = arith.constant 2 : i32
      %450 = arith.addi %449, %c2_i32_311 : i32
      %c7_i32_312 = arith.constant 7 : i32
      %451 = arith.muli %450, %c7_i32_312 : i32
      %c0_i32_313 = arith.constant 0 : i32
      %452 = arith.addi %451, %c0_i32_313 : i32
      %453 = arith.index_cast %452 : i32 to index
      %454 = memref.load %arg1[%453] : memref<1134xi32, #tpu.memory_space<smem>>
      %455 = arith.index_cast %454 : i32 to index
      %c0_314 = arith.constant 0 : index
      %456 = vector.load %arg20[%455, %c0_314] : memref<162x32xf32, #tpu.memory_space<vmem>>, vector<1x32xf32>
      %c0_315 = arith.constant 0 : index
      %457 = arith.index_cast %450 : i32 to index
      %c0_316 = arith.constant 0 : index
      %458 = vector.load %arg17[%c0_315, %457, %c0_316] : memref<7x162x64xf32, #tpu.memory_space<vmem>>, vector<1x1x32xf32>
      %459 = vector.shape_cast %458 : vector<1x1x32xf32> to vector<1x32xf32>
      %460 = vector.shape_cast %456 : vector<1x32xf32> to vector<1x1x32xf32>
      tpu.vector_store %arg17[%c0_315, %457, %c0_316], %460 {strides = array<i32>} : memref<7x162x64xf32, #tpu.memory_space<vmem>>, vector<1x1x32xf32>,
      %c1_i32_317 = arith.constant 1 : i32
      %461 = arith.addi %451, %c1_i32_317 : i32
      %462 = arith.index_cast %461 : i32 to index
      %463 = memref.load %arg1[%462] : memref<1134xi32, #tpu.memory_space<smem>>
      %464 = arith.index_cast %463 : i32 to index
      %c0_318 = arith.constant 0 : index
      %465 = vector.load %arg20[%464, %c0_318] : memref<162x32xf32, #tpu.memory_space<vmem>>, vector<1x32xf32>
      %c1_319 = arith.constant 1 : index
      %466 = arith.index_cast %450 : i32 to index
      %c0_320 = arith.constant 0 : index
      %467 = vector.load %arg17[%c1_319, %466, %c0_320] : memref<7x162x64xf32, #tpu.memory_space<vmem>>, vector<1x1x32xf32>
      %468 = vector.shape_cast %467 : vector<1x1x32xf32> to vector<1x32xf32>
      %469 = vector.shape_cast %465 : vector<1x32xf32> to vector<1x1x32xf32>
      tpu.vector_store %arg17[%c1_319, %466, %c0_320], %469 {strides = array<i32>} : memref<7x162x64xf32, #tpu.memory_space<vmem>>, vector<1x1x32xf32>,
      %c2_i32_321 = arith.constant 2 : i32
      %470 = arith.addi %451, %c2_i32_321 : i32
      %471 = arith.index_cast %470 : i32 to index
      %472 = memref.load %arg1[%471] : memref<1134xi32, #tpu.memory_space<smem>>
      %473 = arith.index_cast %472 : i32 to index
      %c0_322 = arith.constant 0 : index
      %474 = vector.load %arg20[%473, %c0_322] : memref<162x32xf32, #tpu.memory_space<vmem>>, vector<1x32xf32>
      %c2_323 = arith.constant 2 : index
      %475 = arith.index_cast %450 : i32 to index
      %c0_324 = arith.constant 0 : index
      %476 = vector.load %arg17[%c2_323, %475, %c0_324] : memref<7x162x64xf32, #tpu.memory_space<vmem>>, vector<1x1x32xf32>
      %477 = vector.shape_cast %476 : vector<1x1x32xf32> to vector<1x32xf32>
      %478 = vector.shape_cast %474 : vector<1x32xf32> to vector<1x1x32xf32>
      tpu.vector_store %arg17[%c2_323, %475, %c0_324], %478 {strides = array<i32>} : memref<7x162x64xf32, #tpu.memory_space<vmem>>, vector<1x1x32xf32>,
      %c3_i32_325 = arith.constant 3 : i32
      %479 = arith.addi %451, %c3_i32_325 : i32
      %480 = arith.index_cast %479 : i32 to index
      %481 = memref.load %arg1[%480] : memref<1134xi32, #tpu.memory_space<smem>>
      %482 = arith.index_cast %481 : i32 to index
      %c0_326 = arith.constant 0 : index
      %483 = vector.load %arg20[%482, %c0_326] : memref<162x32xf32, #tpu.memory_space<vmem>>, vector<1x32xf32>
      %c3_327 = arith.constant 3 : index
      %484 = arith.index_cast %450 : i32 to index
      %c0_328 = arith.constant 0 : index
      %485 = vector.load %arg17[%c3_327, %484, %c0_328] : memref<7x162x64xf32, #tpu.memory_space<vmem>>, vector<1x1x32xf32>
      %486 = vector.shape_cast %485 : vector<1x1x32xf32> to vector<1x32xf32>
      %487 = vector.shape_cast %483 : vector<1x32xf32> to vector<1x1x32xf32>
      tpu.vector_store %arg17[%c3_327, %484, %c0_328], %487 {strides = array<i32>} : memref<7x162x64xf32, #tpu.memory_space<vmem>>, vector<1x1x32xf32>,
      %c4_i32_329 = arith.constant 4 : i32
      %488 = arith.addi %451, %c4_i32_329 : i32
      %489 = arith.index_cast %488 : i32 to index
      %490 = memref.load %arg1[%489] : memref<1134xi32, #tpu.memory_space<smem>>
      %491 = arith.index_cast %490 : i32 to index
      %c0_330 = arith.constant 0 : index
      %492 = vector.load %arg20[%491, %c0_330] : memref<162x32xf32, #tpu.memory_space<vmem>>, vector<1x32xf32>
      %c4_331 = arith.constant 4 : index
      %493 = arith.index_cast %450 : i32 to index
      %c0_332 = arith.constant 0 : index
      %494 = vector.load %arg17[%c4_331, %493, %c0_332] : memref<7x162x64xf32, #tpu.memory_space<vmem>>, vector<1x1x32xf32>
      %495 = vector.shape_cast %494 : vector<1x1x32xf32> to vector<1x32xf32>
      %496 = vector.shape_cast %492 : vector<1x32xf32> to vector<1x1x32xf32>
      tpu.vector_store %arg17[%c4_331, %493, %c0_332], %496 {strides = array<i32>} : memref<7x162x64xf32, #tpu.memory_space<vmem>>, vector<1x1x32xf32>,
      %c5_i32_333 = arith.constant 5 : i32
      %497 = arith.addi %451, %c5_i32_333 : i32
      %498 = arith.index_cast %497 : i32 to index
      %499 = memref.load %arg1[%498] : memref<1134xi32, #tpu.memory_space<smem>>
      %500 = arith.index_cast %499 : i32 to index
      %c0_334 = arith.constant 0 : index
      %501 = vector.load %arg20[%500, %c0_334] : memref<162x32xf32, #tpu.memory_space<vmem>>, vector<1x32xf32>
      %c5_335 = arith.constant 5 : index
      %502 = arith.index_cast %450 : i32 to index
      %c0_336 = arith.constant 0 : index
      %503 = vector.load %arg17[%c5_335, %502, %c0_336] : memref<7x162x64xf32, #tpu.memory_space<vmem>>, vector<1x1x32xf32>
      %504 = vector.shape_cast %503 : vector<1x1x32xf32> to vector<1x32xf32>
      %505 = vector.shape_cast %501 : vector<1x32xf32> to vector<1x1x32xf32>
      tpu.vector_store %arg17[%c5_335, %502, %c0_336], %505 {strides = array<i32>} : memref<7x162x64xf32, #tpu.memory_space<vmem>>, vector<1x1x32xf32>,
      %c6_i32_337 = arith.constant 6 : i32
      %506 = arith.addi %451, %c6_i32_337 : i32
      %507 = arith.index_cast %506 : i32 to index
      %508 = memref.load %arg1[%507] : memref<1134xi32, #tpu.memory_space<smem>>
      %509 = arith.index_cast %508 : i32 to index
      %c0_338 = arith.constant 0 : index
      %510 = vector.load %arg20[%509, %c0_338] : memref<162x32xf32, #tpu.memory_space<vmem>>, vector<1x32xf32>
      %c6_339 = arith.constant 6 : index
      %511 = arith.index_cast %450 : i32 to index
      %c0_340 = arith.constant 0 : index
      %512 = vector.load %arg17[%c6_339, %511, %c0_340] : memref<7x162x64xf32, #tpu.memory_space<vmem>>, vector<1x1x32xf32>
      %513 = vector.shape_cast %512 : vector<1x1x32xf32> to vector<1x32xf32>
      %514 = vector.shape_cast %510 : vector<1x32xf32> to vector<1x1x32xf32>
      tpu.vector_store %arg17[%c6_339, %511, %c0_340], %514 {strides = array<i32>} : memref<7x162x64xf32, #tpu.memory_space<vmem>>, vector<1x1x32xf32>,
      %c8_i32_341 = arith.constant 8 : i32
      %515 = arith.muli %arg21, %c8_i32_341 : i32
      %c3_i32_342 = arith.constant 3 : i32
      %516 = arith.addi %515, %c3_i32_342 : i32
      %c7_i32_343 = arith.constant 7 : i32
      %517 = arith.muli %516, %c7_i32_343 : i32
      %c0_i32_344 = arith.constant 0 : i32
      %518 = arith.addi %517, %c0_i32_344 : i32
      %519 = arith.index_cast %518 : i32 to index
      %520 = memref.load %arg1[%519] : memref<1134xi32, #tpu.memory_space<smem>>
      %521 = arith.index_cast %520 : i32 to index
      %c0_345 = arith.constant 0 : index
      %522 = vector.load %arg20[%521, %c0_345] : memref<162x32xf32, #tpu.memory_space<vmem>>, vector<1x32xf32>
      %c0_346 = arith.constant 0 : index
      %523 = arith.index_cast %516 : i32 to index
      %c0_347 = arith.constant 0 : index
      %524 = vector.load %arg17[%c0_346, %523, %c0_347] : memref<7x162x64xf32, #tpu.memory_space<vmem>>, vector<1x1x32xf32>
      %525 = vector.shape_cast %524 : vector<1x1x32xf32> to vector<1x32xf32>
      %526 = vector.shape_cast %522 : vector<1x32xf32> to vector<1x1x32xf32>
      tpu.vector_store %arg17[%c0_346, %523, %c0_347], %526 {strides = array<i32>} : memref<7x162x64xf32, #tpu.memory_space<vmem>>, vector<1x1x32xf32>,
      %c1_i32_348 = arith.constant 1 : i32
      %527 = arith.addi %517, %c1_i32_348 : i32
      %528 = arith.index_cast %527 : i32 to index
      %529 = memref.load %arg1[%528] : memref<1134xi32, #tpu.memory_space<smem>>
      %530 = arith.index_cast %529 : i32 to index
      %c0_349 = arith.constant 0 : index
      %531 = vector.load %arg20[%530, %c0_349] : memref<162x32xf32, #tpu.memory_space<vmem>>, vector<1x32xf32>
      %c1_350 = arith.constant 1 : index
      %532 = arith.index_cast %516 : i32 to index
      %c0_351 = arith.constant 0 : index
      %533 = vector.load %arg17[%c1_350, %532, %c0_351] : memref<7x162x64xf32, #tpu.memory_space<vmem>>, vector<1x1x32xf32>
      %534 = vector.shape_cast %533 : vector<1x1x32xf32> to vector<1x32xf32>
      %535 = vector.shape_cast %531 : vector<1x32xf32> to vector<1x1x32xf32>
      tpu.vector_store %arg17[%c1_350, %532, %c0_351], %535 {strides = array<i32>} : memref<7x162x64xf32, #tpu.memory_space<vmem>>, vector<1x1x32xf32>,
      %c2_i32_352 = arith.constant 2 : i32
      %536 = arith.addi %517, %c2_i32_352 : i32
      %537 = arith.index_cast %536 : i32 to index
      %538 = memref.load %arg1[%537] : memref<1134xi32, #tpu.memory_space<smem>>
      %539 = arith.index_cast %538 : i32 to index
      %c0_353 = arith.constant 0 : index
      %540 = vector.load %arg20[%539, %c0_353] : memref<162x32xf32, #tpu.memory_space<vmem>>, vector<1x32xf32>
      %c2_354 = arith.constant 2 : index
      %541 = arith.index_cast %516 : i32 to index
      %c0_355 = arith.constant 0 : index
      %542 = vector.load %arg17[%c2_354, %541, %c0_355] : memref<7x162x64xf32, #tpu.memory_space<vmem>>, vector<1x1x32xf32>
      %543 = vector.shape_cast %542 : vector<1x1x32xf32> to vector<1x32xf32>
      %544 = vector.shape_cast %540 : vector<1x32xf32> to vector<1x1x32xf32>
      tpu.vector_store %arg17[%c2_354, %541, %c0_355], %544 {strides = array<i32>} : memref<7x162x64xf32, #tpu.memory_space<vmem>>, vector<1x1x32xf32>,
      %c3_i32_356 = arith.constant 3 : i32
      %545 = arith.addi %517, %c3_i32_356 : i32
      %546 = arith.index_cast %545 : i32 to index
      %547 = memref.load %arg1[%546] : memref<1134xi32, #tpu.memory_space<smem>>
      %548 = arith.index_cast %547 : i32 to index
      %c0_357 = arith.constant 0 : index
      %549 = vector.load %arg20[%548, %c0_357] : memref<162x32xf32, #tpu.memory_space<vmem>>, vector<1x32xf32>
      %c3_358 = arith.constant 3 : index
      %550 = arith.index_cast %516 : i32 to index
      %c0_359 = arith.constant 0 : index
      %551 = vector.load %arg17[%c3_358, %550, %c0_359] : memref<7x162x64xf32, #tpu.memory_space<vmem>>, vector<1x1x32xf32>
      %552 = vector.shape_cast %551 : vector<1x1x32xf32> to vector<1x32xf32>
      %553 = vector.shape_cast %549 : vector<1x32xf32> to vector<1x1x32xf32>
      tpu.vector_store %arg17[%c3_358, %550, %c0_359], %553 {strides = array<i32>} : memref<7x162x64xf32, #tpu.memory_space<vmem>>, vector<1x1x32xf32>,
      %c4_i32_360 = arith.constant 4 : i32
      %554 = arith.addi %517, %c4_i32_360 : i32
      %555 = arith.index_cast %554 : i32 to index
      %556 = memref.load %arg1[%555] : memref<1134xi32, #tpu.memory_space<smem>>
      %557 = arith.index_cast %556 : i32 to index
      %c0_361 = arith.constant 0 : index
      %558 = vector.load %arg20[%557, %c0_361] : memref<162x32xf32, #tpu.memory_space<vmem>>, vector<1x32xf32>
      %c4_362 = arith.constant 4 : index
      %559 = arith.index_cast %516 : i32 to index
      %c0_363 = arith.constant 0 : index
      %560 = vector.load %arg17[%c4_362, %559, %c0_363] : memref<7x162x64xf32, #tpu.memory_space<vmem>>, vector<1x1x32xf32>
      %561 = vector.shape_cast %560 : vector<1x1x32xf32> to vector<1x32xf32>
      %562 = vector.shape_cast %558 : vector<1x32xf32> to vector<1x1x32xf32>
      tpu.vector_store %arg17[%c4_362, %559, %c0_363], %562 {strides = array<i32>} : memref<7x162x64xf32, #tpu.memory_space<vmem>>, vector<1x1x32xf32>,
      %c5_i32_364 = arith.constant 5 : i32
      %563 = arith.addi %517, %c5_i32_364 : i32
      %564 = arith.index_cast %563 : i32 to index
      %565 = memref.load %arg1[%564] : memref<1134xi32, #tpu.memory_space<smem>>
      %566 = arith.index_cast %565 : i32 to index
      %c0_365 = arith.constant 0 : index
      %567 = vector.load %arg20[%566, %c0_365] : memref<162x32xf32, #tpu.memory_space<vmem>>, vector<1x32xf32>
      %c5_366 = arith.constant 5 : index
      %568 = arith.index_cast %516 : i32 to index
      %c0_367 = arith.constant 0 : index
      %569 = vector.load %arg17[%c5_366, %568, %c0_367] : memref<7x162x64xf32, #tpu.memory_space<vmem>>, vector<1x1x32xf32>
      %570 = vector.shape_cast %569 : vector<1x1x32xf32> to vector<1x32xf32>
      %571 = vector.shape_cast %567 : vector<1x32xf32> to vector<1x1x32xf32>
      tpu.vector_store %arg17[%c5_366, %568, %c0_367], %571 {strides = array<i32>} : memref<7x162x64xf32, #tpu.memory_space<vmem>>, vector<1x1x32xf32>,
      %c6_i32_368 = arith.constant 6 : i32
      %572 = arith.addi %517, %c6_i32_368 : i32
      %573 = arith.index_cast %572 : i32 to index
      %574 = memref.load %arg1[%573] : memref<1134xi32, #tpu.memory_space<smem>>
      %575 = arith.index_cast %574 : i32 to index
      %c0_369 = arith.constant 0 : index
      %576 = vector.load %arg20[%575, %c0_369] : memref<162x32xf32, #tpu.memory_space<vmem>>, vector<1x32xf32>
      %c6_370 = arith.constant 6 : index
      %577 = arith.index_cast %516 : i32 to index
      %c0_371 = arith.constant 0 : index
      %578 = vector.load %arg17[%c6_370, %577, %c0_371] : memref<7x162x64xf32, #tpu.memory_space<vmem>>, vector<1x1x32xf32>
      %579 = vector.shape_cast %578 : vector<1x1x32xf32> to vector<1x32xf32>
      %580 = vector.shape_cast %576 : vector<1x32xf32> to vector<1x1x32xf32>
      tpu.vector_store %arg17[%c6_370, %577, %c0_371], %580 {strides = array<i32>} : memref<7x162x64xf32, #tpu.memory_space<vmem>>, vector<1x1x32xf32>,
      %c8_i32_372 = arith.constant 8 : i32
      %581 = arith.muli %arg21, %c8_i32_372 : i32
      %c4_i32_373 = arith.constant 4 : i32
      %582 = arith.addi %581, %c4_i32_373 : i32
      %c7_i32_374 = arith.constant 7 : i32
      %583 = arith.muli %582, %c7_i32_374 : i32
      %c0_i32_375 = arith.constant 0 : i32
      %584 = arith.addi %583, %c0_i32_375 : i32
      %585 = arith.index_cast %584 : i32 to index
      %586 = memref.load %arg1[%585] : memref<1134xi32, #tpu.memory_space<smem>>
      %587 = arith.index_cast %586 : i32 to index
      %c0_376 = arith.constant 0 : index
      %588 = vector.load %arg20[%587, %c0_376] : memref<162x32xf32, #tpu.memory_space<vmem>>, vector<1x32xf32>
      %c0_377 = arith.constant 0 : index
      %589 = arith.index_cast %582 : i32 to index
      %c0_378 = arith.constant 0 : index
      %590 = vector.load %arg17[%c0_377, %589, %c0_378] : memref<7x162x64xf32, #tpu.memory_space<vmem>>, vector<1x1x32xf32>
      %591 = vector.shape_cast %590 : vector<1x1x32xf32> to vector<1x32xf32>
      %592 = vector.shape_cast %588 : vector<1x32xf32> to vector<1x1x32xf32>
      tpu.vector_store %arg17[%c0_377, %589, %c0_378], %592 {strides = array<i32>} : memref<7x162x64xf32, #tpu.memory_space<vmem>>, vector<1x1x32xf32>,
      %c1_i32_379 = arith.constant 1 : i32
      %593 = arith.addi %583, %c1_i32_379 : i32
      %594 = arith.index_cast %593 : i32 to index
      %595 = memref.load %arg1[%594] : memref<1134xi32, #tpu.memory_space<smem>>
      %596 = arith.index_cast %595 : i32 to index
      %c0_380 = arith.constant 0 : index
      %597 = vector.load %arg20[%596, %c0_380] : memref<162x32xf32, #tpu.memory_space<vmem>>, vector<1x32xf32>
      %c1_381 = arith.constant 1 : index
      %598 = arith.index_cast %582 : i32 to index
      %c0_382 = arith.constant 0 : index
      %599 = vector.load %arg17[%c1_381, %598, %c0_382] : memref<7x162x64xf32, #tpu.memory_space<vmem>>, vector<1x1x32xf32>
      %600 = vector.shape_cast %599 : vector<1x1x32xf32> to vector<1x32xf32>
      %601 = vector.shape_cast %597 : vector<1x32xf32> to vector<1x1x32xf32>
      tpu.vector_store %arg17[%c1_381, %598, %c0_382], %601 {strides = array<i32>} : memref<7x162x64xf32, #tpu.memory_space<vmem>>, vector<1x1x32xf32>,
      %c2_i32_383 = arith.constant 2 : i32
      %602 = arith.addi %583, %c2_i32_383 : i32
      %603 = arith.index_cast %602 : i32 to index
      %604 = memref.load %arg1[%603] : memref<1134xi32, #tpu.memory_space<smem>>
      %605 = arith.index_cast %604 : i32 to index
      %c0_384 = arith.constant 0 : index
      %606 = vector.load %arg20[%605, %c0_384] : memref<162x32xf32, #tpu.memory_space<vmem>>, vector<1x32xf32>
      %c2_385 = arith.constant 2 : index
      %607 = arith.index_cast %582 : i32 to index
      %c0_386 = arith.constant 0 : index
      %608 = vector.load %arg17[%c2_385, %607, %c0_386] : memref<7x162x64xf32, #tpu.memory_space<vmem>>, vector<1x1x32xf32>
      %609 = vector.shape_cast %608 : vector<1x1x32xf32> to vector<1x32xf32>
      %610 = vector.shape_cast %606 : vector<1x32xf32> to vector<1x1x32xf32>
      tpu.vector_store %arg17[%c2_385, %607, %c0_386], %610 {strides = array<i32>} : memref<7x162x64xf32, #tpu.memory_space<vmem>>, vector<1x1x32xf32>,
      %c3_i32_387 = arith.constant 3 : i32
      %611 = arith.addi %583, %c3_i32_387 : i32
      %612 = arith.index_cast %611 : i32 to index
      %613 = memref.load %arg1[%612] : memref<1134xi32, #tpu.memory_space<smem>>
      %614 = arith.index_cast %613 : i32 to index
      %c0_388 = arith.constant 0 : index
      %615 = vector.load %arg20[%614, %c0_388] : memref<162x32xf32, #tpu.memory_space<vmem>>, vector<1x32xf32>
      %c3_389 = arith.constant 3 : index
      %616 = arith.index_cast %582 : i32 to index
      %c0_390 = arith.constant 0 : index
      %617 = vector.load %arg17[%c3_389, %616, %c0_390] : memref<7x162x64xf32, #tpu.memory_space<vmem>>, vector<1x1x32xf32>
      %618 = vector.shape_cast %617 : vector<1x1x32xf32> to vector<1x32xf32>
      %619 = vector.shape_cast %615 : vector<1x32xf32> to vector<1x1x32xf32>
      tpu.vector_store %arg17[%c3_389, %616, %c0_390], %619 {strides = array<i32>} : memref<7x162x64xf32, #tpu.memory_space<vmem>>, vector<1x1x32xf32>,
      %c4_i32_391 = arith.constant 4 : i32
      %620 = arith.addi %583, %c4_i32_391 : i32
      %621 = arith.index_cast %620 : i32 to index
      %622 = memref.load %arg1[%621] : memref<1134xi32, #tpu.memory_space<smem>>
      %623 = arith.index_cast %622 : i32 to index
      %c0_392 = arith.constant 0 : index
      %624 = vector.load %arg20[%623, %c0_392] : memref<162x32xf32, #tpu.memory_space<vmem>>, vector<1x32xf32>
      %c4_393 = arith.constant 4 : index
      %625 = arith.index_cast %582 : i32 to index
      %c0_394 = arith.constant 0 : index
      %626 = vector.load %arg17[%c4_393, %625, %c0_394] : memref<7x162x64xf32, #tpu.memory_space<vmem>>, vector<1x1x32xf32>
      %627 = vector.shape_cast %626 : vector<1x1x32xf32> to vector<1x32xf32>
      %628 = vector.shape_cast %624 : vector<1x32xf32> to vector<1x1x32xf32>
      tpu.vector_store %arg17[%c4_393, %625, %c0_394], %628 {strides = array<i32>} : memref<7x162x64xf32, #tpu.memory_space<vmem>>, vector<1x1x32xf32>,
      %c5_i32_395 = arith.constant 5 : i32
      %629 = arith.addi %583, %c5_i32_395 : i32
      %630 = arith.index_cast %629 : i32 to index
      %631 = memref.load %arg1[%630] : memref<1134xi32, #tpu.memory_space<smem>>
      %632 = arith.index_cast %631 : i32 to index
      %c0_396 = arith.constant 0 : index
      %633 = vector.load %arg20[%632, %c0_396] : memref<162x32xf32, #tpu.memory_space<vmem>>, vector<1x32xf32>
      %c5_397 = arith.constant 5 : index
      %634 = arith.index_cast %582 : i32 to index
      %c0_398 = arith.constant 0 : index
      %635 = vector.load %arg17[%c5_397, %634, %c0_398] : memref<7x162x64xf32, #tpu.memory_space<vmem>>, vector<1x1x32xf32>
      %636 = vector.shape_cast %635 : vector<1x1x32xf32> to vector<1x32xf32>
      %637 = vector.shape_cast %633 : vector<1x32xf32> to vector<1x1x32xf32>
      tpu.vector_store %arg17[%c5_397, %634, %c0_398], %637 {strides = array<i32>} : memref<7x162x64xf32, #tpu.memory_space<vmem>>, vector<1x1x32xf32>,
      %c6_i32_399 = arith.constant 6 : i32
      %638 = arith.addi %583, %c6_i32_399 : i32
      %639 = arith.index_cast %638 : i32 to index
      %640 = memref.load %arg1[%639] : memref<1134xi32, #tpu.memory_space<smem>>
      %641 = arith.index_cast %640 : i32 to index
      %c0_400 = arith.constant 0 : index
      %642 = vector.load %arg20[%641, %c0_400] : memref<162x32xf32, #tpu.memory_space<vmem>>, vector<1x32xf32>
      %c6_401 = arith.constant 6 : index
      %643 = arith.index_cast %582 : i32 to index
      %c0_402 = arith.constant 0 : index
      %644 = vector.load %arg17[%c6_401, %643, %c0_402] : memref<7x162x64xf32, #tpu.memory_space<vmem>>, vector<1x1x32xf32>
      %645 = vector.shape_cast %644 : vector<1x1x32xf32> to vector<1x32xf32>
      %646 = vector.shape_cast %642 : vector<1x32xf32> to vector<1x1x32xf32>
      tpu.vector_store %arg17[%c6_401, %643, %c0_402], %646 {strides = array<i32>} : memref<7x162x64xf32, #tpu.memory_space<vmem>>, vector<1x1x32xf32>,
      %c8_i32_403 = arith.constant 8 : i32
      %647 = arith.muli %arg21, %c8_i32_403 : i32
      %c5_i32_404 = arith.constant 5 : i32
      %648 = arith.addi %647, %c5_i32_404 : i32
      %c7_i32_405 = arith.constant 7 : i32
      %649 = arith.muli %648, %c7_i32_405 : i32
      %c0_i32_406 = arith.constant 0 : i32
      %650 = arith.addi %649, %c0_i32_406 : i32
      %651 = arith.index_cast %650 : i32 to index
      %652 = memref.load %arg1[%651] : memref<1134xi32, #tpu.memory_space<smem>>
      %653 = arith.index_cast %652 : i32 to index
      %c0_407 = arith.constant 0 : index
      %654 = vector.load %arg20[%653, %c0_407] : memref<162x32xf32, #tpu.memory_space<vmem>>, vector<1x32xf32>
      %c0_408 = arith.constant 0 : index
      %655 = arith.index_cast %648 : i32 to index
      %c0_409 = arith.constant 0 : index
      %656 = vector.load %arg17[%c0_408, %655, %c0_409] : memref<7x162x64xf32, #tpu.memory_space<vmem>>, vector<1x1x32xf32>
      %657 = vector.shape_cast %656 : vector<1x1x32xf32> to vector<1x32xf32>
      %658 = vector.shape_cast %654 : vector<1x32xf32> to vector<1x1x32xf32>
      tpu.vector_store %arg17[%c0_408, %655, %c0_409], %658 {strides = array<i32>} : memref<7x162x64xf32, #tpu.memory_space<vmem>>, vector<1x1x32xf32>,
      %c1_i32_410 = arith.constant 1 : i32
      %659 = arith.addi %649, %c1_i32_410 : i32
      %660 = arith.index_cast %659 : i32 to index
      %661 = memref.load %arg1[%660] : memref<1134xi32, #tpu.memory_space<smem>>
      %662 = arith.index_cast %661 : i32 to index
      %c0_411 = arith.constant 0 : index
      %663 = vector.load %arg20[%662, %c0_411] : memref<162x32xf32, #tpu.memory_space<vmem>>, vector<1x32xf32>
      %c1_412 = arith.constant 1 : index
      %664 = arith.index_cast %648 : i32 to index
      %c0_413 = arith.constant 0 : index
      %665 = vector.load %arg17[%c1_412, %664, %c0_413] : memref<7x162x64xf32, #tpu.memory_space<vmem>>, vector<1x1x32xf32>
      %666 = vector.shape_cast %665 : vector<1x1x32xf32> to vector<1x32xf32>
      %667 = vector.shape_cast %663 : vector<1x32xf32> to vector<1x1x32xf32>
      tpu.vector_store %arg17[%c1_412, %664, %c0_413], %667 {strides = array<i32>} : memref<7x162x64xf32, #tpu.memory_space<vmem>>, vector<1x1x32xf32>,
      %c2_i32_414 = arith.constant 2 : i32
      %668 = arith.addi %649, %c2_i32_414 : i32
      %669 = arith.index_cast %668 : i32 to index
      %670 = memref.load %arg1[%669] : memref<1134xi32, #tpu.memory_space<smem>>
      %671 = arith.index_cast %670 : i32 to index
      %c0_415 = arith.constant 0 : index
      %672 = vector.load %arg20[%671, %c0_415] : memref<162x32xf32, #tpu.memory_space<vmem>>, vector<1x32xf32>
      %c2_416 = arith.constant 2 : index
      %673 = arith.index_cast %648 : i32 to index
      %c0_417 = arith.constant 0 : index
      %674 = vector.load %arg17[%c2_416, %673, %c0_417] : memref<7x162x64xf32, #tpu.memory_space<vmem>>, vector<1x1x32xf32>
      %675 = vector.shape_cast %674 : vector<1x1x32xf32> to vector<1x32xf32>
      %676 = vector.shape_cast %672 : vector<1x32xf32> to vector<1x1x32xf32>
      tpu.vector_store %arg17[%c2_416, %673, %c0_417], %676 {strides = array<i32>} : memref<7x162x64xf32, #tpu.memory_space<vmem>>, vector<1x1x32xf32>,
      %c3_i32_418 = arith.constant 3 : i32
      %677 = arith.addi %649, %c3_i32_418 : i32
      %678 = arith.index_cast %677 : i32 to index
      %679 = memref.load %arg1[%678] : memref<1134xi32, #tpu.memory_space<smem>>
      %680 = arith.index_cast %679 : i32 to index
      %c0_419 = arith.constant 0 : index
      %681 = vector.load %arg20[%680, %c0_419] : memref<162x32xf32, #tpu.memory_space<vmem>>, vector<1x32xf32>
      %c3_420 = arith.constant 3 : index
      %682 = arith.index_cast %648 : i32 to index
      %c0_421 = arith.constant 0 : index
      %683 = vector.load %arg17[%c3_420, %682, %c0_421] : memref<7x162x64xf32, #tpu.memory_space<vmem>>, vector<1x1x32xf32>
      %684 = vector.shape_cast %683 : vector<1x1x32xf32> to vector<1x32xf32>
      %685 = vector.shape_cast %681 : vector<1x32xf32> to vector<1x1x32xf32>
      tpu.vector_store %arg17[%c3_420, %682, %c0_421], %685 {strides = array<i32>} : memref<7x162x64xf32, #tpu.memory_space<vmem>>, vector<1x1x32xf32>,
      %c4_i32_422 = arith.constant 4 : i32
      %686 = arith.addi %649, %c4_i32_422 : i32
      %687 = arith.index_cast %686 : i32 to index
      %688 = memref.load %arg1[%687] : memref<1134xi32, #tpu.memory_space<smem>>
      %689 = arith.index_cast %688 : i32 to index
      %c0_423 = arith.constant 0 : index
      %690 = vector.load %arg20[%689, %c0_423] : memref<162x32xf32, #tpu.memory_space<vmem>>, vector<1x32xf32>
      %c4_424 = arith.constant 4 : index
      %691 = arith.index_cast %648 : i32 to index
      %c0_425 = arith.constant 0 : index
      %692 = vector.load %arg17[%c4_424, %691, %c0_425] : memref<7x162x64xf32, #tpu.memory_space<vmem>>, vector<1x1x32xf32>
      %693 = vector.shape_cast %692 : vector<1x1x32xf32> to vector<1x32xf32>
      %694 = vector.shape_cast %690 : vector<1x32xf32> to vector<1x1x32xf32>
      tpu.vector_store %arg17[%c4_424, %691, %c0_425], %694 {strides = array<i32>} : memref<7x162x64xf32, #tpu.memory_space<vmem>>, vector<1x1x32xf32>,
      %c5_i32_426 = arith.constant 5 : i32
      %695 = arith.addi %649, %c5_i32_426 : i32
      %696 = arith.index_cast %695 : i32 to index
      %697 = memref.load %arg1[%696] : memref<1134xi32, #tpu.memory_space<smem>>
      %698 = arith.index_cast %697 : i32 to index
      %c0_427 = arith.constant 0 : index
      %699 = vector.load %arg20[%698, %c0_427] : memref<162x32xf32, #tpu.memory_space<vmem>>, vector<1x32xf32>
      %c5_428 = arith.constant 5 : index
      %700 = arith.index_cast %648 : i32 to index
      %c0_429 = arith.constant 0 : index
      %701 = vector.load %arg17[%c5_428, %700, %c0_429] : memref<7x162x64xf32, #tpu.memory_space<vmem>>, vector<1x1x32xf32>
      %702 = vector.shape_cast %701 : vector<1x1x32xf32> to vector<1x32xf32>
      %703 = vector.shape_cast %699 : vector<1x32xf32> to vector<1x1x32xf32>
      tpu.vector_store %arg17[%c5_428, %700, %c0_429], %703 {strides = array<i32>} : memref<7x162x64xf32, #tpu.memory_space<vmem>>, vector<1x1x32xf32>,
      %c6_i32_430 = arith.constant 6 : i32
      %704 = arith.addi %649, %c6_i32_430 : i32
      %705 = arith.index_cast %704 : i32 to index
      %706 = memref.load %arg1[%705] : memref<1134xi32, #tpu.memory_space<smem>>
      %707 = arith.index_cast %706 : i32 to index
      %c0_431 = arith.constant 0 : index
      %708 = vector.load %arg20[%707, %c0_431] : memref<162x32xf32, #tpu.memory_space<vmem>>, vector<1x32xf32>
      %c6_432 = arith.constant 6 : index
      %709 = arith.index_cast %648 : i32 to index
      %c0_433 = arith.constant 0 : index
      %710 = vector.load %arg17[%c6_432, %709, %c0_433] : memref<7x162x64xf32, #tpu.memory_space<vmem>>, vector<1x1x32xf32>
      %711 = vector.shape_cast %710 : vector<1x1x32xf32> to vector<1x32xf32>
      %712 = vector.shape_cast %708 : vector<1x32xf32> to vector<1x1x32xf32>
      tpu.vector_store %arg17[%c6_432, %709, %c0_433], %712 {strides = array<i32>} : memref<7x162x64xf32, #tpu.memory_space<vmem>>, vector<1x1x32xf32>,
      %c8_i32_434 = arith.constant 8 : i32
      %713 = arith.muli %arg21, %c8_i32_434 : i32
      %c6_i32_435 = arith.constant 6 : i32
      %714 = arith.addi %713, %c6_i32_435 : i32
      %c7_i32_436 = arith.constant 7 : i32
      %715 = arith.muli %714, %c7_i32_436 : i32
      %c0_i32_437 = arith.constant 0 : i32
      %716 = arith.addi %715, %c0_i32_437 : i32
      %717 = arith.index_cast %716 : i32 to index
      %718 = memref.load %arg1[%717] : memref<1134xi32, #tpu.memory_space<smem>>
      %719 = arith.index_cast %718 : i32 to index
      %c0_438 = arith.constant 0 : index
      %720 = vector.load %arg20[%719, %c0_438] : memref<162x32xf32, #tpu.memory_space<vmem>>, vector<1x32xf32>
      %c0_439 = arith.constant 0 : index
      %721 = arith.index_cast %714 : i32 to index
      %c0_440 = arith.constant 0 : index
      %722 = vector.load %arg17[%c0_439, %721, %c0_440] : memref<7x162x64xf32, #tpu.memory_space<vmem>>, vector<1x1x32xf32>
      %723 = vector.shape_cast %722 : vector<1x1x32xf32> to vector<1x32xf32>
      %724 = vector.shape_cast %720 : vector<1x32xf32> to vector<1x1x32xf32>
      tpu.vector_store %arg17[%c0_439, %721, %c0_440], %724 {strides = array<i32>} : memref<7x162x64xf32, #tpu.memory_space<vmem>>, vector<1x1x32xf32>,
      %c1_i32_441 = arith.constant 1 : i32
      %725 = arith.addi %715, %c1_i32_441 : i32
      %726 = arith.index_cast %725 : i32 to index
      %727 = memref.load %arg1[%726] : memref<1134xi32, #tpu.memory_space<smem>>
      %728 = arith.index_cast %727 : i32 to index
      %c0_442 = arith.constant 0 : index
      %729 = vector.load %arg20[%728, %c0_442] : memref<162x32xf32, #tpu.memory_space<vmem>>, vector<1x32xf32>
      %c1_443 = arith.constant 1 : index
      %730 = arith.index_cast %714 : i32 to index
      %c0_444 = arith.constant 0 : index
      %731 = vector.load %arg17[%c1_443, %730, %c0_444] : memref<7x162x64xf32, #tpu.memory_space<vmem>>, vector<1x1x32xf32>
      %732 = vector.shape_cast %731 : vector<1x1x32xf32> to vector<1x32xf32>
      %733 = vector.shape_cast %729 : vector<1x32xf32> to vector<1x1x32xf32>
      tpu.vector_store %arg17[%c1_443, %730, %c0_444], %733 {strides = array<i32>} : memref<7x162x64xf32, #tpu.memory_space<vmem>>, vector<1x1x32xf32>,
      %c2_i32_445 = arith.constant 2 : i32
      %734 = arith.addi %715, %c2_i32_445 : i32
      %735 = arith.index_cast %734 : i32 to index
      %736 = memref.load %arg1[%735] : memref<1134xi32, #tpu.memory_space<smem>>
      %737 = arith.index_cast %736 : i32 to index
      %c0_446 = arith.constant 0 : index
      %738 = vector.load %arg20[%737, %c0_446] : memref<162x32xf32, #tpu.memory_space<vmem>>, vector<1x32xf32>
      %c2_447 = arith.constant 2 : index
      %739 = arith.index_cast %714 : i32 to index
      %c0_448 = arith.constant 0 : index
      %740 = vector.load %arg17[%c2_447, %739, %c0_448] : memref<7x162x64xf32, #tpu.memory_space<vmem>>, vector<1x1x32xf32>
      %741 = vector.shape_cast %740 : vector<1x1x32xf32> to vector<1x32xf32>
      %742 = vector.shape_cast %738 : vector<1x32xf32> to vector<1x1x32xf32>
      tpu.vector_store %arg17[%c2_447, %739, %c0_448], %742 {strides = array<i32>} : memref<7x162x64xf32, #tpu.memory_space<vmem>>, vector<1x1x32xf32>,
      %c3_i32_449 = arith.constant 3 : i32
      %743 = arith.addi %715, %c3_i32_449 : i32
      %744 = arith.index_cast %743 : i32 to index
      %745 = memref.load %arg1[%744] : memref<1134xi32, #tpu.memory_space<smem>>
      %746 = arith.index_cast %745 : i32 to index
      %c0_450 = arith.constant 0 : index
      %747 = vector.load %arg20[%746, %c0_450] : memref<162x32xf32, #tpu.memory_space<vmem>>, vector<1x32xf32>
      %c3_451 = arith.constant 3 : index
      %748 = arith.index_cast %714 : i32 to index
      %c0_452 = arith.constant 0 : index
      %749 = vector.load %arg17[%c3_451, %748, %c0_452] : memref<7x162x64xf32, #tpu.memory_space<vmem>>, vector<1x1x32xf32>
      %750 = vector.shape_cast %749 : vector<1x1x32xf32> to vector<1x32xf32>
      %751 = vector.shape_cast %747 : vector<1x32xf32> to vector<1x1x32xf32>
      tpu.vector_store %arg17[%c3_451, %748, %c0_452], %751 {strides = array<i32>} : memref<7x162x64xf32, #tpu.memory_space<vmem>>, vector<1x1x32xf32>,
      %c4_i32_453 = arith.constant 4 : i32
      %752 = arith.addi %715, %c4_i32_453 : i32
      %753 = arith.index_cast %752 : i32 to index
      %754 = memref.load %arg1[%753] : memref<1134xi32, #tpu.memory_space<smem>>
      %755 = arith.index_cast %754 : i32 to index
      %c0_454 = arith.constant 0 : index
      %756 = vector.load %arg20[%755, %c0_454] : memref<162x32xf32, #tpu.memory_space<vmem>>, vector<1x32xf32>
      %c4_455 = arith.constant 4 : index
      %757 = arith.index_cast %714 : i32 to index
      %c0_456 = arith.constant 0 : index
      %758 = vector.load %arg17[%c4_455, %757, %c0_456] : memref<7x162x64xf32, #tpu.memory_space<vmem>>, vector<1x1x32xf32>
      %759 = vector.shape_cast %758 : vector<1x1x32xf32> to vector<1x32xf32>
      %760 = vector.shape_cast %756 : vector<1x32xf32> to vector<1x1x32xf32>
      tpu.vector_store %arg17[%c4_455, %757, %c0_456], %760 {strides = array<i32>} : memref<7x162x64xf32, #tpu.memory_space<vmem>>, vector<1x1x32xf32>,
      %c5_i32_457 = arith.constant 5 : i32
      %761 = arith.addi %715, %c5_i32_457 : i32
      %762 = arith.index_cast %761 : i32 to index
      %763 = memref.load %arg1[%762] : memref<1134xi32, #tpu.memory_space<smem>>
      %764 = arith.index_cast %763 : i32 to index
      %c0_458 = arith.constant 0 : index
      %765 = vector.load %arg20[%764, %c0_458] : memref<162x32xf32, #tpu.memory_space<vmem>>, vector<1x32xf32>
      %c5_459 = arith.constant 5 : index
      %766 = arith.index_cast %714 : i32 to index
      %c0_460 = arith.constant 0 : index
      %767 = vector.load %arg17[%c5_459, %766, %c0_460] : memref<7x162x64xf32, #tpu.memory_space<vmem>>, vector<1x1x32xf32>
      %768 = vector.shape_cast %767 : vector<1x1x32xf32> to vector<1x32xf32>
      %769 = vector.shape_cast %765 : vector<1x32xf32> to vector<1x1x32xf32>
      tpu.vector_store %arg17[%c5_459, %766, %c0_460], %769 {strides = array<i32>} : memref<7x162x64xf32, #tpu.memory_space<vmem>>, vector<1x1x32xf32>,
      %c6_i32_461 = arith.constant 6 : i32
      %770 = arith.addi %715, %c6_i32_461 : i32
      %771 = arith.index_cast %770 : i32 to index
      %772 = memref.load %arg1[%771] : memref<1134xi32, #tpu.memory_space<smem>>
      %773 = arith.index_cast %772 : i32 to index
      %c0_462 = arith.constant 0 : index
      %774 = vector.load %arg20[%773, %c0_462] : memref<162x32xf32, #tpu.memory_space<vmem>>, vector<1x32xf32>
      %c6_463 = arith.constant 6 : index
      %775 = arith.index_cast %714 : i32 to index
      %c0_464 = arith.constant 0 : index
      %776 = vector.load %arg17[%c6_463, %775, %c0_464] : memref<7x162x64xf32, #tpu.memory_space<vmem>>, vector<1x1x32xf32>
      %777 = vector.shape_cast %776 : vector<1x1x32xf32> to vector<1x32xf32>
      %778 = vector.shape_cast %774 : vector<1x32xf32> to vector<1x1x32xf32>
      tpu.vector_store %arg17[%c6_463, %775, %c0_464], %778 {strides = array<i32>} : memref<7x162x64xf32, #tpu.memory_space<vmem>>, vector<1x1x32xf32>,
      %c8_i32_465 = arith.constant 8 : i32
      %779 = arith.muli %arg21, %c8_i32_465 : i32
      %c7_i32_466 = arith.constant 7 : i32
      %780 = arith.addi %779, %c7_i32_466 : i32
      %c7_i32_467 = arith.constant 7 : i32
      %781 = arith.muli %780, %c7_i32_467 : i32
      %c0_i32_468 = arith.constant 0 : i32
      %782 = arith.addi %781, %c0_i32_468 : i32
      %783 = arith.index_cast %782 : i32 to index
      %784 = memref.load %arg1[%783] : memref<1134xi32, #tpu.memory_space<smem>>
      %785 = arith.index_cast %784 : i32 to index
      %c0_469 = arith.constant 0 : index
      %786 = vector.load %arg20[%785, %c0_469] : memref<162x32xf32, #tpu.memory_space<vmem>>, vector<1x32xf32>
      %c0_470 = arith.constant 0 : index
      %787 = arith.index_cast %780 : i32 to index
      %c0_471 = arith.constant 0 : index
      %788 = vector.load %arg17[%c0_470, %787, %c0_471] : memref<7x162x64xf32, #tpu.memory_space<vmem>>, vector<1x1x32xf32>
      %789 = vector.shape_cast %788 : vector<1x1x32xf32> to vector<1x32xf32>
      %790 = vector.shape_cast %786 : vector<1x32xf32> to vector<1x1x32xf32>
      tpu.vector_store %arg17[%c0_470, %787, %c0_471], %790 {strides = array<i32>} : memref<7x162x64xf32, #tpu.memory_space<vmem>>, vector<1x1x32xf32>,
      %c1_i32_472 = arith.constant 1 : i32
      %791 = arith.addi %781, %c1_i32_472 : i32
      %792 = arith.index_cast %791 : i32 to index
      %793 = memref.load %arg1[%792] : memref<1134xi32, #tpu.memory_space<smem>>
      %794 = arith.index_cast %793 : i32 to index
      %c0_473 = arith.constant 0 : index
      %795 = vector.load %arg20[%794, %c0_473] : memref<162x32xf32, #tpu.memory_space<vmem>>, vector<1x32xf32>
      %c1_474 = arith.constant 1 : index
      %796 = arith.index_cast %780 : i32 to index
      %c0_475 = arith.constant 0 : index
      %797 = vector.load %arg17[%c1_474, %796, %c0_475] : memref<7x162x64xf32, #tpu.memory_space<vmem>>, vector<1x1x32xf32>
      %798 = vector.shape_cast %797 : vector<1x1x32xf32> to vector<1x32xf32>
      %799 = vector.shape_cast %795 : vector<1x32xf32> to vector<1x1x32xf32>
      tpu.vector_store %arg17[%c1_474, %796, %c0_475], %799 {strides = array<i32>} : memref<7x162x64xf32, #tpu.memory_space<vmem>>, vector<1x1x32xf32>,
      %c2_i32_476 = arith.constant 2 : i32
      %800 = arith.addi %781, %c2_i32_476 : i32
      %801 = arith.index_cast %800 : i32 to index
      %802 = memref.load %arg1[%801] : memref<1134xi32, #tpu.memory_space<smem>>
      %803 = arith.index_cast %802 : i32 to index
      %c0_477 = arith.constant 0 : index
      %804 = vector.load %arg20[%803, %c0_477] : memref<162x32xf32, #tpu.memory_space<vmem>>, vector<1x32xf32>
      %c2_478 = arith.constant 2 : index
      %805 = arith.index_cast %780 : i32 to index
      %c0_479 = arith.constant 0 : index
      %806 = vector.load %arg17[%c2_478, %805, %c0_479] : memref<7x162x64xf32, #tpu.memory_space<vmem>>, vector<1x1x32xf32>
      %807 = vector.shape_cast %806 : vector<1x1x32xf32> to vector<1x32xf32>
      %808 = vector.shape_cast %804 : vector<1x32xf32> to vector<1x1x32xf32>
      tpu.vector_store %arg17[%c2_478, %805, %c0_479], %808 {strides = array<i32>} : memref<7x162x64xf32, #tpu.memory_space<vmem>>, vector<1x1x32xf32>,
      %c3_i32_480 = arith.constant 3 : i32
      %809 = arith.addi %781, %c3_i32_480 : i32
      %810 = arith.index_cast %809 : i32 to index
      %811 = memref.load %arg1[%810] : memref<1134xi32, #tpu.memory_space<smem>>
      %812 = arith.index_cast %811 : i32 to index
      %c0_481 = arith.constant 0 : index
      %813 = vector.load %arg20[%812, %c0_481] : memref<162x32xf32, #tpu.memory_space<vmem>>, vector<1x32xf32>
      %c3_482 = arith.constant 3 : index
      %814 = arith.index_cast %780 : i32 to index
      %c0_483 = arith.constant 0 : index
      %815 = vector.load %arg17[%c3_482, %814, %c0_483] : memref<7x162x64xf32, #tpu.memory_space<vmem>>, vector<1x1x32xf32>
      %816 = vector.shape_cast %815 : vector<1x1x32xf32> to vector<1x32xf32>
      %817 = vector.shape_cast %813 : vector<1x32xf32> to vector<1x1x32xf32>
      tpu.vector_store %arg17[%c3_482, %814, %c0_483], %817 {strides = array<i32>} : memref<7x162x64xf32, #tpu.memory_space<vmem>>, vector<1x1x32xf32>,
      %c4_i32_484 = arith.constant 4 : i32
      %818 = arith.addi %781, %c4_i32_484 : i32
      %819 = arith.index_cast %818 : i32 to index
      %820 = memref.load %arg1[%819] : memref<1134xi32, #tpu.memory_space<smem>>
      %821 = arith.index_cast %820 : i32 to index
      %c0_485 = arith.constant 0 : index
      %822 = vector.load %arg20[%821, %c0_485] : memref<162x32xf32, #tpu.memory_space<vmem>>, vector<1x32xf32>
      %c4_486 = arith.constant 4 : index
      %823 = arith.index_cast %780 : i32 to index
      %c0_487 = arith.constant 0 : index
      %824 = vector.load %arg17[%c4_486, %823, %c0_487] : memref<7x162x64xf32, #tpu.memory_space<vmem>>, vector<1x1x32xf32>
      %825 = vector.shape_cast %824 : vector<1x1x32xf32> to vector<1x32xf32>
      %826 = vector.shape_cast %822 : vector<1x32xf32> to vector<1x1x32xf32>
      tpu.vector_store %arg17[%c4_486, %823, %c0_487], %826 {strides = array<i32>} : memref<7x162x64xf32, #tpu.memory_space<vmem>>, vector<1x1x32xf32>,
      %c5_i32_488 = arith.constant 5 : i32
      %827 = arith.addi %781, %c5_i32_488 : i32
      %828 = arith.index_cast %827 : i32 to index
      %829 = memref.load %arg1[%828] : memref<1134xi32, #tpu.memory_space<smem>>
      %830 = arith.index_cast %829 : i32 to index
      %c0_489 = arith.constant 0 : index
      %831 = vector.load %arg20[%830, %c0_489] : memref<162x32xf32, #tpu.memory_space<vmem>>, vector<1x32xf32>
      %c5_490 = arith.constant 5 : index
      %832 = arith.index_cast %780 : i32 to index
      %c0_491 = arith.constant 0 : index
      %833 = vector.load %arg17[%c5_490, %832, %c0_491] : memref<7x162x64xf32, #tpu.memory_space<vmem>>, vector<1x1x32xf32>
      %834 = vector.shape_cast %833 : vector<1x1x32xf32> to vector<1x32xf32>
      %835 = vector.shape_cast %831 : vector<1x32xf32> to vector<1x1x32xf32>
      tpu.vector_store %arg17[%c5_490, %832, %c0_491], %835 {strides = array<i32>} : memref<7x162x64xf32, #tpu.memory_space<vmem>>, vector<1x1x32xf32>,
      %c6_i32_492 = arith.constant 6 : i32
      %836 = arith.addi %781, %c6_i32_492 : i32
      %837 = arith.index_cast %836 : i32 to index
      %838 = memref.load %arg1[%837] : memref<1134xi32, #tpu.memory_space<smem>>
      %839 = arith.index_cast %838 : i32 to index
      %c0_493 = arith.constant 0 : index
      %840 = vector.load %arg20[%839, %c0_493] : memref<162x32xf32, #tpu.memory_space<vmem>>, vector<1x32xf32>
      %c6_494 = arith.constant 6 : index
      %841 = arith.index_cast %780 : i32 to index
      %c0_495 = arith.constant 0 : index
      %842 = vector.load %arg17[%c6_494, %841, %c0_495] : memref<7x162x64xf32, #tpu.memory_space<vmem>>, vector<1x1x32xf32>
      %843 = vector.shape_cast %842 : vector<1x1x32xf32> to vector<1x32xf32>
      %844 = vector.shape_cast %840 : vector<1x32xf32> to vector<1x1x32xf32>
      tpu.vector_store %arg17[%c6_494, %841, %c0_495], %844 {strides = array<i32>} : memref<7x162x64xf32, #tpu.memory_space<vmem>>, vector<1x1x32xf32>,
    }
    %c20_i32_129 = arith.constant 20 : i32
    %c1120_130 = arith.constant 1120 : index
    %176 = memref.load %arg1[%c1120_130] : memref<1134xi32, #tpu.memory_space<smem>>
    %177 = arith.index_cast %176 : i32 to index
    %c0_131 = arith.constant 0 : index
    %178 = vector.load %arg20[%177, %c0_131] : memref<162x32xf32, #tpu.memory_space<vmem>>, vector<1x32xf32>
    %c0_132 = arith.constant 0 : index
    %c160_133 = arith.constant 160 : index
    %c0_134 = arith.constant 0 : index
    %179 = vector.load %arg17[%c0_132, %c160_133, %c0_134] : memref<7x162x64xf32, #tpu.memory_space<vmem>>, vector<1x1x32xf32>
    %180 = vector.shape_cast %179 : vector<1x1x32xf32> to vector<1x32xf32>
    %181 = vector.shape_cast %178 : vector<1x32xf32> to vector<1x1x32xf32>
    tpu.vector_store %arg17[%c0_132, %c160_133, %c0_134], %181 {strides = array<i32>} : memref<7x162x64xf32, #tpu.memory_space<vmem>>, vector<1x1x32xf32>,
    %c1121_135 = arith.constant 1121 : index
    %182 = memref.load %arg1[%c1121_135] : memref<1134xi32, #tpu.memory_space<smem>>
    %183 = arith.index_cast %182 : i32 to index
    %c0_136 = arith.constant 0 : index
    %184 = vector.load %arg20[%183, %c0_136] : memref<162x32xf32, #tpu.memory_space<vmem>>, vector<1x32xf32>
    %c1_137 = arith.constant 1 : index
    %c160_138 = arith.constant 160 : index
    %c0_139 = arith.constant 0 : index
    %185 = vector.load %arg17[%c1_137, %c160_138, %c0_139] : memref<7x162x64xf32, #tpu.memory_space<vmem>>, vector<1x1x32xf32>
    %186 = vector.shape_cast %185 : vector<1x1x32xf32> to vector<1x32xf32>
    %187 = vector.shape_cast %184 : vector<1x32xf32> to vector<1x1x32xf32>
    tpu.vector_store %arg17[%c1_137, %c160_138, %c0_139], %187 {strides = array<i32>} : memref<7x162x64xf32, #tpu.memory_space<vmem>>, vector<1x1x32xf32>,
    %c1122_140 = arith.constant 1122 : index
    %188 = memref.load %arg1[%c1122_140] : memref<1134xi32, #tpu.memory_space<smem>>
    %189 = arith.index_cast %188 : i32 to index
    %c0_141 = arith.constant 0 : index
    %190 = vector.load %arg20[%189, %c0_141] : memref<162x32xf32, #tpu.memory_space<vmem>>, vector<1x32xf32>
    %c2_142 = arith.constant 2 : index
    %c160_143 = arith.constant 160 : index
    %c0_144 = arith.constant 0 : index
    %191 = vector.load %arg17[%c2_142, %c160_143, %c0_144] : memref<7x162x64xf32, #tpu.memory_space<vmem>>, vector<1x1x32xf32>
    %192 = vector.shape_cast %191 : vector<1x1x32xf32> to vector<1x32xf32>
    %193 = vector.shape_cast %190 : vector<1x32xf32> to vector<1x1x32xf32>
    tpu.vector_store %arg17[%c2_142, %c160_143, %c0_144], %193 {strides = array<i32>} : memref<7x162x64xf32, #tpu.memory_space<vmem>>, vector<1x1x32xf32>,
    %c1123_145 = arith.constant 1123 : index
    %194 = memref.load %arg1[%c1123_145] : memref<1134xi32, #tpu.memory_space<smem>>
    %195 = arith.index_cast %194 : i32 to index
    %c0_146 = arith.constant 0 : index
    %196 = vector.load %arg20[%195, %c0_146] : memref<162x32xf32, #tpu.memory_space<vmem>>, vector<1x32xf32>
    %c3_147 = arith.constant 3 : index
    %c160_148 = arith.constant 160 : index
    %c0_149 = arith.constant 0 : index
    %197 = vector.load %arg17[%c3_147, %c160_148, %c0_149] : memref<7x162x64xf32, #tpu.memory_space<vmem>>, vector<1x1x32xf32>
    %198 = vector.shape_cast %197 : vector<1x1x32xf32> to vector<1x32xf32>
    %199 = vector.shape_cast %196 : vector<1x32xf32> to vector<1x1x32xf32>
    tpu.vector_store %arg17[%c3_147, %c160_148, %c0_149], %199 {strides = array<i32>} : memref<7x162x64xf32, #tpu.memory_space<vmem>>, vector<1x1x32xf32>,
    %c1124_150 = arith.constant 1124 : index
    %200 = memref.load %arg1[%c1124_150] : memref<1134xi32, #tpu.memory_space<smem>>
    %201 = arith.index_cast %200 : i32 to index
    %c0_151 = arith.constant 0 : index
    %202 = vector.load %arg20[%201, %c0_151] : memref<162x32xf32, #tpu.memory_space<vmem>>, vector<1x32xf32>
    %c4_152 = arith.constant 4 : index
    %c160_153 = arith.constant 160 : index
    %c0_154 = arith.constant 0 : index
    %203 = vector.load %arg17[%c4_152, %c160_153, %c0_154] : memref<7x162x64xf32, #tpu.memory_space<vmem>>, vector<1x1x32xf32>
    %204 = vector.shape_cast %203 : vector<1x1x32xf32> to vector<1x32xf32>
    %205 = vector.shape_cast %202 : vector<1x32xf32> to vector<1x1x32xf32>
    tpu.vector_store %arg17[%c4_152, %c160_153, %c0_154], %205 {strides = array<i32>} : memref<7x162x64xf32, #tpu.memory_space<vmem>>, vector<1x1x32xf32>,
    %c1125_155 = arith.constant 1125 : index
    %206 = memref.load %arg1[%c1125_155] : memref<1134xi32, #tpu.memory_space<smem>>
    %207 = arith.index_cast %206 : i32 to index
    %c0_156 = arith.constant 0 : index
    %208 = vector.load %arg20[%207, %c0_156] : memref<162x32xf32, #tpu.memory_space<vmem>>, vector<1x32xf32>
    %c5_157 = arith.constant 5 : index
    %c160_158 = arith.constant 160 : index
    %c0_159 = arith.constant 0 : index
    %209 = vector.load %arg17[%c5_157, %c160_158, %c0_159] : memref<7x162x64xf32, #tpu.memory_space<vmem>>, vector<1x1x32xf32>
    %210 = vector.shape_cast %209 : vector<1x1x32xf32> to vector<1x32xf32>
    %211 = vector.shape_cast %208 : vector<1x32xf32> to vector<1x1x32xf32>
    tpu.vector_store %arg17[%c5_157, %c160_158, %c0_159], %211 {strides = array<i32>} : memref<7x162x64xf32, #tpu.memory_space<vmem>>, vector<1x1x32xf32>,
    %c1126_160 = arith.constant 1126 : index
    %212 = memref.load %arg1[%c1126_160] : memref<1134xi32, #tpu.memory_space<smem>>
    %213 = arith.index_cast %212 : i32 to index
    %c0_161 = arith.constant 0 : index
    %214 = vector.load %arg20[%213, %c0_161] : memref<162x32xf32, #tpu.memory_space<vmem>>, vector<1x32xf32>
    %c6_162 = arith.constant 6 : index
    %c160_163 = arith.constant 160 : index
    %c0_164 = arith.constant 0 : index
    %215 = vector.load %arg17[%c6_162, %c160_163, %c0_164] : memref<7x162x64xf32, #tpu.memory_space<vmem>>, vector<1x1x32xf32>
    %216 = vector.shape_cast %215 : vector<1x1x32xf32> to vector<1x32xf32>
    %217 = vector.shape_cast %214 : vector<1x32xf32> to vector<1x1x32xf32>
    tpu.vector_store %arg17[%c6_162, %c160_163, %c0_164], %217 {strides = array<i32>} : memref<7x162x64xf32, #tpu.memory_space<vmem>>, vector<1x1x32xf32>,
    %c1127_165 = arith.constant 1127 : index
    %218 = memref.load %arg1[%c1127_165] : memref<1134xi32, #tpu.memory_space<smem>>
    %219 = arith.index_cast %218 : i32 to index
    %c0_166 = arith.constant 0 : index
    %220 = vector.load %arg20[%219, %c0_166] : memref<162x32xf32, #tpu.memory_space<vmem>>, vector<1x32xf32>
    %c0_167 = arith.constant 0 : index
    %c161_168 = arith.constant 161 : index
    %c0_169 = arith.constant 0 : index
    %221 = vector.load %arg17[%c0_167, %c161_168, %c0_169] : memref<7x162x64xf32, #tpu.memory_space<vmem>>, vector<1x1x32xf32>
    %222 = vector.shape_cast %221 : vector<1x1x32xf32> to vector<1x32xf32>
    %223 = vector.shape_cast %220 : vector<1x32xf32> to vector<1x1x32xf32>
    tpu.vector_store %arg17[%c0_167, %c161_168, %c0_169], %223 {strides = array<i32>} : memref<7x162x64xf32, #tpu.memory_space<vmem>>, vector<1x1x32xf32>,
    %c1128_170 = arith.constant 1128 : index
    %224 = memref.load %arg1[%c1128_170] : memref<1134xi32, #tpu.memory_space<smem>>
    %225 = arith.index_cast %224 : i32 to index
    %c0_171 = arith.constant 0 : index
    %226 = vector.load %arg20[%225, %c0_171] : memref<162x32xf32, #tpu.memory_space<vmem>>, vector<1x32xf32>
    %c1_172 = arith.constant 1 : index
    %c161_173 = arith.constant 161 : index
    %c0_174 = arith.constant 0 : index
    %227 = vector.load %arg17[%c1_172, %c161_173, %c0_174] : memref<7x162x64xf32, #tpu.memory_space<vmem>>, vector<1x1x32xf32>
    %228 = vector.shape_cast %227 : vector<1x1x32xf32> to vector<1x32xf32>
    %229 = vector.shape_cast %226 : vector<1x32xf32> to vector<1x1x32xf32>
    tpu.vector_store %arg17[%c1_172, %c161_173, %c0_174], %229 {strides = array<i32>} : memref<7x162x64xf32, #tpu.memory_space<vmem>>, vector<1x1x32xf32>,
    %c1129_175 = arith.constant 1129 : index
    %230 = memref.load %arg1[%c1129_175] : memref<1134xi32, #tpu.memory_space<smem>>
    %231 = arith.index_cast %230 : i32 to index
    %c0_176 = arith.constant 0 : index
    %232 = vector.load %arg20[%231, %c0_176] : memref<162x32xf32, #tpu.memory_space<vmem>>, vector<1x32xf32>
    %c2_177 = arith.constant 2 : index
    %c161_178 = arith.constant 161 : index
    %c0_179 = arith.constant 0 : index
    %233 = vector.load %arg17[%c2_177, %c161_178, %c0_179] : memref<7x162x64xf32, #tpu.memory_space<vmem>>, vector<1x1x32xf32>
    %234 = vector.shape_cast %233 : vector<1x1x32xf32> to vector<1x32xf32>
    %235 = vector.shape_cast %232 : vector<1x32xf32> to vector<1x1x32xf32>
    tpu.vector_store %arg17[%c2_177, %c161_178, %c0_179], %235 {strides = array<i32>} : memref<7x162x64xf32, #tpu.memory_space<vmem>>, vector<1x1x32xf32>,
    %c1130_180 = arith.constant 1130 : index
    %236 = memref.load %arg1[%c1130_180] : memref<1134xi32, #tpu.memory_space<smem>>
    %237 = arith.index_cast %236 : i32 to index
    %c0_181 = arith.constant 0 : index
    %238 = vector.load %arg20[%237, %c0_181] : memref<162x32xf32, #tpu.memory_space<vmem>>, vector<1x32xf32>
    %c3_182 = arith.constant 3 : index
    %c161_183 = arith.constant 161 : index
    %c0_184 = arith.constant 0 : index
    %239 = vector.load %arg17[%c3_182, %c161_183, %c0_184] : memref<7x162x64xf32, #tpu.memory_space<vmem>>, vector<1x1x32xf32>
    %240 = vector.shape_cast %239 : vector<1x1x32xf32> to vector<1x32xf32>
    %241 = vector.shape_cast %238 : vector<1x32xf32> to vector<1x1x32xf32>
    tpu.vector_store %arg17[%c3_182, %c161_183, %c0_184], %241 {strides = array<i32>} : memref<7x162x64xf32, #tpu.memory_space<vmem>>, vector<1x1x32xf32>,
    %c1131_185 = arith.constant 1131 : index
    %242 = memref.load %arg1[%c1131_185] : memref<1134xi32, #tpu.memory_space<smem>>
    %243 = arith.index_cast %242 : i32 to index
    %c0_186 = arith.constant 0 : index
    %244 = vector.load %arg20[%243, %c0_186] : memref<162x32xf32, #tpu.memory_space<vmem>>, vector<1x32xf32>
    %c4_187 = arith.constant 4 : index
    %c161_188 = arith.constant 161 : index
    %c0_189 = arith.constant 0 : index
    %245 = vector.load %arg17[%c4_187, %c161_188, %c0_189] : memref<7x162x64xf32, #tpu.memory_space<vmem>>, vector<1x1x32xf32>
    %246 = vector.shape_cast %245 : vector<1x1x32xf32> to vector<1x32xf32>
    %247 = vector.shape_cast %244 : vector<1x32xf32> to vector<1x1x32xf32>
    tpu.vector_store %arg17[%c4_187, %c161_188, %c0_189], %247 {strides = array<i32>} : memref<7x162x64xf32, #tpu.memory_space<vmem>>, vector<1x1x32xf32>,
    %c1132_190 = arith.constant 1132 : index
    %248 = memref.load %arg1[%c1132_190] : memref<1134xi32, #tpu.memory_space<smem>>
    %249 = arith.index_cast %248 : i32 to index
    %c0_191 = arith.constant 0 : index
    %250 = vector.load %arg20[%249, %c0_191] : memref<162x32xf32, #tpu.memory_space<vmem>>, vector<1x32xf32>
    %c5_192 = arith.constant 5 : index
    %c161_193 = arith.constant 161 : index
    %c0_194 = arith.constant 0 : index
    %251 = vector.load %arg17[%c5_192, %c161_193, %c0_194] : memref<7x162x64xf32, #tpu.memory_space<vmem>>, vector<1x1x32xf32>
    %252 = vector.shape_cast %251 : vector<1x1x32xf32> to vector<1x32xf32>
    %253 = vector.shape_cast %250 : vector<1x32xf32> to vector<1x1x32xf32>
    tpu.vector_store %arg17[%c5_192, %c161_193, %c0_194], %253 {strides = array<i32>} : memref<7x162x64xf32, #tpu.memory_space<vmem>>, vector<1x1x32xf32>,
    %c1133_195 = arith.constant 1133 : index
    %254 = memref.load %arg1[%c1133_195] : memref<1134xi32, #tpu.memory_space<smem>>
    %255 = arith.index_cast %254 : i32 to index
    %c0_196 = arith.constant 0 : index
    %256 = vector.load %arg20[%255, %c0_196] : memref<162x32xf32, #tpu.memory_space<vmem>>, vector<1x32xf32>
    %c6_197 = arith.constant 6 : index
    %c161_198 = arith.constant 161 : index
    %c0_199 = arith.constant 0 : index
    %257 = vector.load %arg17[%c6_197, %c161_198, %c0_199] : memref<7x162x64xf32, #tpu.memory_space<vmem>>, vector<1x1x32xf32>
    %258 = vector.shape_cast %257 : vector<1x1x32xf32> to vector<1x32xf32>
    %259 = vector.shape_cast %256 : vector<1x32xf32> to vector<1x1x32xf32>
    tpu.vector_store %arg17[%c6_197, %c161_198, %c0_199], %259 {strides = array<i32>} : memref<7x162x64xf32, #tpu.memory_space<vmem>>, vector<1x1x32xf32>,
    %c0_200 = arith.constant 0 : index
    %c0_201 = arith.constant 0 : index
    %c0_202 = arith.constant 0 : index
    %260 = vector.load %arg17[%c0_200, %c0_201, %c0_202] : memref<7x162x64xf32, #tpu.memory_space<vmem>>, vector<1x162x32xf32>
    %261 = vector.shape_cast %260 : vector<1x162x32xf32> to vector<162x32xf32>
    %c0_203 = arith.constant 0 : index
    %c0_204 = arith.constant 0 : index
    %262 = vector.load %arg19[%c0_203, %c0_204] : memref<162x224xf32, #tpu.memory_space<vmem>>, vector<162x32xf32>
    tpu.vector_store %arg19[%c0_203, %c0_204], %261 {strides = array<i32>} : memref<162x224xf32, #tpu.memory_space<vmem>>, vector<162x32xf32>,
    %c1_205 = arith.constant 1 : index
    %c0_206 = arith.constant 0 : index
    %c0_207 = arith.constant 0 : index
    %263 = vector.load %arg17[%c1_205, %c0_206, %c0_207] : memref<7x162x64xf32, #tpu.memory_space<vmem>>, vector<1x162x32xf32>
    %264 = vector.shape_cast %263 : vector<1x162x32xf32> to vector<162x32xf32>
    %c0_208 = arith.constant 0 : index
    %c32_209 = arith.constant 32 : index
    %265 = vector.load %arg19[%c0_208, %c32_209] : memref<162x224xf32, #tpu.memory_space<vmem>>, vector<162x32xf32>
    tpu.vector_store %arg19[%c0_208, %c32_209], %264 {strides = array<i32>} : memref<162x224xf32, #tpu.memory_space<vmem>>, vector<162x32xf32>,
    %c2_210 = arith.constant 2 : index
    %c0_211 = arith.constant 0 : index
    %c0_212 = arith.constant 0 : index
    %266 = vector.load %arg17[%c2_210, %c0_211, %c0_212] : memref<7x162x64xf32, #tpu.memory_space<vmem>>, vector<1x162x32xf32>
    %267 = vector.shape_cast %266 : vector<1x162x32xf32> to vector<162x32xf32>
    %c0_213 = arith.constant 0 : index
    %c64_214 = arith.constant 64 : index
    %268 = vector.load %arg19[%c0_213, %c64_214] : memref<162x224xf32, #tpu.memory_space<vmem>>, vector<162x32xf32>
    tpu.vector_store %arg19[%c0_213, %c64_214], %267 {strides = array<i32>} : memref<162x224xf32, #tpu.memory_space<vmem>>, vector<162x32xf32>,
    %c3_215 = arith.constant 3 : index
    %c0_216 = arith.constant 0 : index
    %c0_217 = arith.constant 0 : index
    %269 = vector.load %arg17[%c3_215, %c0_216, %c0_217] : memref<7x162x64xf32, #tpu.memory_space<vmem>>, vector<1x162x32xf32>
    %270 = vector.shape_cast %269 : vector<1x162x32xf32> to vector<162x32xf32>
    %c0_218 = arith.constant 0 : index
    %c96_219 = arith.constant 96 : index
    %271 = vector.load %arg19[%c0_218, %c96_219] : memref<162x224xf32, #tpu.memory_space<vmem>>, vector<162x32xf32>
    tpu.vector_store %arg19[%c0_218, %c96_219], %270 {strides = array<i32>} : memref<162x224xf32, #tpu.memory_space<vmem>>, vector<162x32xf32>,
    %c4_220 = arith.constant 4 : index
    %c0_221 = arith.constant 0 : index
    %c0_222 = arith.constant 0 : index
    %272 = vector.load %arg17[%c4_220, %c0_221, %c0_222] : memref<7x162x64xf32, #tpu.memory_space<vmem>>, vector<1x162x32xf32>
    %273 = vector.shape_cast %272 : vector<1x162x32xf32> to vector<162x32xf32>
    %c0_223 = arith.constant 0 : index
    %c128_224 = arith.constant 128 : index
    %274 = vector.load %arg19[%c0_223, %c128_224] : memref<162x224xf32, #tpu.memory_space<vmem>>, vector<162x32xf32>
    tpu.vector_store %arg19[%c0_223, %c128_224], %273 {strides = array<i32>} : memref<162x224xf32, #tpu.memory_space<vmem>>, vector<162x32xf32>,
    %c5_225 = arith.constant 5 : index
    %c0_226 = arith.constant 0 : index
    %c0_227 = arith.constant 0 : index
    %275 = vector.load %arg17[%c5_225, %c0_226, %c0_227] : memref<7x162x64xf32, #tpu.memory_space<vmem>>, vector<1x162x32xf32>
    %276 = vector.shape_cast %275 : vector<1x162x32xf32> to vector<162x32xf32>
    %c0_228 = arith.constant 0 : index
    %c160_229 = arith.constant 160 : index
    %277 = vector.load %arg19[%c0_228, %c160_229] : memref<162x224xf32, #tpu.memory_space<vmem>>, vector<162x32xf32>
    tpu.vector_store %arg19[%c0_228, %c160_229], %276 {strides = array<i32>} : memref<162x224xf32, #tpu.memory_space<vmem>>, vector<162x32xf32>,
    %c6_230 = arith.constant 6 : index
    %c0_231 = arith.constant 0 : index
    %c0_232 = arith.constant 0 : index
    %278 = vector.load %arg17[%c6_230, %c0_231, %c0_232] : memref<7x162x64xf32, #tpu.memory_space<vmem>>, vector<1x162x32xf32>
    %279 = vector.shape_cast %278 : vector<1x162x32xf32> to vector<162x32xf32>
    %c0_233 = arith.constant 0 : index
    %c192_234 = arith.constant 192 : index
    %280 = vector.load %arg19[%c0_233, %c192_234] : memref<162x224xf32, #tpu.memory_space<vmem>>, vector<162x32xf32>
    tpu.vector_store %arg19[%c0_233, %c192_234], %279 {strides = array<i32>} : memref<162x224xf32, #tpu.memory_space<vmem>>, vector<162x32xf32>,
    %c0_235 = arith.constant 0 : index
    %c0_236 = arith.constant 0 : index
    %281 = vector.load %arg19[%c0_235, %c0_236] : memref<162x224xf32, #tpu.memory_space<vmem>>, vector<162x224xf32>
    %282 = arith.truncf %281 : vector<162x224xf32> to vector<162x224xbf16>
    %c0_237 = arith.constant 0 : index
    %c0_238 = arith.constant 0 : index
    %283 = vector.load %arg11[%c0_237, %c0_238] : memref<224x32xbf16, #tpu.memory_space<vmem>>, vector<224x32xbf16>
    %cst_239 = arith.constant dense<0.000000e+00> : vector<162x32xf32>
    %284 = tpu.matmul %282, %283, %cst_239 {dimension_numbers = #tpu.dot_dimension_numbers<[1], [0], [0], [1], [0, 0, 1, 1], [], []>} : vector<162x224xbf16>, vector<224x32xbf16>, vector<162x32xf32> -> vector<162x32xf32>
    %cst_240 = arith.constant dense<0.000000e+00> : vector<32xf32>
    %285 = vector.multi_reduction <add>, %284, %cst_240 [0] : vector<162x32xf32> to vector<32xf32>
    %286 = vector.shape_cast %285 : vector<32xf32> to vector<1x32xf32>
    %287 = arith.mulf %284, %284 : vector<162x32xf32>
    %cst_241 = arith.constant dense<0.000000e+00> : vector<32xf32>
    %288 = vector.multi_reduction <add>, %287, %cst_241 [0] : vector<162x32xf32> to vector<32xf32>
    %289 = vector.shape_cast %288 : vector<32xf32> to vector<1x32xf32>
    %cst_242 = arith.constant 0.00617283955 : f32
    %290 = vector.broadcast %cst_242 : f32 to vector<1x32xf32>
    %291 = arith.mulf %286, %290 : vector<1x32xf32>
    %cst_243 = arith.constant 0.00617283955 : f32
    %292 = vector.broadcast %cst_243 : f32 to vector<1x32xf32>
    %293 = arith.mulf %289, %292 : vector<1x32xf32>
    %294 = arith.mulf %291, %291 : vector<1x32xf32>
    %295 = arith.subf %293, %294 : vector<1x32xf32>
    %cst_244 = arith.constant 0.000000e+00 : f32
    %296 = vector.broadcast %cst_244 : f32 to vector<1x32xf32>
    %297 = arith.maximumf %295, %296 : vector<1x32xf32>
    %c0_245 = arith.constant 0 : index
    %c0_246 = arith.constant 0 : index
    %298 = vector.load %arg12[%c0_245, %c0_246] : memref<1x32xf32, #tpu.memory_space<vmem>>, vector<1x32xf32>
    %299 = vector.broadcast %291 : vector<1x32xf32> to vector<162x32xf32>
    %300 = arith.subf %284, %299 : vector<162x32xf32>
    %301 = vector.broadcast %298 : vector<1x32xf32> to vector<162x32xf32>
    %302 = arith.mulf %301, %300 : vector<162x32xf32>
    %cst_247 = arith.constant 9.99999974E-6 : f32
    %303 = vector.broadcast %cst_247 : f32 to vector<1x32xf32>
    %304 = arith.addf %297, %303 : vector<1x32xf32>
    %305 = math.rsqrt %304 : vector<1x32xf32>
    %306 = vector.broadcast %305 : vector<1x32xf32> to vector<162x32xf32>
    %307 = arith.mulf %302, %306 : vector<162x32xf32>
    %c0_248 = arith.constant 0 : index
    %c0_249 = arith.constant 0 : index
    %308 = vector.load %arg13[%c0_248, %c0_249] : memref<1x32xf32, #tpu.memory_space<vmem>>, vector<1x32xf32>
    %309 = vector.broadcast %308 : vector<1x32xf32> to vector<162x32xf32>
    %310 = arith.addf %307, %309 : vector<162x32xf32>
    %cst_250 = arith.constant 0.000000e+00 : f32
    %311 = vector.broadcast %cst_250 : f32 to vector<162x32xf32>
    %312 = arith.cmpf oge, %310, %311 : vector<162x32xf32>
    %cst_251 = arith.constant 2.000000e-01 : f32
    %313 = vector.broadcast %cst_251 : f32 to vector<162x32xf32>
    %314 = arith.mulf %313, %310 : vector<162x32xf32>
    %315 = arith.select %312, %310, %314 : vector<162x32xi1>, vector<162x32xf32>
    %c0_252 = arith.constant 0 : index
    %c0_253 = arith.constant 0 : index
    %316 = vector.load %arg14[%c0_252, %c0_253] : memref<162x32xf32, #tpu.memory_space<vmem>>, vector<162x32xf32>
    tpu.vector_store %arg14[%c0_252, %c0_253], %315 {strides = array<i32>} : memref<162x32xf32, #tpu.memory_space<vmem>>, vector<162x32xf32>,
    return
  }
  func.func @transform_0(%arg0: i32, %arg1: memref<1134xi32, #tpu.memory_space<smem>>, %arg2: memref<42xi32, #tpu.memory_space<smem>>, %arg3: memref<240xi32, #tpu.memory_space<smem>>) -> (i32, i32) {
    %c0_i32 = arith.constant 0 : i32
    %c0_i32_0 = arith.constant 0 : i32
    %c0_i32_1 = arith.constant 0 : i32
    return %c0_i32, %c0_i32_0 : i32, i32
  }
  func.func @transform_1(%arg0: i32, %arg1: memref<1134xi32, #tpu.memory_space<smem>>, %arg2: memref<42xi32, #tpu.memory_space<smem>>, %arg3: memref<240xi32, #tpu.memory_space<smem>>) -> (i32, i32) {
    %c0_i32 = arith.constant 0 : i32
    %c0_i32_0 = arith.constant 0 : i32
    %c0_i32_1 = arith.constant 0 : i32
    return %c0_i32, %c0_i32_0 : i32, i32
  }
  func.func @transform_2(%arg0: i32, %arg1: memref<1134xi32, #tpu.memory_space<smem>>, %arg2: memref<42xi32, #tpu.memory_space<smem>>, %arg3: memref<240xi32, #tpu.memory_space<smem>>) -> (i32, i32) {
    %c0_i32 = arith.constant 0 : i32
    %c0_i32_0 = arith.constant 0 : i32
    %c0_i32_1 = arith.constant 0 : i32
    return %c0_i32, %c0_i32_0 : i32, i32
  }
  func.func @transform_3(%arg0: i32, %arg1: memref<1134xi32, #tpu.memory_space<smem>>, %arg2: memref<42xi32, #tpu.memory_space<smem>>, %arg3: memref<240xi32, #tpu.memory_space<smem>>) -> (i32, i32) {
    %c0_i32 = arith.constant 0 : i32
    %c0_i32_0 = arith.constant 0 : i32
    %c0_i32_1 = arith.constant 0 : i32
    return %c0_i32, %c0_i32_0 : i32, i32
  }
  func.func @transform_4(%arg0: i32, %arg1: memref<1134xi32, #tpu.memory_space<smem>>, %arg2: memref<42xi32, #tpu.memory_space<smem>>, %arg3: memref<240xi32, #tpu.memory_space<smem>>) -> (i32, i32) {
    %c0_i32 = arith.constant 0 : i32
    %c0_i32_0 = arith.constant 0 : i32
    %c0_i32_1 = arith.constant 0 : i32
    return %c0_i32, %c0_i32_0 : i32, i32
  }
  func.func @transform_5(%arg0: i32, %arg1: memref<1134xi32, #tpu.memory_space<smem>>, %arg2: memref<42xi32, #tpu.memory_space<smem>>, %arg3: memref<240xi32, #tpu.memory_space<smem>>) -> (i32, i32) {
    %c0_i32 = arith.constant 0 : i32
    %c0_i32_0 = arith.constant 0 : i32
    %c0_i32_1 = arith.constant 0 : i32
    return %c0_i32, %c0_i32_0 : i32, i32
  }
  func.func @transform_6(%arg0: i32, %arg1: memref<1134xi32, #tpu.memory_space<smem>>, %arg2: memref<42xi32, #tpu.memory_space<smem>>, %arg3: memref<240xi32, #tpu.memory_space<smem>>) -> (i32, i32) {
    %c0_i32 = arith.constant 0 : i32
    %c0_i32_0 = arith.constant 0 : i32
    %c0_i32_1 = arith.constant 0 : i32
    return %c0_i32, %c0_i32_0 : i32, i32
  }
  func.func @transform_7(%arg0: i32, %arg1: memref<1134xi32, #tpu.memory_space<smem>>, %arg2: memref<42xi32, #tpu.memory_space<smem>>, %arg3: memref<240xi32, #tpu.memory_space<smem>>) -> (i32, i32) {
    %c0_i32 = arith.constant 0 : i32
    %c0_i32_0 = arith.constant 0 : i32
    %c0_i32_1 = arith.constant 0 : i32
    return %c0_i32, %c0_i32_0 : i32, i32
  }
  func.func @transform_8(%arg0: i32, %arg1: memref<1134xi32, #tpu.memory_space<smem>>, %arg2: memref<42xi32, #tpu.memory_space<smem>>, %arg3: memref<240xi32, #tpu.memory_space<smem>>) -> (i32, i32) {
    %c0_i32 = arith.constant 0 : i32
    %c0_i32_0 = arith.constant 0 : i32
    %c0_i32_1 = arith.constant 0 : i32
    return %c0_i32, %c0_i32_0 : i32, i32
  }
  func.func @transform_9(%arg0: i32, %arg1: memref<1134xi32, #tpu.memory_space<smem>>, %arg2: memref<42xi32, #tpu.memory_space<smem>>, %arg3: memref<240xi32, #tpu.memory_space<smem>>) -> (i32, i32) {
    %c0_i32 = arith.constant 0 : i32
    %c0_i32_0 = arith.constant 0 : i32
    %c0_i32_1 = arith.constant 0 : i32
    return %c0_i32, %c0_i32_0 : i32, i32
  }
  func.func @transform_10(%arg0: i32, %arg1: memref<1134xi32, #tpu.memory_space<smem>>, %arg2: memref<42xi32, #tpu.memory_space<smem>>, %arg3: memref<240xi32, #tpu.memory_space<smem>>) -> (i32, i32) {
    %c0_i32 = arith.constant 0 : i32
    %c0_i32_0 = arith.constant 0 : i32
    %c0_i32_1 = arith.constant 0 : i32
    return %c0_i32, %c0_i32_0 : i32, i32
  }
}

</mosaic_0001>

<bundles_post_ra>
// kernel: _lambda_.1
= control target key start
LH: loop header
LB: loop body
LE: loop exit
PB: predicated region body
PF: predicated region fallthrough
CT: control target
= control target key end

     0   :  { %s5698_s14 = smov [#allocation9]   ;;  %s5699_s15 = smov [#allocation10]   ;;  %s7825_s0 = inlined_call_operand.vmem [shape: s32[1134], index: 0, kind: input, shape index: {}]   ;;  %s7826_s3 = inlined_call_operand.vmem [shape: f32[42,64], index: 3, kind: input, shape index: {}]   ;;  %s7827_s4 = inlined_call_operand.vmem [shape: f32[162,32], index: 4, kind: input, shape index: {}]   ;;  %s7828_s5 = inlined_call_operand.vmem [shape: bf16[64,224], index: 5, kind: input, shape index: {}]   ;;  %s7829_s6 = inlined_call_operand.vmem [shape: f32[1,224], index: 6, kind: input, shape index: {}]   ;;  %s7830_s7 = inlined_call_operand.vmem [shape: bf16[448,32], index: 7, kind: input, shape index: {}]   ;;  %s7831_s8 = inlined_call_operand.vmem [shape: f32[1,32], index: 8, kind: input, shape index: {}]   ;;  %s7832_s9 = inlined_call_operand.vmem [shape: f32[1,32], index: 9, kind: input, shape index: {}]   ;;  %s7833_s10 = inlined_call_operand.vmem [shape: bf16[224,32], index: 10, kind: input, shape index: {}]   ;;  %s7834_s11 = inlined_call_operand.vmem [shape: f32[1,32], index: 11, kind: input, shape index: {}]   ;;  %s7835_s12 = inlined_call_operand.vmem [shape: f32[1,32], index: 12, kind: input, shape index: {}]   ;;  %s7836_s13 = inlined_call_operand.vmem [shape: f32[162,32], index: 13, kind: output, shape index: {}]   ;;  %s7837_s1 = inlined_call_operand.vmem [shape: s32[42], index: 1, kind: input, shape index: {}]   ;;  %s7838_s2 = inlined_call_operand.vmem [shape: s32[240], index: 2, kind: input, shape index: {}]  }
   0x1   :  { %s19_s27 = sshll.u32 %s7825_s0, 4  ;;  %s24_s30 = sshll.u32 %s7837_s1, 4  ;;  %s20_s27 = int_to_ptr.vmem [resolvable:$true] %s19_s27  ;;  %s25_s30 = int_to_ptr.vmem [resolvable:$true] %s24_s30 }
   0x2   :  { %22 = dma.vmem_to_smem %s20_s27, 144, %s5698_s14, [#allocation8] }
   0x3   :  { %27 = dma.vmem_to_smem %s25_s30, 16, %s5699_s15, [#allocation8] }
   0x4   :  { %s29_s18 = sshll.u32 %s7838_s2, 4  ;;  %s5700_s19 = smov [#allocation11]   ;;  %s30_s18 = int_to_ptr.vmem [resolvable:$true] %s29_s18 }
   0x5   :  { %32 = dma.vmem_to_smem %s30_s18, 32, %s5700_s19, [#allocation8] }
   0x6   :  { %5680 = dma.done.wait [#allocation8], 192 }
   0x7   :  { %5681 = vsyncadd [#allocation8], 4294967104 }
   0x8   :  { %35 = sfence }
   0x9   :  { %v5001_v0 = vld [vmem:[%s7828_s5 + $0x30] sm:$0xf]  ;;  %v5502_v1 = vld [vmem:[%s7828_s5 + $0x34] sm:$0xf0]  ;;  %v4993_v2 = vld [vmem:[%s7828_s5 + $0x20] sm:$0xf] }
   0xa   :  { %v5002_v3 = vor.u32 %v5502_v1, %v5001_v0  ;;  %v5500_v4 = vld [vmem:[%s7828_s5 + $0x24] sm:$0xf0]  ;;  %v5501_v5 = vld [vmem:[%s7828_s5 + $0x34] sm:$0xf]  ;;  %v5003_v6 = vld [vmem:[%s7828_s5 + $0x38] sm:$0xf0] }
   0xb   :  { %v4994_v7 = vor.u32 %v5500_v4, %v4993_v2  ;;  %v5006_v8 = vor.u32 %v5501_v5, %v5003_v6  ;;  %v5499_v9 = vld [vmem:[%s7828_s5 + $0x24] sm:$0xf]  ;;  %v4995_v10 = vld [vmem:[%s7828_s5 + $0x28] sm:$0xf0]  ;;  %v4985_v11 = vld [vmem:[%s7828_s5 + $0x10] sm:$0xf] }
   0xc   :  { %134 = vmatpush.bf16.msra.mxu0 %v5002_v3  ;;  %v5498_v12 = vld [vmem:[%s7828_s5 + $0x14] sm:$0xf0]  ;;  %v4998_v13 = vor.u32 %v5499_v9, %v4995_v10  ;;  %v5497_v14 = vld [vmem:[%s7828_s5 + $0x14] sm:$0xf]  ;;  %v4987_v15 = vld [vmem:[%s7828_s5 + $0x18] sm:$0xf0] }
   0xd   :  { %158 = vmatpush.bf16.msra.mxu1 %v5006_v8  ;;  %v4986_v16 = vor.u32 %v5498_v12, %v4985_v11  ;;  %v4977_v17 = vld [vmem:[%s7828_s5] sm:$0xf]  ;;  %v5496_v18 = vld [vmem:[%s7828_s5 + $0x4] sm:$0xf0]  ;;  %v4990_v19 = vor.u32 %v5497_v14, %v4987_v15  ;;  %v5495_v20 = vld [vmem:[%s7828_s5 + $0x4] sm:$0xf] }
   0xe   :  { %v4979_v21 = vld [vmem:[%s7828_s5 + $0x8] sm:$0xf0]  ;;  %v4978_v22 = vor.u32 %v5496_v18, %v4977_v17  ;;  %v57_v23 = vld [vmem:[%s7826_s3] sm:$0xff]  ;;  %vm120_vm0 = vcmask 523264   ;;  %v59_v27 = vld [vmem:[%s7826_s3 + $0x10] sm:$0xff]  ;;  %vm178_vm1 = vcmask 261120  }
   0xf   :  { %v58_v24 = vld [vmem:[%s7826_s3 + $0x8] sm:$0xff]  ;;  %v4982_v25 = vor.u32 %v5495_v20, %v4979_v21  ;;  %v60_v28 = vld [vmem:[%s7826_s3 + $0x18] sm:$0xff]  ;;  %v61_v30 = vld [vmem:[%s7826_s3 + $0x20] sm:$0xff]  ;;  %s7839_s23 = smov 96   ;;  %vm184_vm2 = vcmask 254976   ;;  %s5930_s2 = smov 0  }
  0x10   :  { %135 = vmatpush.bf16.msra.mxu0 %v4994_v7  ;;  %v63_v26 = vpack.c.bf16 %v58_v24, %v57_v23  ;;  %v64_v29 = vpack.c.bf16 %v60_v28, %v59_v27  ;;  %v62_v31 = vld [vmem:[%s7826_s3 + $0x28] sm:$0x3]  ;;  %v74_v33 = vld [vmem:[%s7829_s6] sm:$0x3]  ;;  %s7841_s3 = smov 64   ;;  %s5703_s6 = smov 32  }
  0x11   :  { %159 = vmatpush.bf16.msra.mxu1 %v4998_v13  ;;  %v65_v32 = vpack.c.bf16 %v62_v31, %v61_v30  ;;  %v76_v34 = vperm.slane %v74_v33, 0  ;;  %v77_v35 = vperm.slane %v74_v33, 1 }
  0x14   :  { %136 = vmatpush.bf16.msra.mxu0 %v4986_v16 }
  0x15   :  { %160 = vmatpush.bf16.msra.mxu1 %v4990_v19 }
  0x18   :  { %137 = vmatpush.bf16.msra.mxu0 %v4978_v22 }
  0x19   :  { %161 = vmatpush.bf16.msra.mxu1 %v4982_v25 }
  0x1b   :  { %5007 = vmatmul.msk.bf16.vlgmr.msra.gmra.mxu0 %vm120_vm0, %v63_v26 }
  0x1c   :  { %5010 = vmatmul.msk.bf16.vlgmr.msra.gmra.mxu1 %vm120_vm0, %v63_v26 }
  0x2b   :  { %5008 = vmatmul.msk.bf16.gmra.mxu0 %vm120_vm0, %v64_v29 }
  0x2c   :  { %5011 = vmatmul.msk.bf16.gmra.mxu1 %vm120_vm0, %v64_v29 }
  0x3b   :  { %5009 = vmatmul.msk.bf16.gmra.mxu0 %vm120_vm0, %v65_v32 }
  0x3c   :  { %5012 = vmatmul.msk.bf16.gmra.mxu1 %vm120_vm0, %v65_v32 }
  0x98   :  { %v139_v36 = vpop.f32.mrf.mxu0 }
  0x99   :  { %v140_v37 = vadd.f32 %v139_v36, %v76_v34  ;;  %v163_v38 = vpop.f32.mrf.mxu1 }
  0x9a   :  { %v164_v39 = vadd.f32 %v163_v38, %v77_v35 }
  0x9b   :  { %179 = vst.msk [vmem:[#allocation2] sm:$0xff] %vm178_vm1, %v140_v37  ;;  %192 = vrot.lane.b32.xlu0 %v140_v37, %s7839_s23 }
  0x9c   :  { %264 = vst.msk [vmem:[#allocation2 + $0xc0] sm:$0xff] %vm178_vm1, %v164_v39 }
  0xa0   :  { %v141_v40 = vpop.f32.mrf.mxu0 }
  0xa1   :  { %v142_v41 = vadd.f32 %v141_v40, %v76_v34  ;;  %v165_v42 = vpop.f32.mrf.mxu1 }
  0xa2   :  { %v166_v43 = vadd.f32 %v165_v42, %v77_v35 }
  0xa3   :  { %180 = vst.msk [vmem:[#allocation2 + $0x8] sm:$0xff] %vm178_vm1, %v142_v41  ;;  %218 = vrot.lane.b32.xlu1 %v142_v41, %s7841_s3  ;;  %216 = vrot.lane.b32.xlu0 %v140_v37, %s7841_s3 }
  0xa4   :  { %265 = vst.msk [vmem:[#allocation2 + $0xc8] sm:$0xff] %vm178_vm1, %v166_v43 }
  0xa8   :  { %v144_v44 = vpop.f32.mrf.mxu0 }
  0xa9   :  { %v145_v45 = vadd.f32 %v144_v44, %v76_v34  ;;  %v168_v46 = vpop.f32.mrf.mxu1 }
  0xaa   :  { %v169_v47 = vadd.f32 %v168_v46, %v77_v35 }
  0xab   :  { %181 = vst.msk [vmem:[#allocation2 + $0x10] sm:$0xff] %vm178_vm1, %v145_v45  ;;  %220 = vrot.lane.b32.xlu2 %v145_v45, %s7841_s3  ;;  %242 = vrot.lane.b32.xlu1 %v142_v41, %s5703_s6 }
  0xac   :  { %240 = vrot.lane.b32.xlu0 %v140_v37, %s5703_s6  ;;  %266 = vst.msk [vmem:[#allocation2 + $0xd0] sm:$0xff] %vm178_vm1, %v169_v47 }
  0xb0   :  { %v146_v48 = vpop.f32.mrf.mxu0 }
  0xb1   :  { %v147_v49 = vadd.f32 %v146_v48, %v76_v34  ;;  %v170_v50 = vpop.f32.mrf.mxu1 }
  0xb2   :  { %v171_v51 = vadd.f32 %v170_v50, %v77_v35 }
  0xb3   :  { %244 = vrot.lane.b32.xlu2 %v145_v45, %s5703_s6  ;;  %278 = vrot.lane.b32.xlu1 %v166_v43, %s7839_s23  ;;  %182 = vst.msk [vmem:[#allocation2 + $0x18] sm:$0xff] %vm178_vm1, %v147_v49 }
  0xb4   :  { %276 = vrot.lane.b32.xlu0 %v164_v39, %s7839_s23  ;;  %267 = vst.msk [vmem:[#allocation2 + $0xd8] sm:$0xff] %vm178_vm1, %v171_v51 }
  0xb8   :  { %v149_v52 = vpop.f32.mrf.mxu0 }
  0xb9   :  { %v150_v53 = vadd.f32 %v149_v52, %v76_v34  ;;  %v173_v54 = vpop.f32.mrf.mxu1 }
  0xba   :  { %v174_v55 = vadd.f32 %v173_v54, %v77_v35 }
  0xbb   :  { %280 = vrot.lane.b32.xlu2 %v169_v47, %s7839_s23  ;;  %302 = vrot.lane.b32.xlu1 %v166_v43, %s7841_s3  ;;  %183 = vst.msk [vmem:[#allocation2 + $0x20] sm:$0xff] %vm178_vm1, %v150_v53 }
  0xbc   :  { %300 = vrot.lane.b32.xlu0 %v164_v39, %s7841_s3  ;;  %268 = vst.msk [vmem:[#allocation2 + $0xe0] sm:$0xff] %vm178_vm1, %v174_v55 }
  0xc0   :  { %v151_v56 = vpop.f32.mrf.mxu0 }
  0xc1   :  { %v152_v57 = vadd.f32 %v151_v56, %v76_v34  ;;  %v175_v58 = vpop.f32.mrf.mxu1 }
  0xc2   :  { %v176_v59 = vadd.f32 %v175_v58, %v77_v35 }
  0xc3   :  { %304 = vrot.lane.b32.xlu2 %v169_v47, %s7841_s3  ;;  %196 = vrot.lane.b32.xlu1 %v145_v45, %s7839_s23  ;;  %185 = vst.msk [vmem:[#allocation2 + $0x28] sm:$0x3] %vm184_vm2, %v152_v57 }
  0xc4   :  { %194 = vrot.lane.b32.xlu0 %v142_v41, %s7839_s23  ;;  %269 = vst.msk [vmem:[#allocation2 + $0xe8] sm:$0x3] %vm184_vm2, %v176_v59 }
  0xcb   :  { %200 = vrot.lane.b32.xlu2 %v150_v53, %s7839_s23  ;;  %198 = vrot.lane.b32.xlu1 %v147_v49, %s7839_s23 }
  0xcc   :  { %222 = vrot.lane.b32.xlu0 %v147_v49, %s7841_s3 }
  0xd3   :  { %202 = vrot.lane.b32.xlu2 %v152_v57, %s7839_s23  ;;  %224 = vrot.lane.b32.xlu1 %v150_v53, %s7841_s3 }
  0xd4   :  { %246 = vrot.lane.b32.xlu0 %v147_v49, %s5703_s6 }
  0xdb   :  { %226 = vrot.lane.b32.xlu2 %v152_v57, %s7841_s3  ;;  %248 = vrot.lane.b32.xlu1 %v150_v53, %s5703_s6 }
  0xdc   :  { %282 = vrot.lane.b32.xlu0 %v171_v51, %s7839_s23 }
  0xe3   :  { %250 = vrot.lane.b32.xlu2 %v152_v57, %s5703_s6  ;;  %284 = vrot.lane.b32.xlu1 %v174_v55, %s7839_s23 }
  0xe4   :  { %306 = vrot.lane.b32.xlu0 %v171_v51, %s7841_s3 }
  0xeb   :  { %286 = vrot.lane.b32.xlu2 %v176_v59, %s7839_s23  ;;  %308 = vrot.lane.b32.xlu1 %v174_v55, %s7841_s3 }
  0xf3   :  { %310 = vrot.lane.b32.xlu2 %v176_v59, %s7841_s3 }
 0x105   :  { %v221_v60 = vpop.permute.xlu2 %220 }
 0x106   :  { %236 = vst.msk [vmem:[#allocation2 + $0x70] sm:$0xff] %vm178_vm1, %v221_v60 }
 0x10d   :  { %v245_v61 = vpop.permute.xlu2 %244  ;;  %v193_v62 = vpop.permute.xlu0 %192 }
 0x10e   :  { %260 = vst.msk [vmem:[#allocation2 + $0xa0] sm:$0xff] %vm178_vm1, %v245_v61 }
 0x10f   :  { %210 = vst.msk [vmem:[#allocation2 + $0x30] sm:$0xff] %vm178_vm1, %v193_v62 }
 0x115   :  { %v281_v63 = vpop.permute.xlu2 %280  ;;  %v219_v0 = vpop.permute.xlu1 %218 }
 0x116   :  { %296 = vst.msk [vmem:[#allocation2 + $0x100] sm:$0xff] %vm178_vm1, %v281_v63  ;;  %v217_v1 = vpop.permute.xlu0 %216 }
 0x117   :  { %235 = vst.msk [vmem:[#allocation2 + $0x68] sm:$0xff] %vm178_vm1, %v219_v0 }
 0x118   :  { %234 = vst.msk [vmem:[#allocation2 + $0x60] sm:$0xff] %vm178_vm1, %v217_v1 }
 0x11d   :  { %v305_v2 = vpop.permute.xlu2 %304  ;;  %v243_v3 = vpop.permute.xlu1 %242 }
 0x11e   :  { %320 = vst.msk [vmem:[#allocation2 + $0x130] sm:$0xff] %vm178_vm1, %v305_v2  ;;  %v241_v4 = vpop.permute.xlu0 %240 }
 0x11f   :  { %259 = vst.msk [vmem:[#allocation2 + $0x98] sm:$0xff] %vm178_vm1, %v243_v3 }
 0x120   :  { %258 = vst.msk [vmem:[#allocation2 + $0x90] sm:$0xff] %vm178_vm1, %v241_v4 }
 0x125   :  { %v201_v5 = vpop.permute.xlu2 %200  ;;  %v279_v6 = vpop.permute.xlu1 %278 }
 0x126   :  { %214 = vst.msk [vmem:[#allocation2 + $0x50] sm:$0xff] %vm178_vm1, %v201_v5  ;;  %v277_v7 = vpop.permute.xlu0 %276 }
 0x127   :  { %295 = vst.msk [vmem:[#allocation2 + $0xf8] sm:$0xff] %vm178_vm1, %v279_v6 }
 0x128   :  { %294 = vst.msk [vmem:[#allocation2 + $0xf0] sm:$0xff] %vm178_vm1, %v277_v7 }
 0x12d   :  { %v203_v8 = vpop.permute.xlu2 %202  ;;  %v303_v9 = vpop.permute.xlu1 %302 }
 0x12e   :  { %215 = vst.msk [vmem:[#allocation2 + $0x58] sm:$0x3] %vm184_vm2, %v203_v8  ;;  %v301_v10 = vpop.permute.xlu0 %300 }
 0x12f   :  { %319 = vst.msk [vmem:[#allocation2 + $0x128] sm:$0xff] %vm178_vm1, %v303_v9 }
 0x130   :  { %318 = vst.msk [vmem:[#allocation2 + $0x120] sm:$0xff] %vm178_vm1, %v301_v10 }
 0x135   :  { %v227_v11 = vpop.permute.xlu2 %226  ;;  %v197_v12 = vpop.permute.xlu1 %196 }
 0x136   :  { %239 = vst.msk [vmem:[#allocation2 + $0x88] sm:$0x3] %vm184_vm2, %v227_v11  ;;  %v195_v13 = vpop.permute.xlu0 %194 }
 0x137   :  { %212 = vst.msk [vmem:[#allocation2 + $0x40] sm:$0xff] %vm178_vm1, %v197_v12 }
 0x138   :  { %211 = vst.msk [vmem:[#allocation2 + $0x38] sm:$0xff] %vm178_vm1, %v195_v13 }
 0x13d   :  { %v251_v14 = vpop.permute.xlu2 %250  ;;  %v199_v15 = vpop.permute.xlu1 %198 }
 0x13e   :  { %263 = vst.msk [vmem:[#allocation2 + $0xb8] sm:$0x3] %vm184_vm2, %v251_v14  ;;  %v223_v16 = vpop.permute.xlu0 %222 }
 0x13f   :  { %213 = vst.msk [vmem:[#allocation2 + $0x48] sm:$0xff] %vm178_vm1, %v199_v15 }
 0x140   :  { %237 = vst.msk [vmem:[#allocation2 + $0x78] sm:$0xff] %vm178_vm1, %v223_v16 }
 0x145   :  { %v287_v17 = vpop.permute.xlu2 %286  ;;  %v225_v18 = vpop.permute.xlu1 %224 }
 0x146   :  { %299 = vst.msk [vmem:[#allocation2 + $0x118] sm:$0x3] %vm184_vm2, %v287_v17  ;;  %v247_v19 = vpop.permute.xlu0 %246 }
 0x147   :  { %238 = vst.msk [vmem:[#allocation2 + $0x80] sm:$0xff] %vm178_vm1, %v225_v18 }
 0x148   :  { %261 = vst.msk [vmem:[#allocation2 + $0xa8] sm:$0xff] %vm178_vm1, %v247_v19 }
 0x14d   :  { %v311_v20 = vpop.permute.xlu2 %310  ;;  %v249_v21 = vpop.permute.xlu1 %248 }
 0x14e   :  { %323 = vst.msk [vmem:[#allocation2 + $0x148] sm:$0x3] %vm184_vm2, %v311_v20  ;;  %v283_v22 = vpop.permute.xlu0 %282 }
 0x14f   :  { %262 = vst.msk [vmem:[#allocation2 + $0xb0] sm:$0xff] %vm178_vm1, %v249_v21 }
 0x150   :  { %297 = vst.msk [vmem:[#allocation2 + $0x108] sm:$0xff] %vm178_vm1, %v283_v22 }
 0x155   :  { %v285_v23 = vpop.permute.xlu1 %284 }
 0x156   :  { %298 = vst.msk [vmem:[#allocation2 + $0x110] sm:$0xff] %vm178_vm1, %v285_v23  ;;  %v307_v24 = vpop.permute.xlu0 %306 }
 0x157   :  { %321 = vst.msk [vmem:[#allocation2 + $0x138] sm:$0xff] %vm178_vm1, %v307_v24 }
 0x15d   :  { %v309_v25 = vpop.permute.xlu1 %308 }
 0x15e   :  { %322 = vst.msk [vmem:[#allocation2 + $0x140] sm:$0xff] %vm178_vm1, %v309_v25 }
 0x15f LB: > { %s5013_s24 = sshll.u32 %s5684_s2, 3  ;;  %vm335_vm3 = vcmask 253952   ;;  %s329_s2 = sadd.s32 1, %s5684_s2   ;;  %s5684_s2 = sphi %s5930_s2, %s329_s2  }
 0x160   : > { %s331_s25 = sld [smem:[#allocation10 + %s5013_s24]]  ;;  %s337_s26 = sadd.s32 1, %s5013_s24 }
 0x161   : > { %s343_s27 = sadd.s32 2, %s5013_s24  ;;  %s338_s28 = sld [smem:[#allocation10 + %s337_s26]] }
 0x162   : > { %s349_s29 = sadd.s32 3, %s5013_s24  ;;  %s344_s30 = sld [smem:[#allocation10 + %s343_s27]] }
 0x163   : > { %s355_s14 = sadd.s32 4, %s5013_s24  ;;  %s350_s15 = sld [smem:[#allocation10 + %s349_s29]] }
 0x164   : > { %s361_s5 = sadd.s32 5, %s5013_s24  ;;  %s356_s16 = sld [smem:[#allocation10 + %s355_s14]] }
 0x165   : > { %s367_s17 = sadd.s32 6, %s5013_s24  ;;  %s362_s18 = sld [smem:[#allocation10 + %s361_s5]] }
 0x166   : > { %s332_s19 = scalar_lea.vmem [#allocation2], %s331_s25  ;;  %s368_s0 = sld [smem:[#allocation10 + %s367_s17]] }
 0x167   : > { %v333_v26 = vld [vmem:[%s332_s19] sm:$0x1]  ;;  %s373_s20 = sadd.s32 7, %s5013_s24  ;;  %s334_s1 = scalar_lea.vmem [#allocation3], %s5013_s24 }
 0x168   : > { %336 = vst.msk [vmem:[%s334_s1] sm:$0x1] %vm335_vm3, %v333_v26  ;;  %s374_s21 = sld [smem:[#allocation10 + %s373_s20]]  ;;  %s339_s22 = scalar_lea.vmem [#allocation2], %s338_s28 }
 0x169   : > { %v340_v27 = vld [vmem:[%s339_s22] sm:$0x1]  ;;  %s345_s26 = scalar_lea.vmem [#allocation2], %s344_s30  ;;  %s351_s27 = scalar_lea.vmem [#allocation2], %s350_s15 }
 0x16a   : > { %5015 = vst.msk [vmem:[%s334_s1 + $0x1] sm:$0x1] %vm335_vm3, %v340_v27  ;;  %v346_v28 = vld [vmem:[%s345_s26] sm:$0x1]  ;;  %s357_s25 = scalar_lea.vmem [#allocation2], %s356_s16  ;;  %p326_p0 = scmp.ge.s32.totalorder %s329_s2, 5  }
 0x16b   : > { %5017 = vst.msk [vmem:[%s334_s1 + $0x2] sm:$0x1] %vm335_vm3, %v346_v28  ;;  %v352_v29 = vld [vmem:[%s351_s27] sm:$0x1]  ;;  %s363_s24 = scalar_lea.vmem [#allocation2], %s362_s18  ;;  %s5028_s30 = sld [smem:[#allocation10 + $0x28]] (%p326_p0) }
 0x16c   : > { %5019 = vst.msk [vmem:[%s334_s1 + $0x3] sm:$0x1] %vm335_vm3, %v352_v29  ;;  %v358_v30 = vld [vmem:[%s357_s25] sm:$0x1]  ;;  %s369_s28 = scalar_lea.vmem [#allocation2], %s368_s0  ;;  %328 = sbr.rel (!%p326_p0) target bundleno = 351 (0x15f), region = 388 }
 0x16d   : > { %5021 = vst.msk [vmem:[%s334_s1 + $0x4] sm:$0x1] %vm335_vm3, %v358_v30  ;;  %v364_v31 = vld [vmem:[%s363_s24] sm:$0x1]  ;;  %s5029_s14 = sld [smem:[#allocation10 + $0x29]] (%p326_p0)  ;;  %s5949_s16 = smov (%p326_p0), 0  }
 0x16e   : > { %5023 = vst.msk [vmem:[%s334_s1 + $0x5] sm:$0x1] %vm335_vm3, %v364_v31  ;;  %v370_v32 = vld [vmem:[%s369_s28] sm:$0x1]  ;;  %s375_s29 = scalar_lea.vmem [#allocation2], %s374_s21 }
 0x16f   : > { %5025 = vst.msk [vmem:[%s334_s1 + $0x6] sm:$0x1] %vm335_vm3, %v370_v32  ;;  %v376_v33 = vld [vmem:[%s375_s29] sm:$0x1] }
 0x170   : > { %5027 = vst.msk [vmem:[%s334_s1 + $0x7] sm:$0x1] %vm335_vm3, %v376_v33 }
 0x171   :  { %s380_s15 = scalar_lea.vmem [#allocation2], %s5028_s30 }
 0x172   :  { %v381_v34 = vld [vmem:[%s380_s15] sm:$0x1] }
 0x173   :  { %383 = vst.msk [vmem:[#allocation3 + $0x28] sm:$0x1] %vm335_vm3, %v381_v34  ;;  %s385_s5 = scalar_lea.vmem [#allocation2], %s5029_s14 }
 0x174   :  { %v386_v35 = vld [vmem:[%s385_s5] sm:$0x1] }
 0x175   :  { %387 = vst.msk [vmem:[#allocation3 + $0x29] sm:$0x1] %vm335_vm3, %v386_v35 }
 0x176 LB: > { %s5955_s2 = sshll.u32 %s5688_s16, 4  ;;  %s5032_s17 = sshll.u32 %s5688_s16, 3  ;;  %s5688_s16 = sphi %s5949_s16, %s393_s16  }
 0x177   : > { %s396_s18 = sld [smem:[#allocation11 + %s5955_s2]]  ;;  %s397_s19 = sadd.s32 1, %s5955_s2 }
 0x178   : > { %s398_s0 = sld [smem:[#allocation11 + %s397_s19]]  ;;  %s5504_s20 = sadd.s32 2, %s5955_s2 }
 0x179   : > { %s5506_s1 = sadd.s32 4, %s5955_s2  ;;  %s410_s21 = sld [smem:[#allocation11 + %s5504_s20]] }
 0x17a   : > { %s411_s22 = sadd.s32 1, %s5504_s20  ;;  %s425_s27 = sadd.s32 1, %s5506_s1 }
 0x17b   : > { %s412_s26 = sld [smem:[#allocation11 + %s411_s22]]  ;;  %s5508_s24 = sadd.s32 6, %s5955_s2 }
 0x17c   : > { %s424_s25 = sld [smem:[#allocation11 + %s5506_s1]]  ;;  %s439_s15 = sadd.s32 1, %s5508_s24 }
 0x17d   : > { %s426_s28 = sld [smem:[#allocation11 + %s425_s27]]  ;;  %s399_s29 = scalar_lea.vmem [#allocation2], %s396_s18 }
 0x17e   : > { %v400_v36 = vld [vmem:[%s399_s29] sm:$0x1]  ;;  %s438_s30 = sld [smem:[#allocation11 + %s5508_s24]]  ;;  %s401_s14 = scalar_lea.vmem [#allocation2], %s398_s0 }
 0x17f   : > { %v402_v37 = vld [vmem:[%s401_s14] sm:$0x1]  ;;  %s5510_s5 = sadd.s32 8, %s5955_s2  ;;  %s440_s19 = sld [smem:[#allocation11 + %s439_s15]] }
 0x180   : > { %v403_v38 = vadd.f32 %v402_v37, %v400_v36  ;;  %s413_s23 = scalar_lea.vmem [#allocation2], %s410_s21  ;;  %s452_s3 = sld [smem:[#allocation11 + %s5510_s5]] }
 0x181   : > { %v414_v39 = vld [vmem:[%s413_s23] sm:$0x1]  ;;  %s415_s20 = scalar_lea.vmem [#allocation2], %s412_s26  ;;  %s453_s1 = sadd.s32 1, %s5510_s5 }
 0x182   : > { %v404_v40 = vmul.f32 0.5, %v403_v38  ;;  %v416_v41 = vld [vmem:[%s415_s20] sm:$0x1]  ;;  %s427_s22 = scalar_lea.vmem [#allocation2], %s424_s25  ;;  %s454_s18 = sld [smem:[#allocation11 + %s453_s1]] }
 0x183   : > { %v417_v42 = vadd.f32 %v416_v41, %v414_v39  ;;  %v428_v43 = vld [vmem:[%s427_s22] sm:$0x1]  ;;  %s5966_s0 = scalar_lea.vmem [#allocation3], %s5032_s17  ;;  %s429_s27 = scalar_lea.vmem [#allocation2], %s426_s28 }
 0x184   : > { %5033 = vst.msk [vmem:[%s5966_s0 + $0x2a] sm:$0x1] %vm335_vm3, %v404_v40  ;;  %v430_v44 = vld [vmem:[%s429_s27] sm:$0x1]  ;;  %s5512_s23 = sadd.s32 10, %s5955_s2  ;;  %s441_s21 = scalar_lea.vmem [#allocation2], %s438_s30 }
 0x185   : > { %v418_v45 = vmul.f32 0.5, %v417_v42  ;;  %v431_v46 = vadd.f32 %v430_v44, %v428_v43  ;;  %v442_v47 = vld [vmem:[%s441_s21] sm:$0x1]  ;;  %s466_s26 = sld [smem:[#allocation11 + %s5512_s23]]  ;;  %s467_s25 = sadd.s32 1, %s5512_s23 }
 0x186   : > { %s468_s24 = sld [smem:[#allocation11 + %s467_s25]]  ;;  %s443_s17 = scalar_lea.vmem [#allocation2], %s440_s19 }
 0x187   : > { %5036 = vst.msk [vmem:[%s5966_s0 + $0x2b] sm:$0x1] %vm335_vm3, %v418_v45  ;;  %v432_v48 = vmul.f32 0.5, %v431_v46  ;;  %v444_v49 = vld [vmem:[%s443_s17] sm:$0x1]  ;;  %s455_s28 = scalar_lea.vmem [#allocation2], %s452_s3 }
 0x188   : > { %v445_v50 = vadd.f32 %v444_v49, %v442_v47  ;;  %v456_v51 = vld [vmem:[%s455_s28] sm:$0x1]  ;;  %s5514_s29 = sadd.s32 12, %s5955_s2  ;;  %s5516_s14 = sadd.s32 14, %s5955_s2 }
 0x189   : > { %5039 = vst.msk [vmem:[%s5966_s0 + $0x2c] sm:$0x1] %vm335_vm3, %v432_v48  ;;  %s480_s15 = sld [smem:[#allocation11 + %s5514_s29]]  ;;  %s457_s30 = scalar_lea.vmem [#allocation2], %s454_s18 }
 0x18a   : > { %v446_v52 = vmul.f32 0.5, %v445_v50  ;;  %v458_v53 = vld [vmem:[%s457_s30] sm:$0x1]  ;;  %s481_s5 = sadd.s32 1, %s5514_s29  ;;  %s494_s20 = sld [smem:[#allocation11 + %s5516_s14]] }
 0x18b   : > { %v459_v54 = vadd.f32 %v458_v53, %v456_v51  ;;  %s482_s1 = sld [smem:[#allocation11 + %s481_s5]]  ;;  %s469_s19 = scalar_lea.vmem [#allocation2], %s466_s26 }
 0x18c   : > { %5042 = vst.msk [vmem:[%s5966_s0 + $0x2d] sm:$0x1] %vm335_vm3, %v446_v52  ;;  %v470_v55 = vld [vmem:[%s469_s19] sm:$0x1]  ;;  %s495_s3 = sadd.s32 1, %s5516_s14  ;;  %s471_s22 = scalar_lea.vmem [#allocation2], %s468_s24 }
 0x18d   : > { %v460_v56 = vmul.f32 0.5, %v459_v54  ;;  %v472_v57 = vld [vmem:[%s471_s22] sm:$0x1]  ;;  %s496_s2 = sld [smem:[#allocation11 + %s495_s3]]  ;;  %s393_s16 = sadd.s32 1, %s5688_s16  }
 0x18e   : > { %v473_v58 = vadd.f32 %v472_v57, %v470_v55  ;;  %p390_p1 = scmp.ge.s32.totalorder %s393_s16, 15  }
 0x18f   : > { %5045 = vst.msk [vmem:[%s5966_s0 + $0x2e] sm:$0x1] %vm335_vm3, %v460_v56  ;;  %s483_s18 = scalar_lea.vmem [#allocation2], %s480_s15  ;;  %v508_v4 = vld [vmem:[%s7827_s4 + $0x10] sm:$0xff] (%p390_p1)  ;;  %v506_v5 = vld [vmem:[%s7827_s4] sm:$0xff] (%p390_p1)  ;;  %v509_v7 = vld [vmem:[%s7827_s4 + $0x18] sm:$0xff] (%p390_p1) }
 0x190   : > { %v474_v59 = vmul.f32 0.5, %v473_v58  ;;  %v484_v60 = vld [vmem:[%s483_s18] sm:$0x1]  ;;  %s497_s23 = scalar_lea.vmem [#allocation2], %s494_s20  ;;  %552 = vrot.lane.b32.xlu1 (%p390_p1), %v508_v4, %s5703_s6  ;;  %548 = vrot.lane.b32.xlu0 (%p390_p1), %v506_v5, %s5703_s6  ;;  %v507_v8 = vld [vmem:[%s7827_s4 + $0x8] sm:$0xff] (%p390_p1)  ;;  %vm611_vm4 = vcmask (%p390_p1), 523520  }
 0x191   : > { %s485_s27 = scalar_lea.vmem [#allocation2], %s482_s1  ;;  %v498_v62 = vld [vmem:[%s497_s23] sm:$0x1]  ;;  %v511_v9 = vld [vmem:[%s7827_s4 + $0x28] sm:$0xff] (%p390_p1)  ;;  %v513_v10 = vld [vmem:[%s7827_s4 + $0x38] sm:$0xff] (%p390_p1)  ;;  %vm632_vm5 = vcmask (%p390_p1), 517376  }
 0x192   : > { %5048 = vst.msk [vmem:[%s5966_s0 + $0x2f] sm:$0x1] %vm335_vm3, %v474_v59  ;;  %v486_v61 = vld [vmem:[%s485_s27] sm:$0x1]  ;;  %v512_v11 = vld [vmem:[%s7827_s4 + $0x30] sm:$0xff] (%p390_p1)  ;;  %v515_v14 = vld [vmem:[%s7827_s4 + $0x48] sm:$0xff] (%p390_p1) }
 0x193   : > { %v487_v63 = vadd.f32 %v486_v61, %v484_v60  ;;  %s499_s21 = scalar_lea.vmem [#allocation2], %s496_s2  ;;  %v510_v6 = vld [vmem:[%s7827_s4 + $0x20] sm:$0xff] (%p390_p1)  ;;  %v516_v13 = vld [vmem:[%s7827_s4 + $0x50] sm:$0xff] (%p390_p1)  ;;  %v517_v15 = vld [vmem:[%s7827_s4 + $0x58] sm:$0xff] (%p390_p1) }
 0x194   : > { %v500_v0 = vld [vmem:[%s499_s21] sm:$0x1]  ;;  %556 = vrot.lane.b32.xlu2 (%p390_p1), %v510_v6, %s5703_s6  ;;  %v519_v16 = vld [vmem:[%s7827_s4 + $0x68] sm:$0xff] (%p390_p1)  ;;  %v520_v18 = vld [vmem:[%s7827_s4 + $0x70] sm:$0xff] (%p390_p1) }
 0x195   : > { %v488_v1 = vmul.f32 0.5, %v487_v63  ;;  %v501_v2 = vadd.f32 %v500_v0, %v498_v62  ;;  %392 = sbr.rel (!%p390_p1) target bundleno = 374 (0x176), region = 399  ;;  %v514_v12 = vld [vmem:[%s7827_s4 + $0x40] sm:$0xff] (%p390_p1)  ;;  %v521_v20 = vld [vmem:[%s7827_s4 + $0x78] sm:$0xff] (%p390_p1)  ;;  %v523_v21 = vld [vmem:[%s7827_s4 + $0x88] sm:$0xff] (%p390_p1) }
 0x196   :  { %v518_v17 = vld [vmem:[%s7827_s4 + $0x60] sm:$0xff] (%p390_p1)  ;;  %v525_v22 = vld [vmem:[%s7827_s4 + $0x98] sm:$0xff] (%p390_p1)  ;;  %v524_v23 = vld [vmem:[%s7827_s4 + $0x90] sm:$0xff] (%p390_p1) }
 0x197   : > { %5051 = vst.msk [vmem:[%s5966_s0 + $0x30] sm:$0x1] %vm335_vm3, %v488_v1  ;;  %v502_v3 = vmul.f32 0.5, %v501_v2  ;;  %v522_v19 = vld [vmem:[%s7827_s4 + $0x80] sm:$0xff] (%p390_p1) }
 0x198   :  { %554 = vrot.lane.b32.xlu1 (%p390_p1), %v509_v7, %s5703_s6  ;;  %550 = vrot.lane.b32.xlu0 (%p390_p1), %v507_v8, %s5703_s6  ;;  %v526_v24 = vld [vmem:[%s7827_s4 + $0xa0] sm:$0x3] (%p390_p1)  ;;  %s6095_s4 = smov (%p390_p1), 0  }
 0x199   : > { %5054 = vst.msk [vmem:[%s5966_s0 + $0x31] sm:$0x1] %vm335_vm3, %v502_v3 }
 0x19c   :  { %558 = vrot.lane.b32.xlu2 %v511_v9, %s5703_s6 }
 0x1a0   :  { %562 = vrot.lane.b32.xlu1 %v513_v10, %s5703_s6  ;;  %560 = vrot.lane.b32.xlu0 %v512_v11, %s5703_s6 }
 0x1a4   :  { %564 = vrot.lane.b32.xlu2 %v514_v12, %s5703_s6 }
 0x1a8   :  { %568 = vrot.lane.b32.xlu1 %v516_v13, %s5703_s6  ;;  %566 = vrot.lane.b32.xlu0 %v515_v14, %s5703_s6 }
 0x1ac   :  { %570 = vrot.lane.b32.xlu2 %v517_v15, %s5703_s6 }
 0x1b0   :  { %574 = vrot.lane.b32.xlu1 %v519_v16, %s5703_s6  ;;  %572 = vrot.lane.b32.xlu0 %v518_v17, %s5703_s6 }
 0x1b4   :  { %576 = vrot.lane.b32.xlu2 %v520_v18, %s5703_s6 }
 0x1b8   :  { %580 = vrot.lane.b32.xlu1 %v522_v19, %s5703_s6  ;;  %578 = vrot.lane.b32.xlu0 %v521_v20, %s5703_s6 }
 0x1bc   :  { %582 = vrot.lane.b32.xlu2 %v523_v21, %s5703_s6 }
 0x1c0   :  { %586 = vrot.lane.b32.xlu1 %v525_v22, %s5703_s6  ;;  %584 = vrot.lane.b32.xlu0 %v524_v23, %s5703_s6 }
 0x1c4   :  { %588 = vrot.lane.b32.xlu2 %v526_v24, %s5703_s6 }
 0x1ee   :  { %v557_v25 = vpop.permute.xlu2 %556 }
 0x1ef   :  { %616 = vst.msk [vmem:[#allocation3 + $0x20] sm:$0xff] %vm611_vm4, %v557_v25 }
 0x1f6   :  { %v559_v26 = vpop.permute.xlu2 %558 }
 0x1f7   :  { %617 = vst.msk [vmem:[#allocation3 + $0x28] sm:$0xff] %vm611_vm4, %v559_v26 }
 0x1fe   :  { %v565_v27 = vpop.permute.xlu2 %564 }
 0x1ff   :  { %620 = vst.msk [vmem:[#allocation3 + $0x40] sm:$0xff] %vm611_vm4, %v565_v27 }
 0x202   :  { %v553_v28 = vpop.permute.xlu1 %552  ;;  %v549_v29 = vpop.permute.xlu0 %548 }
 0x203   :  { %614 = vst.msk [vmem:[#allocation3 + $0x10] sm:$0xff] %vm611_vm4, %v553_v28 }
 0x204   :  { %612 = vst.msk [vmem:[#allocation3] sm:$0xff] %vm611_vm4, %v549_v29 }
 0x206   :  { %v571_v30 = vpop.permute.xlu2 %570 }
 0x207   :  { %623 = vst.msk [vmem:[#allocation3 + $0x58] sm:$0xff] %vm611_vm4, %v571_v30 }
 0x20a   :  { %v555_v31 = vpop.permute.xlu1 %554  ;;  %v551_v32 = vpop.permute.xlu0 %550 }
 0x20b   :  { %615 = vst.msk [vmem:[#allocation3 + $0x18] sm:$0xff] %vm611_vm4, %v555_v31 }
 0x20c   :  { %613 = vst.msk [vmem:[#allocation3 + $0x8] sm:$0xff] %vm611_vm4, %v551_v32 }
 0x20e   :  { %v577_v33 = vpop.permute.xlu2 %576 }
 0x20f   :  { %626 = vst.msk [vmem:[#allocation3 + $0x70] sm:$0xff] %vm611_vm4, %v577_v33 }
 0x212   :  { %v563_v34 = vpop.permute.xlu1 %562  ;;  %v561_v35 = vpop.permute.xlu0 %560 }
 0x213   :  { %619 = vst.msk [vmem:[#allocation3 + $0x38] sm:$0xff] %vm611_vm4, %v563_v34 }
 0x214   :  { %618 = vst.msk [vmem:[#allocation3 + $0x30] sm:$0xff] %vm611_vm4, %v561_v35 }
 0x216   :  { %v583_v36 = vpop.permute.xlu2 %582 }
 0x217   :  { %629 = vst.msk [vmem:[#allocation3 + $0x88] sm:$0xff] %vm611_vm4, %v583_v36 }
 0x21a   :  { %v569_v37 = vpop.permute.xlu1 %568  ;;  %v567_v38 = vpop.permute.xlu0 %566 }
 0x21b   :  { %622 = vst.msk [vmem:[#allocation3 + $0x50] sm:$0xff] %vm611_vm4, %v569_v37 }
 0x21c   :  { %621 = vst.msk [vmem:[#allocation3 + $0x48] sm:$0xff] %vm611_vm4, %v567_v38 }
 0x21e   :  { %v589_v39 = vpop.permute.xlu2 %588 }
 0x21f   :  { %633 = vst.msk [vmem:[#allocation3 + $0xa0] sm:$0x3] %vm632_vm5, %v589_v39 }
 0x222   :  { %v575_v40 = vpop.permute.xlu1 %574  ;;  %v573_v41 = vpop.permute.xlu0 %572 }
 0x223   :  { %625 = vst.msk [vmem:[#allocation3 + $0x68] sm:$0xff] %vm611_vm4, %v575_v40 }
 0x224   :  { %624 = vst.msk [vmem:[#allocation3 + $0x60] sm:$0xff] %vm611_vm4, %v573_v41 }
 0x22a   :  { %v581_v42 = vpop.permute.xlu1 %580  ;;  %v579_v43 = vpop.permute.xlu0 %578 }
 0x22b   :  { %628 = vst.msk [vmem:[#allocation3 + $0x80] sm:$0xff] %vm611_vm4, %v581_v42 }
 0x22c   :  { %627 = vst.msk [vmem:[#allocation3 + $0x78] sm:$0xff] %vm611_vm4, %v579_v43 }
 0x232   :  { %v587_v44 = vpop.permute.xlu1 %586  ;;  %v585_v45 = vpop.permute.xlu0 %584 }
 0x233   :  { %631 = vst.msk [vmem:[#allocation3 + $0x98] sm:$0xff] %vm611_vm4, %v587_v44 }
 0x234   :  { %630 = vst.msk [vmem:[#allocation3 + $0x90] sm:$0xff] %vm611_vm4, %v585_v45 }
 0x235 LB: > { %s6101_s23 = sshll.u32 %s5692_s4, 3  ;;  %s641_s21 = smul.u32 56, %s5692_s4  ;;  %vm646_vm6 = vcmask 516096   ;;  %s5692_s4 = sphi %s6095_s4, %s639_s4  }
 0x236   : > { %s690_s26 = sadd.s32 1, %s6101_s23  ;;  %s6108_s22 = scalar_lea.vmem [#allocation4], %s6101_s23 }
 0x237   : > { %s642_s25 = sld [smem:[#allocation9 + %s641_s21]]  ;;  %s648_s24 = sadd.s32 1, %s641_s21 }
 0x238   : > { %s649_s17 = sld [smem:[#allocation9 + %s648_s24]]  ;;  %s655_s28 = sadd.s32 2, %s641_s21 }
 0x239   : > { %s656_s0 = sld [smem:[#allocation9 + %s655_s28]]  ;;  %s662_s16 = sadd.s32 3, %s641_s21 }
 0x23a   : > { %s663_s29 = sld [smem:[#allocation9 + %s662_s16]]  ;;  %s669_s14 = sadd.s32 4, %s641_s21 }
 0x23b   : > { %s670_s15 = sld [smem:[#allocation9 + %s669_s14]]  ;;  %s676_s30 = sadd.s32 5, %s641_s21 }
 0x23c   : > { %s677_s5 = sld [smem:[#allocation9 + %s676_s30]]  ;;  %s683_s20 = sadd.s32 6, %s641_s21 }
 0x23d   : > { %s684_s1 = sld [smem:[#allocation9 + %s683_s20]]  ;;  %s643_s19 = scalar_lea.vmem [#allocation3], %s642_s25 }
 0x23e   : > { %v644_v46 = vld [vmem:[%s643_s19] sm:$0x1]  ;;  %s6105_s3 = smul.u32 7, %s690_s26  ;;  %s650_s2 = scalar_lea.vmem [#allocation3], %s649_s17 }
 0x23f   : > { %647 = vst.msk [vmem:[%s6108_s22] sm:$0x1] %vm646_vm6, %v644_v46  ;;  %v651_v47 = vld [vmem:[%s650_s2] sm:$0x1]  ;;  %s739_s18 = sadd.s32 2, %s6101_s23  ;;  %s657_s27 = scalar_lea.vmem [#allocation3], %s656_s0 }
 0x240   : > { %5057 = vst.msk [vmem:[%s6108_s22 + $0xa8] sm:$0x1] %vm646_vm6, %v651_v47  ;;  %v658_v48 = vld [vmem:[%s657_s27] sm:$0x1]  ;;  %s692_s21 = sld [smem:[#allocation9 + %s6105_s3]]  ;;  %s664_s26 = scalar_lea.vmem [#allocation3], %s663_s29 }
 0x241   : > { %5059 = vst.msk [vmem:[%s6108_s22 + $0x150] sm:$0x1] %vm646_vm6, %v658_v48  ;;  %v665_v49 = vld [vmem:[%s664_s26] sm:$0x1]  ;;  %s697_s25 = sadd.s32 1, %s6105_s3  ;;  %s671_s24 = scalar_lea.vmem [#allocation3], %s670_s15 }
 0x242   : > { %5061 = vst.msk [vmem:[%s6108_s22 + $0x1f8] sm:$0x1] %vm646_vm6, %v665_v49  ;;  %v672_v50 = vld [vmem:[%s671_s24] sm:$0x1]  ;;  %s698_s17 = sld [smem:[#allocation9 + %s697_s25]]  ;;  %s678_s28 = scalar_lea.vmem [#allocation3], %s677_s5 }
 0x243   : > { %5063 = vst.msk [vmem:[%s6108_s22 + $0x2a0] sm:$0x1] %vm646_vm6, %v672_v50  ;;  %v679_v51 = vld [vmem:[%s678_s28] sm:$0x1]  ;;  %s704_s0 = sadd.s32 2, %s6105_s3  ;;  %s685_s16 = scalar_lea.vmem [#allocation3], %s684_s1 }
 0x244   : > { %5065 = vst.msk [vmem:[%s6108_s22 + $0x348] sm:$0x1] %vm646_vm6, %v679_v51  ;;  %v686_v52 = vld [vmem:[%s685_s16] sm:$0x1]  ;;  %s705_s29 = sld [smem:[#allocation9 + %s704_s0]]  ;;  %s711_s14 = sadd.s32 3, %s6105_s3 }
 0x245   : > { %5067 = vst.msk [vmem:[%s6108_s22 + $0x3f0] sm:$0x1] %vm646_vm6, %v686_v52  ;;  %s712_s15 = sld [smem:[#allocation9 + %s711_s14]]  ;;  %s718_s30 = sadd.s32 4, %s6105_s3 }
 0x246   : > { %s719_s20 = sld [smem:[#allocation9 + %s718_s30]]  ;;  %s693_s19 = scalar_lea.vmem [#allocation3], %s692_s21 }
 0x247   : > { %v694_v53 = vld [vmem:[%s693_s19] sm:$0x1]  ;;  %s725_s5 = sadd.s32 5, %s6105_s3  ;;  %s732_s2 = sadd.s32 6, %s6105_s3 }
 0x248   : > { %5069 = vst.msk [vmem:[%s6108_s22 + $0x1] sm:$0x1] %vm646_vm6, %v694_v53  ;;  %s726_s1 = sld [smem:[#allocation9 + %s725_s5]]  ;;  %s699_s27 = scalar_lea.vmem [#allocation3], %s698_s17 }
 0x249   : > { %v700_v54 = vld [vmem:[%s699_s27] sm:$0x1]  ;;  %s733_s26 = sld [smem:[#allocation9 + %s732_s2]]  ;;  %s6136_s25 = smul.u32 7, %s739_s18 }
 0x24a   : > { %5071 = vst.msk [vmem:[%s6108_s22 + $0xa9] sm:$0x1] %vm646_vm6, %v700_v54  ;;  %s788_s21 = sadd.s32 3, %s6101_s23  ;;  %s706_s24 = scalar_lea.vmem [#allocation3], %s705_s29 }
 0x24b   : > { %v707_v55 = vld [vmem:[%s706_s24] sm:$0x1]  ;;  %s741_s3 = sld [smem:[#allocation9 + %s6136_s25]]  ;;  %s713_s17 = scalar_lea.vmem [#allocation3], %s712_s15 }
 0x24c   : > { %5073 = vst.msk [vmem:[%s6108_s22 + $0x151] sm:$0x1] %vm646_vm6, %v707_v55  ;;  %v714_v56 = vld [vmem:[%s713_s17] sm:$0x1]  ;;  %s746_s28 = sadd.s32 1, %s6136_s25  ;;  %s720_s18 = scalar_lea.vmem [#allocation3], %s719_s20 }
 0x24d   : > { %5075 = vst.msk [vmem:[%s6108_s22 + $0x1f9] sm:$0x1] %vm646_vm6, %v714_v56  ;;  %v721_v57 = vld [vmem:[%s720_s18] sm:$0x1]  ;;  %s747_s0 = sld [smem:[#allocation9 + %s746_s28]]  ;;  %s753_s16 = sadd.s32 2, %s6136_s25 }
 0x24e   : > { %5077 = vst.msk [vmem:[%s6108_s22 + $0x2a1] sm:$0x1] %vm646_vm6, %v721_v57  ;;  %s754_s29 = sld [smem:[#allocation9 + %s753_s16]]  ;;  %s727_s14 = scalar_lea.vmem [#allocation3], %s726_s1 }
 0x24f   : > { %v728_v58 = vld [vmem:[%s727_s14] sm:$0x1]  ;;  %s760_s30 = sadd.s32 3, %s6136_s25  ;;  %s734_s15 = scalar_lea.vmem [#allocation3], %s733_s26 }
 0x250   : > { %5079 = vst.msk [vmem:[%s6108_s22 + $0x349] sm:$0x1] %vm646_vm6, %v728_v58  ;;  %v735_v59 = vld [vmem:[%s734_s15] sm:$0x1]  ;;  %s761_s19 = sld [smem:[#allocation9 + %s760_s30]]  ;;  %s767_s20 = sadd.s32 4, %s6136_s25 }
 0x251   : > { %5081 = vst.msk [vmem:[%s6108_s22 + $0x3f1] sm:$0x1] %vm646_vm6, %v735_v59  ;;  %s768_s5 = sld [smem:[#allocation9 + %s767_s20]]  ;;  %s742_s2 = scalar_lea.vmem [#allocation3], %s741_s3 }
 0x252   : > { %v743_v60 = vld [vmem:[%s742_s2] sm:$0x1]  ;;  %s774_s27 = sadd.s32 5, %s6136_s25  ;;  %s781_s24 = sadd.s32 6, %s6136_s25 }
 0x253   : > { %5083 = vst.msk [vmem:[%s6108_s22 + $0x2] sm:$0x1] %vm646_vm6, %v743_v60  ;;  %s775_s1 = sld [smem:[#allocation9 + %s774_s27]]  ;;  %s748_s17 = scalar_lea.vmem [#allocation3], %s747_s0 }
 0x254   : > { %v749_v61 = vld [vmem:[%s748_s17] sm:$0x1]  ;;  %s782_s26 = sld [smem:[#allocation9 + %s781_s24]]  ;;  %s755_s28 = scalar_lea.vmem [#allocation3], %s754_s29 }
 0x255   : > { %5085 = vst.msk [vmem:[%s6108_s22 + $0xaa] sm:$0x1] %vm646_vm6, %v749_v61  ;;  %v756_v62 = vld [vmem:[%s755_s28] sm:$0x1]  ;;  %s6164_s18 = smul.u32 7, %s788_s21  ;;  %s837_s3 = sadd.s32 4, %s6101_s23 }
 0x256   : > { %5087 = vst.msk [vmem:[%s6108_s22 + $0x152] sm:$0x1] %vm646_vm6, %v756_v62  ;;  %s6169_s25 = smul.u32 7, %s837_s3  ;;  %s762_s0 = scalar_lea.vmem [#allocation3], %s761_s19 }
 0x257   : > { %v763_v63 = vld [vmem:[%s762_s0] sm:$0x1]  ;;  %s790_s16 = sld [smem:[#allocation9 + %s6164_s18]]  ;;  %s769_s29 = scalar_lea.vmem [#allocation3], %s768_s5 }
 0x258   : > { %5089 = vst.msk [vmem:[%s6108_s22 + $0x1fa] sm:$0x1] %vm646_vm6, %v763_v63  ;;  %v770_v0 = vld [vmem:[%s769_s29] sm:$0x1]  ;;  %s795_s21 = sadd.s32 1, %s6164_s18  ;;  %s802_s14 = sadd.s32 2, %s6164_s18 }
 0x259   : > { %5091 = vst.msk [vmem:[%s6108_s22 + $0x2a2] sm:$0x1] %vm646_vm6, %v770_v0  ;;  %s796_s30 = sld [smem:[#allocation9 + %s795_s21]]  ;;  %s776_s15 = scalar_lea.vmem [#allocation3], %s775_s1 }
 0x25a   : > { %v777_v1 = vld [vmem:[%s776_s15] sm:$0x1]  ;;  %s803_s19 = sld [smem:[#allocation9 + %s802_s14]]  ;;  %s783_s20 = scalar_lea.vmem [#allocation3], %s782_s26 }
 0x25b   : > { %5093 = vst.msk [vmem:[%s6108_s22 + $0x34a] sm:$0x1] %vm646_vm6, %v777_v1  ;;  %v784_v2 = vld [vmem:[%s783_s20] sm:$0x1]  ;;  %s809_s2 = sadd.s32 3, %s6164_s18  ;;  %s816_s5 = sadd.s32 4, %s6164_s18 }
 0x25c   : > { %5095 = vst.msk [vmem:[%s6108_s22 + $0x3f2] sm:$0x1] %vm646_vm6, %v784_v2  ;;  %s810_s27 = sld [smem:[#allocation9 + %s809_s2]]  ;;  %s823_s24 = sadd.s32 5, %s6164_s18 }
 0x25d   : > { %s817_s17 = sld [smem:[#allocation9 + %s816_s5]]  ;;  %s791_s1 = scalar_lea.vmem [#allocation3], %s790_s16 }
 0x25e   : > { %v792_v3 = vld [vmem:[%s791_s1] sm:$0x1]  ;;  %s824_s28 = sld [smem:[#allocation9 + %s823_s24]]  ;;  %s830_s3 = sadd.s32 6, %s6164_s18 }
 0x25f   : > { %5097 = vst.msk [vmem:[%s6108_s22 + $0x3] sm:$0x1] %vm646_vm6, %v792_v3  ;;  %s831_s26 = sld [smem:[#allocation9 + %s830_s3]]  ;;  %s797_s0 = scalar_lea.vmem [#allocation3], %s796_s30 }
 0x260   : > { %v798_v4 = vld [vmem:[%s797_s0] sm:$0x1]  ;;  %s839_s29 = sld [smem:[#allocation9 + %s6169_s25]]  ;;  %s804_s21 = scalar_lea.vmem [#allocation3], %s803_s19 }
 0x261   : > { %5099 = vst.msk [vmem:[%s6108_s22 + $0xab] sm:$0x1] %vm646_vm6, %v798_v4  ;;  %v805_v5 = vld [vmem:[%s804_s21] sm:$0x1]  ;;  %s844_s14 = sadd.s32 1, %s6169_s25  ;;  %s851_s15 = sadd.s32 2, %s6169_s25 }
 0x262   : > { %5101 = vst.msk [vmem:[%s6108_s22 + $0x153] sm:$0x1] %vm646_vm6, %v805_v5  ;;  %s845_s18 = sld [smem:[#allocation9 + %s844_s14]]  ;;  %s811_s16 = scalar_lea.vmem [#allocation3], %s810_s27 }
 0x263   : > { %v812_v6 = vld [vmem:[%s811_s16] sm:$0x1]  ;;  %s852_s20 = sld [smem:[#allocation9 + %s851_s15]]  ;;  %s818_s30 = scalar_lea.vmem [#allocation3], %s817_s17 }
 0x264   : > { %5103 = vst.msk [vmem:[%s6108_s22 + $0x1fb] sm:$0x1] %vm646_vm6, %v812_v6  ;;  %v819_v7 = vld [vmem:[%s818_s30] sm:$0x1]  ;;  %s858_s2 = sadd.s32 3, %s6169_s25  ;;  %s825_s19 = scalar_lea.vmem [#allocation3], %s824_s28 }
 0x265   : > { %5105 = vst.msk [vmem:[%s6108_s22 + $0x2a3] sm:$0x1] %vm646_vm6, %v819_v7  ;;  %v826_v8 = vld [vmem:[%s825_s19] sm:$0x1]  ;;  %s859_s5 = sld [smem:[#allocation9 + %s858_s2]]  ;;  %s832_s24 = scalar_lea.vmem [#allocation3], %s831_s26 }
 0x266   : > { %5107 = vst.msk [vmem:[%s6108_s22 + $0x34b] sm:$0x1] %vm646_vm6, %v826_v8  ;;  %v833_v9 = vld [vmem:[%s832_s24] sm:$0x1]  ;;  %s865_s27 = sadd.s32 4, %s6169_s25  ;;  %s840_s17 = scalar_lea.vmem [#allocation3], %s839_s29 }
 0x267   : > { %5109 = vst.msk [vmem:[%s6108_s22 + $0x3f3] sm:$0x1] %vm646_vm6, %v833_v9  ;;  %v841_v10 = vld [vmem:[%s840_s17] sm:$0x1]  ;;  %s866_s1 = sld [smem:[#allocation9 + %s865_s27]]  ;;  %s872_s3 = sadd.s32 5, %s6169_s25 }
 0x268   : > { %5111 = vst.msk [vmem:[%s6108_s22 + $0x4] sm:$0x1] %vm646_vm6, %v841_v10  ;;  %s873_s28 = sld [smem:[#allocation9 + %s872_s3]]  ;;  %s846_s0 = scalar_lea.vmem [#allocation3], %s845_s18 }
 0x269   : > { %v847_v11 = vld [vmem:[%s846_s0] sm:$0x1]  ;;  %s879_s21 = sadd.s32 6, %s6169_s25  ;;  %s853_s26 = scalar_lea.vmem [#allocation3], %s852_s20 }
 0x26a   : > { %5113 = vst.msk [vmem:[%s6108_s22 + $0xac] sm:$0x1] %vm646_vm6, %v847_v11  ;;  %v854_v12 = vld [vmem:[%s853_s26] sm:$0x1]  ;;  %s880_s14 = sld [smem:[#allocation9 + %s879_s21]]  ;;  %s886_s15 = sadd.s32 5, %s6101_s23 }
 0x26b   : > { %5115 = vst.msk [vmem:[%s6108_s22 + $0x154] sm:$0x1] %vm646_vm6, %v854_v12  ;;  %s6214_s29 = smul.u32 7, %s886_s15  ;;  %s860_s16 = scalar_lea.vmem [#allocation3], %s859_s5 }
 0x26c   : > { %v861_v13 = vld [vmem:[%s860_s16] sm:$0x1]  ;;  %s935_s18 = sadd.s32 6, %s6101_s23  ;;  %s984_s25 = sadd.s32 7, %s6101_s23 }
 0x26d   : > { %5117 = vst.msk [vmem:[%s6108_s22 + $0x1fc] sm:$0x1] %vm646_vm6, %v861_v13  ;;  %s888_s20 = sld [smem:[#allocation9 + %s6214_s29]]  ;;  %s867_s30 = scalar_lea.vmem [#allocation3], %s866_s1 }
 0x26e   : > { %v868_v14 = vld [vmem:[%s867_s30] sm:$0x1]  ;;  %s893_s2 = sadd.s32 1, %s6214_s29  ;;  %s874_s19 = scalar_lea.vmem [#allocation3], %s873_s28 }
 0x26f   : > { %5119 = vst.msk [vmem:[%s6108_s22 + $0x2a4] sm:$0x1] %vm646_vm6, %v868_v14  ;;  %v875_v15 = vld [vmem:[%s874_s19] sm:$0x1]  ;;  %s894_s24 = sld [smem:[#allocation9 + %s893_s2]]  ;;  %s900_s5 = sadd.s32 2, %s6214_s29 }
 0x270   : > { %5121 = vst.msk [vmem:[%s6108_s22 + $0x34c] sm:$0x1] %vm646_vm6, %v875_v15  ;;  %s901_s27 = sld [smem:[#allocation9 + %s900_s5]]  ;;  %s881_s17 = scalar_lea.vmem [#allocation3], %s880_s14 }
 0x271   : > { %v882_v16 = vld [vmem:[%s881_s17] sm:$0x1]  ;;  %s907_s3 = sadd.s32 3, %s6214_s29  ;;  %s914_s1 = sadd.s32 4, %s6214_s29 }
 0x272   : > { %5123 = vst.msk [vmem:[%s6108_s22 + $0x3f4] sm:$0x1] %vm646_vm6, %v882_v16  ;;  %s908_s0 = sld [smem:[#allocation9 + %s907_s3]]  ;;  %s921_s28 = sadd.s32 5, %s6214_s29 }
 0x273   : > { %s915_s21 = sld [smem:[#allocation9 + %s914_s1]]  ;;  %s889_s26 = scalar_lea.vmem [#allocation3], %s888_s20 }
 0x274   : > { %v890_v17 = vld [vmem:[%s889_s26] sm:$0x1]  ;;  %s922_s15 = sld [smem:[#allocation9 + %s921_s28]]  ;;  %s928_s16 = sadd.s32 6, %s6214_s29 }
 0x275   : > { %5125 = vst.msk [vmem:[%s6108_s22 + $0x5] sm:$0x1] %vm646_vm6, %v890_v17  ;;  %s929_s14 = sld [smem:[#allocation9 + %s928_s16]]  ;;  %s895_s30 = scalar_lea.vmem [#allocation3], %s894_s24 }
 0x276   : > { %v896_v18 = vld [vmem:[%s895_s30] sm:$0x1]  ;;  %s6237_s2 = smul.u32 7, %s935_s18  ;;  %s902_s19 = scalar_lea.vmem [#allocation3], %s901_s27 }
 0x277   : > { %5127 = vst.msk [vmem:[%s6108_s22 + $0xad] sm:$0x1] %vm646_vm6, %v896_v18  ;;  %v903_v19 = vld [vmem:[%s902_s19] sm:$0x1]  ;;  %s6243_s20 = smul.u32 7, %s984_s25  ;;  %s639_s4 = sadd.s32 1, %s5692_s4  }
 0x278   : > { %5129 = vst.msk [vmem:[%s6108_s22 + $0x155] sm:$0x1] %vm646_vm6, %v903_v19  ;;  %s937_s29 = sld [smem:[#allocation9 + %s6237_s2]]  ;;  %s909_s24 = scalar_lea.vmem [#allocation3], %s908_s0 }
 0x279   : > { %v910_v20 = vld [vmem:[%s909_s24] sm:$0x1]  ;;  %s942_s18 = sadd.s32 1, %s6237_s2  ;;  %s916_s5 = scalar_lea.vmem [#allocation3], %s915_s21 }
 0x27a   : > { %5131 = vst.msk [vmem:[%s6108_s22 + $0x1fd] sm:$0x1] %vm646_vm6, %v910_v20  ;;  %v917_v21 = vld [vmem:[%s916_s5] sm:$0x1]  ;;  %s943_s17 = sld [smem:[#allocation9 + %s942_s18]]  ;;  %s923_s23 = scalar_lea.vmem [#allocation3], %s922_s15 }
 0x27b   : > { %5133 = vst.msk [vmem:[%s6108_s22 + $0x2a5] sm:$0x1] %vm646_vm6, %v917_v21  ;;  %v924_v22 = vld [vmem:[%s923_s23] sm:$0x1]  ;;  %s949_s25 = sadd.s32 2, %s6237_s2  ;;  %s930_s27 = scalar_lea.vmem [#allocation3], %s929_s14 }
 0x27c   : > { %5135 = vst.msk [vmem:[%s6108_s22 + $0x34d] sm:$0x1] %vm646_vm6, %v924_v22  ;;  %v931_v23 = vld [vmem:[%s930_s27] sm:$0x1]  ;;  %s950_s3 = sld [smem:[#allocation9 + %s949_s25]]  ;;  %s956_s1 = sadd.s32 3, %s6237_s2 }
 0x27d   : > { %5137 = vst.msk [vmem:[%s6108_s22 + $0x3f5] sm:$0x1] %vm646_vm6, %v931_v23  ;;  %s957_s0 = sld [smem:[#allocation9 + %s956_s1]]  ;;  %s963_s28 = sadd.s32 4, %s6237_s2 }
 0x27e   : > { %s964_s21 = sld [smem:[#allocation9 + %s963_s28]]  ;;  %s938_s26 = scalar_lea.vmem [#allocation3], %s937_s29 }
 0x27f   : > { %v939_v24 = vld [vmem:[%s938_s26] sm:$0x1]  ;;  %s970_s15 = sadd.s32 5, %s6237_s2  ;;  %s977_s16 = sadd.s32 6, %s6237_s2 }
 0x280   : > { %5139 = vst.msk [vmem:[%s6108_s22 + $0x6] sm:$0x1] %vm646_vm6, %v939_v24  ;;  %s971_s14 = sld [smem:[#allocation9 + %s970_s15]]  ;;  %s944_s30 = scalar_lea.vmem [#allocation3], %s943_s17 }
 0x281   : > { %v945_v25 = vld [vmem:[%s944_s30] sm:$0x1]  ;;  %s978_s19 = sld [smem:[#allocation9 + %s977_s16]]  ;;  %s991_s24 = sadd.s32 1, %s6243_s20 }
 0x282   : > { %5141 = vst.msk [vmem:[%s6108_s22 + $0xae] sm:$0x1] %vm646_vm6, %v945_v25  ;;  %s986_s18 = sld [smem:[#allocation9 + %s6243_s20]]  ;;  %s951_s5 = scalar_lea.vmem [#allocation3], %s950_s3 }
 0x283   : > { %v952_v26 = vld [vmem:[%s951_s5] sm:$0x1]  ;;  %s992_s29 = sld [smem:[#allocation9 + %s991_s24]]  ;;  %s958_s2 = scalar_lea.vmem [#allocation3], %s957_s0 }
 0x284   : > { %5143 = vst.msk [vmem:[%s6108_s22 + $0x156] sm:$0x1] %vm646_vm6, %v952_v26  ;;  %v959_v27 = vld [vmem:[%s958_s2] sm:$0x1]  ;;  %s998_s23 = sadd.s32 2, %s6243_s20  ;;  %s965_s17 = scalar_lea.vmem [#allocation3], %s964_s21 }
 0x285   : > { %5145 = vst.msk [vmem:[%s6108_s22 + $0x1fe] sm:$0x1] %vm646_vm6, %v959_v27  ;;  %v966_v28 = vld [vmem:[%s965_s17] sm:$0x1]  ;;  %s999_s25 = sld [smem:[#allocation9 + %s998_s23]]  ;;  %s1005_s27 = sadd.s32 3, %s6243_s20 }
 0x286   : > { %5147 = vst.msk [vmem:[%s6108_s22 + $0x2a6] sm:$0x1] %vm646_vm6, %v966_v28  ;;  %s1006_s3 = sld [smem:[#allocation9 + %s1005_s27]]  ;;  %s972_s1 = scalar_lea.vmem [#allocation3], %s971_s14 }
 0x287   : > { %v973_v29 = vld [vmem:[%s972_s1] sm:$0x1]  ;;  %s1012_s28 = sadd.s32 4, %s6243_s20  ;;  %s979_s0 = scalar_lea.vmem [#allocation3], %s978_s19 }
 0x288   : > { %5149 = vst.msk [vmem:[%s6108_s22 + $0x34e] sm:$0x1] %vm646_vm6, %v973_v29  ;;  %v980_v30 = vld [vmem:[%s979_s0] sm:$0x1]  ;;  %s1013_s26 = sld [smem:[#allocation9 + %s1012_s28]]  ;;  %s987_s21 = scalar_lea.vmem [#allocation3], %s986_s18 }
 0x289   : > { %5151 = vst.msk [vmem:[%s6108_s22 + $0x3f6] sm:$0x1] %vm646_vm6, %v980_v30  ;;  %v988_v31 = vld [vmem:[%s987_s21] sm:$0x1]  ;;  %s1019_s15 = sadd.s32 5, %s6243_s20  ;;  %s993_s16 = scalar_lea.vmem [#allocation3], %s992_s29 }
 0x28a   : > { %5153 = vst.msk [vmem:[%s6108_s22 + $0x7] sm:$0x1] %vm646_vm6, %v988_v31  ;;  %v994_v32 = vld [vmem:[%s993_s16] sm:$0x1]  ;;  %s1020_s14 = sld [smem:[#allocation9 + %s1019_s15]]  ;;  %s1026_s30 = sadd.s32 6, %s6243_s20 }
 0x28b   : > { %5155 = vst.msk [vmem:[%s6108_s22 + $0xaf] sm:$0x1] %vm646_vm6, %v994_v32  ;;  %s1027_s19 = sld [smem:[#allocation9 + %s1026_s30]]  ;;  %s1000_s24 = scalar_lea.vmem [#allocation3], %s999_s25 }
 0x28c   : > { %v1001_v33 = vld [vmem:[%s1000_s24] sm:$0x1]  ;;  %s1007_s5 = scalar_lea.vmem [#allocation3], %s1006_s3  ;;  %p636_p2 = scmp.ge.s32.totalorder %s639_s4, 20  }
 0x28d   : > { %5157 = vst.msk [vmem:[%s6108_s22 + $0x157] sm:$0x1] %vm646_vm6, %v1001_v33  ;;  %v1008_v34 = vld [vmem:[%s1007_s5] sm:$0x1]  ;;  %s7844_s2 = smov (%p636_p2), 64   ;;  %v5524_v50 = vld [vmem:[%s7830_s7 + $0x38] sm:$0xff] (%p636_p2) }
 0x28e   : > { %5159 = vst.msk [vmem:[%s6108_s22 + $0x1ff] sm:$0x1] %vm646_vm6, %v1008_v34  ;;  %s1014_s18 = scalar_lea.vmem [#allocation3], %s1013_s26  ;;  %v5532_v51 = vld [vmem:[%s7830_s7 + $0x78] sm:$0xff] (%p636_p2)  ;;  %2030 = vmatpush.bf16.msrb.mxu0 (%p636_p2), %v5524_v50  ;;  %5566 = vmatpush.bf16.msra.mxu2 (%p636_p2), %v5524_v50  ;;  %v5523_v55 = vld [vmem:[%s7830_s7 + $0x30] sm:$0xff] (%p636_p2)  ;;  %v5522_v57 = vld [vmem:[%s7830_s7 + $0x28] sm:$0xff] (%p636_p2) }
 0x28f   : > { %v1015_v35 = vld [vmem:[%s1014_s18] sm:$0x1]  ;;  %638 = sbr.rel (!%p636_p2) target bundleno = 565 (0x235), region = 410  ;;  %2093 = vmatpush.bf16.msrb.mxu1 (%p636_p2), %v5532_v51  ;;  %5574 = vmatpush.bf16.msra.mxu3 (%p636_p2), %v5532_v51  ;;  %v5531_v56 = vld [vmem:[%s7830_s7 + $0x70] sm:$0xff] (%p636_p2)  ;;  %v5530_v58 = vld [vmem:[%s7830_s7 + $0x68] sm:$0xff] (%p636_p2)  ;;  %vm1244_vm7 = vcmask (%p636_p2), 1048064  }
 0x290   : > { %5161 = vst.msk [vmem:[%s6108_s22 + $0x2a7] sm:$0x1] %vm646_vm6, %v1015_v35  ;;  %s1021_s29 = scalar_lea.vmem [#allocation3], %s1020_s14  ;;  %v5521_v62 = vld [vmem:[%s7830_s7 + $0x20] sm:$0xff] (%p636_p2)  ;;  %v5520_v9 = vld [vmem:[%s7830_s7 + $0x18] sm:$0xff] (%p636_p2)  ;;  %v5519_v14 = vld [vmem:[%s7830_s7 + $0x10] sm:$0xff] (%p636_p2) }
 0x291   : > { %v1022_v36 = vld [vmem:[%s1021_s29] sm:$0x1]  ;;  %s1028_s20 = scalar_lea.vmem [#allocation3], %s1027_s19  ;;  %v5528_v10 = vld [vmem:[%s7830_s7 + $0x58] sm:$0xff] (%p636_p2)  ;;  %v5527_v15 = vld [vmem:[%s7830_s7 + $0x50] sm:$0xff] (%p636_p2)  ;;  %s6479_s15 = sld [smem:[#allocation9 + $0x46a]] (%p636_p2) }
 0x292   : > { %5163 = vst.msk [vmem:[%s6108_s22 + $0x34f] sm:$0x1] %vm646_vm6, %v1022_v36  ;;  %v1029_v37 = vld [vmem:[%s1028_s20] sm:$0x1]  ;;  %2031 = vmatpush.bf16.msrb.mxu0 (%p636_p2), %v5523_v55  ;;  %5567 = vmatpush.bf16.msra.mxu2 (%p636_p2), %v5523_v55  ;;  %v5518_v20 = vld [vmem:[%s7830_s7 + $0x8] sm:$0xff] (%p636_p2)  ;;  %v5540_v29 = vld [vmem:[%s7830_s7 + $0xb8] sm:$0xff] (%p636_p2) }
 0x293   : > { %5165 = vst.msk [vmem:[%s6108_s22 + $0x3f7] sm:$0x1] %vm646_vm6, %v1029_v37  ;;  %2094 = vmatpush.bf16.msrb.mxu1 (%p636_p2), %v5531_v56  ;;  %5575 = vmatpush.bf16.msra.mxu3 (%p636_p2), %v5531_v56  ;;  %v5529_v63 = vld [vmem:[%s7830_s7 + $0x60] sm:$0xff] (%p636_p2)  ;;  %v5526_v21 = vld [vmem:[%s7830_s7 + $0x48] sm:$0xff] (%p636_p2)  ;;  %v5544_v30 = vld [vmem:[%s7830_s7 + $0xd8] sm:$0xff] (%p636_p2)  ;;  %s6481_s16 = sld [smem:[#allocation9 + $0x461]] (%p636_p2) }
 0x294   :  { %v5517_v25 = vld [vmem:[%s7830_s7] sm:$0xff]  ;;  %v5539_v36 = vld [vmem:[%s7830_s7 + $0xb0] sm:$0xff]  ;;  %s6484_s14 = sld [smem:[#allocation9 + $0x468]]  ;;  %vm1137_vm8 = vcmask 517120   ;;  %vm1265_vm9 = vcmask 1041920  }
 0x295   :  { %v5525_v26 = vld [vmem:[%s7830_s7 + $0x40] sm:$0xff]  ;;  %s6532_s18 = sld [smem:[#allocation9 + $0x465]] }
 0x296   :  { %2032 = vmatpush.bf16.msrb.mxu0 %v5522_v57  ;;  %5568 = vmatpush.bf16.msra.mxu2 %v5522_v57  ;;  %s6537_s29 = sld [smem:[#allocation9 + $0x46c]] }
 0x297   :  { %2095 = vmatpush.bf16.msrb.mxu1 %v5530_v58  ;;  %5576 = vmatpush.bf16.msra.mxu3 %v5530_v58  ;;  %s1081_s19 = scalar_lea.vmem [#allocation3], %s6479_s15  ;;  %s6617_s22 = sld [smem:[#allocation9 + $0x462]] }
 0x298   :  { %s6619_s23 = sld [smem:[#allocation9 + $0x467]] }
 0x299   :  { %s1039_s24 = scalar_lea.vmem [#allocation3], %s6481_s16  ;;  %s6621_s17 = sld [smem:[#allocation9 + $0x460]] }
 0x29a   :  { %v1309_v38 = vld [vmem:[#allocation4 + $0x1f8] sm:$0xff]  ;;  %v1139_v39 = vld [vmem:[#allocation4 + $0xa8] sm:$0xff]  ;;  %v1310_v41 = vld [vmem:[#allocation4 + $0x200] sm:$0xff]  ;;  %2033 = vmatpush.bf16.msrb.mxu0 %v5521_v62  ;;  %5569 = vmatpush.bf16.msra.mxu2 %v5521_v62  ;;  %s1073_s5 = scalar_lea.vmem [#allocation3], %s6484_s14  ;;  %s6640_s28 = sld [smem:[#allocation9 + $0x46b]] }
 0x29b   :  { %1351 = vrot.lane.b32.xlu1 %v1309_v38, %s7844_s2  ;;  %1181 = vrot.lane.b32.xlu0 %v1139_v39, %s7844_s2  ;;  %v1141_v40 = vld [vmem:[#allocation4 + $0xb8] sm:$0xff]  ;;  %v1140_v42 = vld [vmem:[#allocation4 + $0xb0] sm:$0xff]  ;;  %v1142_v43 = vld [vmem:[#allocation4 + $0xc0] sm:$0xff]  ;;  %s1059_s20 = scalar_lea.vmem [#allocation3], %s6532_s18  ;;  %s6642_s0 = sld [smem:[#allocation9 + $0x466]] }
 0x29c   :  { %1185 = vrot.lane.b32.xlu2 %v1141_v40, %s7844_s2  ;;  %v1312_v44 = vld [vmem:[#allocation4 + $0x210] sm:$0xff]  ;;  %v1311_v45 = vld [vmem:[#allocation4 + $0x208] sm:$0xff]  ;;  %v1313_v48 = vld [vmem:[#allocation4 + $0x218] sm:$0xff]  ;;  %2096 = vmatpush.bf16.msrb.mxu1 %v5529_v63  ;;  %s1089_s4 = scalar_lea.vmem [#allocation3], %s6537_s29  ;;  %s6644_s26 = sld [smem:[#allocation9 + $0x46d]] }
 0x29d   :  { %v1143_v46 = vld [vmem:[#allocation4 + $0xc8] sm:$0xff]  ;;  %v1144_v47 = vld [vmem:[#allocation4 + $0xd0] sm:$0xff]  ;;  %v1314_v49 = vld [vmem:[#allocation4 + $0x220] sm:$0xff]  ;;  %5577 = vmatpush.bf16.msra.mxu3 %v5529_v63  ;;  %s1044_s27 = scalar_lea.vmem [#allocation3], %s6617_s22  ;;  %s6646_s21 = sld [smem:[#allocation9 + $0x464]] }
 0x29e   :  { %v1145_v52 = vld [vmem:[#allocation4 + $0xd8] sm:$0xff]  ;;  %v1146_v53 = vld [vmem:[#allocation4 + $0xe0] sm:$0xff]  ;;  %v1315_v54 = vld [vmem:[#allocation4 + $0x228] sm:$0xff]  ;;  %2034 = vmatpush.bf16.msrb.mxu0 %v5520_v9  ;;  %5570 = vmatpush.bf16.msra.mxu2 %v5520_v9  ;;  %s1069_s3 = scalar_lea.vmem [#allocation3], %s6619_s23 }
 0x29f   :  { %v1316_v59 = vld [vmem:[#allocation4 + $0x230] sm:$0xff]  ;;  %v1477_v60 = vld [vmem:[#allocation4 + $0x348] sm:$0xff]  ;;  %v1480_v0 = vld [vmem:[#allocation4 + $0x360] sm:$0xff]  ;;  %s1034_s1 = scalar_lea.vmem [#allocation3], %s6621_s17 }
 0x2a0   :  { %v1478_v61 = vld [vmem:[#allocation4 + $0x350] sm:$0xff]  ;;  %v1479_v1 = vld [vmem:[#allocation4 + $0x358] sm:$0xff]  ;;  %v1147_v4 = vld [vmem:[#allocation4 + $0xe8] sm:$0xff]  ;;  %2097 = vmatpush.bf16.msrb.mxu1 %v5528_v10  ;;  %s1085_s16 = scalar_lea.vmem [#allocation3], %s6640_s28 }
 0x2a1   :  { %v1482_v2 = vld [vmem:[#allocation4 + $0x370] sm:$0xff]  ;;  %v1483_v3 = vld [vmem:[#allocation4 + $0x378] sm:$0xff]  ;;  %v1318_v6 = vld [vmem:[#allocation4 + $0x240] sm:$0xff]  ;;  %5578 = vmatpush.bf16.msra.mxu3 %v5528_v10 }
 0x2a2   :  { %v1148_v5 = vld [vmem:[#allocation4 + $0xf0] sm:$0xff]  ;;  %v1096_v7 = vld [vmem:[#allocation4] sm:$0xff]  ;;  %v1485_v11 = vld [vmem:[#allocation4 + $0x388] sm:$0xff]  ;;  %2035 = vmatpush.bf16.msrb.mxu0 %v5519_v14  ;;  %5571 = vmatpush.bf16.msra.mxu2 %v5519_v14  ;;  %s1093_s15 = scalar_lea.vmem [#allocation3], %s6644_s26 }
 0x2a3   :  { %1353 = vrot.lane.b32.xlu1 %v1310_v41, %s7844_s2  ;;  %1183 = vrot.lane.b32.xlu0 %v1140_v42, %s7844_s2  ;;  %v1267_v8 = vld [vmem:[#allocation4 + $0x150] sm:$0xff]  ;;  %1117 = vst.msk [vmem:[#allocation5] sm:$0xff] %vm120_vm0, %v1096_v7  ;;  %v1481_v12 = vld [vmem:[#allocation4 + $0x368] sm:$0xff]  ;;  %v1149_v13 = vld [vmem:[#allocation4 + $0xf8] sm:$0xff]  ;;  %s1054_s14 = scalar_lea.vmem [#allocation3], %s6646_s21 }
 0x2a4   :  { %1187 = vrot.lane.b32.xlu2 %v1142_v43, %s7844_s2  ;;  %1288 = vst.msk [vmem:[#allocation5 + $0x8] sm:$0xff] %vm120_vm0, %v1267_v8  ;;  %2098 = vmatpush.bf16.msrb.mxu1 %v5527_v15  ;;  %v1268_v16 = vld [vmem:[#allocation4 + $0x158] sm:$0xff]  ;;  %v1098_v17 = vld [vmem:[#allocation4 + $0x10] sm:$0xff]  ;;  %v1097_v18 = vld [vmem:[#allocation4 + $0x8] sm:$0xff] }
 0x2a5   :  { %1289 = vst.msk [vmem:[#allocation5 + $0x28] sm:$0xff] %vm120_vm0, %v1268_v16  ;;  %v1150_v22 = vld [vmem:[#allocation4 + $0x100] sm:$0xff]  ;;  %5579 = vmatpush.bf16.msra.mxu3 %v5527_v15  ;;  %v1320_v24 = vld [vmem:[#allocation4 + $0x250] sm:$0xff]  ;;  %v1099_v27 = vld [vmem:[#allocation4 + $0x18] sm:$0xff] }
 0x2a6   :  { %1119 = vst.msk [vmem:[#allocation5 + $0x40] sm:$0xff] %vm120_vm0, %v1098_v17  ;;  %v1484_v23 = vld [vmem:[#allocation4 + $0x380] sm:$0xff]  ;;  %2036 = vmatpush.bf16.msrb.mxu0 %v5518_v20  ;;  %5572 = vmatpush.bf16.msra.mxu2 %v5518_v20  ;;  %v1487_v31 = vld [vmem:[#allocation4 + $0x398] sm:$0xff]  ;;  %v1151_v33 = vld [vmem:[#allocation4 + $0x108] sm:$0xff] }
 0x2a7   :  { %1118 = vst.msk [vmem:[#allocation5 + $0x20] sm:$0xff] %vm120_vm0, %v1097_v18  ;;  %v1317_v32 = vld [vmem:[#allocation4 + $0x238] sm:$0xff]  ;;  %v1270_v34 = vld [vmem:[#allocation4 + $0x168] sm:$0xff]  ;;  %v1269_v35 = vld [vmem:[#allocation4 + $0x160] sm:$0xff] }
 0x2a8   :  { %2099 = vmatpush.bf16.msrb.mxu1 %v5526_v21  ;;  %1120 = vst.msk [vmem:[#allocation5 + $0x60] sm:$0xff] %vm120_vm0, %v1099_v27  ;;  %v1100_v37 = vld [vmem:[#allocation4 + $0x20] sm:$0xff]  ;;  %v1101_v38 = vld [vmem:[#allocation4 + $0x28] sm:$0xff]  ;;  %v1152_v39 = vld [vmem:[#allocation4 + $0x110] sm:$0xff] }
 0x2a9   :  { %5580 = vmatpush.bf16.msra.mxu3 %v5526_v21  ;;  %1291 = vst.msk [vmem:[#allocation5 + $0x68] sm:$0xff] %vm120_vm0, %v1270_v34  ;;  %v1486_v41 = vld [vmem:[#allocation4 + $0x390] sm:$0xff]  ;;  %v1322_v42 = vld [vmem:[#allocation4 + $0x260] sm:$0xff]  ;;  %v1103_v57 = vld [vmem:[#allocation4 + $0x38] sm:$0xff] }
 0x2aa   :  { %2037 = vmatpush.bf16.msrb.mxu0 %v5517_v25  ;;  %5573 = vmatpush.bf16.msra.mxu2 %v5517_v25  ;;  %1290 = vst.msk [vmem:[#allocation5 + $0x48] sm:$0xff] %vm120_vm0, %v1269_v35  ;;  %v1271_v50 = vld [vmem:[#allocation4 + $0x170] sm:$0xff]  ;;  %v1154_v58 = vld [vmem:[#allocation4 + $0x120] sm:$0xff]  ;;  %v1491_v7 = vld [vmem:[#allocation4 + $0x3b8] sm:$0xff] }
 0x2ab   :  { %1357 = vrot.lane.b32.xlu1 %v1312_v44, %s7844_s2  ;;  %1355 = vrot.lane.b32.xlu0 %v1311_v45, %s7844_s2  ;;  %1121 = vst.msk [vmem:[#allocation5 + $0x80] sm:$0xff] %vm120_vm0, %v1100_v37  ;;  %v5538_v45 = vld [vmem:[%s7830_s7 + $0xa8] sm:$0xff]  ;;  %v1321_v9 = vld [vmem:[#allocation4 + $0x258] sm:$0xff]  ;;  %v1155_v10 = vld [vmem:[#allocation4 + $0x128] sm:$0xff] }
 0x2ac   :  { %1189 = vrot.lane.b32.xlu2 %v1143_v46, %s7844_s2  ;;  %2100 = vmatpush.bf16.msrb.mxu1 %v5525_v26  ;;  %1122 = vst.msk [vmem:[#allocation5 + $0xa0] sm:$0xff] %vm120_vm0, %v1101_v38  ;;  %v5543_v46 = vld [vmem:[%s7830_s7 + $0xd0] sm:$0xff]  ;;  %v1102_v56 = vld [vmem:[#allocation4 + $0x30] sm:$0xff]  ;;  %v1326_v20 = vld [vmem:[#allocation4 + $0x280] sm:$0xff] }
 0x2ad   :  { %5581 = vmatpush.bf16.msra.mxu3 %v5525_v26  ;;  %1292 = vst.msk [vmem:[#allocation5 + $0x88] sm:$0xff] %vm120_vm0, %v1271_v50  ;;  %v1156_v16 = vld [vmem:[#allocation4 + $0x130] sm:$0xff]  ;;  %v1436_v34 = vld [vmem:[#allocation4 + $0x2a8] sm:$0xff]  ;;  %v1438_v50 = vld [vmem:[#allocation4 + $0x2b8] sm:$0xff] }
 0x2ae   :  { %2156 = vmatpush.bf16.msra.mxu0 %v5540_v29  ;;  %1123 = vst.msk [vmem:[#allocation5 + $0xc0] sm:$0xff] %vm120_vm0, %v1102_v56  ;;  %v1490_v17 = vld [vmem:[#allocation4 + $0x3b0] sm:$0xff]  ;;  %v1493_v29 = vld [vmem:[#allocation4 + $0x3c8] sm:$0xff] }
 0x2af   :  { %1124 = vst.msk [vmem:[#allocation5 + $0xe0] sm:$0xff] %vm120_vm0, %v1103_v57  ;;  %v5534_v27 = vld [vmem:[%s7830_s7 + $0x88] sm:$0xff]  ;;  %v5533_v35 = vld [vmem:[%s7830_s7 + $0x80] sm:$0xff]  ;;  %v1605_v57 = vld [vmem:[#allocation4 + $0x400] sm:$0xff] }
 0x2b0   :  { %2223 = vmatpush.bf16.msra.mxu1 %v5544_v30  ;;  %v1323_v30 = vld [vmem:[#allocation4 + $0x268] sm:$0xff]  ;;  %1457 = vst.msk [vmem:[#allocation5 + $0x30] sm:$0xff] %vm120_vm0, %v1436_v34  ;;  %v1603_v38 = vld [vmem:[#allocation4 + $0x3f0] sm:$0xff] }
 0x2b1   :  { %1624 = vst.msk [vmem:[#allocation5 + $0x18] sm:$0xff] %vm120_vm0, %v1603_v38  ;;  %v1440_v56 = vld [vmem:[#allocation4 + $0x2c8] sm:$0xff] }
 0x2b2   :  { %2157 = vmatpush.bf16.msra.mxu0 %v5539_v36  ;;  %1459 = vst.msk [vmem:[#allocation5 + $0x70] sm:$0xff] %vm120_vm0, %v1438_v50 }
 0x2b3   :  { %1191 = vrot.lane.b32.xlu0 %v1144_v47, %s7844_s2  ;;  %1359 = vrot.lane.b32.xlu1 %v1313_v48, %s7844_s2  ;;  %v1489_v47 = vld [vmem:[#allocation4 + $0x3a8] sm:$0xff]  ;;  %1461 = vst.msk [vmem:[#allocation5 + $0xb0] sm:$0xff] %vm120_vm0, %v1440_v56 }
 0x2b4   :  { %1361 = vrot.lane.b32.xlu2 %v1314_v49, %s7844_s2  ;;  %v1319_v48 = vld [vmem:[#allocation4 + $0x248] sm:$0xff]  ;;  %v1153_v49 = vld [vmem:[#allocation4 + $0x118] sm:$0xff]  ;;  %2224 = vmatpush.bf16.msra.mxu1 %v5543_v46  ;;  %1626 = vst.msk [vmem:[#allocation5 + $0x58] sm:$0xff] %vm120_vm0, %v1605_v57 }
 0x2b6   :  { %2158 = vmatpush.bf16.msra.mxu0 %v5538_v45 }
 0x2bb   :  { %1193 = vrot.lane.b32.xlu0 %v1145_v52, %s7844_s2  ;;  %1195 = vrot.lane.b32.xlu1 %v1146_v53, %s7844_s2  ;;  %v1272_v52 = vld [vmem:[#allocation4 + $0x178] sm:$0xff]  ;;  %v5537_v53 = vld [vmem:[%s7830_s7 + $0xa0] sm:$0xff] }
 0x2bc   :  { %1363 = vrot.lane.b32.xlu2 %v1315_v54, %s7844_s2  ;;  %1293 = vst.msk [vmem:[#allocation5 + $0xa8] sm:$0xff] %vm120_vm0, %v1272_v52  ;;  %2159 = vmatpush.bf16.msra.mxu0 %v5537_v53  ;;  %v1437_v52 = vld [vmem:[#allocation4 + $0x2b0] sm:$0xff] }
 0x2bd   :  { %1458 = vst.msk [vmem:[#allocation5 + $0x50] sm:$0xff] %vm120_vm0, %v1437_v52 }
 0x2c3   :  { %1365 = vrot.lane.b32.xlu0 %v1316_v59, %s7844_s2  ;;  %1519 = vrot.lane.b32.xlu1 %v1477_v60, %s7844_s2  ;;  %v1488_v59 = vld [vmem:[#allocation4 + $0x3a0] sm:$0xff]  ;;  %v1324_v60 = vld [vmem:[#allocation4 + $0x270] sm:$0xff] }
 0x2c4   :  { %1521 = vrot.lane.b32.xlu2 %v1478_v61, %s7844_s2 }
 0x2cb   :  { %1525 = vrot.lane.b32.xlu1 %v1480_v0, %s7844_s2  ;;  %1523 = vrot.lane.b32.xlu0 %v1479_v1, %s7844_s2 }
 0x2cc   :  { %1527 = vrot.lane.b32.xlu2 %v1481_v12, %s7844_s2  ;;  %v1274_v12 = vld [vmem:[#allocation4 + $0x188] sm:$0xff] }
 0x2cd   :  { %1295 = vst.msk [vmem:[#allocation5 + $0xe8] sm:$0xff] %vm120_vm0, %v1274_v12 }
 0x2d3   :  { %1529 = vrot.lane.b32.xlu0 %v1482_v2, %s7844_s2  ;;  %1531 = vrot.lane.b32.xlu1 %v1483_v3, %s7844_s2 }
 0x2d4   :  { %1533 = vrot.lane.b32.xlu2 %v1484_v23, %s7844_s2 }
 0x2db   :  { %1197 = vrot.lane.b32.xlu0 %v1147_v4, %s7844_s2  ;;  %1199 = vrot.lane.b32.xlu1 %v1148_v5, %s7844_s2  ;;  %v5536_v5 = vld [vmem:[%s7830_s7 + $0x98] sm:$0xff] }
 0x2dc   :  { %1367 = vrot.lane.b32.xlu2 %v1317_v32, %s7844_s2  ;;  %2160 = vmatpush.bf16.msra.mxu0 %v5536_v5  ;;  %v1435_v32 = vld [vmem:[#allocation4 + $0x2a0] sm:$0xff]  ;;  %v1040_v5 = vld [vmem:[%s1039_s24] sm:$0x1] }
 0x2dd   :  { %1456 = vst.msk [vmem:[#allocation5 + $0x10] sm:$0xff] %vm120_vm0, %v1435_v32  ;;  %v1444_v32 = vld [vmem:[#allocation4 + $0x2e8] sm:$0xff] }
 0x2de   :  { %1042 = vst.msk [vmem:[#allocation4 + $0x148] sm:$0x1] %vm646_vm6, %v1040_v5 }
 0x2df   :  { %1465 = vst.msk [vmem:[#allocation5 + $0x130] sm:$0xff] %vm120_vm0, %v1444_v32 }
 0x2e3   :  { %1369 = vrot.lane.b32.xlu0 %v1318_v6, %s7844_s2  ;;  %1535 = vrot.lane.b32.xlu1 %v1485_v11, %s7844_s2  ;;  %v5542_v6 = vld [vmem:[%s7830_s7 + $0xc8] sm:$0xff]  ;;  %v1273_v11 = vld [vmem:[#allocation4 + $0x180] sm:$0xff] }
 0x2e4   :  { %1537 = vrot.lane.b32.xlu2 %v1486_v41, %s7844_s2  ;;  %2225 = vmatpush.bf16.msra.mxu1 %v5542_v6  ;;  %1294 = vst.msk [vmem:[#allocation5 + $0xc8] sm:$0xff] %vm120_vm0, %v1273_v11  ;;  %v1074_v6 = vld [vmem:[%s1073_s5] sm:$0x1]  ;;  %v1442_v11 = vld [vmem:[#allocation4 + $0x2d8] sm:$0xff] }
 0x2e5   :  { %1075 = vst.msk [vmem:[#allocation4 + $0x149] sm:$0x1] %vm646_vm6, %v1074_v6  ;;  %v1090_v6 = vld [vmem:[%s1089_s4] sm:$0x1] }
 0x2e6   :  { %1463 = vst.msk [vmem:[#allocation5 + $0xf0] sm:$0xff] %vm120_vm0, %v1442_v11 }
 0x2e7   :  { %1091 = vst.msk [vmem:[#allocation4 + $0x3e9] sm:$0x1] %vm646_vm6, %v1090_v6 }
 0x2eb   :  { %1201 = vrot.lane.b32.xlu0 %v1149_v13, %s7844_s2  ;;  %1203 = vrot.lane.b32.xlu1 %v1150_v22, %s7844_s2  ;;  %v5535_v13 = vld [vmem:[%s7830_s7 + $0x90] sm:$0xff] }
 0x2ec   :  { %1371 = vrot.lane.b32.xlu2 %v1319_v48, %s7844_s2  ;;  %2161 = vmatpush.bf16.msra.mxu0 %v5535_v13  ;;  %v1104_v13 = vld [vmem:[#allocation4 + $0x40] sm:$0xff] }
 0x2ed   :  { %1125 = vst.msk [vmem:[#allocation5 + $0x100] sm:$0xff] %vm120_vm0, %v1104_v13 }
 0x2f0   :  { %2162 = vmatpush.bf16.msra.mxu0 %v5534_v27  ;;  %v1608_v27 = vld [vmem:[#allocation4 + $0x418] sm:$0xff] }
 0x2f1   :  { %1629 = vst.msk [vmem:[#allocation5 + $0xb8] sm:$0xff] %vm120_vm0, %v1608_v27 }
 0x2f3   :  { %1373 = vrot.lane.b32.xlu0 %v1320_v24, %s7844_s2  ;;  %1539 = vrot.lane.b32.xlu1 %v1487_v31, %s7844_s2  ;;  %v1157_v31 = vld [vmem:[#allocation4 + $0x138] sm:$0xff] }
 0x2f4   :  { %1541 = vrot.lane.b32.xlu2 %v1488_v59, %s7844_s2  ;;  %2163 = vmatpush.bf16.msra.mxu0 %v5533_v35 }
 0x2f6   :  { %v1186_v19 = vpop.permute.xlu2 %1185 }
 0x2f7   :  { %1247 = vst.msk [vmem:[#allocation5 + $0x40] sm:$0xff] %vm1244_vm7, %v1186_v19 }
 0x2f8   :  { %v1668_v11 = vld [vmem:[#allocation5 + $0xb8] sm:$0xff] }
 0x2fb   :  { %1205 = vrot.lane.b32.xlu0 %v1151_v33, %s7844_s2  ;;  %1207 = vrot.lane.b32.xlu1 %v1152_v39, %s7844_s2  ;;  %v1604_v39 = vld [vmem:[#allocation4 + $0x3f8] sm:$0xff] }
 0x2fc   :  { %1375 = vrot.lane.b32.xlu2 %v1321_v9, %s7844_s2  ;;  %1625 = vst.msk [vmem:[#allocation5 + $0x38] sm:$0xff] %vm120_vm0, %v1604_v39  ;;  %v1441_v9 = vld [vmem:[#allocation4 + $0x2d0] sm:$0xff] }
 0x2fd   :  { %1462 = vst.msk [vmem:[#allocation5 + $0xd0] sm:$0xff] %vm120_vm0, %v1441_v9  ;;  %v1612_v9 = vld [vmem:[#allocation4 + $0x438] sm:$0xff] }
 0x2fe   :  { %v1188_v28 = vpop.permute.xlu2 %1187  ;;  %v1653_v21 = vld [vmem:[#allocation5 + $0x40] sm:$0xff]  ;;  %1633 = vst.msk [vmem:[#allocation5 + $0x138] sm:$0xff] %vm120_vm0, %v1612_v9 }
 0x2ff   :  { %1248 = vst.msk [vmem:[#allocation5 + $0x60] sm:$0xff] %vm1244_vm7, %v1188_v28  ;;  %v5541_v28 = vld [vmem:[%s7830_s7 + $0xc0] sm:$0xff]  ;;  %s6477_s7 = sld [smem:[#allocation9 + $0x463]]  ;;  %v1284_v9 = vld [vmem:[#allocation4 + $0x1d8] sm:$0xff] }
 0x300   :  { %2226 = vmatpush.bf16.msra.mxu1 %v5541_v28  ;;  %1305 = vst.msk [vmem:[#allocation5 + $0x228] sm:$0xff] %vm120_vm0, %v1284_v9  ;;  %v1454_v9 = vld [vmem:[#allocation4 + $0x338] sm:$0xff] }
 0x301   :  { %1475 = vst.msk [vmem:[#allocation5 + $0x270] sm:$0xff] %vm120_vm0, %v1454_v9 }
 0x303   :  { %1377 = vrot.lane.b32.xlu0 %v1322_v42, %s7844_s2  ;;  %1543 = vrot.lane.b32.xlu1 %v1489_v47, %s7844_s2 }
 0x304   :  { %1545 = vrot.lane.b32.xlu2 %v1490_v17, %s7844_s2  ;;  %v1275_v17 = vld [vmem:[#allocation4 + $0x190] sm:$0xff] }
 0x305   :  { %s1049_s30 = scalar_lea.vmem [#allocation3], %s6477_s7  ;;  %1296 = vst.msk [vmem:[#allocation5 + $0x108] sm:$0xff] %vm120_vm0, %v1275_v17  ;;  %v1109_v17 = vld [vmem:[#allocation4 + $0x68] sm:$0xff]  ;;  %s1064_s7 = scalar_lea.vmem [#allocation3], %s6642_s0 }
 0x306   :  { %v1190_v40 = vpop.permute.xlu2 %1189  ;;  %v1657_v22 = vld [vmem:[#allocation5 + $0x60] sm:$0xff]  ;;  %1130 = vst.msk [vmem:[#allocation5 + $0x1a0] sm:$0xff] %vm120_vm0, %v1109_v17 }
 0x307   :  { %1249 = vst.msk [vmem:[#allocation5 + $0x80] sm:$0xff] %vm1244_vm7, %v1190_v40  ;;  %v1733_v26 = vpack.c.bf16 %v1657_v22, %v1653_v21  ;;  %v1158_v40 = vld [vmem:[#allocation4 + $0x140] sm:$0xff]  ;;  %v1652_v21 = vld [vmem:[#allocation5 + $0x38] sm:$0xff] }
 0x30b   :  { %1209 = vrot.lane.b32.xlu0 %v1153_v49, %s7844_s2  ;;  %1211 = vrot.lane.b32.xlu1 %v1154_v58, %s7844_s2  ;;  %v1325_v49 = vld [vmem:[#allocation4 + $0x278] sm:$0xff]  ;;  %v1606_v58 = vld [vmem:[#allocation4 + $0x408] sm:$0xff] }
 0x30c   :  { %1379 = vrot.lane.b32.xlu2 %v1323_v30, %s7844_s2  ;;  %1627 = vst.msk [vmem:[#allocation5 + $0x78] sm:$0xff] %vm120_vm0, %v1606_v58  ;;  %v1445_v58 = vld [vmem:[#allocation4 + $0x2f0] sm:$0xff] }
 0x30d   :  { %v1352_v43 = vpop.permute.xlu1 %1351  ;;  %v1182_v44 = vpop.permute.xlu0 %1181  ;;  %1466 = vst.msk [vmem:[#allocation5 + $0x150] sm:$0xff] %vm120_vm0, %v1445_v58 }
 0x30e   :  { %1414 = vst.msk [vmem:[#allocation5 + $0x8] sm:$0xff] %vm1244_vm7, %v1352_v43  ;;  %v1362_v51 = vpop.permute.xlu2 %1361  ;;  %v1492_v43 = vld [vmem:[#allocation4 + $0x3c0] sm:$0xff]  ;;  %v1661_v45 = vld [vmem:[#allocation5 + $0x80] sm:$0xff] }
 0x30f   :  { %1245 = vst.msk [vmem:[#allocation5] sm:$0xff] %vm1244_vm7, %v1182_v44  ;;  %v1328_v44 = vld [vmem:[#allocation4 + $0x290] sm:$0xff] }
 0x310   :  { %1419 = vst.msk [vmem:[#allocation5 + $0xa8] sm:$0xff] %vm1244_vm7, %v1362_v51 }
 0x313   :  { %1381 = vrot.lane.b32.xlu0 %v1324_v60, %s7844_s2  ;;  %1547 = vrot.lane.b32.xlu1 %v1491_v7, %s7844_s2 }
 0x314   :  { %1549 = vrot.lane.b32.xlu2 %v1492_v43, %s7844_s2 }
 0x315   :  { %v1354_v54 = vpop.permute.xlu1 %1353  ;;  %v1184_v55 = vpop.permute.xlu0 %1183  ;;  %v1646_v61 = vld [vmem:[#allocation5 + $0x8] sm:$0xff] }
 0x316   :  { %1415 = vst.msk [vmem:[#allocation5 + $0x28] sm:$0xff] %vm1244_vm7, %v1354_v54  ;;  %v1645_v1 = vld [vmem:[#allocation5] sm:$0xff]  ;;  %v1364_v8 = vpop.permute.xlu2 %1363 }
 0x317   :  { %1246 = vst.msk [vmem:[#allocation5 + $0x20] sm:$0xff] %vm1244_vm7, %v1184_v55  ;;  %v1666_v41 = vld [vmem:[#allocation5 + $0xa8] sm:$0xff]  ;;  %v1495_v54 = vld [vmem:[#allocation4 + $0x3d8] sm:$0xff] }
 0x318   :  { %1420 = vst.msk [vmem:[#allocation5 + $0xc8] sm:$0xff] %vm1244_vm7, %v1364_v8  ;;  %v1439_v55 = vld [vmem:[#allocation4 + $0x2c0] sm:$0xff]  ;;  %v1327_v8 = vld [vmem:[#allocation4 + $0x288] sm:$0xff] }
 0x319   :  { %1460 = vst.msk [vmem:[#allocation5 + $0x90] sm:$0xff] %vm120_vm0, %v1439_v55 }
 0x31b   :  { %1213 = vrot.lane.b32.xlu0 %v1155_v10, %s7844_s2  ;;  %1215 = vrot.lane.b32.xlu1 %v1156_v16, %s7844_s2  ;;  %v1105_v16 = vld [vmem:[#allocation4 + $0x48] sm:$0xff] }
 0x31c   :  { %1383 = vrot.lane.b32.xlu2 %v1325_v49, %s7844_s2  ;;  %1126 = vst.msk [vmem:[#allocation5 + $0x120] sm:$0xff] %vm120_vm0, %v1105_v16  ;;  %v1609_v49 = vld [vmem:[#allocation4 + $0x420] sm:$0xff] }
 0x31d   :  { %v1650_v62 = vld [vmem:[#allocation5 + $0x28] sm:$0xff]  ;;  %v1358_v63 = vpop.permute.xlu1 %1357  ;;  %v1356_v0 = vpop.permute.xlu0 %1355  ;;  %1630 = vst.msk [vmem:[#allocation5 + $0xd8] sm:$0xff] %vm120_vm0, %v1609_v49  ;;  %v1449_v49 = vld [vmem:[#allocation4 + $0x310] sm:$0xff] }
 0x31e   :  { %v1649_v2 = vld [vmem:[#allocation5 + $0x20] sm:$0xff]  ;;  %v1730_v3 = vpack.c.bf16 %v1650_v62, %v1646_v61  ;;  %1417 = vst.msk [vmem:[#allocation5 + $0x68] sm:$0xff] %vm1244_vm7, %v1358_v63  ;;  %v1522_v33 = vpop.permute.xlu2 %1521  ;;  %v1494_v61 = vld [vmem:[#allocation4 + $0x3d0] sm:$0xff]  ;;  %v1050_v63 = vld [vmem:[%s1049_s30] sm:$0x1] }
 0x31f   :  { %v1729_v4 = vpack.c.bf16 %v1649_v2, %v1645_v1  ;;  %1416 = vst.msk [vmem:[#allocation5 + $0x48] sm:$0xff] %vm1244_vm7, %v1356_v0  ;;  %v1670_v59 = vld [vmem:[#allocation5 + $0xc8] sm:$0xff]  ;;  %v1082_v0 = vld [vmem:[%s1081_s19] sm:$0x1] }
 0x320   :  { %2101 = vmatmul.bf16.vlgmr.msrb.gmra.mxu1 %v1730_v3  ;;  %1583 = vst.msk [vmem:[#allocation5 + $0x30] sm:$0xff] %vm1244_vm7, %v1522_v33  ;;  %v1106_v33 = vld [vmem:[#allocation4 + $0x50] sm:$0xff] }
 0x321   :  { %2038 = vmatmul.bf16.vlgmr.msrb.gmra.mxu0 %v1729_v4  ;;  %1052 = vst.msk [vmem:[#allocation4 + $0x298] sm:$0x1] %vm646_vm6, %v1050_v63 }
 0x322   :  { %1083 = vst.msk [vmem:[#allocation4 + $0x299] sm:$0x1] %vm646_vm6, %v1082_v0  ;;  %v1060_v0 = vld [vmem:[%s1059_s20] sm:$0x1] }
 0x323   :  { %1385 = vrot.lane.b32.xlu0 %v1326_v20, %s7844_s2  ;;  %1551 = vrot.lane.b32.xlu1 %v1493_v29, %s7844_s2  ;;  %v1648_v20 = vld [vmem:[#allocation5 + $0x18] sm:$0xff]  ;;  %1127 = vst.msk [vmem:[#allocation5 + $0x140] sm:$0xff] %vm120_vm0, %v1106_v33 }
 0x324   :  { %1553 = vrot.lane.b32.xlu2 %v1494_v61, %s7844_s2  ;;  %v1732_v28 = vpack.c.bf16 %v1652_v21, %v1648_v20  ;;  %1062 = vst.msk [vmem:[#allocation4 + $0x3e8] sm:$0x1] %vm646_vm6, %v1060_v0  ;;  %v1280_v21 = vld [vmem:[#allocation4 + $0x1b8] sm:$0xff] }
 0x325   :  { %v1192_v14 = vpop.permute.xlu0 %1191  ;;  %v1360_v15 = vpop.permute.xlu1 %1359  ;;  %v1658_v19 = vld [vmem:[#allocation5 + $0x68] sm:$0xff]  ;;  %1301 = vst.msk [vmem:[#allocation5 + $0x1a8] sm:$0xff] %vm120_vm0, %v1280_v21 }
 0x326   :  { %1250 = vst.msk [vmem:[#allocation5 + $0xa0] sm:$0xff] %vm1244_vm7, %v1192_v14  ;;  %v1654_v18 = vld [vmem:[#allocation5 + $0x48] sm:$0xff]  ;;  %v1528_v4 = vpop.permute.xlu2 %1527 }
 0x327   :  { %1418 = vst.msk [vmem:[#allocation5 + $0x88] sm:$0xff] %vm1244_vm7, %v1360_v15  ;;  %v1734_v23 = vpack.c.bf16 %v1658_v19, %v1654_v18  ;;  %v1159_v18 = vld [vmem:[#allocation4 + $0x148] sm:$0x3]  ;;  %v1276_v19 = vld [vmem:[#allocation4 + $0x198] sm:$0xff] }
 0x328   :  { %1586 = vst.msk [vmem:[#allocation5 + $0x90] sm:$0xff] %vm1244_vm7, %v1528_v4 }
 0x329   :  { %v1329_v15 = vld [vmem:[#allocation4 + $0x298] sm:$0x3]  ;;  %1297 = vst.msk [vmem:[#allocation5 + $0x128] sm:$0xff] %vm120_vm0, %v1276_v19 }
 0x32a   :  { %1470 = vst.msk [vmem:[#allocation5 + $0x1d0] sm:$0xff] %vm120_vm0, %v1449_v49 }
 0x32b   :  { %1217 = vrot.lane.b32.xlu0 %v1157_v31, %s7844_s2  ;;  %1219 = vrot.lane.b32.xlu1 %v1158_v40, %s7844_s2  ;;  %v1443_v31 = vld [vmem:[#allocation4 + $0x2e0] sm:$0xff] }
 0x32c   :  { %1387 = vrot.lane.b32.xlu2 %v1327_v8, %s7844_s2  ;;  %1464 = vst.msk [vmem:[#allocation5 + $0x110] sm:$0xff] %vm120_vm0, %v1443_v31  ;;  %v1611_v8 = vld [vmem:[#allocation4 + $0x430] sm:$0xff] }
 0x32d   :  { %v1194_v24 = vpop.permute.xlu0 %1193  ;;  %v1196_v25 = vpop.permute.xlu1 %1195  ;;  %v1665_v46 = vld [vmem:[#allocation5 + $0xa0] sm:$0xff]  ;;  %1632 = vst.msk [vmem:[#allocation5 + $0x118] sm:$0xff] %vm120_vm0, %v1611_v8 }
 0x32e   :  { %1251 = vst.msk [vmem:[#allocation5 + $0xc0] sm:$0xff] %vm1244_vm7, %v1194_v24  ;;  %v1662_v42 = vld [vmem:[#allocation5 + $0x88] sm:$0xff]  ;;  %v1737_v48 = vpack.c.bf16 %v1665_v46, %v1661_v45  ;;  %v1534_v14 = vpop.permute.xlu2 %1533  ;;  %v1278_v46 = vld [vmem:[#allocation4 + $0x1a8] sm:$0xff] }
 0x32f   :  { %1252 = vst.msk [vmem:[#allocation5 + $0xe0] sm:$0xff] %vm1244_vm7, %v1196_v25  ;;  %v1738_v47 = vpack.c.bf16 %v1666_v41, %v1662_v42  ;;  %v1651_v25 = vld [vmem:[#allocation5 + $0x30] sm:$0xff]  ;;  %v1107_v41 = vld [vmem:[#allocation4 + $0x58] sm:$0xff] }
 0x330   :  { %2106 = vmatmul.bf16.gmra.mxu1 %v1734_v23  ;;  %1589 = vst.msk [vmem:[#allocation5 + $0xf0] sm:$0xff] %vm1244_vm7, %v1534_v14 }
 0x331   :  { %2043 = vmatmul.bf16.gmra.mxu0 %v1733_v26  ;;  %v1607_v26 = vld [vmem:[#allocation4 + $0x410] sm:$0xff]  ;;  %1128 = vst.msk [vmem:[#allocation5 + $0x160] sm:$0xff] %vm120_vm0, %v1107_v41 }
 0x332   :  { %1628 = vst.msk [vmem:[#allocation5 + $0x98] sm:$0xff] %vm120_vm0, %v1607_v26 }
 0x333   :  { %1389 = vrot.lane.b32.xlu0 %v1328_v44, %s7844_s2  ;;  %1555 = vrot.lane.b32.xlu1 %v1495_v54, %s7844_s2  ;;  %v1277_v44 = vld [vmem:[#allocation4 + $0x1a0] sm:$0xff]  ;;  %1299 = vst.msk [vmem:[#allocation5 + $0x168] sm:$0xff] %vm120_vm0, %v1278_v46 }
 0x334   :  { %1298 = vst.msk [vmem:[#allocation5 + $0x148] sm:$0xff] %vm120_vm0, %v1277_v44  ;;  %v1282_v44 = vld [vmem:[#allocation4 + $0x1c8] sm:$0xff] }
 0x335   :  { %v1366_v36 = vpop.permute.xlu0 %1365  ;;  %v1520_v37 = vpop.permute.xlu1 %1519  ;;  %v1669_v1 = vld [vmem:[#allocation5 + $0xc0] sm:$0xff]  ;;  %1303 = vst.msk [vmem:[#allocation5 + $0x1e8] sm:$0xff] %vm120_vm0, %v1282_v44 }
 0x336   :  { %1421 = vst.msk [vmem:[#allocation5 + $0xe8] sm:$0xff] %vm1244_vm7, %v1366_v36  ;;  %v1673_v2 = vld [vmem:[#allocation5 + $0xe0] sm:$0xff]  ;;  %v1368_v30 = vpop.permute.xlu2 %1367 }
 0x337   :  { %1582 = vst.msk [vmem:[#allocation5 + $0x10] sm:$0xff] %vm1244_vm7, %v1520_v37  ;;  %v1741_v7 = vpack.c.bf16 %v1673_v2, %v1669_v1  ;;  %v1496_v37 = vld [vmem:[#allocation4 + $0x3e0] sm:$0xff] }
 0x338   :  { %1422 = vst.msk [vmem:[#allocation5 + $0x108] sm:$0xff] %vm1244_vm7, %v1368_v30  ;;  %1557 = vrot.lane.b32.xlu2 %v1496_v37, %s7844_s2  ;;  %v1110_v30 = vld [vmem:[#allocation4 + $0x70] sm:$0xff]  ;;  %v1675_v37 = vld [vmem:[#allocation5 + $0xf0] sm:$0xff] }
 0x339   :  { %1131 = vst.msk [vmem:[#allocation5 + $0x1c0] sm:$0xff] %vm120_vm0, %v1110_v30 }
 0x33b   :  { %1391 = vrot.lane.b32.xlu1 %v1329_v15, %s7844_s2  ;;  %1221 = vrot.lane.b32.xlu0 %v1159_v18, %s7844_s2  ;;  %v1279_v18 = vld [vmem:[#allocation4 + $0x1b0] sm:$0xff] }
 0x33c   :  { %1300 = vst.msk [vmem:[#allocation5 + $0x188] sm:$0xff] %vm120_vm0, %v1279_v18  ;;  %v1114_v18 = vld [vmem:[#allocation4 + $0x90] sm:$0xff] }
 0x33d   :  { %v1526_v51 = vpop.permute.xlu1 %1525  ;;  %v1524_v53 = vpop.permute.xlu0 %1523  ;;  %v1674_v60 = vld [vmem:[#allocation5 + $0xe8] sm:$0xff]  ;;  %1135 = vst.msk [vmem:[#allocation5 + $0x240] sm:$0xff] %vm120_vm0, %v1114_v18 }
 0x33e   :  { %1585 = vst.msk [vmem:[#allocation5 + $0x70] sm:$0xff] %vm1244_vm7, %v1526_v51  ;;  %v1742_v3 = vpack.c.bf16 %v1674_v60, %v1670_v59  ;;  %v1647_v24 = vld [vmem:[#allocation5 + $0x10] sm:$0xff]  ;;  %v1538_v42 = vpop.permute.xlu2 %1537  ;;  %v1446_v59 = vld [vmem:[#allocation4 + $0x2f8] sm:$0xff]  ;;  %v1108_v60 = vld [vmem:[#allocation4 + $0x60] sm:$0xff] }
 0x33f   :  { %1584 = vst.msk [vmem:[#allocation5 + $0x50] sm:$0xff] %vm1244_vm7, %v1524_v53  ;;  %v1731_v29 = vpack.c.bf16 %v1651_v25, %v1647_v24  ;;  %v1678_v43 = vld [vmem:[#allocation5 + $0x108] sm:$0xff]  ;;  %v1610_v53 = vld [vmem:[#allocation4 + $0x428] sm:$0xff] }
 0x340   :  { %2111 = vmatmul.bf16.gmra.mxu1 %v1738_v47  ;;  %1591 = vst.msk [vmem:[#allocation5 + $0x130] sm:$0xff] %vm1244_vm7, %v1538_v42  ;;  %v1656_v47 = vld [vmem:[#allocation5 + $0x58] sm:$0xff]  ;;  %v1448_v25 = vld [vmem:[#allocation4 + $0x308] sm:$0xff] }
 0x341   :  { %2048 = vmatmul.bf16.gmra.mxu0 %v1737_v48  ;;  %v1660_v48 = vld [vmem:[#allocation5 + $0x78] sm:$0xff]  ;;  %1631 = vst.msk [vmem:[#allocation5 + $0xf8] sm:$0xff] %vm120_vm0, %v1610_v53 }
 0x342   :  { %v1736_v54 = vpack.c.bf16 %v1660_v48, %v1656_v47  ;;  %1467 = vst.msk [vmem:[#allocation5 + $0x170] sm:$0xff] %vm120_vm0, %v1446_v59  ;;  %v1613_v47 = vld [vmem:[#allocation4 + $0x440] sm:$0xff]  ;;  %v1614_v48 = vld [vmem:[#allocation4 + $0x448] sm:$0xff] }
 0x343   :  { %1129 = vst.msk [vmem:[#allocation5 + $0x180] sm:$0xff] %vm120_vm0, %v1108_v60  ;;  %v1113_v59 = vld [vmem:[#allocation4 + $0x88] sm:$0xff] }
 0x344   :  { %1469 = vst.msk [vmem:[#allocation5 + $0x1b0] sm:$0xff] %vm120_vm0, %v1448_v25 }
 0x345   :  { %v1530_v62 = vpop.permute.xlu0 %1529  ;;  %v1532_v10 = vpop.permute.xlu1 %1531  ;;  %v1659_v51 = vld [vmem:[#allocation5 + $0x70] sm:$0xff]  ;;  %1634 = vst.msk [vmem:[#allocation5 + $0x158] sm:$0xff] %vm120_vm0, %v1613_v47 }
 0x346   :  { %1587 = vst.msk [vmem:[#allocation5 + $0xb0] sm:$0xff] %vm1244_vm7, %v1530_v62  ;;  %v1655_v50 = vld [vmem:[#allocation5 + $0x50] sm:$0xff]  ;;  %v1372_v57 = vpop.permute.xlu2 %1371 }
 0x347   :  { %1588 = vst.msk [vmem:[#allocation5 + $0xd0] sm:$0xff] %vm1244_vm7, %v1532_v10  ;;  %v1735_v56 = vpack.c.bf16 %v1659_v51, %v1655_v50  ;;  %v1664_v10 = vld [vmem:[#allocation5 + $0x98] sm:$0xff]  ;;  %v1450_v50 = vld [vmem:[#allocation4 + $0x318] sm:$0xff] }
 0x348   :  { %1424 = vst.msk [vmem:[#allocation5 + $0x148] sm:$0xff] %vm1244_vm7, %v1372_v57  ;;  %v1740_v14 = vpack.c.bf16 %v1668_v11, %v1664_v10 }
 0x349   :  { %1635 = vst.msk [vmem:[#allocation5 + $0x178] sm:$0xff] %vm120_vm0, %v1614_v48 }
 0x34a   :  { %1471 = vst.msk [vmem:[#allocation5 + $0x1f0] sm:$0xff] %vm120_vm0, %v1450_v50 }
 0x34b   :  { %1134 = vst.msk [vmem:[#allocation5 + $0x220] sm:$0xff] %vm120_vm0, %v1113_v59 }
 0x34c   :  { %v1688_v30 = vld [vmem:[#allocation5 + $0x158] sm:$0xff] }
 0x34d   :  { %v1198_v12 = vpop.permute.xlu0 %1197  ;;  %v1200_v22 = vpop.permute.xlu1 %1199  ;;  %v1667_v13 = vld [vmem:[#allocation5 + $0xb0] sm:$0xff] }
 0x34e   :  { %1253 = vst.msk [vmem:[#allocation5 + $0x100] sm:$0xff] %vm1244_vm7, %v1198_v12  ;;  %v1663_v12 = vld [vmem:[#allocation5 + $0x90] sm:$0xff] }
 0x34f   :  { %1254 = vst.msk [vmem:[#allocation5 + $0x120] sm:$0xff] %vm1244_vm7, %v1200_v22  ;;  %v1686_v5 = vld [vmem:[#allocation5 + $0x148] sm:$0xff]  ;;  %v1739_v15 = vpack.c.bf16 %v1667_v13, %v1663_v12  ;;  %v1497_v22 = vld [vmem:[#allocation4 + $0x3e8] sm:$0x3] }
 0x350   :  { %2116 = vmatmul.bf16.gmra.mxu1 %v1742_v3  ;;  %v1542_v3 = vpop.permute.xlu2 %1541  ;;  %1559 = vrot.lane.b32.xlu2 %v1497_v22, %s7844_s2  ;;  %v1671_v32 = vld [vmem:[#allocation5 + $0xd0] sm:$0xff]  ;;  %s6614_s2 = sld [smem:[#allocation9 + $0x469]] }
 0x351   :  { %2053 = vmatmul.bf16.gmra.mxu0 %v1741_v7  ;;  %1593 = vst.msk [vmem:[#allocation5 + $0x170] sm:$0xff] %vm1244_vm7, %v1542_v3  ;;  %v1743_v42 = vpack.c.bf16 %v1675_v37, %v1671_v32  ;;  %v1683_v3 = vld [vmem:[#allocation5 + $0x130] sm:$0xff] }
 0x355   :  { %v1370_v23 = vpop.permute.xlu0 %1369  ;;  %v1536_v34 = vpop.permute.xlu1 %1535  ;;  %v1677_v35 = vld [vmem:[#allocation5 + $0x100] sm:$0xff] }
 0x356   :  { %1423 = vst.msk [vmem:[#allocation5 + $0x128] sm:$0xff] %vm1244_vm7, %v1370_v23  ;;  %v1681_v36 = vld [vmem:[#allocation5 + $0x120] sm:$0xff]  ;;  %v1447_v23 = vld [vmem:[#allocation4 + $0x300] sm:$0xff]  ;;  %s1077_s25 = scalar_lea.vmem [#allocation3], %s6614_s2 }
 0x357   :  { %1590 = vst.msk [vmem:[#allocation5 + $0x110] sm:$0xff] %vm1244_vm7, %v1536_v34  ;;  %v1745_v38 = vpack.c.bf16 %v1681_v36, %v1677_v35  ;;  %v1672_v34 = vld [vmem:[#allocation5 + $0xd8] sm:$0xff]  ;;  %v1111_v36 = vld [vmem:[#allocation4 + $0x78] sm:$0xff] }
 0x358   :  { %v1376_v19 = vpop.permute.xlu2 %1375  ;;  %1468 = vst.msk [vmem:[#allocation5 + $0x190] sm:$0xff] %vm120_vm0, %v1447_v23  ;;  %v1676_v35 = vld [vmem:[#allocation5 + $0xf8] sm:$0xff] }
 0x359   :  { %2058 = vmatmul.bf16.vlgmr.msra.gmra.mxu2 %v1745_v38  ;;  %1426 = vst.msk [vmem:[#allocation5 + $0x188] sm:$0xff] %vm1244_vm7, %v1376_v19  ;;  %v1744_v41 = vpack.c.bf16 %v1676_v35, %v1672_v34  ;;  %v1691_v35 = vld [vmem:[#allocation5 + $0x170] sm:$0xff] }
 0x35a   :  { %1132 = vst.msk [vmem:[#allocation5 + $0x1e0] sm:$0xff] %vm120_vm0, %v1111_v36  ;;  %v1618_v36 = vld [vmem:[#allocation4 + $0x468] sm:$0xff] }
 0x35b   :  { %1639 = vst.msk [vmem:[#allocation5 + $0x1f8] sm:$0xff] %vm120_vm0, %v1618_v36 }
 0x35d   :  { %v1202_v39 = vpop.permute.xlu0 %1201  ;;  %v1682_v40 = vld [vmem:[#allocation5 + $0x128] sm:$0xff]  ;;  %v1204_v52 = vpop.permute.xlu1 %1203 }
 0x35e   :  { %1255 = vst.msk [vmem:[#allocation5 + $0x140] sm:$0xff] %vm1244_vm7, %v1202_v39  ;;  %v1746_v45 = vpack.c.bf16 %v1682_v40, %v1678_v43  ;;  %v1281_v39 = vld [vmem:[#allocation4 + $0x1c0] sm:$0xff] }
 0x35f   :  { %1256 = vst.msk [vmem:[#allocation5 + $0x160] sm:$0xff] %vm1244_vm7, %v1204_v52  ;;  %v1112_v52 = vld [vmem:[#allocation4 + $0x80] sm:$0xff] }
 0x360   :  { %5292 = vmatmul.msk.bf16.vlgmr.msra.gmra.mxu1 %vm120_vm0, %v1732_v28  ;;  %2121 = vmatmul.bf16.vlgmr.msra.gmra.mxu3 %v1746_v45  ;;  %v1546_v26 = vpop.permute.xlu2 %1545  ;;  %v1694_v33 = vld [vmem:[#allocation5 + $0x188] sm:$0xff]  ;;  %1302 = vst.msk [vmem:[#allocation5 + $0x1c8] sm:$0xff] %vm120_vm0, %v1281_v39 }
 0x361   :  { %2164 = vmatmul.bf16.vlgmr.msra.gmra.mxu0 %v1731_v29  ;;  %1595 = vst.msk [vmem:[#allocation5 + $0x1b0] sm:$0xff] %vm1244_vm7, %v1546_v26 }
 0x362   :  { %1133 = vst.msk [vmem:[#allocation5 + $0x200] sm:$0xff] %vm120_vm0, %v1112_v52  ;;  %v1708_v18 = vld [vmem:[#allocation5 + $0x1f8] sm:$0xff] }
 0x365   :  { %v1374_v55 = vpop.permute.xlu0 %1373  ;;  %v1685_v61 = vld [vmem:[#allocation5 + $0x140] sm:$0xff]  ;;  %v1540_v1 = vpop.permute.xlu1 %1539 }
 0x366   :  { %1425 = vst.msk [vmem:[#allocation5 + $0x168] sm:$0xff] %vm1244_vm7, %v1374_v55  ;;  %v1689_v62 = vld [vmem:[#allocation5 + $0x160] sm:$0xff] }
 0x367   :  { %v1749_v63 = vpack.c.bf16 %v1689_v62, %v1685_v61  ;;  %1592 = vst.msk [vmem:[#allocation5 + $0x150] sm:$0xff] %vm1244_vm7, %v1540_v1  ;;  %v1283_v61 = vld [vmem:[#allocation4 + $0x1d0] sm:$0xff] }
 0x368   :  { %v1380_v45 = vpop.permute.xlu2 %1379  ;;  %v1680_v62 = vld [vmem:[#allocation5 + $0x118] sm:$0xff]  ;;  %1304 = vst.msk [vmem:[#allocation5 + $0x208] sm:$0xff] %vm120_vm0, %v1283_v61 }
 0x369   :  { %2063 = vmatmul.bf16.gmra.mxu2 %v1749_v63  ;;  %1428 = vst.msk [vmem:[#allocation5 + $0x1c8] sm:$0xff] %vm1244_vm7, %v1380_v45  ;;  %v1684_v63 = vld [vmem:[#allocation5 + $0x138] sm:$0xff] }
 0x36a   :  { %v1615_v1 = vld [vmem:[#allocation4 + $0x450] sm:$0xff] }
 0x36b   :  { %1636 = vst.msk [vmem:[#allocation5 + $0x198] sm:$0xff] %vm120_vm0, %v1615_v1 }
 0x36d   :  { %v1690_v2 = vld [vmem:[#allocation5 + $0x168] sm:$0xff]  ;;  %v1206_v4 = vpop.permute.xlu0 %1205  ;;  %v1208_v16 = vpop.permute.xlu1 %1207 }
 0x36e   :  { %v1750_v7 = vpack.c.bf16 %v1690_v2, %v1686_v5  ;;  %1257 = vst.msk [vmem:[#allocation5 + $0x180] sm:$0xff] %vm1244_vm7, %v1206_v4  ;;  %v1679_v2 = vld [vmem:[#allocation5 + $0x110] sm:$0xff]  ;;  %v1616_v4 = vld [vmem:[#allocation4 + $0x458] sm:$0xff]  ;;  %v1748_v5 = vpack.c.bf16 %v1684_v63, %v1680_v62 }
 0x36f   :  { %1258 = vst.msk [vmem:[#allocation5 + $0x1a0] sm:$0xff] %vm1244_vm7, %v1208_v16  ;;  %v1687_v34 = vld [vmem:[#allocation5 + $0x150] sm:$0xff] }
 0x370   :  { %5293 = vmatmul.msk.bf16.gmra.mxu1 %vm120_vm0, %v1736_v54  ;;  %2126 = vmatmul.bf16.gmra.mxu3 %v1750_v7  ;;  %v1550_v53 = vpop.permute.xlu2 %1549  ;;  %v1702_v57 = vld [vmem:[#allocation5 + $0x1c8] sm:$0xff]  ;;  %v1747_v7 = vpack.c.bf16 %v1683_v3, %v1679_v2  ;;  %1637 = vst.msk [vmem:[#allocation5 + $0x1b8] sm:$0xff] %vm120_vm0, %v1616_v4  ;;  %v1751_v39 = vpack.c.bf16 %v1691_v35, %v1687_v34  ;;  %v1699_v62 = vld [vmem:[#allocation5 + $0x1b0] sm:$0xff] }
 0x371   :  { %2169 = vmatmul.bf16.gmra.mxu0 %v1735_v56  ;;  %1597 = vst.msk [vmem:[#allocation5 + $0x1f0] sm:$0xff] %vm1244_vm7, %v1550_v53  ;;  %v1453_v53 = vld [vmem:[#allocation4 + $0x330] sm:$0xff]  ;;  %v1078_v2 = vld [vmem:[%s1077_s25] sm:$0x1] }
 0x372   :  { %1474 = vst.msk [vmem:[#allocation5 + $0x250] sm:$0xff] %vm120_vm0, %v1453_v53  ;;  %v1045_v3 = vld [vmem:[%s1044_s27] sm:$0x1] }
 0x373   :  { %v1070_v4 = vld [vmem:[%s1069_s3] sm:$0x1]  ;;  %1079 = vst.msk [vmem:[#allocation4 + $0x1f1] sm:$0x1] %vm646_vm6, %v1078_v2 }
 0x374   :  { %1047 = vst.msk [vmem:[#allocation4 + $0x1f0] sm:$0x1] %vm646_vm6, %v1045_v3 }
 0x375   :  { %v1378_v20 = vpop.permute.xlu0 %1377  ;;  %v1544_v24 = vpop.permute.xlu1 %1543  ;;  %v1693_v28 = vld [vmem:[#allocation5 + $0x180] sm:$0xff]  ;;  %1071 = vst.msk [vmem:[#allocation4 + $0xa1] sm:$0x1] %vm646_vm6, %v1070_v4 }
 0x376   :  { %1427 = vst.msk [vmem:[#allocation5 + $0x1a8] sm:$0xff] %vm1244_vm7, %v1378_v20  ;;  %v1697_v29 = vld [vmem:[#allocation5 + $0x1a0] sm:$0xff] }
 0x377   :  { %1594 = vst.msk [vmem:[#allocation5 + $0x190] sm:$0xff] %vm1244_vm7, %v1544_v24  ;;  %v1753_v31 = vpack.c.bf16 %v1697_v29, %v1693_v28  ;;  %v1285_v29 = vld [vmem:[#allocation4 + $0x1e0] sm:$0xff]  ;;  %v1700_v59 = vld [vmem:[#allocation5 + $0x1b8] sm:$0xff] }
 0x378   :  { %v1384_v11 = vpop.permute.xlu2 %1383  ;;  %1306 = vst.msk [vmem:[#allocation5 + $0x248] sm:$0xff] %vm120_vm0, %v1285_v29  ;;  %v1065_v29 = vld [vmem:[%s1064_s7] sm:$0x1] }
 0x379   :  { %2068 = vmatmul.bf16.gmra.mxu2 %v1753_v31  ;;  %1430 = vst.msk [vmem:[#allocation5 + $0x208] sm:$0xff] %vm1244_vm7, %v1384_v11  ;;  %v1692_v31 = vld [vmem:[#allocation5 + $0x178] sm:$0xff] }
 0x37a   :  { %v1752_v37 = vpack.c.bf16 %v1692_v31, %v1688_v30  ;;  %v1094_v30 = vld [vmem:[%s1093_s15] sm:$0x1]  ;;  %1067 = vst.msk [vmem:[#allocation4 + $0x490] sm:$0x1] %vm646_vm6, %v1065_v29 }
 0x37b   :  { %v1086_v31 = vld [vmem:[%s1085_s16] sm:$0x1]  ;;  %1095 = vst.msk [vmem:[#allocation4 + $0x491] sm:$0x1] %vm646_vm6, %v1094_v30 }
 0x37c   :  { %1087 = vst.msk [vmem:[#allocation4 + $0x341] sm:$0x1] %vm646_vm6, %v1086_v31 }
 0x37d   :  { %v1210_v27 = vpop.permute.xlu0 %1209  ;;  %v1698_v38 = vld [vmem:[#allocation5 + $0x1a8] sm:$0xff]  ;;  %v1212_v43 = vpop.permute.xlu1 %1211 }
 0x37e   :  { %1259 = vst.msk [vmem:[#allocation5 + $0x1c0] sm:$0xff] %vm1244_vm7, %v1210_v27  ;;  %v1754_v40 = vpack.c.bf16 %v1698_v38, %v1694_v33  ;;  %v1115_v27 = vld [vmem:[#allocation4 + $0x98] sm:$0xff]  ;;  %v1617_v33 = vld [vmem:[#allocation4 + $0x460] sm:$0xff]  ;;  %v1695_v61 = vld [vmem:[#allocation5 + $0x190] sm:$0xff] }
 0x37f   :  { %1260 = vst.msk [vmem:[#allocation5 + $0x1e0] sm:$0xff] %vm1244_vm7, %v1212_v43  ;;  %v1755_v1 = vpack.c.bf16 %v1699_v62, %v1695_v61 }
 0x380   :  { %5294 = vmatmul.msk.bf16.gmra.mxu1 %vm120_vm0, %v1740_v14  ;;  %2131 = vmatmul.bf16.gmra.mxu3 %v1754_v40  ;;  %v1451_v14 = vld [vmem:[#allocation4 + $0x320] sm:$0xff]  ;;  %v1554_v20 = vpop.permute.xlu2 %1553  ;;  %1136 = vst.msk [vmem:[#allocation5 + $0x260] sm:$0xff] %vm120_vm0, %v1115_v27 }
 0x381   :  { %2174 = vmatmul.bf16.gmra.mxu0 %v1739_v15  ;;  %v1452_v15 = vld [vmem:[#allocation4 + $0x328] sm:$0xff]  ;;  %1472 = vst.msk [vmem:[#allocation5 + $0x210] sm:$0xff] %vm120_vm0, %v1451_v14  ;;  %v1710_v23 = vld [vmem:[#allocation5 + $0x208] sm:$0xff] }
 0x382   :  { %1473 = vst.msk [vmem:[#allocation5 + $0x230] sm:$0xff] %vm120_vm0, %v1452_v15 }
 0x383   :  { %1599 = vst.msk [vmem:[#allocation5 + $0x230] sm:$0xff] %vm1244_vm7, %v1554_v20 }
 0x384   :  { %1638 = vst.msk [vmem:[#allocation5 + $0x1d8] sm:$0xff] %vm120_vm0, %v1617_v33  ;;  %v1055_v33 = vld [vmem:[%s1054_s14] sm:$0x1] }
 0x385   :  { %v1382_v46 = vpop.permute.xlu0 %1381  ;;  %v1548_v51 = vpop.permute.xlu1 %1547  ;;  %v1701_v55 = vld [vmem:[#allocation5 + $0x1c0] sm:$0xff]  ;;  %1057 = vst.msk [vmem:[#allocation4 + $0x340] sm:$0x1] %vm646_vm6, %v1055_v33 }
 0x386   :  { %1429 = vst.msk [vmem:[#allocation5 + $0x1e8] sm:$0xff] %vm1244_vm7, %v1382_v46  ;;  %v1705_v56 = vld [vmem:[#allocation5 + $0x1e0] sm:$0xff] }
 0x387   :  { %1596 = vst.msk [vmem:[#allocation5 + $0x1d0] sm:$0xff] %vm1244_vm7, %v1548_v51  ;;  %v1757_v58 = vpack.c.bf16 %v1705_v56, %v1701_v55 }
 0x388   :  { %v1388_v43 = vpop.permute.xlu2 %1387 }
 0x389   :  { %2073 = vmatmul.bf16.gmra.mxu2 %v1757_v58  ;;  %1432 = vst.msk [vmem:[#allocation5 + $0x248] sm:$0xff] %vm1244_vm7, %v1388_v43  ;;  %v1696_v58 = vld [vmem:[#allocation5 + $0x198] sm:$0xff] }
 0x38a   :  { %v1756_v63 = vpack.c.bf16 %v1700_v59, %v1696_v58 }
 0x38d   :  { %v1214_v54 = vpop.permute.xlu0 %1213  ;;  %v1706_v60 = vld [vmem:[#allocation5 + $0x1e8] sm:$0xff]  ;;  %v1216_v8 = vpop.permute.xlu1 %1215 }
 0x38e   :  { %1261 = vst.msk [vmem:[#allocation5 + $0x200] sm:$0xff] %vm1244_vm7, %v1214_v54  ;;  %v1758_v0 = vpack.c.bf16 %v1706_v60, %v1702_v57  ;;  %v1619_v54 = vld [vmem:[#allocation4 + $0x470] sm:$0xff]  ;;  %v1620_v57 = vld [vmem:[#allocation4 + $0x478] sm:$0xff]  ;;  %v1703_v20 = vld [vmem:[#allocation5 + $0x1d0] sm:$0xff] }
 0x38f   :  { %1262 = vst.msk [vmem:[#allocation5 + $0x220] sm:$0xff] %vm1244_vm7, %v1216_v8 }
 0x390   :  { %5295 = vmatmul.msk.bf16.gmra.mxu1 %vm120_vm0, %v1744_v41  ;;  %2136 = vmatmul.bf16.gmra.mxu3 %v1758_v0  ;;  %v1286_v41 = vld [vmem:[#allocation4 + $0x1e8] sm:$0xff]  ;;  %v1718_v50 = vld [vmem:[#allocation5 + $0x248] sm:$0xff]  ;;  %1640 = vst.msk [vmem:[#allocation5 + $0x218] sm:$0xff] %vm120_vm0, %v1619_v54 }
 0x391   :  { %2179 = vmatmul.bf16.gmra.mxu0 %v1743_v42  ;;  %1307 = vst.msk [vmem:[#allocation5 + $0x268] sm:$0xff] %vm120_vm0, %v1286_v41  ;;  %v1623_v41 = vld [vmem:[#allocation4 + $0x490] sm:$0x3] }
 0x392   :  { %1641 = vst.msk [vmem:[#allocation5 + $0x238] sm:$0xff] %vm120_vm0, %v1620_v57 }
 0x393   :  { %1644 = vst.msk [vmem:[#allocation5 + $0x298] sm:$0x3] %vm1137_vm8, %v1623_v41 }
 0x395   :  { %v1386_v13 = vpop.permute.xlu0 %1385  ;;  %v1552_v17 = vpop.permute.xlu1 %1551  ;;  %v1709_v21 = vld [vmem:[#allocation5 + $0x200] sm:$0xff] }
 0x396   :  { %1431 = vst.msk [vmem:[#allocation5 + $0x228] sm:$0xff] %vm1244_vm7, %v1386_v13  ;;  %v1713_v22 = vld [vmem:[#allocation5 + $0x220] sm:$0xff]  ;;  %v1287_v13 = vld [vmem:[#allocation4 + $0x1f0] sm:$0x3] }
 0x397   :  { %1598 = vst.msk [vmem:[#allocation5 + $0x210] sm:$0xff] %vm1244_vm7, %v1552_v17  ;;  %v1761_v26 = vpack.c.bf16 %v1713_v22, %v1709_v21  ;;  %v1704_v17 = vld [vmem:[#allocation5 + $0x1d8] sm:$0xff]  ;;  %v1707_v21 = vld [vmem:[#allocation5 + $0x1f0] sm:$0xff] }
 0x398   :  { %1308 = vst.msk [vmem:[#allocation5 + $0x288] sm:$0x3] %vm1137_vm8, %v1287_v13  ;;  %v1759_v27 = vpack.c.bf16 %v1707_v21, %v1703_v20 }
 0x399   :  { %2078 = vmatmul.bf16.gmra.mxu2 %v1761_v26  ;;  %v1716_v43 = vld [vmem:[#allocation5 + $0x238] sm:$0xff] }
 0x39d   :  { %v2102_v6 = vpop.f32.mrf.mxu1  ;;  %v1218_v25 = vpop.permute.xlu0 %1217  ;;  %v1714_v28 = vld [vmem:[#allocation5 + $0x228] sm:$0xff] }
 0x39e   :  { %v2039_v10 = vpop.f32.mrf.mxu0  ;;  %1263 = vst.msk [vmem:[#allocation5 + $0x240] sm:$0xff] %vm1244_vm7, %v1218_v25  ;;  %v1762_v32 = vpack.c.bf16 %v1714_v28, %v1710_v23  ;;  %v1220_v40 = vpop.permute.xlu1 %1219  ;;  %v1622_v23 = vld [vmem:[#allocation4 + $0x488] sm:$0xff]  ;;  %v1760_v25 = vpack.c.bf16 %v1708_v18, %v1704_v17  ;;  %v1728_v17 = vld [vmem:[#allocation5 + $0x298] sm:$0x3] }
 0x39f   :  { %v6590_v12 = vadd.f32 %v2102_v6, %v2039_v10  ;;  %1264 = vst.msk [vmem:[#allocation5 + $0x260] sm:$0xff] %vm1244_vm7, %v1220_v40  ;;  %v1035_v6 = vld [vmem:[%s1034_s1] sm:$0x1]  ;;  %v1558_v10 = vpop.permute.xlu2 %1557 }
 0x3a0   :  { %5296 = vmatmul.msk.bf16.gmra.mxu1 %vm120_vm0, %v1748_v5  ;;  %2141 = vmatmul.bf16.gmra.mxu3 %v1762_v32  ;;  %1037 = vst.msk [vmem:[#allocation4 + $0xa0] sm:$0x1] %vm646_vm6, %v1035_v6 }
 0x3a1   :  { %2184 = vmatmul.bf16.gmra.mxu0 %v1747_v7  ;;  %1601 = vst.msk [vmem:[#allocation5 + $0x270] sm:$0xff] %vm1244_vm7, %v1558_v10 }
 0x3a2   :  { %1643 = vst.msk [vmem:[#allocation5 + $0x278] sm:$0xff] %vm120_vm0, %v1622_v23 }
 0x3a5   :  { %v2104_v16 = vpop.f32.mrf.mxu1  ;;  %v1390_v45 = vpop.permute.xlu0 %1389  ;;  %v1717_v48 = vld [vmem:[#allocation5 + $0x240] sm:$0xff] }
 0x3a6   :  { %v2041_v19 = vpop.f32.mrf.mxu0  ;;  %1433 = vst.msk [vmem:[#allocation5 + $0x268] sm:$0xff] %vm1244_vm7, %v1390_v45  ;;  %v1721_v49 = vld [vmem:[#allocation5 + $0x260] sm:$0xff]  ;;  %v1556_v56 = vpop.permute.xlu1 %1555  ;;  %v1455_v45 = vld [vmem:[#allocation4 + $0x340] sm:$0x3] }
 0x3a7   :  { %v6599_v24 = vadd.f32 %v2104_v16, %v2041_v19  ;;  %v1765_v52 = vpack.c.bf16 %v1721_v49, %v1717_v48  ;;  %1600 = vst.msk [vmem:[#allocation5 + $0x250] sm:$0xff] %vm1244_vm7, %v1556_v56  ;;  %v1116_v16 = vld [vmem:[#allocation4 + $0xa0] sm:$0x3] }
 0x3a8   :  { %v1621_v19 = vld [vmem:[#allocation4 + $0x480] sm:$0xff]  ;;  %1138 = vst.msk [vmem:[#allocation5 + $0x280] sm:$0x3] %vm1137_vm8, %v1116_v16 }
 0x3a9   :  { %2083 = vmatmul.bf16.gmra.mxu2 %v1765_v52  ;;  %1642 = vst.msk [vmem:[#allocation5 + $0x258] sm:$0xff] %vm120_vm0, %v1621_v19  ;;  %v1724_v61 = vld [vmem:[#allocation5 + $0x278] sm:$0xff]  ;;  %v1772_v19 = vpack.c.bf16 %v1728_v17, %v1728_v17 }
 0x3aa   :  { %1476 = vst.msk [vmem:[#allocation5 + $0x290] sm:$0x3] %vm1137_vm8, %v1455_v45  ;;  %v1560_v48 = vpop.permute.xlu2 %1559 }
 0x3ab   :  { %1602 = vst.msk [vmem:[#allocation5 + $0x290] sm:$0x3] %vm1265_vm9, %v1560_v48 }
 0x3ad   :  { %v2107_v38 = vpop.f32.mrf.mxu1  ;;  %v1722_v55 = vld [vmem:[#allocation5 + $0x268] sm:$0xff]  ;;  %v1222_v22 = vpop.permute.xlu0 %1221 }
 0x3ae   :  { %v2044_v42 = vpop.f32.mrf.mxu0  ;;  %v1766_v60 = vpack.c.bf16 %v1722_v55, %v1718_v50  ;;  %v1392_v15 = vpop.permute.xlu1 %1391  ;;  %1266 = vst.msk [vmem:[#allocation5 + $0x280] sm:$0x3] %vm1265_vm9, %v1222_v22  ;;  %v1719_v62 = vld [vmem:[#allocation5 + $0x250] sm:$0xff] }
 0x3af   :  { %v6609_v44 = vadd.f32 %v2107_v38, %v2044_v42  ;;  %1434 = vst.msk [vmem:[#allocation5 + $0x288] sm:$0x3] %vm1265_vm9, %v1392_v15  ;;  %v1712_v42 = vld [vmem:[#allocation5 + $0x218] sm:$0xff] }
 0x3b0   :  { %5297 = vmatmul.msk.bf16.gmra.mxu1 %vm120_vm0, %v1752_v37  ;;  %2146 = vmatmul.bf16.gmra.mxu3 %v1766_v60  ;;  %v1764_v49 = vpack.c.bf16 %v1716_v43, %v1712_v42  ;;  %v1720_v60 = vld [vmem:[#allocation5 + $0x258] sm:$0xff] }
 0x3b1   :  { %2189 = vmatmul.bf16.gmra.mxu0 %v1751_v39 }
 0x3b2   :  { %v1727_v18 = vld [vmem:[#allocation5 + $0x290] sm:$0x3] }
 0x3b3   :  { %v1771_v22 = vpack.c.bf16 %v1727_v18, %v1727_v18 }
 0x3b5   :  { %v2109_v46 = vpop.f32.mrf.mxu1  ;;  %v1725_v36 = vld [vmem:[#allocation5 + $0x280] sm:$0x3] }
 0x3b6   :  { %v2046_v47 = vpop.f32.mrf.mxu0  ;;  %v1726_v34 = vld [vmem:[#allocation5 + $0x288] sm:$0x3]  ;;  %v1769_v37 = vpack.c.bf16 %v1725_v36, %v1725_v36 }
 0x3b7   :  { %v6623_v51 = vadd.f32 %v2109_v46, %v2046_v47  ;;  %v1770_v35 = vpack.c.bf16 %v1726_v34, %v1726_v34  ;;  %v1711_v46 = vld [vmem:[#allocation5 + $0x210] sm:$0xff] }
 0x3b8   :  { %v1715_v47 = vld [vmem:[#allocation5 + $0x230] sm:$0xff] }
 0x3b9   :  { %2088 = vmatmul.bf16.gmra.mxu2 %v1769_v37  ;;  %v1763_v52 = vpack.c.bf16 %v1715_v47, %v1711_v46 }
 0x3bd   :  { %v2112_v0 = vpop.f32.mrf.mxu1 }
 0x3be   :  { %v2049_v5 = vpop.f32.mrf.mxu0 }
 0x3bf   :  { %v6634_v7 = vadd.f32 %v2112_v0, %v2049_v5  ;;  %v1768_v0 = vpack.c.bf16 %v1724_v61, %v1720_v60 }
 0x3c0   :  { %5298 = vmatmul.msk.bf16.gmra.mxu1 %vm120_vm0, %v1756_v63  ;;  %2151 = vmatmul.bf16.gmra.mxu3 %v1770_v35  ;;  %v1723_v63 = vld [vmem:[#allocation5 + $0x270] sm:$0xff] }
 0x3c1   :  { %2194 = vmatmul.bf16.gmra.mxu0 %v1755_v1 }
 0x3c5   :  { %v2114_v8 = vpop.f32.mrf.mxu1 }
 0x3c6   :  { %v2051_v11 = vpop.f32.mrf.mxu0 }
 0x3c7   :  { %v6649_v14 = vadd.f32 %v2114_v8, %v2051_v11 }
 0x3cd   :  { %v2117_v26 = vpop.f32.mrf.mxu1 }
 0x3ce   :  { %v2054_v28 = vpop.f32.mrf.mxu0 }
 0x3cf   :  { %v6661_v32 = vadd.f32 %v2117_v26, %v2054_v28 }
 0x3d0   :  { %5299 = vmatmul.msk.bf16.gmra.mxu1 %vm120_vm0, %v1760_v25 }
 0x3d1   :  { %2199 = vmatmul.bf16.gmra.mxu0 %v1759_v27 }
 0x3d5   :  { %v2119_v38 = vpop.f32.mrf.mxu1 }
 0x3d6   :  { %v2056_v39 = vpop.f32.mrf.mxu0 }
 0x3d7   :  { %v6669_v40 = vadd.f32 %v2119_v38, %v2056_v39 }
 0x3dc   :  { %v2059_v1 = vpop.f32.mrf.mxu2 }
 0x3dd   :  { %v2228_v50 = vpop.f32.mrf.mxu1 }
 0x3de   :  { %v2165_v53 = vpop.f32.mrf.mxu0 }
 0x3df   :  { %v2166_v54 = vadd.f32 %v2165_v53, %v6590_v12  ;;  %v1767_v12 = vpack.c.bf16 %v1723_v63, %v1719_v62 }
 0x3e0   :  { %5300 = vmatmul.msk.bf16.gmra.mxu1 %vm120_vm0, %v1764_v49 }
 0x3e1   :  { %v6676_v55 = vadd.f32 %v2228_v50, %v2166_v54  ;;  %2204 = vmatmul.bf16.gmra.mxu0 %v1763_v52 }
 0x3e3   :  { %v2122_v2 = vpop.f32.mrf.mxu3 }
 0x3e4   :  { %v2123_v5 = vadd.f32 %v2122_v2, %v2059_v1 }
 0x3e5   :  { %v2230_v56 = vpop.f32.mrf.mxu1 }
 0x3e6   :  { %v2167_v57 = vpop.f32.mrf.mxu0 }
 0x3e7   :  { %v2168_v58 = vadd.f32 %v2167_v57, %v6599_v24  ;;  %v2061_v24 = vpop.f32.mrf.mxu2 }
 0x3e9   :  { %v6679_v59 = vadd.f32 %v2230_v56, %v2168_v58 }
 0x3eb   :  { %v2124_v9 = vpop.f32.mrf.mxu3 }
 0x3ec   :  { %v2125_v11 = vadd.f32 %v2124_v9, %v2061_v24 }
 0x3ed   :  { %v2233_v3 = vpop.f32.mrf.mxu1 }
 0x3ee   :  { %v2170_v4 = vpop.f32.mrf.mxu0 }
 0x3ef   :  { %v2171_v6 = vadd.f32 %v2170_v4, %v6609_v44  ;;  %v2064_v20 = vpop.f32.mrf.mxu2 }
 0x3f0   :  { %5301 = vmatmul.msk.bf16.gmra.mxu1 %vm120_vm0, %v1768_v0 }
 0x3f1   :  { %v6683_v8 = vadd.f32 %v2233_v3, %v2171_v6  ;;  %2209 = vmatmul.bf16.gmra.mxu0 %v1767_v12 }
 0x3f3   :  { %v2127_v21 = vpop.f32.mrf.mxu3 }
 0x3f4   :  { %v2128_v25 = vadd.f32 %v2127_v21, %v2064_v20 }
 0x3f5   :  { %v2235_v10 = vpop.f32.mrf.mxu1 }
 0x3f6   :  { %v2172_v13 = vpop.f32.mrf.mxu0 }
 0x3f7   :  { %v2173_v15 = vadd.f32 %v2172_v13, %v6623_v51  ;;  %v2066_v28 = vpop.f32.mrf.mxu2 }
 0x3f9   :  { %v6686_v16 = vadd.f32 %v2235_v10, %v2173_v15 }
 0x3fb   :  { %v2129_v51 = vpop.f32.mrf.mxu3 }
 0x3fc   :  { %v2130_v30 = vadd.f32 %v2129_v51, %v2066_v28  ;;  %v2331_v28 = vmul.f32 %v6683_v8, %v6683_v8  ;;  %v2282_v51 = vsel %vm178_vm1, %v6676_v55, 0.0 }
 0x3fd   :  { %v2238_v44 = vpop.f32.mrf.mxu1 }
 0x3fe   :  { %v2175_v23 = vpop.f32.mrf.mxu0 }
 0x3ff   :  { %v2176_v26 = vadd.f32 %v2175_v23, %v6634_v7  ;;  %v2069_v35 = vpop.f32.mrf.mxu2 }
 0x400   :  { %5302 = vmatmul.msk.bf16.gmra.mxu1 %vm120_vm0, %v1772_v19 }
 0x401   :  { %v6690_v27 = vadd.f32 %v2238_v44, %v2176_v26  ;;  %2214 = vmatmul.bf16.gmra.mxu0 %v1771_v22  ;;  %v2330_v44 = vmul.f32 %v6679_v59, %v6679_v59  ;;  %v2283_v26 = vsel %vm178_vm1, %v6679_v59, 0.0 }
 0x403   :  { %v2132_v7 = vpop.f32.mrf.mxu3 }
 0x404   :  { %v2133_v41 = vadd.f32 %v2132_v7, %v2069_v35  ;;  %v2287_v7 = vsel %vm178_vm1, %v6686_v16, 0.0 }
 0x405   :  { %v2240_v29 = vpop.f32.mrf.mxu1 }
 0x406   :  { %v2177_v31 = vpop.f32.mrf.mxu0 }
 0x407   :  { %v2178_v33 = vadd.f32 %v2177_v31, %v6649_v14  ;;  %v2071_v42 = vpop.f32.mrf.mxu2  ;;  %v2332_v31 = vmul.f32 %v6686_v16, %v6686_v16 }
 0x409   :  { %v6693_v34 = vadd.f32 %v2240_v29, %v2178_v33  ;;  %v2351_v29 = vsel %vm178_vm1, %v2330_v44, 0.0 }
 0x40b   :  { %v2134_v47 = vpop.f32.mrf.mxu3 }
 0x40c   :  { %v2135_v14 = vadd.f32 %v2134_v47, %v2071_v42  ;;  %v2289_v47 = vsel %vm178_vm1, %v6690_v27, 0.0 }
 0x40d   :  { %v2243_v36 = vpop.f32.mrf.mxu1 }
 0x40e   :  { %v2180_v37 = vpop.f32.mrf.mxu0 }
 0x40f   :  { %v2181_v38 = vadd.f32 %v2180_v37, %v6661_v32  ;;  %v2074_v49 = vpop.f32.mrf.mxu2 }
 0x411   :  { %v6696_v39 = vadd.f32 %v2243_v36, %v2181_v38  ;;  %v2284_v36 = vadd.f32 %v2283_v26, %v2282_v51  ;;  %v2353_v38 = vsel %vm178_vm1, %v2331_v28, 0.0 }
 0x413   :  { %v2137_v54 = vpop.f32.mrf.mxu3 }
 0x414   :  { %v6703_v32 = vadd.f32 %v2137_v54, %v2074_v49  ;;  %v2334_v49 = vmul.f32 %v6693_v34, %v6693_v34 }
 0x415   :  { %v2245_v43 = vpop.f32.mrf.mxu1 }
 0x416   :  { %v2182_v45 = vpop.f32.mrf.mxu0 }
 0x417   :  { %v2183_v46 = vadd.f32 %v2182_v45, %v6669_v40  ;;  %v2076_v57 = vpop.f32.mrf.mxu2 }
 0x419   :  { %v6699_v48 = vadd.f32 %v2245_v43, %v2183_v46  ;;  %v2355_v46 = vsel %vm178_vm1, %v2332_v31, 0.0 }
 0x41b   :  { %v2139_v62 = vpop.f32.mrf.mxu3 }
 0x41c   :  { %v6707_v40 = vadd.f32 %v2139_v62, %v2076_v57  ;;  %v2291_v57 = vsel %vm178_vm1, %v6693_v34, 0.0  ;;  %v2293_v62 = vsel %vm178_vm1, %v6696_v39, 0.0 }
 0x41d   :  { %v2248_v50 = vpop.f32.mrf.mxu1 }
 0x41e   :  { %v2185_v52 = vpop.f32.mrf.mxu0 }
 0x41f   :  { %v2186_v53 = vadd.f32 %v2185_v52, %v2123_v5  ;;  %v2079_v0 = vpop.f32.mrf.mxu2 }
 0x421   :  { %v6701_v56 = vadd.f32 %v2248_v50, %v2186_v53 }
 0x423   :  { %v2142_v12 = vpop.f32.mrf.mxu3 }
 0x424   :  { %v6711_v5 = vadd.f32 %v2142_v12, %v2079_v0  ;;  %v2336_v0 = vmul.f32 %v6699_v48, %v6699_v48 }
 0x425   :  { %v2250_v58 = vpop.f32.mrf.mxu1 }
 0x426   :  { %v2187_v60 = vpop.f32.mrf.mxu0 }
 0x427   :  { %v2188_v61 = vadd.f32 %v2187_v60, %v2125_v11  ;;  %v2081_v9 = vpop.f32.mrf.mxu2 }
 0x429   :  { %v6705_v63 = vadd.f32 %v2250_v58, %v2188_v61  ;;  %v2359_v61 = vsel %vm178_vm1, %v2334_v49, 0.0 }
 0x42b   :  { %v2144_v13 = vpop.f32.mrf.mxu3  ;;  %v2299_v51 = vsel %vm178_vm1, %v6705_v63, 0.0 }
 0x42c   :  { %v6715_v15 = vadd.f32 %v2144_v13, %v2081_v9  ;;  %v2295_v9 = vsel %vm178_vm1, %v6699_v48, 0.0 }
 0x42d   :  { %v2253_v1 = vpop.f32.mrf.mxu1 }
 0x42e   :  { %v2190_v2 = vpop.f32.mrf.mxu0 }
 0x42f   :  { %v2191_v3 = vadd.f32 %v2190_v2, %v2128_v25  ;;  %v2084_v20 = vpop.f32.mrf.mxu2  ;;  %v2329_v25 = vmul.f32 %v6676_v55, %v6676_v55 }
 0x431   :  { %v6709_v4 = vadd.f32 %v2253_v1, %v2191_v3  ;;  %v2350_v35 = vsel %vm178_vm1, %v2329_v25, 0.0 }
 0x432   :  { %v2352_v43 = vadd.f32 %v2351_v29, %v2350_v35 }
 0x433   :  { %v2147_v21 = vpop.f32.mrf.mxu3  ;;  %v2339_v26 = vmul.f32 %v6709_v4, %v6709_v4  ;;  %v2301_v35 = vsel %vm178_vm1, %v6709_v4, 0.0 }
 0x434   :  { %v6721_v23 = vadd.f32 %v2147_v21, %v2084_v20  ;;  %v2354_v52 = vadd.f32 %v2353_v38, %v2352_v43  ;;  %v2297_v20 = vsel %vm178_vm1, %v6701_v56, 0.0  ;;  %v2338_v21 = vmul.f32 %v6705_v63, %v6705_v63 }
 0x435   :  { %v2255_v6 = vpop.f32.mrf.mxu1 }
 0x436   :  { %v2192_v24 = vpop.f32.mrf.mxu0  ;;  %v2356_v58 = vadd.f32 %v2355_v46, %v2354_v52 }
 0x437   :  { %v2193_v10 = vadd.f32 %v2192_v24, %v2130_v30  ;;  %v2285_v30 = vsel %vm178_vm1, %v6683_v8, 0.0 }
 0x438   :  { %v2286_v45 = vadd.f32 %v2285_v30, %v2284_v36 }
 0x439   :  { %v6713_v11 = vadd.f32 %v2255_v6, %v2193_v10  ;;  %v2337_v10 = vmul.f32 %v6701_v56, %v6701_v56 }
 0x43a   :  { %v2288_v53 = vadd.f32 %v2287_v7, %v2286_v45 }
 0x43b   :  { %v6759_v6 = vpop.f32.mrf.mxu3  ;;  %v2365_v28 = vsel %vm178_vm1, %v2337_v10, 0.0  ;;  %v2340_v36 = vmul.f32 %v6713_v11, %v6713_v11 }
 0x43c   :  { %v2290_v60 = vadd.f32 %v2289_v47, %v2288_v53 }
 0x43d   :  { %v2258_v17 = vpop.f32.mrf.mxu1 }
 0x43e   :  { %v2195_v18 = vpop.f32.mrf.mxu0  ;;  %v2292_v3 = vadd.f32 %v2291_v57, %v2290_v60 }
 0x43f   :  { %v2196_v19 = vadd.f32 %v2195_v18, %v2133_v41  ;;  %v2333_v41 = vmul.f32 %v6690_v27, %v6690_v27  ;;  %v6766_v18 = vpop.f32.mrf.mxu2 }
 0x441   :  { %v6719_v22 = vadd.f32 %v2258_v17, %v2196_v19  ;;  %v2357_v54 = vsel %vm178_vm1, %v2333_v41, 0.0  ;;  %v2294_v17 = vadd.f32 %v2293_v62, %v2292_v3  ;;  %v2363_v19 = vsel %vm178_vm1, %v2336_v0, 0.0 }
 0x442   :  { %v2358_v2 = vadd.f32 %v2357_v54, %v2356_v58  ;;  %v2369_v41 = vsel %vm178_vm1, %v2339_v26, 0.0  ;;  %v2371_v54 = vsel %vm178_vm1, %v2340_v36, 0.0 }
 0x443   :  { %v2296_v25 = vadd.f32 %v2295_v9, %v2294_v17  ;;  %v6785_v43 = vpop.f32.mrf.mxu3  ;;  %v2341_v45 = vmul.f32 %v6719_v22, %v6719_v22  ;;  %v2305_v57 = vsel %vm178_vm1, %v6719_v22, 0.0 }
 0x444   :  { %v2360_v13 = vadd.f32 %v2359_v61, %v2358_v2 }
 0x445   :  { %v2260_v33 = vpop.f32.mrf.mxu1  ;;  %v2298_v31 = vadd.f32 %v2297_v20, %v2296_v25  ;;  %v2373_v62 = vsel %vm178_vm1, %v2341_v45, 0.0 }
 0x446   :  { %v2197_v37 = vpop.f32.mrf.mxu0 }
 0x447   :  { %v2198_v42 = vadd.f32 %v2197_v37, %v2135_v14  ;;  %v2335_v14 = vmul.f32 %v6696_v39, %v6696_v39  ;;  %v2300_v7 = vadd.f32 %v2299_v51, %v2298_v31  ;;  %v2089_v53 = vpop.f32.mrf.mxu2 }
 0x449   :  { %v6747_v50 = vadd.f32 %v2260_v33, %v2198_v42  ;;  %v2361_v24 = vsel %vm178_vm1, %v2335_v14, 0.0  ;;  %v2367_v33 = vsel %vm178_vm1, %v2338_v21, 0.0  ;;  %v2302_v52 = vadd.f32 %v2301_v35, %v2300_v7 }
 0x44a   :  { %v2362_v44 = vadd.f32 %v2361_v24, %v2360_v13 }
 0x44b   :  { %v2342_v14 = vmul.f32 %v6747_v50, %v6747_v50 }
 0x44c   :  { %v2364_v30 = vadd.f32 %v2363_v19, %v2362_v44  ;;  %v2154_v19 = vpop.f32.mrf.mxu3 }
 0x44d   :  { %v2263_v1 = vpop.f32.mrf.mxu1  ;;  %v2375_v3 = vsel %vm178_vm1, %v2342_v14, 0.0 }
 0x44e   :  { %v2200_v12 = vpop.f32.mrf.mxu0  ;;  %v2366_v38 = vadd.f32 %v2365_v28, %v2364_v30 }
 0x44f   :  { %v2201_v29 = vadd.f32 %v2200_v12, %v6703_v32  ;;  %v2303_v32 = vsel %vm178_vm1, %v6713_v11, 0.0  ;;  %v2091_v28 = vpop.f32.mrf.mxu2 }
 0x450   :  { %v2368_v49 = vadd.f32 %v2367_v33, %v2366_v38  ;;  %v2304_v61 = vadd.f32 %v2303_v32, %v2302_v52 }
 0x451   :  { %v6791_v46 = vadd.f32 %v2263_v1, %v2201_v29 }
 0x452   :  { %v2370_v60 = vadd.f32 %v2369_v41, %v2368_v49  ;;  %v2306_v2 = vadd.f32 %v2305_v57, %v2304_v61 }
 0x453   :  { %v2343_v0 = vmul.f32 %v6791_v46, %v6791_v46  ;;  %v2309_v12 = vsel %vm178_vm1, %v6791_v46, 0.0 }
 0x454   :  { %v2372_v1 = vadd.f32 %v2371_v54, %v2370_v60 }
 0x455   :  { %v2265_v37 = vpop.f32.mrf.mxu1  ;;  %v2377_v20 = vsel %vm178_vm1, %v2343_v0, 0.0  ;;  %v2150_v0 = vadd.f32 %v6759_v6, %v6766_v18 }
 0x456   :  { %v2202_v42 = vpop.f32.mrf.mxu0  ;;  %v2374_v10 = vadd.f32 %v2373_v62, %v2372_v1 }
 0x457   :  { %v2203_v47 = vadd.f32 %v2202_v42, %v6707_v40  ;;  %v2307_v40 = vsel %vm178_vm1, %v6747_v50, 0.0 }
 0x458   :  { %v2308_v13 = vadd.f32 %v2307_v40, %v2306_v2  ;;  %v2376_v25 = vadd.f32 %v2375_v3, %v2374_v10 }
 0x459   :  { %v6799_v58 = vadd.f32 %v2265_v37, %v2203_v47 }
 0x45a   :  { %v2310_v26 = vadd.f32 %v2309_v12, %v2308_v13  ;;  %v2378_v30 = vadd.f32 %v2377_v20, %v2376_v25 }
 0x45b   :  { %v2344_v24 = vmul.f32 %v6799_v58, %v6799_v58  ;;  %v2311_v21 = vsel %vm178_vm1, %v6799_v58, 0.0 }
 0x45c   :  { %v2312_v31 = vadd.f32 %v2311_v21, %v2310_v26 }
 0x45d   :  { %v2268_v9 = vpop.f32.mrf.mxu1  ;;  %v2379_v51 = vsel %vm178_vm1, %v2344_v24, 0.0 }
 0x45e   :  { %v2205_v17 = vpop.f32.mrf.mxu0  ;;  %v2380_v36 = vadd.f32 %v2379_v51, %v2378_v30 }
 0x45f   :  { %v2206_v44 = vadd.f32 %v2205_v17, %v6711_v5 }
 0x461   :  { %v6816_v29 = vadd.f32 %v2268_v9, %v2206_v44 }
 0x463   :  { %v2313_v33 = vsel %vm178_vm1, %v6816_v29, 0.0  ;;  %v2345_v35 = vmul.f32 %v6816_v29, %v6816_v29 }
 0x464   :  { %v2314_v37 = vadd.f32 %v2313_v33, %v2312_v31 }
 0x465   :  { %v2381_v38 = vsel %vm178_vm1, %v2345_v35, 0.0  ;;  %v2270_v5 = vpop.f32.mrf.mxu1 }
 0x466   :  { %v2382_v7 = vadd.f32 %v2381_v38, %v2380_v36  ;;  %v2207_v41 = vpop.f32.mrf.mxu0 }
 0x467   :  { %v2208_v42 = vadd.f32 %v2207_v41, %v6715_v15 }
 0x469   :  { %v6824_v32 = vadd.f32 %v2270_v5, %v2208_v42 }
 0x46b   :  { %v2315_v45 = vsel %vm178_vm1, %v6824_v32, 0.0  ;;  %v2346_v47 = vmul.f32 %v6824_v32, %v6824_v32 }
 0x46c   :  { %v2316_v49 = vadd.f32 %v2315_v45, %v2314_v37 }
 0x46d   :  { %v2383_v52 = vsel %vm178_vm1, %v2346_v47, 0.0  ;;  %v2273_v54 = vpop.f32.mrf.mxu1 }
 0x46e   :  { %v2384_v57 = vadd.f32 %v2383_v52, %v2382_v7  ;;  %v2210_v14 = vpop.f32.mrf.mxu0 }
 0x46f   :  { %v2211_v60 = vadd.f32 %v2210_v14, %v6721_v23  ;;  %v2153_v23 = vadd.f32 %v6785_v43, %v2089_v53 }
 0x471   :  { %v6832_v61 = vadd.f32 %v2273_v54, %v2211_v60 }
 0x473   :  { %v2317_v15 = vsel %vm178_vm1, %v6832_v61, 0.0  ;;  %v2347_v62 = vmul.f32 %v6832_v61, %v6832_v61 }
 0x474   :  { %v2318_v40 = vadd.f32 %v2317_v15, %v2316_v49 }
 0x475   :  { %v2385_v1 = vsel %vm178_vm1, %v2347_v62, 0.0  ;;  %v2275_v2 = vpop.f32.mrf.mxu1 }
 0x476   :  { %v2386_v3 = vadd.f32 %v2385_v1, %v2384_v57  ;;  %v2212_v12 = vpop.f32.mrf.mxu0 }
 0x477   :  { %v2213_v24 = vadd.f32 %v2212_v12, %v2150_v0 }
 0x479   :  { %v6841_v9 = vadd.f32 %v2275_v2, %v2213_v24 }
 0x47b   :  { %v2319_v10 = vsel %vm178_vm1, %v6841_v9, 0.0  ;;  %v2348_v13 = vmul.f32 %v6841_v9, %v6841_v9 }
 0x47c   :  { %v2320_v17 = vadd.f32 %v2319_v10, %v2318_v40 }
 0x47d   :  { %v2387_v19 = vsel %vm178_vm1, %v2348_v13, 0.0  ;;  %v2278_v6 = vpop.f32.mrf.mxu1 }
 0x47e   :  { %v2388_v18 = vadd.f32 %v2387_v19, %v2386_v3  ;;  %v2215_v20 = vpop.f32.mrf.mxu0 }
 0x47f   :  { %v2216_v21 = vadd.f32 %v2215_v20, %v2153_v23 }
 0x481   :  { %v6849_v44 = vadd.f32 %v2278_v6, %v2216_v21 }
 0x483   :  { %v2321_v25 = vsel %vm184_vm2, %v6849_v44, 0.0  ;;  %v2349_v43 = vmul.f32 %v6849_v44, %v6849_v44 }
 0x484   :  { %v2322_v53 = vadd.f32 %v2321_v25, %v2320_v17 }
 0x485   :  { %v2389_v26 = vsel %vm184_vm2, %v2349_v43, 0.0  ;;  %v2280_v28 = vpop.f32.mrf.mxu1 }
 0x486   :  { %v2323_v51 = vrot.slane %v2322_v53, 4  ;;  %v2390_v30 = vadd.f32 %v2389_v26, %v2388_v18  ;;  %v2217_v31 = vpop.f32.mrf.mxu0 }
 0x488   :  { %v2324_v33 = vadd.f32 %v2323_v51, %v2322_v53  ;;  %v2391_v35 = vrot.slane %v2390_v30, 4 }
 0x48a   :  { %v2325_v36 = vrot.slane %v2324_v33, 2  ;;  %v2392_v37 = vadd.f32 %v2391_v35, %v2390_v30 }
 0x48c   :  { %v2326_v38 = vadd.f32 %v2325_v36, %v2324_v33  ;;  %v2393_v5 = vrot.slane %v2392_v37, 2 }
 0x48e   :  { %v2327_v7 = vrot.slane %v2326_v38, 1  ;;  %v2394_v41 = vadd.f32 %v2393_v5, %v2392_v37 }
 0x490   :  { %v2328_v42 = vadd.f32 %v2327_v7, %v2326_v38  ;;  %v2395_v45 = vrot.slane %v2394_v41, 1 }
 0x492   :  { %v2396_v47 = vadd.f32 %v2395_v45, %v2394_v41  ;;  %v2397_v49 = vmul.f32 0.0061728396, %v2328_v42 }
 0x494   :  { %v2398_v52 = vmul.f32 0.0061728396, %v2396_v47  ;;  %v2399_v54 = vmul.f32 %v2397_v49, %v2397_v49  ;;  %v2418_v14 = vsub.f32 %v6799_v58, %v2397_v49  ;;  %v2419_v60 = vsub.f32 %v6816_v29, %v2397_v49  ;;  %v5620_v29 = vld [vmem:[%s7831_s8] ss:$0 sm:$0xff] }
 0x495   :  { %v2420_v15 = vsub.f32 %v6824_v32, %v2397_v49  ;;  %v2421_v62 = vsub.f32 %v6832_v61, %v2397_v49  ;;  %v2422_v40 = vsub.f32 %v6841_v9, %v2397_v49  ;;  %v2403_v3 = vsub.f32 %v6676_v55, %v2397_v49 }
 0x496   :  { %v2400_v57 = vsub.f32 %v2398_v52, %v2399_v54  ;;  %v2404_v12 = vsub.f32 %v6679_v59, %v2397_v49  ;;  %v2405_v24 = vsub.f32 %v6683_v8, %v2397_v49  ;;  %v2406_v58 = vsub.f32 %v6686_v16, %v2397_v49 }
 0x497   :  { %v2407_v61 = vsub.f32 %v6690_v27, %v2397_v49  ;;  %v2408_v9 = vsub.f32 %v6693_v34, %v2397_v49  ;;  %v2409_v23 = vsub.f32 %v6696_v39, %v2397_v49  ;;  %v2410_v10 = vsub.f32 %v6699_v48, %v2397_v49 }
 0x498   :  { %v2401_v0 = vmax.f32 %v2400_v57, 0.0  ;;  %v2411_v55 = vsub.f32 %v6701_v56, %v2397_v49  ;;  %v2412_v59 = vsub.f32 %v6705_v63, %v2397_v49  ;;  %v2413_v8 = vsub.f32 %v6709_v4, %v2397_v49 }
 0x499   :  { %v2414_v13 = vsub.f32 %v6713_v11, %v2397_v49  ;;  %v2415_v17 = vsub.f32 %v6719_v22, %v2397_v49  ;;  %v2416_v19 = vsub.f32 %v6747_v50, %v2397_v49  ;;  %v2417_v27 = vsub.f32 %v6791_v46, %v2397_v49 }
 0x49a   :  { %v2448_v1 = vadd.f32 1e-05, %v2401_v0  ;;  %v2423_v34 = vsub.f32 %v6849_v44, %v2397_v49  ;;  %v2427_v39 = vmul.f32 %v5620_v29, %v2403_v3  ;;  %v2428_v6 = vmul.f32 %v5620_v29, %v2404_v12  ;;  %v6889_v12 = vld [vmem:[%s7832_s9] ss:$0 sm:$0xff]  ;;  %s6945_s9 = smov 0  }
 0x49b   :  { %v2429_v18 = vmul.f32 %v5620_v29, %v2405_v24  ;;  %v2430_v56 = vmul.f32 %v5620_v29, %v2406_v58  ;;  %v2431_v20 = vmul.f32 %v5620_v29, %v2407_v61  ;;  %v2432_v63 = vmul.f32 %v5620_v29, %v2408_v9 }
 0x49c   :  { %5622 = vrsqrt.f32 %v2448_v1  ;;  %v2433_v21 = vmul.f32 %v5620_v29, %v2409_v23  ;;  %v2434_v4 = vmul.f32 %v5620_v29, %v2410_v10  ;;  %v2435_v11 = vmul.f32 %v5620_v29, %v2411_v55 }
 0x49d   :  { %v2436_v43 = vmul.f32 %v5620_v29, %v2412_v59  ;;  %v2437_v22 = vmul.f32 %v5620_v29, %v2413_v8  ;;  %v2438_v53 = vmul.f32 %v5620_v29, %v2414_v13  ;;  %v2439_v50 = vmul.f32 %v5620_v29, %v2415_v17 }
 0x49e   :  { %v2440_v26 = vmul.f32 %v5620_v29, %v2416_v19  ;;  %vm2455_vm11 = vweird.f32 %v2448_v1  ;;  %v2441_v44 = vmul.f32 %v5620_v29, %v2417_v27  ;;  %v2442_v28 = vmul.f32 %v5620_v29, %v2418_v14 }
 0x49f   :  { %v2443_v51 = vmul.f32 %v5620_v29, %v2419_v60  ;;  %v2444_v30 = vmul.f32 %v5620_v29, %v2420_v15  ;;  %v2445_v31 = vmul.f32 %v5620_v29, %v2421_v62  ;;  %v2446_v33 = vmul.f32 %v5620_v29, %v2422_v40 }
 0x4a0   :  { %v2447_v35 = vmul.f32 %v5620_v29, %v2423_v34 }
 0x4a2   :  { %v5623_v2 = vpop.eup %5622 }
 0x4a3   :  { %v2450_v32 = vmul.f32 %v5623_v2, %v2448_v1  ;;  %vm2456_vm10 = vweird.f32 %v5623_v2 }
 0x4a4   :  { %vm2457_vm12 = vmor %vm2455_vm11, %vm2456_vm10 }
 0x4a5   :  { %v2451_v16 = vmul.f32 %v5623_v2, %v2450_v32 }
 0x4a7   :  { %v2452_v48 = vmul.f32 0.5, %v2451_v16 }
 0x4a9   :  { %v2453_v25 = vsub.f32 1.5, %v2452_v48 }
 0x4ab   :  { %v2454_v46 = vmul.f32 %v5623_v2, %v2453_v25 }
 0x4ad   :  { %v2458_v36 = vsel %vm2457_vm12, %v5623_v2, %v2454_v46 }
 0x4ae   :  { %v2459_v37 = vmul.f32 %v2458_v36, %v2427_v39  ;;  %v2460_v38 = vmul.f32 %v2458_v36, %v2428_v6  ;;  %v2461_v5 = vmul.f32 %v2458_v36, %v2429_v18  ;;  %v2462_v7 = vmul.f32 %v2458_v36, %v2430_v56 }
 0x4af   :  { %v2463_v41 = vmul.f32 %v2458_v36, %v2431_v20  ;;  %v2464_v42 = vmul.f32 %v2458_v36, %v2432_v63  ;;  %v2465_v45 = vmul.f32 %v2458_v36, %v2433_v21  ;;  %v2466_v47 = vmul.f32 %v2458_v36, %v2434_v4 }
 0x4b0   :  { %v2467_v49 = vmul.f32 %v2458_v36, %v2435_v11  ;;  %v2468_v52 = vmul.f32 %v2458_v36, %v2436_v43  ;;  %v2469_v54 = vmul.f32 %v2458_v36, %v2437_v22  ;;  %v2470_v57 = vmul.f32 %v2458_v36, %v2438_v53 }
 0x4b1   :  { %v2471_v14 = vmul.f32 %v2458_v36, %v2439_v50  ;;  %v2472_v60 = vmul.f32 %v2458_v36, %v2440_v26  ;;  %v2473_v15 = vmul.f32 %v2458_v36, %v2441_v44  ;;  %v2474_v0 = vmul.f32 %v2458_v36, %v2442_v28 }
 0x4b2   :  { %v2475_v62 = vmul.f32 %v2458_v36, %v2443_v51  ;;  %v2476_v40 = vmul.f32 %v2458_v36, %v2444_v30  ;;  %v6880_v1 = vmul.f32 %v2458_v36, %v2445_v31  ;;  %v6882_v2 = vmul.f32 %v2458_v36, %v2446_v33 }
 0x4b3   :  { %v6884_v3 = vmul.f32 %v2458_v36, %v2447_v35  ;;  %v2484_v24 = vadd.f32 %v6889_v12, %v2459_v37  ;;  %v2485_v58 = vadd.f32 %v6889_v12, %v2460_v38  ;;  %v2486_v29 = vadd.f32 %v6889_v12, %v2461_v5 }
 0x4b4   :  { %v2487_v32 = vadd.f32 %v6889_v12, %v2462_v7  ;;  %v2488_v61 = vadd.f32 %v6889_v12, %v2463_v41  ;;  %v2489_v23 = vadd.f32 %v6889_v12, %v2464_v42  ;;  %v2490_v55 = vadd.f32 %v6889_v12, %v2465_v45 }
 0x4b5   :  { %v2526_v9 = vmul.f32 0.2, %v2484_v24  ;;  %vm2505_vm13 = vcmp.ge.f32.partialorder %v2484_v24, 0.0  ;;  %v2527_v10 = vmul.f32 0.2, %v2485_v58  ;;  %vm2506_vm14 = vcmp.ge.f32.partialorder %v2485_v58, 0.0 }
 0x4b6   :  { %v2528_v59 = vmul.f32 0.2, %v2486_v29  ;;  %v2491_v8 = vadd.f32 %v6889_v12, %v2466_v47  ;;  %vm2507_vm15 = vcmp.ge.f32.partialorder %v2486_v29, 0.0  ;;  %v2529_v16 = vmul.f32 0.2, %v2487_v32 }
 0x4b7   :  { %v2492_v13 = vadd.f32 %v6889_v12, %v2467_v49  ;;  %vm2508_vm0 = vcmp.ge.f32.partialorder %v2487_v32, 0.0  ;;  %v2530_v17 = vmul.f32 0.2, %v2488_v61  ;;  %v2547_v19 = vsel %vm2505_vm13, %v2484_v24, %v2526_v9 }
 0x4b8   :  { %v2493_v27 = vadd.f32 %v6889_v12, %v2468_v52  ;;  %vm2509_vm6 = vcmp.ge.f32.partialorder %v2488_v61, 0.0  ;;  %v2531_v34 = vmul.f32 0.2, %v2489_v23  ;;  %v2548_v39 = vsel %vm2506_vm14, %v2485_v58, %v2527_v10  ;;  %2568 = vst.msk [vmem:[#allocation7] sm:$0xff] %vm178_vm1, %v2547_v19 }
 0x4b9   :  { %v2494_v6 = vadd.f32 %v6889_v12, %v2469_v54  ;;  %vm2510_vm7 = vcmp.ge.f32.partialorder %v2489_v23, 0.0  ;;  %v2532_v48 = vmul.f32 0.2, %v2490_v55  ;;  %v2549_v18 = vsel %vm2507_vm15, %v2486_v29, %v2528_v59  ;;  %2569 = vst.msk [vmem:[#allocation7 + $0x8] sm:$0xff] %vm178_vm1, %v2548_v39 }
 0x4ba   :  { %v2495_v56 = vadd.f32 %v6889_v12, %v2470_v57  ;;  %vm2511_vm8 = vcmp.ge.f32.partialorder %v2490_v55, 0.0  ;;  %v2533_v20 = vmul.f32 0.2, %v2491_v8  ;;  %v2550_v63 = vsel %vm2508_vm0, %v2487_v32, %v2529_v16  ;;  %2570 = vst.msk [vmem:[#allocation7 + $0x10] sm:$0xff] %vm178_vm1, %v2549_v18 }
 0x4bb   :  { %v2496_v21 = vadd.f32 %v6889_v12, %v2471_v14  ;;  %vm2512_vm9 = vcmp.ge.f32.partialorder %v2491_v8, 0.0  ;;  %v2534_v4 = vmul.f32 0.2, %v2492_v13  ;;  %v2551_v25 = vsel %vm2509_vm6, %v2488_v61, %v2530_v17  ;;  %2571 = vst.msk [vmem:[#allocation7 + $0x18] sm:$0xff] %vm178_vm1, %v2550_v63 }
 0x4bc   :  { %v2497_v11 = vadd.f32 %v6889_v12, %v2472_v60  ;;  %vm2513_vm10 = vcmp.ge.f32.partialorder %v2492_v13, 0.0  ;;  %v2535_v43 = vmul.f32 0.2, %v2493_v27  ;;  %v2552_v22 = vsel %vm2510_vm7, %v2489_v23, %v2531_v34  ;;  %2572 = vst.msk [vmem:[#allocation7 + $0x20] sm:$0xff] %vm178_vm1, %v2551_v25 }
 0x4bd   :  { %v2498_v53 = vadd.f32 %v6889_v12, %v2473_v15  ;;  %vm2514_vm11 = vcmp.ge.f32.partialorder %v2493_v27, 0.0  ;;  %v2536_v50 = vmul.f32 0.2, %v2494_v6  ;;  %v2553_v26 = vsel %vm2511_vm8, %v2490_v55, %v2532_v48  ;;  %2573 = vst.msk [vmem:[#allocation7 + $0x28] sm:$0xff] %vm178_vm1, %v2552_v22 }
 0x4be   :  { %v2499_v46 = vadd.f32 %v6889_v12, %v2474_v0  ;;  %vm2515_vm12 = vcmp.ge.f32.partialorder %v2494_v6, 0.0  ;;  %v2537_v44 = vmul.f32 0.2, %v2495_v56  ;;  %v2554_v28 = vsel %vm2512_vm9, %v2491_v8, %v2533_v20  ;;  %2574 = vst.msk [vmem:[#allocation7 + $0x30] sm:$0xff] %vm178_vm1, %v2553_v26 }
 0x4bf   :  { %v2500_v51 = vadd.f32 %v6889_v12, %v2475_v62  ;;  %vm2516_vm13 = vcmp.ge.f32.partialorder %v2495_v56, 0.0  ;;  %v2538_v30 = vmul.f32 0.2, %v2496_v21  ;;  %v2555_v31 = vsel %vm2513_vm10, %v2492_v13, %v2534_v4  ;;  %2575 = vst.msk [vmem:[#allocation7 + $0x38] sm:$0xff] %vm178_vm1, %v2554_v28 }
 0x4c0   :  { %v2501_v33 = vadd.f32 %v6889_v12, %v2476_v40  ;;  %vm2517_vm14 = vcmp.ge.f32.partialorder %v2496_v21, 0.0  ;;  %v2539_v35 = vmul.f32 0.2, %v2497_v11  ;;  %v2556_v36 = vsel %vm2514_vm11, %v2493_v27, %v2535_v43  ;;  %2576 = vst.msk [vmem:[#allocation7 + $0x40] sm:$0xff] %vm178_vm1, %v2555_v31 }
 0x4c1   :  { %v2502_v37 = vadd.f32 %v6889_v12, %v6880_v1  ;;  %vm2518_vm15 = vcmp.ge.f32.partialorder %v2497_v11, 0.0  ;;  %v2540_v38 = vmul.f32 0.2, %v2498_v53  ;;  %v2557_v5 = vsel %vm2515_vm12, %v2494_v6, %v2536_v50  ;;  %2577 = vst.msk [vmem:[#allocation7 + $0x48] sm:$0xff] %vm178_vm1, %v2556_v36 }
 0x4c2   :  { %v2503_v7 = vadd.f32 %v6889_v12, %v6882_v2  ;;  %vm2519_vm0 = vcmp.ge.f32.partialorder %v2498_v53, 0.0  ;;  %v2541_v41 = vmul.f32 0.2, %v2499_v46  ;;  %v2558_v42 = vsel %vm2516_vm13, %v2495_v56, %v2537_v44  ;;  %2578 = vst.msk [vmem:[#allocation7 + $0x50] sm:$0xff] %vm178_vm1, %v2557_v5 }
 0x4c3   :  { %v2504_v45 = vadd.f32 %v6889_v12, %v6884_v3  ;;  %vm2520_vm6 = vcmp.ge.f32.partialorder %v2499_v46, 0.0  ;;  %v2542_v47 = vmul.f32 0.2, %v2500_v51  ;;  %v2559_v49 = vsel %vm2517_vm14, %v2496_v21, %v2538_v30  ;;  %2579 = vst.msk [vmem:[#allocation7 + $0x58] sm:$0xff] %vm178_vm1, %v2558_v42 }
 0x4c4   :  { %vm2521_vm7 = vcmp.ge.f32.partialorder %v2500_v51, 0.0  ;;  %v2543_v52 = vmul.f32 0.2, %v2501_v33  ;;  %v2560_v54 = vsel %vm2518_vm15, %v2497_v11, %v2539_v35  ;;  %vm2522_vm8 = vcmp.ge.f32.partialorder %v2501_v33, 0.0  ;;  %2580 = vst.msk [vmem:[#allocation7 + $0x60] sm:$0xff] %vm178_vm1, %v2559_v49 }
 0x4c5   :  { %v2544_v57 = vmul.f32 0.2, %v2502_v37  ;;  %v2561_v14 = vsel %vm2519_vm0, %v2498_v53, %v2540_v38  ;;  %vm2523_vm9 = vcmp.ge.f32.partialorder %v2502_v37, 0.0  ;;  %v2545_v60 = vmul.f32 0.2, %v2503_v7  ;;  %2581 = vst.msk [vmem:[#allocation7 + $0x68] sm:$0xff] %vm178_vm1, %v2560_v54 }
 0x4c6   :  { %v2562_v15 = vsel %vm2520_vm6, %v2499_v46, %v2541_v41  ;;  %vm2524_vm10 = vcmp.ge.f32.partialorder %v2503_v7, 0.0  ;;  %v2546_v0 = vmul.f32 0.2, %v2504_v45  ;;  %v2563_v62 = vsel %vm2521_vm7, %v2500_v51, %v2542_v47  ;;  %2582 = vst.msk [vmem:[#allocation7 + $0x70] sm:$0xff] %vm178_vm1, %v2561_v14 }
 0x4c7   :  { %vm2525_vm11 = vcmp.ge.f32.partialorder %v2504_v45, 0.0  ;;  %v2564_v40 = vsel %vm2522_vm8, %v2501_v33, %v2543_v52  ;;  %v2565_v1 = vsel %vm2523_vm9, %v2502_v37, %v2544_v57  ;;  %2583 = vst.msk [vmem:[#allocation7 + $0x78] sm:$0xff] %vm178_vm1, %v2562_v15  ;;  %v2566_v2 = vsel %vm2524_vm10, %v2503_v7, %v2545_v60 }
 0x4c8   :  { %2584 = vst.msk [vmem:[#allocation7 + $0x80] sm:$0xff] %vm178_vm1, %v2563_v62  ;;  %v2567_v3 = vsel %vm2525_vm11, %v2504_v45, %v2546_v0 }
 0x4c9   :  { %2585 = vst.msk [vmem:[#allocation7 + $0x88] sm:$0xff] %vm178_vm1, %v2564_v40 }
 0x4ca   :  { %2586 = vst.msk [vmem:[#allocation7 + $0x90] sm:$0xff] %vm178_vm1, %v2565_v1 }
 0x4cb   :  { %2587 = vst.msk [vmem:[#allocation7 + $0x98] sm:$0xff] %vm178_vm1, %v2566_v2 }
 0x4cc   :  { %2588 = vst.msk [vmem:[#allocation7 + $0xa0] sm:$0x3] %vm184_vm2, %v2567_v3 }
 0x4cd LB: > { %s6951_s5 = sshll.u32 %s5696_s9, 3  ;;  %s2596_s18 = smul.u32 56, %s5696_s9  ;;  %s5696_s9 = sphi %s6945_s9, %s2594_s9  }
 0x4ce   : > { %s2644_s29 = sadd.s32 1, %s6951_s5  ;;  %s6958_s15 = scalar_lea.vmem [#allocation4], %s6951_s5 }
 0x4cf   : > { %s2597_s20 = sld [smem:[#allocation9 + %s2596_s18]]  ;;  %s2602_s4 = sadd.s32 1, %s2596_s18 }
 0x4d0   : > { %s2603_s2 = sld [smem:[#allocation9 + %s2602_s4]]  ;;  %s2609_s22 = sadd.s32 2, %s2596_s18 }
 0x4d1   : > { %s2610_s23 = sld [smem:[#allocation9 + %s2609_s22]]  ;;  %s2616_s17 = sadd.s32 3, %s2596_s18 }
 0x4d2   : > { %s2617_s25 = sld [smem:[#allocation9 + %s2616_s17]]  ;;  %s2623_s27 = sadd.s32 4, %s2596_s18 }
 0x4d3   : > { %s2624_s3 = sld [smem:[#allocation9 + %s2623_s27]]  ;;  %s2630_s1 = sadd.s32 5, %s2596_s18 }
 0x4d4   : > { %s2631_s28 = sld [smem:[#allocation9 + %s2630_s1]]  ;;  %s2637_s0 = sadd.s32 6, %s2596_s18 }
 0x4d5   : > { %s2638_s26 = sld [smem:[#allocation9 + %s2637_s0]]  ;;  %s2598_s21 = scalar_lea.vmem [#allocation7], %s2597_s20 }
 0x4d6   : > { %v2599_v12 = vld [vmem:[%s2598_s21] sm:$0x1]  ;;  %s6955_s7 = smul.u32 7, %s2644_s29  ;;  %s2604_s16 = scalar_lea.vmem [#allocation7], %s2603_s2 }
 0x4d7   : > { %2601 = vst.msk [vmem:[%s6958_s15] sm:$0x1] %vm335_vm3, %v2599_v12  ;;  %v2605_v24 = vld [vmem:[%s2604_s16] sm:$0x1]  ;;  %s2693_s14 = sadd.s32 2, %s6951_s5  ;;  %s2611_s30 = scalar_lea.vmem [#allocation7], %s2610_s23 }
 0x4d8   : > { %5305 = vst.msk [vmem:[%s6958_s15 + $0xa8] sm:$0x1] %vm335_vm3, %v2605_v24  ;;  %v2612_v58 = vld [vmem:[%s2611_s30] sm:$0x1]  ;;  %s2646_s19 = sld [smem:[#allocation9 + %s6955_s7]]  ;;  %s2618_s8 = scalar_lea.vmem [#allocation7], %s2617_s25 }
 0x4d9   : > { %5307 = vst.msk [vmem:[%s6958_s15 + $0x150] sm:$0x1] %vm335_vm3, %v2612_v58  ;;  %v2619_v29 = vld [vmem:[%s2618_s8] sm:$0x1]  ;;  %s2651_s24 = sadd.s32 1, %s6955_s7  ;;  %s2625_s18 = scalar_lea.vmem [#allocation7], %s2624_s3 }
 0x4da   : > { %5309 = vst.msk [vmem:[%s6958_s15 + $0x1f8] sm:$0x1] %vm335_vm3, %v2619_v29  ;;  %v2626_v32 = vld [vmem:[%s2625_s18] sm:$0x1]  ;;  %s2652_s29 = sld [smem:[#allocation9 + %s2651_s24]]  ;;  %s2632_s20 = scalar_lea.vmem [#allocation7], %s2631_s28 }
 0x4db   : > { %5311 = vst.msk [vmem:[%s6958_s15 + $0x2a0] sm:$0x1] %vm335_vm3, %v2626_v32  ;;  %v2633_v61 = vld [vmem:[%s2632_s20] sm:$0x1]  ;;  %s2658_s4 = sadd.s32 2, %s6955_s7  ;;  %s2639_s2 = scalar_lea.vmem [#allocation7], %s2638_s26 }
 0x4dc   : > { %5313 = vst.msk [vmem:[%s6958_s15 + $0x348] sm:$0x1] %vm335_vm3, %v2633_v61  ;;  %v2640_v9 = vld [vmem:[%s2639_s2] sm:$0x1]  ;;  %s2659_s22 = sld [smem:[#allocation9 + %s2658_s4]]  ;;  %s2665_s23 = sadd.s32 3, %s6955_s7 }
 0x4dd   : > { %5315 = vst.msk [vmem:[%s6958_s15 + $0x3f0] sm:$0x1] %vm335_vm3, %v2640_v9  ;;  %s2666_s17 = sld [smem:[#allocation9 + %s2665_s23]]  ;;  %s2672_s25 = sadd.s32 4, %s6955_s7 }
 0x4de   : > { %s2673_s27 = sld [smem:[#allocation9 + %s2672_s25]]  ;;  %s2647_s3 = scalar_lea.vmem [#allocation7], %s2646_s19 }
 0x4df   : > { %v2648_v23 = vld [vmem:[%s2647_s3] sm:$0x1]  ;;  %s2679_s1 = sadd.s32 5, %s6955_s7  ;;  %s2686_s28 = sadd.s32 6, %s6955_s7 }
 0x4e0   : > { %5317 = vst.msk [vmem:[%s6958_s15 + $0x1] sm:$0x1] %vm335_vm3, %v2648_v23  ;;  %s2680_s0 = sld [smem:[#allocation9 + %s2679_s1]]  ;;  %s2653_s26 = scalar_lea.vmem [#allocation7], %s2652_s29 }
 0x4e1   : > { %v2654_v10 = vld [vmem:[%s2653_s26] sm:$0x1]  ;;  %s2687_s21 = sld [smem:[#allocation9 + %s2686_s28]]  ;;  %s6986_s16 = smul.u32 7, %s2693_s14 }
 0x4e2   : > { %5319 = vst.msk [vmem:[%s6958_s15 + $0xa9] sm:$0x1] %vm335_vm3, %v2654_v10  ;;  %s2742_s30 = sadd.s32 3, %s6951_s5  ;;  %s2660_s19 = scalar_lea.vmem [#allocation7], %s2659_s22 }
 0x4e3   : > { %v2661_v55 = vld [vmem:[%s2660_s19] sm:$0x1]  ;;  %s2695_s7 = sld [smem:[#allocation9 + %s6986_s16]]  ;;  %s2667_s8 = scalar_lea.vmem [#allocation7], %s2666_s17 }
 0x4e4   : > { %5321 = vst.msk [vmem:[%s6958_s15 + $0x151] sm:$0x1] %vm335_vm3, %v2661_v55  ;;  %v2668_v59 = vld [vmem:[%s2667_s8] sm:$0x1]  ;;  %s2700_s24 = sadd.s32 1, %s6986_s16  ;;  %s2674_s14 = scalar_lea.vmem [#allocation7], %s2673_s27 }
 0x4e5   : > { %5323 = vst.msk [vmem:[%s6958_s15 + $0x1f9] sm:$0x1] %vm335_vm3, %v2668_v59  ;;  %v2675_v8 = vld [vmem:[%s2674_s14] sm:$0x1]  ;;  %s2701_s18 = sld [smem:[#allocation9 + %s2700_s24]]  ;;  %s2707_s29 = sadd.s32 2, %s6986_s16 }
 0x4e6   : > { %5325 = vst.msk [vmem:[%s6958_s15 + $0x2a1] sm:$0x1] %vm335_vm3, %v2675_v8  ;;  %s2708_s20 = sld [smem:[#allocation9 + %s2707_s29]]  ;;  %s2681_s4 = scalar_lea.vmem [#allocation7], %s2680_s0 }
 0x4e7   : > { %v2682_v16 = vld [vmem:[%s2681_s4] sm:$0x1]  ;;  %s2714_s2 = sadd.s32 3, %s6986_s16  ;;  %s2688_s22 = scalar_lea.vmem [#allocation7], %s2687_s21 }
 0x4e8   : > { %5327 = vst.msk [vmem:[%s6958_s15 + $0x349] sm:$0x1] %vm335_vm3, %v2682_v16  ;;  %v2689_v13 = vld [vmem:[%s2688_s22] sm:$0x1]  ;;  %s2715_s23 = sld [smem:[#allocation9 + %s2714_s2]]  ;;  %s2721_s17 = sadd.s32 4, %s6986_s16 }
 0x4e9   : > { %5329 = vst.msk [vmem:[%s6958_s15 + $0x3f1] sm:$0x1] %vm335_vm3, %v2689_v13  ;;  %s2722_s25 = sld [smem:[#allocation9 + %s2721_s17]]  ;;  %s2696_s27 = scalar_lea.vmem [#allocation7], %s2695_s7 }
 0x4ea   : > { %v2697_v17 = vld [vmem:[%s2696_s27] sm:$0x1]  ;;  %s2728_s3 = sadd.s32 5, %s6986_s16  ;;  %s2735_s1 = sadd.s32 6, %s6986_s16 }
 0x4eb   : > { %5331 = vst.msk [vmem:[%s6958_s15 + $0x2] sm:$0x1] %vm335_vm3, %v2697_v17  ;;  %s2729_s28 = sld [smem:[#allocation9 + %s2728_s3]]  ;;  %s2702_s0 = scalar_lea.vmem [#allocation7], %s2701_s18 }
 0x4ec   : > { %v2703_v19 = vld [vmem:[%s2702_s0] sm:$0x1]  ;;  %s2736_s26 = sld [smem:[#allocation9 + %s2735_s1]]  ;;  %s2709_s21 = scalar_lea.vmem [#allocation7], %s2708_s20 }
 0x4ed   : > { %5333 = vst.msk [vmem:[%s6958_s15 + $0xaa] sm:$0x1] %vm335_vm3, %v2703_v19  ;;  %v2710_v27 = vld [vmem:[%s2709_s21] sm:$0x1]  ;;  %s7014_s19 = smul.u32 7, %s2742_s30  ;;  %s2791_s7 = sadd.s32 4, %s6951_s5 }
 0x4ee   : > { %5335 = vst.msk [vmem:[%s6958_s15 + $0x152] sm:$0x1] %vm335_vm3, %v2710_v27  ;;  %s7019_s16 = smul.u32 7, %s2791_s7  ;;  %s2716_s8 = scalar_lea.vmem [#allocation7], %s2715_s23 }
 0x4ef   : > { %v2717_v34 = vld [vmem:[%s2716_s8] sm:$0x1]  ;;  %s2744_s24 = sld [smem:[#allocation9 + %s7014_s19]]  ;;  %s2723_s14 = scalar_lea.vmem [#allocation7], %s2722_s25 }
 0x4f0   : > { %5337 = vst.msk [vmem:[%s6958_s15 + $0x1fa] sm:$0x1] %vm335_vm3, %v2717_v34  ;;  %v2724_v39 = vld [vmem:[%s2723_s14] sm:$0x1]  ;;  %s2749_s30 = sadd.s32 1, %s7014_s19  ;;  %s2756_s18 = sadd.s32 2, %s7014_s19 }
 0x4f1   : > { %5339 = vst.msk [vmem:[%s6958_s15 + $0x2a2] sm:$0x1] %vm335_vm3, %v2724_v39  ;;  %s2750_s29 = sld [smem:[#allocation9 + %s2749_s30]]  ;;  %s2730_s20 = scalar_lea.vmem [#allocation7], %s2729_s28 }
 0x4f2   : > { %v2731_v6 = vld [vmem:[%s2730_s20] sm:$0x1]  ;;  %s2757_s4 = sld [smem:[#allocation9 + %s2756_s18]]  ;;  %s2737_s2 = scalar_lea.vmem [#allocation7], %s2736_s26 }
 0x4f3   : > { %5341 = vst.msk [vmem:[%s6958_s15 + $0x34a] sm:$0x1] %vm335_vm3, %v2731_v6  ;;  %v2738_v48 = vld [vmem:[%s2737_s2] sm:$0x1]  ;;  %s2763_s22 = sadd.s32 3, %s7014_s19  ;;  %s2770_s23 = sadd.s32 4, %s7014_s19 }
 0x4f4   : > { %5343 = vst.msk [vmem:[%s6958_s15 + $0x3f2] sm:$0x1] %vm335_vm3, %v2738_v48  ;;  %s2764_s17 = sld [smem:[#allocation9 + %s2763_s22]]  ;;  %s2777_s25 = sadd.s32 5, %s7014_s19 }
 0x4f5   : > { %s2771_s27 = sld [smem:[#allocation9 + %s2770_s23]]  ;;  %s2745_s3 = scalar_lea.vmem [#allocation7], %s2744_s24 }
 0x4f6   : > { %v2746_v18 = vld [vmem:[%s2745_s3] sm:$0x1]  ;;  %s2778_s1 = sld [smem:[#allocation9 + %s2777_s25]]  ;;  %s2784_s28 = sadd.s32 6, %s7014_s19 }
 0x4f7   : > { %5345 = vst.msk [vmem:[%s6958_s15 + $0x3] sm:$0x1] %vm335_vm3, %v2746_v18  ;;  %s2785_s0 = sld [smem:[#allocation9 + %s2784_s28]]  ;;  %s2751_s26 = scalar_lea.vmem [#allocation7], %s2750_s29 }
 0x4f8   : > { %v2752_v56 = vld [vmem:[%s2751_s26] sm:$0x1]  ;;  %s2793_s21 = sld [smem:[#allocation9 + %s7019_s16]]  ;;  %s2758_s7 = scalar_lea.vmem [#allocation7], %s2757_s4 }
 0x4f9   : > { %5347 = vst.msk [vmem:[%s6958_s15 + $0xab] sm:$0x1] %vm335_vm3, %v2752_v56  ;;  %v2759_v20 = vld [vmem:[%s2758_s7] sm:$0x1]  ;;  %s2798_s8 = sadd.s32 1, %s7019_s16  ;;  %s2805_s14 = sadd.s32 2, %s7019_s16 }
 0x4fa   : > { %5349 = vst.msk [vmem:[%s6958_s15 + $0x153] sm:$0x1] %vm335_vm3, %v2759_v20  ;;  %s2799_s19 = sld [smem:[#allocation9 + %s2798_s8]]  ;;  %s2765_s24 = scalar_lea.vmem [#allocation7], %s2764_s17 }
 0x4fb   : > { %v2766_v63 = vld [vmem:[%s2765_s24] sm:$0x1]  ;;  %s2806_s30 = sld [smem:[#allocation9 + %s2805_s14]]  ;;  %s2772_s18 = scalar_lea.vmem [#allocation7], %s2771_s27 }
 0x4fc   : > { %5351 = vst.msk [vmem:[%s6958_s15 + $0x1fb] sm:$0x1] %vm335_vm3, %v2766_v63  ;;  %v2773_v21 = vld [vmem:[%s2772_s18] sm:$0x1]  ;;  %s2812_s29 = sadd.s32 3, %s7019_s16  ;;  %s2779_s20 = scalar_lea.vmem [#allocation7], %s2778_s1 }
 0x4fd   : > { %5353 = vst.msk [vmem:[%s6958_s15 + $0x2a3] sm:$0x1] %vm335_vm3, %v2773_v21  ;;  %v2780_v4 = vld [vmem:[%s2779_s20] sm:$0x1]  ;;  %s2813_s4 = sld [smem:[#allocation9 + %s2812_s29]]  ;;  %s2786_s2 = scalar_lea.vmem [#allocation7], %s2785_s0 }
 0x4fe   : > { %5355 = vst.msk [vmem:[%s6958_s15 + $0x34b] sm:$0x1] %vm335_vm3, %v2780_v4  ;;  %v2787_v25 = vld [vmem:[%s2786_s2] sm:$0x1]  ;;  %s2819_s22 = sadd.s32 4, %s7019_s16  ;;  %s2794_s23 = scalar_lea.vmem [#allocation7], %s2793_s21 }
 0x4ff   : > { %5357 = vst.msk [vmem:[%s6958_s15 + $0x3f3] sm:$0x1] %vm335_vm3, %v2787_v25  ;;  %v2795_v11 = vld [vmem:[%s2794_s23] sm:$0x1]  ;;  %s2820_s17 = sld [smem:[#allocation9 + %s2819_s22]]  ;;  %s2826_s25 = sadd.s32 5, %s7019_s16 }
 0x500   : > { %5359 = vst.msk [vmem:[%s6958_s15 + $0x4] sm:$0x1] %vm335_vm3, %v2795_v11  ;;  %s2827_s27 = sld [smem:[#allocation9 + %s2826_s25]]  ;;  %s2800_s3 = scalar_lea.vmem [#allocation7], %s2799_s19 }
 0x501   : > { %v2801_v43 = vld [vmem:[%s2800_s3] sm:$0x1]  ;;  %s2833_s1 = sadd.s32 6, %s7019_s16  ;;  %s2807_s28 = scalar_lea.vmem [#allocation7], %s2806_s30 }
 0x502   : > { %5361 = vst.msk [vmem:[%s6958_s15 + $0xac] sm:$0x1] %vm335_vm3, %v2801_v43  ;;  %v2808_v22 = vld [vmem:[%s2807_s28] sm:$0x1]  ;;  %s2834_s0 = sld [smem:[#allocation9 + %s2833_s1]]  ;;  %s2840_s26 = sadd.s32 5, %s6951_s5 }
 0x503   : > { %5363 = vst.msk [vmem:[%s6958_s15 + $0x154] sm:$0x1] %vm335_vm3, %v2808_v22  ;;  %s7064_s21 = smul.u32 7, %s2840_s26  ;;  %s2814_s7 = scalar_lea.vmem [#allocation7], %s2813_s4 }
 0x504   : > { %v2815_v53 = vld [vmem:[%s2814_s7] sm:$0x1]  ;;  %s2889_s8 = sadd.s32 6, %s6951_s5  ;;  %s2938_s16 = sadd.s32 7, %s6951_s5 }
 0x505   : > { %5365 = vst.msk [vmem:[%s6958_s15 + $0x1fc] sm:$0x1] %vm335_vm3, %v2815_v53  ;;  %s2842_s14 = sld [smem:[#allocation9 + %s7064_s21]]  ;;  %s2821_s19 = scalar_lea.vmem [#allocation7], %s2820_s17 }
 0x506   : > { %v2822_v50 = vld [vmem:[%s2821_s19] sm:$0x1]  ;;  %s2847_s24 = sadd.s32 1, %s7064_s21  ;;  %s2828_s30 = scalar_lea.vmem [#allocation7], %s2827_s27 }
 0x507   : > { %5367 = vst.msk [vmem:[%s6958_s15 + $0x2a4] sm:$0x1] %vm335_vm3, %v2822_v50  ;;  %v2829_v26 = vld [vmem:[%s2828_s30] sm:$0x1]  ;;  %s2848_s18 = sld [smem:[#allocation9 + %s2847_s24]]  ;;  %s2854_s29 = sadd.s32 2, %s7064_s21 }
 0x508   : > { %5369 = vst.msk [vmem:[%s6958_s15 + $0x34c] sm:$0x1] %vm335_vm3, %v2829_v26  ;;  %s2855_s20 = sld [smem:[#allocation9 + %s2854_s29]]  ;;  %s2835_s4 = scalar_lea.vmem [#allocation7], %s2834_s0 }
 0x509   : > { %v2836_v46 = vld [vmem:[%s2835_s4] sm:$0x1]  ;;  %s2861_s2 = sadd.s32 3, %s7064_s21  ;;  %s2868_s22 = sadd.s32 4, %s7064_s21 }
 0x50a   : > { %5371 = vst.msk [vmem:[%s6958_s15 + $0x3f4] sm:$0x1] %vm335_vm3, %v2836_v46  ;;  %s2862_s23 = sld [smem:[#allocation9 + %s2861_s2]]  ;;  %s2875_s17 = sadd.s32 5, %s7064_s21 }
 0x50b   : > { %s2869_s25 = sld [smem:[#allocation9 + %s2868_s22]]  ;;  %s2843_s27 = scalar_lea.vmem [#allocation7], %s2842_s14 }
 0x50c   : > { %v2844_v44 = vld [vmem:[%s2843_s27] sm:$0x1]  ;;  %s2876_s3 = sld [smem:[#allocation9 + %s2875_s17]]  ;;  %s2882_s1 = sadd.s32 6, %s7064_s21 }
 0x50d   : > { %5373 = vst.msk [vmem:[%s6958_s15 + $0x5] sm:$0x1] %vm335_vm3, %v2844_v44  ;;  %s2883_s28 = sld [smem:[#allocation9 + %s2882_s1]]  ;;  %s2849_s0 = scalar_lea.vmem [#allocation7], %s2848_s18 }
 0x50e   : > { %v2850_v28 = vld [vmem:[%s2849_s0] sm:$0x1]  ;;  %s7087_s26 = smul.u32 7, %s2889_s8  ;;  %s2856_s7 = scalar_lea.vmem [#allocation7], %s2855_s20 }
 0x50f   : > { %5375 = vst.msk [vmem:[%s6958_s15 + $0xad] sm:$0x1] %vm335_vm3, %v2850_v28  ;;  %v2857_v51 = vld [vmem:[%s2856_s7] sm:$0x1]  ;;  %s7093_s14 = smul.u32 7, %s2938_s16  ;;  %s2594_s9 = sadd.s32 1, %s5696_s9  }
 0x510   : > { %5377 = vst.msk [vmem:[%s6958_s15 + $0x155] sm:$0x1] %vm335_vm3, %v2857_v51  ;;  %s2891_s21 = sld [smem:[#allocation9 + %s7087_s26]]  ;;  %s2863_s19 = scalar_lea.vmem [#allocation7], %s2862_s23 }
 0x511   : > { %v2864_v30 = vld [vmem:[%s2863_s19] sm:$0x1]  ;;  %s2896_s8 = sadd.s32 1, %s7087_s26  ;;  %s2870_s24 = scalar_lea.vmem [#allocation7], %s2869_s25 }
 0x512   : > { %5379 = vst.msk [vmem:[%s6958_s15 + $0x1fd] sm:$0x1] %vm335_vm3, %v2864_v30  ;;  %v2871_v31 = vld [vmem:[%s2870_s24] sm:$0x1]  ;;  %s2897_s30 = sld [smem:[#allocation9 + %s2896_s8]]  ;;  %s2877_s5 = scalar_lea.vmem [#allocation7], %s2876_s3 }
 0x513   : > { %5381 = vst.msk [vmem:[%s6958_s15 + $0x2a5] sm:$0x1] %vm335_vm3, %v2871_v31  ;;  %v2878_v33 = vld [vmem:[%s2877_s5] sm:$0x1]  ;;  %s2903_s16 = sadd.s32 2, %s7087_s26  ;;  %s2884_s18 = scalar_lea.vmem [#allocation7], %s2883_s28 }
 0x514   : > { %5383 = vst.msk [vmem:[%s6958_s15 + $0x34d] sm:$0x1] %vm335_vm3, %v2878_v33  ;;  %v2885_v35 = vld [vmem:[%s2884_s18] sm:$0x1]  ;;  %s2904_s29 = sld [smem:[#allocation9 + %s2903_s16]]  ;;  %s2910_s20 = sadd.s32 3, %s7087_s26 }
 0x515   : > { %5385 = vst.msk [vmem:[%s6958_s15 + $0x3f5] sm:$0x1] %vm335_vm3, %v2885_v35  ;;  %s2911_s4 = sld [smem:[#allocation9 + %s2910_s20]]  ;;  %s2917_s2 = sadd.s32 4, %s7087_s26 }
 0x516   : > { %s2918_s22 = sld [smem:[#allocation9 + %s2917_s2]]  ;;  %s2892_s23 = scalar_lea.vmem [#allocation7], %s2891_s21 }
 0x517   : > { %v2893_v36 = vld [vmem:[%s2892_s23] sm:$0x1]  ;;  %s2924_s17 = sadd.s32 5, %s7087_s26  ;;  %s2931_s25 = sadd.s32 6, %s7087_s26 }
 0x518   : > { %5387 = vst.msk [vmem:[%s6958_s15 + $0x6] sm:$0x1] %vm335_vm3, %v2893_v36  ;;  %s2925_s27 = sld [smem:[#allocation9 + %s2924_s17]]  ;;  %s2898_s3 = scalar_lea.vmem [#allocation7], %s2897_s30 }
 0x519   : > { %v2899_v37 = vld [vmem:[%s2898_s3] sm:$0x1]  ;;  %s2932_s1 = sld [smem:[#allocation9 + %s2931_s25]]  ;;  %s2945_s28 = sadd.s32 1, %s7093_s14 }
 0x51a   : > { %5389 = vst.msk [vmem:[%s6958_s15 + $0xae] sm:$0x1] %vm335_vm3, %v2899_v37  ;;  %s2940_s0 = sld [smem:[#allocation9 + %s7093_s14]]  ;;  %s2905_s7 = scalar_lea.vmem [#allocation7], %s2904_s29 }
 0x51b   : > { %v2906_v38 = vld [vmem:[%s2905_s7] sm:$0x1]  ;;  %s2946_s21 = sld [smem:[#allocation9 + %s2945_s28]]  ;;  %s2912_s26 = scalar_lea.vmem [#allocation7], %s2911_s4 }
 0x51c   : > { %5391 = vst.msk [vmem:[%s6958_s15 + $0x156] sm:$0x1] %vm335_vm3, %v2906_v38  ;;  %v2913_v5 = vld [vmem:[%s2912_s26] sm:$0x1]  ;;  %s2952_s19 = sadd.s32 2, %s7093_s14  ;;  %s2919_s8 = scalar_lea.vmem [#allocation7], %s2918_s22 }
 0x51d   : > { %5393 = vst.msk [vmem:[%s6958_s15 + $0x1fe] sm:$0x1] %vm335_vm3, %v2913_v5  ;;  %v2920_v7 = vld [vmem:[%s2919_s8] sm:$0x1]  ;;  %s2953_s24 = sld [smem:[#allocation9 + %s2952_s19]]  ;;  %s2959_s30 = sadd.s32 3, %s7093_s14 }
 0x51e   : > { %5395 = vst.msk [vmem:[%s6958_s15 + $0x2a6] sm:$0x1] %vm335_vm3, %v2920_v7  ;;  %s2960_s5 = sld [smem:[#allocation9 + %s2959_s30]]  ;;  %s2926_s16 = scalar_lea.vmem [#allocation7], %s2925_s27 }
 0x51f   : > { %v2927_v41 = vld [vmem:[%s2926_s16] sm:$0x1]  ;;  %s2966_s18 = sadd.s32 4, %s7093_s14  ;;  %s2933_s29 = scalar_lea.vmem [#allocation7], %s2932_s1 }
 0x520   : > { %5397 = vst.msk [vmem:[%s6958_s15 + $0x34e] sm:$0x1] %vm335_vm3, %v2927_v41  ;;  %v2934_v42 = vld [vmem:[%s2933_s29] sm:$0x1]  ;;  %s2967_s20 = sld [smem:[#allocation9 + %s2966_s18]]  ;;  %s2941_s4 = scalar_lea.vmem [#allocation7], %s2940_s0 }
 0x521   : > { %5399 = vst.msk [vmem:[%s6958_s15 + $0x3f6] sm:$0x1] %vm335_vm3, %v2934_v42  ;;  %v2942_v45 = vld [vmem:[%s2941_s4] sm:$0x1]  ;;  %s2973_s2 = sadd.s32 5, %s7093_s14  ;;  %s2947_s22 = scalar_lea.vmem [#allocation7], %s2946_s21 }
 0x522   : > { %5401 = vst.msk [vmem:[%s6958_s15 + $0x7] sm:$0x1] %vm335_vm3, %v2942_v45  ;;  %v2948_v47 = vld [vmem:[%s2947_s22] sm:$0x1]  ;;  %s2974_s23 = sld [smem:[#allocation9 + %s2973_s2]]  ;;  %s2980_s17 = sadd.s32 6, %s7093_s14 }
 0x523   : > { %5403 = vst.msk [vmem:[%s6958_s15 + $0xaf] sm:$0x1] %vm335_vm3, %v2948_v47  ;;  %s2981_s25 = sld [smem:[#allocation9 + %s2980_s17]]  ;;  %s2954_s27 = scalar_lea.vmem [#allocation7], %s2953_s24 }
 0x524   : > { %v2955_v49 = vld [vmem:[%s2954_s27] sm:$0x1]  ;;  %s2961_s3 = scalar_lea.vmem [#allocation7], %s2960_s5  ;;  %p2591_p3 = scmp.ge.s32.totalorder %s2594_s9, 20  }
 0x525   : > { %5405 = vst.msk [vmem:[%s6958_s15 + $0x157] sm:$0x1] %vm335_vm3, %v2955_v49  ;;  %v2962_v52 = vld [vmem:[%s2961_s3] sm:$0x1]  ;;  %s7845_s0 = smov (%p2591_p3), 64   ;;  %s7846_s9 = smov (%p2591_p3), 96  }
 0x526   : > { %5407 = vst.msk [vmem:[%s6958_s15 + $0x1ff] sm:$0x1] %vm335_vm3, %v2962_v52  ;;  %s2968_s1 = scalar_lea.vmem [#allocation7], %s2967_s20  ;;  %v5552_v56 = vld [vmem:[%s7833_s10 + $0x38] sm:$0xff] (%p2591_p3)  ;;  %v5551_v4 = vld [vmem:[%s7833_s10 + $0x30] sm:$0xff] (%p2591_p3)  ;;  %v5550_v43 = vld [vmem:[%s7833_s10 + $0x28] sm:$0xff] (%p2591_p3) }
 0x527   : > { %v2969_v54 = vld [vmem:[%s2968_s1] sm:$0x1]  ;;  %2593 = sbr.rel (!%p2591_p3) target bundleno = 1229 (0x4cd), region = 421  ;;  %3971 = vmatpush.bf16.msrb.mxu2 (%p2591_p3), %v5552_v56  ;;  %v5548_v51 = vld [vmem:[%s7833_s10 + $0x18] sm:$0xff] (%p2591_p3)  ;;  %v5558_v30 = vld [vmem:[%s7833_s10 + $0x68] sm:$0xff] (%p2591_p3)  ;;  %vm3316_vm12 = vcmask (%p2591_p3), 785920  }
 0x528   : > { %5409 = vst.msk [vmem:[%s6958_s15 + $0x2a7] sm:$0x1] %vm335_vm3, %v2969_v54  ;;  %s2975_s28 = scalar_lea.vmem [#allocation7], %s2974_s23  ;;  %v5549_v26 = vld [vmem:[%s7833_s10 + $0x20] sm:$0xff] (%p2591_p3)  ;;  %4036 = vmatpush.bf16.msrb.mxu3 (%p2591_p3), %v5558_v30  ;;  %v5547_v36 = vld [vmem:[%s7833_s10 + $0x10] sm:$0xff] (%p2591_p3)  ;;  %v5546_v5 = vld [vmem:[%s7833_s10 + $0x8] sm:$0xff] (%p2591_p3) }
 0x529   : > { %v2976_v57 = vld [vmem:[%s2975_s28] sm:$0x1]  ;;  %s2982_s14 = scalar_lea.vmem [#allocation7], %s2981_s25  ;;  %v5556_v7 = vld [vmem:[%s7833_s10 + $0x58] sm:$0xff] (%p2591_p3)  ;;  %v5555_v49 = vld [vmem:[%s7833_s10 + $0x50] sm:$0xff] (%p2591_p3)  ;;  %vm3444_vm13 = vcmask (%p2591_p3), 1048320  }
 0x52a   : > { %5411 = vst.msk [vmem:[%s6958_s15 + $0x34f] sm:$0x1] %vm335_vm3, %v2976_v57  ;;  %v2983_v14 = vld [vmem:[%s2982_s14] sm:$0x1]  ;;  %vm3937_vm14 = vcmask (%p2591_p3), 785408   ;;  %s7340_s19 = sld [smem:[#allocation9 + $0x468]] (%p2591_p3) }
 0x52b   : > { %5413 = vst.msk [vmem:[%s6958_s15 + $0x3f7] sm:$0x1] %vm335_vm3, %v2983_v14  ;;  %3972 = vmatpush.bf16.msrb.mxu2 (%p2591_p3), %v5551_v4  ;;  %v5557_v37 = vld [vmem:[%s7833_s10 + $0x60] sm:$0xff] (%p2591_p3)  ;;  %s7345_s8 = sld [smem:[#allocation9 + $0x463]] (%p2591_p3) }
 0x52c   :  { %4037 = vmatpush.bf16.msrb.mxu3 %v5557_v37  ;;  %v5545_v47 = vld [vmem:[%s7833_s10] sm:$0xff]  ;;  %s7348_s24 = sld [smem:[#allocation9 + $0x46a]] }
 0x52d   :  { %s7357_s5 = sld [smem:[#allocation9 + $0x465]] }
 0x52e   :  { %s5426_s18 = sld [smem:[#allocation9 + $0x46c]] }
 0x52f   :  { %3973 = vmatpush.bf16.msrb.mxu2 %v5550_v43  ;;  %s7383_s22 = sld [smem:[#allocation9 + $0x462]] }
 0x530   :  { %4038 = vmatpush.bf16.msrb.mxu3 %v5556_v7  ;;  %s3020_s16 = scalar_lea.vmem [#allocation7], %s7340_s19  ;;  %s7386_s23 = sld [smem:[#allocation9 + $0x469]] }
 0x531   :  { %s3000_s29 = scalar_lea.vmem [#allocation7], %s7345_s8  ;;  %s7399_s17 = sld [smem:[#allocation9 + $0x466]] }
 0x532   :  { %v3211_v60 = vld [vmem:[#allocation4 + $0x150] sm:$0xff]  ;;  %v3085_v15 = vld [vmem:[#allocation4 + $0xa8] sm:$0xff]  ;;  %v3212_v62 = vld [vmem:[#allocation4 + $0x158] sm:$0xff]  ;;  %s3028_s20 = scalar_lea.vmem [#allocation7], %s7348_s24  ;;  %s5427_s3 = sld [smem:[#allocation9 + $0x46d]] }
 0x533   :  { %3253 = vrot.lane.b32.xlu1 %v3211_v60, %s7845_s0  ;;  %3127 = vrot.lane.b32.xlu0 %v3085_v15, %s5703_s6  ;;  %v3509_v0 = vld [vmem:[#allocation4 + $0x348] sm:$0xff]  ;;  %v3086_v40 = vld [vmem:[#allocation4 + $0xb0] sm:$0xff]  ;;  %v3340_v2 = vld [vmem:[#allocation4 + $0x200] sm:$0xff]  ;;  %s3008_s4 = scalar_lea.vmem [#allocation7], %s7357_s5  ;;  %s5425_s15 = sld [smem:[#allocation9 + $0x46b]] }
 0x534   :  { %3551 = vrot.lane.b32.xlu2 %v3509_v0, %s5703_s6  ;;  %v3510_v1 = vld [vmem:[#allocation4 + $0x350] sm:$0xff]  ;;  %v3339_v3 = vld [vmem:[#allocation4 + $0x1f8] sm:$0xff]  ;;  %v3088_v29 = vld [vmem:[#allocation4 + $0xc0] sm:$0xff]  ;;  %3974 = vmatpush.bf16.msrb.mxu2 %v5549_v26  ;;  %s3036_s2 = scalar_lea.vmem [#allocation7], %s5426_s18  ;;  %s5418_s7 = sld [smem:[#allocation9 + $0x464]] }
 0x535   :  { %v3635_v12 = vld [vmem:[#allocation4 + $0x3f0] sm:$0xff]  ;;  %v3087_v24 = vld [vmem:[#allocation4 + $0xb8] sm:$0xff]  ;;  %v3214_v32 = vld [vmem:[#allocation4 + $0x168] sm:$0xff]  ;;  %4039 = vmatpush.bf16.msrb.mxu3 %v5555_v49  ;;  %s2996_s25 = scalar_lea.vmem [#allocation7], %s7383_s22 }
 0x536   :  { %v3636_v58 = vld [vmem:[#allocation4 + $0x3f8] sm:$0xff]  ;;  %v3213_v61 = vld [vmem:[#allocation4 + $0x160] sm:$0xff]  ;;  %v3341_v23 = vld [vmem:[#allocation4 + $0x208] sm:$0xff]  ;;  %s3024_s27 = scalar_lea.vmem [#allocation7], %s7386_s23 }
 0x537   :  { %v3511_v9 = vld [vmem:[#allocation4 + $0x358] sm:$0xff]  ;;  %v3512_v10 = vld [vmem:[#allocation4 + $0x360] sm:$0xff]  ;;  %v3342_v55 = vld [vmem:[#allocation4 + $0x210] sm:$0xff]  ;;  %s3012_s1 = scalar_lea.vmem [#allocation7], %s7399_s17 }
 0x538   :  { %v3638_v59 = vld [vmem:[#allocation4 + $0x408] sm:$0xff]  ;;  %v3637_v8 = vld [vmem:[#allocation4 + $0x400] sm:$0xff]  ;;  %v3215_v13 = vld [vmem:[#allocation4 + $0x170] sm:$0xff]  ;;  %3975 = vmatpush.bf16.msrb.mxu2 %v5548_v51  ;;  %s3040_s28 = scalar_lea.vmem [#allocation7], %s5427_s3 }
 0x539   :  { %v3089_v16 = vld [vmem:[#allocation4 + $0xc8] sm:$0xff]  ;;  %v3090_v17 = vld [vmem:[#allocation4 + $0xd0] sm:$0xff]  ;;  %v3216_v19 = vld [vmem:[#allocation4 + $0x178] sm:$0xff]  ;;  %s3032_s21 = scalar_lea.vmem [#allocation7], %s5425_s15 }
 0x53a   :  { %v3514_v27 = vld [vmem:[#allocation4 + $0x370] sm:$0xff]  ;;  %v3513_v34 = vld [vmem:[#allocation4 + $0x368] sm:$0xff]  ;;  %v3343_v39 = vld [vmem:[#allocation4 + $0x218] sm:$0xff]  ;;  %s3004_s26 = scalar_lea.vmem [#allocation7], %s5418_s7 }
 0x53b   :  { %3255 = vrot.lane.b32.xlu1 %v3212_v62, %s7845_s0  ;;  %3129 = vrot.lane.b32.xlu0 %v3086_v40, %s5703_s6  ;;  %v3639_v6 = vld [vmem:[#allocation4 + $0x410] sm:$0xff]  ;;  %v3344_v48 = vld [vmem:[#allocation4 + $0x220] sm:$0xff]  ;;  %v3640_v18 = vld [vmem:[#allocation4 + $0x418] sm:$0xff] }
 0x53c   :  { %3553 = vrot.lane.b32.xlu2 %v3510_v1, %s5703_s6  ;;  %v3092_v20 = vld [vmem:[#allocation4 + $0xe0] sm:$0xff]  ;;  %v3091_v63 = vld [vmem:[#allocation4 + $0xd8] sm:$0xff]  ;;  %v3218_v53 = vld [vmem:[#allocation4 + $0x188] sm:$0xff]  ;;  %3976 = vmatpush.bf16.msrb.mxu2 %v5547_v36 }
 0x53d   :  { %v3217_v21 = vld [vmem:[#allocation4 + $0x180] sm:$0xff]  ;;  %v3515_v22 = vld [vmem:[#allocation4 + $0x378] sm:$0xff]  ;;  %v3468_v46 = vld [vmem:[#allocation4 + $0x2a8] sm:$0xff] }
 0x53e   :  { %v3467_v25 = vld [vmem:[#allocation4 + $0x2a0] sm:$0xff]  ;;  %3489 = vst.msk [vmem:[#allocation6 + $0x18] sm:$0xff] %vm178_vm1, %v3468_v46  ;;  %v3044_v44 = vld [vmem:[#allocation4 + $0x8] sm:$0xff]  ;;  %v3346_v31 = vld [vmem:[#allocation4 + $0x230] sm:$0xff] }
 0x53f   :  { %3488 = vst.msk [vmem:[#allocation6 + $0x8] sm:$0xff] %vm178_vm1, %v3467_v25  ;;  %v3043_v11 = vld [vmem:[#allocation4] sm:$0xff]  ;;  %v3345_v33 = vld [vmem:[#allocation4 + $0x228] sm:$0xff]  ;;  %v3094_v45 = vld [vmem:[#allocation4 + $0xf0] sm:$0xff] }
 0x540   :  { %3064 = vst.msk [vmem:[#allocation6] sm:$0xff] %vm178_vm1, %v3043_v11  ;;  %v3516_v50 = vld [vmem:[#allocation4 + $0x380] sm:$0xff]  ;;  %v3093_v41 = vld [vmem:[#allocation4 + $0xe8] sm:$0xff]  ;;  %3977 = vmatpush.bf16.msrb.mxu2 %v5546_v5  ;;  %v3046_v52 = vld [vmem:[#allocation4 + $0x18] sm:$0xff] }
 0x541   :  { %3065 = vst.msk [vmem:[#allocation6 + $0x10] sm:$0xff] %vm178_vm1, %v3044_v44  ;;  %v3641_v35 = vld [vmem:[#allocation4 + $0x420] sm:$0xff]  ;;  %v3642_v42 = vld [vmem:[#allocation4 + $0x428] sm:$0xff]  ;;  %v3045_v54 = vld [vmem:[#allocation4 + $0x10] sm:$0xff] }
 0x542   :  { %3067 = vst.msk [vmem:[#allocation6 + $0x30] sm:$0xff] %vm178_vm1, %v3046_v52  ;;  %v3220_v14 = vld [vmem:[#allocation4 + $0x198] sm:$0xff]  ;;  %v3219_v60 = vld [vmem:[#allocation4 + $0x190] sm:$0xff]  ;;  %v3517_v0 = vld [vmem:[#allocation4 + $0x388] sm:$0xff] }
 0x543   :  { %3383 = vrot.lane.b32.xlu1 %v3340_v2, %s7846_s9  ;;  %3381 = vrot.lane.b32.xlu0 %v3339_v3, %s7846_s9  ;;  %3066 = vst.msk [vmem:[#allocation6 + $0x20] sm:$0xff] %vm178_vm1, %v3045_v54  ;;  %v5554_v15 = vld [vmem:[%s7833_s10 + $0x48] sm:$0xff]  ;;  %v5553_v62 = vld [vmem:[%s7833_s10 + $0x40] sm:$0xff]  ;;  %v3645_v44 = vld [vmem:[#allocation4 + $0x440] sm:$0xff]  ;;  %s5415_s10 = sld [smem:[#allocation9 + $0x461]] }
 0x544   :  { %3677 = vrot.lane.b32.xlu2 %v3635_v12, %s7845_s0  ;;  %3978 = vmatpush.bf16.msrb.mxu2 %v5545_v47  ;;  %v3469_v40 = vld [vmem:[#allocation4 + $0x2b0] sm:$0xff]  ;;  %v3347_v12 = vld [vmem:[#allocation4 + $0x238] sm:$0xff]  ;;  %v3349_v4 = vld [vmem:[#allocation4 + $0x248] sm:$0xff] }
 0x545   :  { %4040 = vmatpush.bf16.msrb.mxu3 %v5554_v15  ;;  %3490 = vst.msk [vmem:[#allocation6 + $0x28] sm:$0xff] %vm178_vm1, %v3469_v40  ;;  %v3472_v25 = vld [vmem:[#allocation4 + $0x2c8] sm:$0xff]  ;;  %v3223_v37 = vld [vmem:[#allocation4 + $0x1b0] sm:$0xff]  ;;  %v3224_v54 = vld [vmem:[#allocation4 + $0x1b8] sm:$0xff] }
 0x546   :  { %3493 = vst.msk [vmem:[#allocation6 + $0x58] sm:$0xff] %vm178_vm1, %v3472_v25  ;;  %v3646_v51 = vld [vmem:[#allocation4 + $0x448] sm:$0xff]  ;;  %v3049_v47 = vld [vmem:[#allocation4 + $0x30] sm:$0xff]  ;;  %v3524_v25 = vld [vmem:[#allocation4 + $0x3c0] sm:$0xff] }
 0x547   :  { %v3097_v36 = vld [vmem:[#allocation4 + $0x108] sm:$0xff]  ;;  %3070 = vst.msk [vmem:[#allocation6 + $0x60] sm:$0xff] %vm178_vm1, %v3049_v47  ;;  %v3526_v47 = vld [vmem:[#allocation4 + $0x3d0] sm:$0xff] }
 0x548   :  { %v3521_v52 = vld [vmem:[#allocation4 + $0x3a8] sm:$0xff] }
 0x549   :  { %4041 = vmatpush.bf16.msrb.mxu3 %v5553_v62  ;;  %s2992_s30 = scalar_lea.vmem [#allocation7], %s5415_s10 }
 0x54b   :  { %3131 = vrot.lane.b32.xlu1 %v3087_v24, %s5703_s6  ;;  %3679 = vrot.lane.b32.xlu0 %v3636_v58, %s7845_s0  ;;  %v3518_v24 = vld [vmem:[#allocation4 + $0x390] sm:$0xff]  ;;  %v3348_v58 = vld [vmem:[#allocation4 + $0x240] sm:$0xff] }
 0x54c   :  { %3133 = vrot.lane.b32.xlu2 %v3088_v29, %s5703_s6 }
 0x553   :  { %3259 = vrot.lane.b32.xlu1 %v3214_v32, %s7845_s0  ;;  %3257 = vrot.lane.b32.xlu0 %v3213_v61, %s7845_s0  ;;  %v3470_v61 = vld [vmem:[#allocation4 + $0x2b8] sm:$0xff] }
 0x554   :  { %3555 = vrot.lane.b32.xlu2 %v3511_v9, %s5703_s6  ;;  %3491 = vst.msk [vmem:[#allocation6 + $0x38] sm:$0xff] %vm178_vm1, %v3470_v61  ;;  %v3099_v61 = vld [vmem:[#allocation4 + $0x118] sm:$0xff] }
 0x55b   :  { %3385 = vrot.lane.b32.xlu1 %v3341_v23, %s7846_s9  ;;  %3557 = vrot.lane.b32.xlu0 %v3512_v10, %s5703_s6  ;;  %v3644_v23 = vld [vmem:[#allocation4 + $0x438] sm:$0xff]  ;;  %v3643_v10 = vld [vmem:[#allocation4 + $0x430] sm:$0xff] }
 0x55c   :  { %3387 = vrot.lane.b32.xlu2 %v3342_v55, %s7846_s9  ;;  %v3095_v55 = vld [vmem:[#allocation4 + $0xf8] sm:$0xff] }
 0x563   :  { %3683 = vrot.lane.b32.xlu1 %v3638_v59, %s7845_s0  ;;  %3681 = vrot.lane.b32.xlu0 %v3637_v8, %s7845_s0  ;;  %v3047_v59 = vld [vmem:[#allocation4 + $0x20] sm:$0xff] }
 0x564   :  { %3135 = vrot.lane.b32.xlu2 %v3089_v16, %s5703_s6  ;;  %3068 = vst.msk [vmem:[#allocation6 + $0x40] sm:$0xff] %vm178_vm1, %v3047_v59 }
 0x56b   :  { %3261 = vrot.lane.b32.xlu1 %v3215_v13, %s7845_s0  ;;  %3137 = vrot.lane.b32.xlu0 %v3090_v17, %s5703_s6  ;;  %v3221_v17 = vld [vmem:[#allocation4 + $0x1a0] sm:$0xff] }
 0x56c   :  { %3263 = vrot.lane.b32.xlu2 %v3216_v19, %s7845_s0  ;;  %v3096_v19 = vld [vmem:[#allocation4 + $0x100] sm:$0xff] }
 0x573   :  { %3561 = vrot.lane.b32.xlu1 %v3514_v27, %s5703_s6  ;;  %3559 = vrot.lane.b32.xlu0 %v3513_v34, %s5703_s6  ;;  %v3222_v27 = vld [vmem:[#allocation4 + $0x1a8] sm:$0xff] }
 0x574   :  { %3389 = vrot.lane.b32.xlu2 %v3343_v39, %s7846_s9 }
 0x57b   :  { %3685 = vrot.lane.b32.xlu1 %v3639_v6, %s7845_s0  ;;  %3391 = vrot.lane.b32.xlu0 %v3344_v48, %s7846_s9 }
 0x57c   :  { %3687 = vrot.lane.b32.xlu2 %v3640_v18, %s7845_s0  ;;  %v3048_v18 = vld [vmem:[#allocation4 + $0x28] sm:$0xff] }
 0x57d   :  { %3069 = vst.msk [vmem:[#allocation6 + $0x50] sm:$0xff] %vm178_vm1, %v3048_v18 }
 0x583   :  { %3141 = vrot.lane.b32.xlu1 %v3092_v20, %s5703_s6  ;;  %3139 = vrot.lane.b32.xlu0 %v3091_v63, %s5703_s6  ;;  %v3520_v63 = vld [vmem:[#allocation4 + $0x3a0] sm:$0xff] }
 0x584   :  { %3265 = vrot.lane.b32.xlu2 %v3217_v21, %s7845_s0  ;;  %v3519_v21 = vld [vmem:[#allocation4 + $0x398] sm:$0xff] }
 0x58b   :  { %3563 = vrot.lane.b32.xlu1 %v3515_v22, %s5703_s6  ;;  %3267 = vrot.lane.b32.xlu0 %v3218_v53, %s7845_s0 }
 0x58c   :  { %3565 = vrot.lane.b32.xlu2 %v3516_v50, %s5703_s6  ;;  %v3471_v50 = vld [vmem:[#allocation4 + $0x2c0] sm:$0xff] }
 0x58d   :  { %3492 = vst.msk [vmem:[#allocation6 + $0x48] sm:$0xff] %vm178_vm1, %v3471_v50  ;;  %v3476_v50 = vld [vmem:[#allocation4 + $0x2e8] sm:$0xff] }
 0x58e   :  { %v3552_v28 = vpop.permute.xlu2 %3551  ;;  %3497 = vst.msk [vmem:[#allocation6 + $0x98] sm:$0xff] %vm178_vm1, %v3476_v50  ;;  %v3479_v50 = vld [vmem:[#allocation4 + $0x300] sm:$0xff] }
 0x58f   :  { %3614 = vst.msk [vmem:[#allocation6 + $0x8] sm:$0xff] %vm611_vm4, %v3552_v28  ;;  %v3350_v28 = vld [vmem:[#allocation4 + $0x250] sm:$0xff] }
 0x590   :  { %3500 = vst.msk [vmem:[#allocation6 + $0xc8] sm:$0xff] %vm178_vm1, %v3479_v50 }
 0x593   :  { %3395 = vrot.lane.b32.xlu1 %v3346_v31, %s7846_s9  ;;  %3393 = vrot.lane.b32.xlu0 %v3345_v33, %s7846_s9 }
 0x594   :  { %3689 = vrot.lane.b32.xlu2 %v3641_v35, %s7845_s0  ;;  %v3098_v35 = vld [vmem:[#allocation4 + $0x110] sm:$0xff] }
 0x596   :  { %v3554_v38 = vpop.permute.xlu2 %3553 }
 0x597   :  { %3615 = vst.msk [vmem:[#allocation6 + $0x18] sm:$0xff] %vm611_vm4, %v3554_v38 }
 0x59b   :  { %3143 = vrot.lane.b32.xlu1 %v3093_v41, %s5703_s6  ;;  %3691 = vrot.lane.b32.xlu0 %v3642_v42, %s7845_s0  ;;  %v3050_v42 = vld [vmem:[#allocation4 + $0x38] sm:$0xff] }
 0x59c   :  { %3145 = vrot.lane.b32.xlu2 %v3094_v45, %s5703_s6  ;;  %3071 = vst.msk [vmem:[#allocation6 + $0x70] sm:$0xff] %vm178_vm1, %v3050_v42 }
 0x59e   :  { %v3678_v57 = vpop.permute.xlu2 %3677 }
 0x59f   :  { %3740 = vst.msk [vmem:[#allocation6 + $0x8] sm:$0xff] %vm3316_vm12, %v3678_v57  ;;  %v3522_v57 = vld [vmem:[#allocation4 + $0x3b0] sm:$0xff] }
 0x5a3   :  { %3271 = vrot.lane.b32.xlu1 %v3220_v14, %s7845_s0  ;;  %3269 = vrot.lane.b32.xlu0 %v3219_v60, %s7845_s0  ;;  %v3474_v14 = vld [vmem:[#allocation4 + $0x2d8] sm:$0xff]  ;;  %v3473_v60 = vld [vmem:[#allocation4 + $0x2d0] sm:$0xff] }
 0x5a4   :  { %3567 = vrot.lane.b32.xlu2 %v3517_v0, %s5703_s6  ;;  %3495 = vst.msk [vmem:[#allocation6 + $0x78] sm:$0xff] %vm178_vm1, %v3474_v14 }
 0x5a5   :  { %v3254_v1 = vpop.permute.xlu1 %3253  ;;  %v3128_v2 = vpop.permute.xlu0 %3127  ;;  %3494 = vst.msk [vmem:[#allocation6 + $0x68] sm:$0xff] %vm178_vm1, %v3473_v60 }
 0x5a6   :  { %3190 = vst.msk [vmem:[#allocation6] sm:$0xff] %vm611_vm4, %v3128_v2  ;;  %v3134_v3 = vpop.permute.xlu2 %3133  ;;  %v3762_v11 = vld [vmem:[#allocation6 + $0x8] sm:$0xff] }
 0x5a7   :  { %3317 = vst.msk [vmem:[#allocation6] sm:$0xff] %vm3316_vm12, %v3254_v1 }
 0x5a8   :  { %3193 = vst.msk [vmem:[#allocation6 + $0x30] sm:$0xff] %vm611_vm4, %v3134_v3  ;;  %v3352_v3 = vld [vmem:[#allocation4 + $0x260] sm:$0xff] }
 0x5ab   :  { %3397 = vrot.lane.b32.xlu1 %v3347_v12, %s7846_s9  ;;  %3569 = vrot.lane.b32.xlu0 %v3518_v24, %s5703_s6  ;;  %v3351_v12 = vld [vmem:[#allocation4 + $0x258] sm:$0xff]  ;;  %v3647_v24 = vld [vmem:[#allocation4 + $0x450] sm:$0xff] }
 0x5ac   :  { %3399 = vrot.lane.b32.xlu2 %v3348_v58, %s7846_s9 }
 0x5ad   :  { %v3256_v29 = vpop.permute.xlu1 %3255  ;;  %v3130_v32 = vpop.permute.xlu0 %3129 }
 0x5ae   :  { %3191 = vst.msk [vmem:[#allocation6 + $0x10] sm:$0xff] %vm611_vm4, %v3130_v32  ;;  %v3556_v9 = vpop.permute.xlu2 %3555 }
 0x5af   :  { %3318 = vst.msk [vmem:[#allocation6 + $0x10] sm:$0xff] %vm3316_vm12, %v3256_v29 }
 0x5b0   :  { %3616 = vst.msk [vmem:[#allocation6 + $0x28] sm:$0xff] %vm611_vm4, %v3556_v9  ;;  %v3648_v9 = vld [vmem:[#allocation4 + $0x458] sm:$0xff] }
 0x5b3   :  { %3695 = vrot.lane.b32.xlu1 %v3644_v23, %s7845_s0  ;;  %3693 = vrot.lane.b32.xlu0 %v3643_v10, %s7845_s0  ;;  %v3100_v23 = vld [vmem:[#allocation4 + $0x120] sm:$0xff]  ;;  %v3052_v10 = vld [vmem:[#allocation4 + $0x48] sm:$0xff] }
 0x5b4   :  { %3147 = vrot.lane.b32.xlu2 %v3095_v55, %s5703_s6  ;;  %3073 = vst.msk [vmem:[#allocation6 + $0x90] sm:$0xff] %vm178_vm1, %v3052_v10  ;;  %v3103_v10 = vld [vmem:[#allocation4 + $0x138] sm:$0xff] }
 0x5b5   :  { %v3384_v8 = vpop.permute.xlu1 %3383  ;;  %v3382_v16 = vpop.permute.xlu0 %3381 }
 0x5b6   :  { %3446 = vst.msk [vmem:[#allocation6 + $0x10] sm:$0xff] %vm3444_vm13, %v3384_v8  ;;  %v3388_v13 = vpop.permute.xlu2 %3387  ;;  %v3051_v8 = vld [vmem:[#allocation4 + $0x40] sm:$0xff] }
 0x5b7   :  { %3445 = vst.msk [vmem:[#allocation6] sm:$0xff] %vm3444_vm13, %v3382_v16 }
 0x5b8   :  { %3072 = vst.msk [vmem:[#allocation6 + $0x80] sm:$0xff] %vm178_vm1, %v3051_v8  ;;  %v3037_v8 = vld [vmem:[%s3036_s2] sm:$0x1] }
 0x5b9   :  { %3038 = vst.msk [vmem:[#allocation4 + $0x3e9] sm:$0x1] %vm335_vm3, %v3037_v8 }
 0x5bb   :  { %3273 = vrot.lane.b32.xlu1 %v3221_v17, %s7845_s0  ;;  %3149 = vrot.lane.b32.xlu0 %v3096_v19, %s5703_s6  ;;  %v3225_v17 = vld [vmem:[#allocation4 + $0x1c0] sm:$0xff]  ;;  %v3523_v19 = vld [vmem:[#allocation4 + $0x3b8] sm:$0xff] }
 0x5bc   :  { %3275 = vrot.lane.b32.xlu2 %v3222_v27, %s7845_s0 }
 0x5bd   :  { %v3132_v34 = vpop.permute.xlu1 %3131  ;;  %v3680_v39 = vpop.permute.xlu0 %3679  ;;  %v3763_v6 = vld [vmem:[#allocation6 + $0x10] sm:$0xff] }
 0x5be   :  { %3192 = vst.msk [vmem:[#allocation6 + $0x20] sm:$0xff] %vm611_vm4, %v3132_v34  ;;  %v3761_v48 = vld [vmem:[#allocation6] sm:$0xff]  ;;  %v3136_v20 = vpop.permute.xlu2 %3135  ;;  %v3475_v34 = vld [vmem:[#allocation4 + $0x2e0] sm:$0xff] }
 0x5bf   :  { %3741 = vst.msk [vmem:[#allocation6 + $0x18] sm:$0xff] %vm3316_vm12, %v3680_v39  ;;  %v3803_v56 = vpack.c.bf16 %v3763_v6, %v3761_v48 }
 0x5c0   :  { %3194 = vst.msk [vmem:[#allocation6 + $0x40] sm:$0xff] %vm611_vm4, %v3136_v20 }
 0x5c1   :  { %3979 = vmatmul.bf16.vlgmr.msrb.gmra.mxu2 %v3803_v56  ;;  %3496 = vst.msk [vmem:[#allocation6 + $0x88] sm:$0xff] %vm178_vm1, %v3475_v34 }
 0x5c3   :  { %3573 = vrot.lane.b32.xlu1 %v3520_v63, %s5703_s6  ;;  %3571 = vrot.lane.b32.xlu0 %v3519_v21, %s5703_s6 }
 0x5c4   :  { %3401 = vrot.lane.b32.xlu2 %v3349_v4, %s7846_s9  ;;  %v3353_v4 = vld [vmem:[#allocation4 + $0x268] sm:$0xff] }
 0x5c5   :  { %v3260_v43 = vpop.permute.xlu1 %3259  ;;  %v3258_v22 = vpop.permute.xlu0 %3257 }
 0x5c6   :  { %3320 = vst.msk [vmem:[#allocation6 + $0x30] sm:$0xff] %vm3316_vm12, %v3260_v43  ;;  %v3764_v53 = vld [vmem:[#allocation6 + $0x18] sm:$0xff]  ;;  %v3264_v46 = vpop.permute.xlu2 %3263 }
 0x5c7   :  { %3319 = vst.msk [vmem:[#allocation6 + $0x20] sm:$0xff] %vm3316_vm12, %v3258_v22  ;;  %v3804_v26 = vpack.c.bf16 %v3764_v53, %v3762_v11  ;;  %v3354_v11 = vld [vmem:[#allocation4 + $0x270] sm:$0xff] }
 0x5c8   :  { %3448 = vst.msk [vmem:[#allocation6 + $0x30] sm:$0xff] %vm3444_vm13, %v3388_v13  ;;  %v3226_v13 = vld [vmem:[#allocation4 + $0x1c8] sm:$0xff] }
 0x5c9   :  { %5484 = vmatmul.msk.bf16.vlgmr.msrb.gmra.mxu3 %vm3937_vm14, %v3804_v26  ;;  %v3650_v26 = vld [vmem:[#allocation4 + $0x468] sm:$0xff] }
 0x5cb   :  { %3697 = vrot.lane.b32.xlu1 %v3645_v44, %s7845_s0  ;;  %3403 = vrot.lane.b32.xlu0 %v3350_v28, %s7846_s9  ;;  %v3101_v44 = vld [vmem:[#allocation4 + $0x128] sm:$0xff]  ;;  %v3053_v28 = vld [vmem:[#allocation4 + $0x50] sm:$0xff] }
 0x5cc   :  { %3699 = vrot.lane.b32.xlu2 %v3646_v51, %s7845_s0  ;;  %3074 = vst.msk [vmem:[#allocation6 + $0xa0] sm:$0xff] %vm178_vm1, %v3053_v28 }
 0x5cd   :  { %v3386_v30 = vpop.permute.xlu1 %3385  ;;  %v3558_v31 = vpop.permute.xlu0 %3557 }
 0x5ce   :  { %3447 = vst.msk [vmem:[#allocation6 + $0x20] sm:$0xff] %vm3444_vm13, %v3386_v30  ;;  %v3390_v33 = vpop.permute.xlu2 %3389 }
 0x5cf   :  { %3617 = vst.msk [vmem:[#allocation6 + $0x38] sm:$0xff] %vm611_vm4, %v3558_v31  ;;  %v3767_v38 = vld [vmem:[#allocation6 + $0x30] sm:$0xff] }
 0x5d3   :  { %3153 = vrot.lane.b32.xlu1 %v3098_v35, %s5703_s6  ;;  %3151 = vrot.lane.b32.xlu0 %v3097_v36, %s5703_s6  ;;  %v3102_v35 = vld [vmem:[#allocation4 + $0x130] sm:$0xff]  ;;  %v3228_v36 = vld [vmem:[#allocation4 + $0x1d8] sm:$0xff] }
 0x5d4   :  { %3277 = vrot.lane.b32.xlu2 %v3223_v37, %s7845_s0 }
 0x5d5   :  { %v3684_v5 = vpop.permute.xlu1 %3683  ;;  %v3682_v7 = vpop.permute.xlu0 %3681  ;;  %v3765_v41 = vld [vmem:[#allocation6 + $0x20] sm:$0xff] }
 0x5d6   :  { %3743 = vst.msk [vmem:[#allocation6 + $0x38] sm:$0xff] %vm3316_vm12, %v3684_v5  ;;  %v3805_v45 = vpack.c.bf16 %v3767_v38, %v3765_v41  ;;  %v3688_v49 = vpop.permute.xlu2 %3687  ;;  %v3054_v41 = vld [vmem:[#allocation4 + $0x58] sm:$0xff] }
 0x5d7   :  { %3742 = vst.msk [vmem:[#allocation6 + $0x28] sm:$0xff] %vm3316_vm12, %v3682_v7 }
 0x5d8   :  { %3984 = vmatmul.bf16.gmra.mxu2 %v3805_v45  ;;  %3075 = vst.msk [vmem:[#allocation6 + $0xb0] sm:$0xff] %vm178_vm1, %v3054_v41  ;;  %v3041_v41 = vld [vmem:[%s3040_s28] sm:$0x1] }
 0x5d9   :  { %3042 = vst.msk [vmem:[#allocation4 + $0x491] sm:$0x1] %vm335_vm3, %v3041_v41 }
 0x5db   :  { %3575 = vrot.lane.b32.xlu1 %v3521_v52, %s5703_s6  ;;  %3279 = vrot.lane.b32.xlu0 %v3224_v54, %s7845_s0  ;;  %v3355_v52 = vld [vmem:[#allocation4 + $0x278] sm:$0xff] }
 0x5dc   :  { %3577 = vrot.lane.b32.xlu2 %v3522_v57, %s5703_s6  ;;  %v3478_v54 = vld [vmem:[#allocation4 + $0x2f8] sm:$0xff]  ;;  %v2993_v57 = vld [vmem:[%s2992_s30] sm:$0x1] }
 0x5dd   :  { %v3262_v15 = vpop.permute.xlu1 %3261  ;;  %v3138_v0 = vpop.permute.xlu0 %3137  ;;  %v3768_v62 = vld [vmem:[#allocation6 + $0x38] sm:$0xff]  ;;  %3499 = vst.msk [vmem:[#allocation6 + $0xb8] sm:$0xff] %vm178_vm1, %v3478_v54 }
 0x5de   :  { %3321 = vst.msk [vmem:[#allocation6 + $0x40] sm:$0xff] %vm3316_vm12, %v3262_v15  ;;  %v3766_v40 = vld [vmem:[#allocation6 + $0x28] sm:$0xff]  ;;  %v3266_v2 = vpop.permute.xlu2 %3265 }
 0x5df   :  { %3195 = vst.msk [vmem:[#allocation6 + $0x50] sm:$0xff] %vm611_vm4, %v3138_v0  ;;  %v3806_v1 = vpack.c.bf16 %v3768_v62, %v3766_v40  ;;  %v3477_v62 = vld [vmem:[#allocation4 + $0x2f0] sm:$0xff] }
 0x5e0   :  { %3322 = vst.msk [vmem:[#allocation6 + $0x50] sm:$0xff] %vm3316_vm12, %v3264_v46  ;;  %v3649_v46 = vld [vmem:[#allocation4 + $0x460] sm:$0xff] }
 0x5e1   :  { %5485 = vmatmul.msk.bf16.gmra.mxu3 %vm3937_vm14, %v3806_v1  ;;  %3449 = vst.msk [vmem:[#allocation6 + $0x40] sm:$0xff] %vm3444_vm13, %v3390_v33  ;;  %v3227_v33 = vld [vmem:[#allocation4 + $0x1d0] sm:$0xff] }
 0x5e2   :  { %2994 = vst.msk [vmem:[#allocation4 + $0x148] sm:$0x1] %vm335_vm3, %v2993_v57 }
 0x5e3   :  { %3407 = vrot.lane.b32.xlu1 %v3352_v3, %s7846_s9  ;;  %3405 = vrot.lane.b32.xlu0 %v3351_v12, %s7846_s9  ;;  %v3651_v3 = vld [vmem:[#allocation4 + $0x470] sm:$0xff]  ;;  %v3356_v12 = vld [vmem:[#allocation4 + $0x280] sm:$0xff]  ;;  %3498 = vst.msk [vmem:[#allocation6 + $0xa8] sm:$0xff] %vm178_vm1, %v3477_v62 }
 0x5e4   :  { %3701 = vrot.lane.b32.xlu2 %v3647_v24, %s7845_s0  ;;  %v3652_v24 = vld [vmem:[#allocation4 + $0x478] sm:$0xff] }
 0x5e5   :  { %v3562_v58 = vpop.permute.xlu1 %3561  ;;  %v3560_v29 = vpop.permute.xlu0 %3559 }
 0x5e6   :  { %3619 = vst.msk [vmem:[#allocation6 + $0x58] sm:$0xff] %vm611_vm4, %v3562_v58  ;;  %v3566_v32 = vpop.permute.xlu2 %3565  ;;  %v3001_v58 = vld [vmem:[%s3000_s29] sm:$0x1] }
 0x5e7   :  { %3618 = vst.msk [vmem:[#allocation6 + $0x48] sm:$0xff] %vm611_vm4, %v3560_v29  ;;  %v3029_v29 = vld [vmem:[%s3028_s20] sm:$0x1] }
 0x5e8   :  { %3745 = vst.msk [vmem:[#allocation6 + $0x58] sm:$0xff] %vm3316_vm12, %v3688_v49  ;;  %v3769_v39 = vld [vmem:[#allocation6 + $0x40] sm:$0xff]  ;;  %v3525_v49 = vld [vmem:[#allocation4 + $0x3c8] sm:$0xff] }
 0x5e9   :  { %3621 = vst.msk [vmem:[#allocation6 + $0x78] sm:$0xff] %vm611_vm4, %v3566_v32 }
 0x5ea   :  { %3002 = vst.msk [vmem:[#allocation4 + $0x298] sm:$0x1] %vm335_vm3, %v3001_v58 }
 0x5eb   :  { %3155 = vrot.lane.b32.xlu1 %v3099_v61, %s5703_s6  ;;  %3703 = vrot.lane.b32.xlu0 %v3648_v9, %s7845_s0  ;;  %3030 = vst.msk [vmem:[#allocation4 + $0x299] sm:$0x1] %vm335_vm3, %v3029_v29 }
 0x5ec   :  { %3157 = vrot.lane.b32.xlu2 %v3100_v23, %s5703_s6  ;;  %v3104_v23 = vld [vmem:[#allocation4 + $0x140] sm:$0xff] }
 0x5ed   :  { %v3686_v55 = vpop.permute.xlu1 %3685  ;;  %v3392_v59 = vpop.permute.xlu0 %3391 }
 0x5ee   :  { %3744 = vst.msk [vmem:[#allocation6 + $0x48] sm:$0xff] %vm3316_vm12, %v3686_v55  ;;  %v3690_v16 = vpop.permute.xlu2 %3689  ;;  %v3229_v55 = vld [vmem:[#allocation4 + $0x1e0] sm:$0xff] }
 0x5ef   :  { %3450 = vst.msk [vmem:[#allocation6 + $0x50] sm:$0xff] %vm3444_vm13, %v3392_v59  ;;  %v3772_v27 = vld [vmem:[#allocation6 + $0x58] sm:$0xff]  ;;  %v3009_v59 = vld [vmem:[%s3008_s4] sm:$0x1] }
 0x5f0   :  { %3010 = vst.msk [vmem:[#allocation4 + $0x3e8] sm:$0x1] %vm335_vm3, %v3009_v59 }
 0x5f3   :  { %3283 = vrot.lane.b32.xlu1 %v3226_v13, %s7845_s0  ;;  %3281 = vrot.lane.b32.xlu0 %v3225_v17, %s7845_s0 }
 0x5f4   :  { %3579 = vrot.lane.b32.xlu2 %v3523_v19, %s5703_s6 }
 0x5f5   :  { %v3142_v6 = vpop.permute.xlu1 %3141  ;;  %v3140_v48 = vpop.permute.xlu0 %3139  ;;  %v3770_v18 = vld [vmem:[#allocation6 + $0x48] sm:$0xff] }
 0x5f6   :  { %3197 = vst.msk [vmem:[#allocation6 + $0x70] sm:$0xff] %vm611_vm4, %v3142_v6  ;;  %v3771_v56 = vld [vmem:[#allocation6 + $0x50] sm:$0xff]  ;;  %v3808_v20 = vpack.c.bf16 %v3772_v27, %v3770_v18  ;;  %v3146_v21 = vpop.permute.xlu2 %3145 }
 0x5f7   :  { %3196 = vst.msk [vmem:[#allocation6 + $0x60] sm:$0xff] %vm611_vm4, %v3140_v48  ;;  %v3807_v63 = vpack.c.bf16 %v3771_v56, %v3769_v39  ;;  %v3056_v27 = vld [vmem:[#allocation4 + $0x68] sm:$0xff]  ;;  %v3055_v39 = vld [vmem:[#allocation4 + $0x60] sm:$0xff]  ;;  %v3527_v48 = vld [vmem:[#allocation4 + $0x3d8] sm:$0xff] }
 0x5f8   :  { %3323 = vst.msk [vmem:[#allocation6 + $0x60] sm:$0xff] %vm3316_vm12, %v3266_v2  ;;  %5486 = vmatmul.msk.bf16.gmra.mxu3 %vm3937_vm14, %v3808_v20  ;;  %v3021_v2 = vld [vmem:[%s3020_s16] sm:$0x1]  ;;  %v3528_v56 = vld [vmem:[#allocation4 + $0x3e0] sm:$0xff] }
 0x5f9   :  { %3989 = vmatmul.bf16.gmra.mxu2 %v3807_v63  ;;  %3199 = vst.msk [vmem:[#allocation6 + $0x90] sm:$0xff] %vm611_vm4, %v3146_v21  ;;  %v3230_v18 = vld [vmem:[#allocation4 + $0x1e8] sm:$0xff] }
 0x5fa   :  { %3022 = vst.msk [vmem:[#allocation4 + $0x149] sm:$0x1] %vm335_vm3, %v3021_v2  ;;  %v3481_v2 = vld [vmem:[#allocation4 + $0x310] sm:$0xff] }
 0x5fb   :  { %3409 = vrot.lane.b32.xlu1 %v3353_v4, %s7846_s9  ;;  %3581 = vrot.lane.b32.xlu0 %v3524_v25, %s5703_s6  ;;  %3077 = vst.msk [vmem:[#allocation6 + $0xd0] sm:$0xff] %vm178_vm1, %v3056_v27  ;;  %v3060_v27 = vld [vmem:[#allocation4 + $0x88] sm:$0xff] }
 0x5fc   :  { %3411 = vrot.lane.b32.xlu2 %v3354_v11, %s7846_s9  ;;  %3076 = vst.msk [vmem:[#allocation6 + $0xc0] sm:$0xff] %vm178_vm1, %v3055_v39 }
 0x5fd   :  { %v3564_v43 = vpop.permute.xlu1 %3563  ;;  %v3268_v22 = vpop.permute.xlu0 %3267  ;;  %3502 = vst.msk [vmem:[#allocation6 + $0xe8] sm:$0xff] %vm178_vm1, %v3481_v2 }
 0x5fe   :  { %3620 = vst.msk [vmem:[#allocation6 + $0x68] sm:$0xff] %vm611_vm4, %v3564_v43  ;;  %v3568_v53 = vpop.permute.xlu2 %3567  ;;  %v3358_v43 = vld [vmem:[#allocation4 + $0x290] sm:$0xff] }
 0x5ff   :  { %3324 = vst.msk [vmem:[#allocation6 + $0x70] sm:$0xff] %vm3316_vm12, %v3268_v22  ;;  %v3357_v22 = vld [vmem:[#allocation4 + $0x288] sm:$0xff] }
 0x600   :  { %3746 = vst.msk [vmem:[#allocation6 + $0x68] sm:$0xff] %vm3316_vm12, %v3690_v16 }
 0x601   :  { %3622 = vst.msk [vmem:[#allocation6 + $0x88] sm:$0xff] %vm611_vm4, %v3568_v53  ;;  %v3480_v53 = vld [vmem:[#allocation4 + $0x308] sm:$0xff] }
 0x602   :  { %3501 = vst.msk [vmem:[#allocation6 + $0xd8] sm:$0xff] %vm178_vm1, %v3480_v53 }
 0x603   :  { %3707 = vrot.lane.b32.xlu1 %v3650_v26, %s7845_s0  ;;  %3705 = vrot.lane.b32.xlu0 %v3649_v46, %s7845_s0  ;;  %v3653_v26 = vld [vmem:[#allocation4 + $0x480] sm:$0xff]  ;;  %v2997_v46 = vld [vmem:[%s2996_s25] sm:$0x1]  ;;  %3081 = vst.msk [vmem:[#allocation6 + $0x110] sm:$0xff] %vm178_vm1, %v3060_v27 }
 0x604   :  { %3159 = vrot.lane.b32.xlu2 %v3101_v44, %s5703_s6  ;;  %v3025_v44 = vld [vmem:[%s3024_s27] sm:$0x1]  ;;  %2998 = vst.msk [vmem:[#allocation4 + $0x1f0] sm:$0x1] %vm335_vm3, %v2997_v46 }
 0x605   :  { %v3396_v51 = vpop.permute.xlu1 %3395  ;;  %v3394_v30 = vpop.permute.xlu0 %3393  ;;  %3026 = vst.msk [vmem:[#allocation4 + $0x1f1] sm:$0x1] %vm335_vm3, %v3025_v44 }
 0x606   :  { %3452 = vst.msk [vmem:[#allocation6 + $0x70] sm:$0xff] %vm3444_vm13, %v3396_v51  ;;  %v3400_v31 = vpop.permute.xlu2 %3399 }
 0x607   :  { %3451 = vst.msk [vmem:[#allocation6 + $0x60] sm:$0xff] %vm3444_vm13, %v3394_v30  ;;  %v3774_v14 = vld [vmem:[#allocation6 + $0x68] sm:$0xff] }
 0x60b   :  { %3285 = vrot.lane.b32.xlu1 %v3227_v33, %s7845_s0  ;;  %3161 = vrot.lane.b32.xlu0 %v3102_v35, %s5703_s6  ;;  %v3105_v33 = vld [vmem:[#allocation4 + $0x148] sm:$0x3]  ;;  %v3058_v35 = vld [vmem:[#allocation4 + $0x78] sm:$0xff] }
 0x60c   :  { %3287 = vrot.lane.b32.xlu2 %v3228_v36, %s7845_s0  ;;  %v3013_v36 = vld [vmem:[%s3012_s1] sm:$0x1]  ;;  %3079 = vst.msk [vmem:[#allocation6 + $0xf0] sm:$0xff] %vm178_vm1, %v3058_v35 }
 0x60d   :  { %v3144_v37 = vpop.permute.xlu1 %3143  ;;  %v3692_v38 = vpop.permute.xlu0 %3691  ;;  %v3775_v5 = vld [vmem:[#allocation6 + $0x70] sm:$0xff]  ;;  %3014 = vst.msk [vmem:[#allocation4 + $0x490] sm:$0x1] %vm335_vm3, %v3013_v36  ;;  %v3061_v36 = vld [vmem:[#allocation4 + $0x90] sm:$0xff] }
 0x60e   :  { %3198 = vst.msk [vmem:[#allocation6 + $0x80] sm:$0xff] %vm611_vm4, %v3144_v37  ;;  %v3773_v7 = vld [vmem:[#allocation6 + $0x60] sm:$0xff]  ;;  %v3148_v45 = vpop.permute.xlu2 %3147  ;;  %v3231_v37 = vld [vmem:[#allocation4 + $0x1f0] sm:$0x3] }
 0x60f   :  { %3747 = vst.msk [vmem:[#allocation6 + $0x78] sm:$0xff] %vm3316_vm12, %v3692_v38  ;;  %v3809_v42 = vpack.c.bf16 %v3775_v5, %v3773_v7  ;;  %v3057_v7 = vld [vmem:[#allocation4 + $0x70] sm:$0xff] }
 0x610   :  { %3200 = vst.msk [vmem:[#allocation6 + $0xa0] sm:$0xff] %vm611_vm4, %v3148_v45  ;;  %v3359_v45 = vld [vmem:[#allocation4 + $0x298] sm:$0x3] }
 0x611   :  { %3994 = vmatmul.bf16.gmra.mxu2 %v3809_v42  ;;  %3078 = vst.msk [vmem:[#allocation6 + $0xe0] sm:$0xff] %vm178_vm1, %v3057_v7 }
 0x612   :  { %3082 = vst.msk [vmem:[#allocation6 + $0x120] sm:$0xff] %vm178_vm1, %v3061_v36 }
 0x613   :  { %3585 = vrot.lane.b32.xlu1 %v3526_v47, %s5703_s6  ;;  %3583 = vrot.lane.b32.xlu0 %v3525_v49, %s5703_s6  ;;  %v3529_v47 = vld [vmem:[#allocation4 + $0x3e8] sm:$0x3] }
 0x614   :  { %3413 = vrot.lane.b32.xlu2 %v3355_v52, %s7846_s9 }
 0x615   :  { %v3272_v60 = vpop.permute.xlu1 %3271  ;;  %v3270_v15 = vpop.permute.xlu0 %3269 }
 0x616   :  { %3326 = vst.msk [vmem:[#allocation6 + $0x90] sm:$0xff] %vm3316_vm12, %v3272_v60  ;;  %v3776_v0 = vld [vmem:[#allocation6 + $0x78] sm:$0xff]  ;;  %v7360_v1 = vpop.permute.xlu2 %3275 }
 0x617   :  { %3325 = vst.msk [vmem:[#allocation6 + $0x80] sm:$0xff] %vm3316_vm12, %v3270_v15  ;;  %v3810_v40 = vpack.c.bf16 %v3776_v0, %v3774_v14 }
 0x618   :  { %3454 = vst.msk [vmem:[#allocation6 + $0x90] sm:$0xff] %vm3444_vm13, %v3400_v31  ;;  %v3654_v31 = vld [vmem:[#allocation4 + $0x488] sm:$0xff] }
 0x619   :  { %5487 = vmatmul.msk.bf16.gmra.mxu3 %vm3937_vm14, %v3810_v40  ;;  %v3655_v40 = vld [vmem:[#allocation4 + $0x490] sm:$0x3] }
 0x61b   :  { %3709 = vrot.lane.b32.xlu1 %v3651_v3, %s7845_s0  ;;  %3415 = vrot.lane.b32.xlu0 %v3356_v12, %s7846_s9 }
 0x61c   :  { %3711 = vrot.lane.b32.xlu2 %v3652_v24, %s7845_s0 }
 0x61d   :  { %v3398_v32 = vpop.permute.xlu1 %3397  ;;  %v3570_v61 = vpop.permute.xlu0 %3569 }
 0x61e   :  { %3453 = vst.msk [vmem:[#allocation6 + $0x80] sm:$0xff] %vm3444_vm13, %v3398_v32  ;;  %v3402_v9 = vpop.permute.xlu2 %3401  ;;  %v3482_v32 = vld [vmem:[#allocation4 + $0x318] sm:$0xff] }
 0x61f   :  { %3623 = vst.msk [vmem:[#allocation6 + $0x98] sm:$0xff] %vm611_vm4, %v3570_v61  ;;  %v3779_v16 = vld [vmem:[#allocation6 + $0x90] sm:$0xff]  ;;  %v3059_v61 = vld [vmem:[#allocation4 + $0x80] sm:$0xff] }
 0x620   :  { %3503 = vst.msk [vmem:[#allocation6 + $0xf8] sm:$0xff] %vm178_vm1, %v3482_v32 }
 0x621   :  { %3080 = vst.msk [vmem:[#allocation6 + $0x100] sm:$0xff] %vm178_vm1, %v3059_v61 }
 0x623   :  { %3165 = vrot.lane.b32.xlu1 %v3104_v23, %s5703_s6  ;;  %3163 = vrot.lane.b32.xlu0 %v3103_v10, %s5703_s6 }
 0x624   :  { %3289 = vrot.lane.b32.xlu2 %v3229_v55, %s7845_s0 }
 0x625   :  { %v3696_v13 = vpop.permute.xlu1 %3695  ;;  %v3694_v17 = vpop.permute.xlu0 %3693  ;;  %v3777_v19 = vld [vmem:[#allocation6 + $0x80] sm:$0xff] }
 0x626   :  { %3749 = vst.msk [vmem:[#allocation6 + $0x98] sm:$0xff] %vm3316_vm12, %v3696_v13  ;;  %v3811_v34 = vpack.c.bf16 %v3779_v16, %v3777_v19  ;;  %v3700_v6 = vpop.permute.xlu2 %3699 }
 0x627   :  { %3748 = vst.msk [vmem:[#allocation6 + $0x88] sm:$0xff] %vm3316_vm12, %v3694_v17 }
 0x628   :  { %3999 = vmatmul.bf16.gmra.mxu2 %v3811_v34 }
 0x62b   :  { %3587 = vrot.lane.b32.xlu1 %v3527_v48, %s5703_s6  ;;  %3291 = vrot.lane.b32.xlu0 %v3230_v18, %s7845_s0 }
 0x62c   :  { %3589 = vrot.lane.b32.xlu2 %v3528_v56, %s5703_s6 }
 0x62d   :  { %v3274_v20 = vpop.permute.xlu1 %3273  ;;  %v3150_v63 = vpop.permute.xlu0 %3149  ;;  %v3780_v21 = vld [vmem:[#allocation6 + $0x98] sm:$0xff] }
 0x62e   :  { %3327 = vst.msk [vmem:[#allocation6 + $0xa0] sm:$0xff] %vm3316_vm12, %v3274_v20  ;;  %v3778_v4 = vld [vmem:[#allocation6 + $0x88] sm:$0xff]  ;;  %v7395_v11 = vpop.permute.xlu2 %3277 }
 0x62f   :  { %3201 = vst.msk [vmem:[#allocation6 + $0xb0] sm:$0xff] %vm611_vm4, %v3150_v63  ;;  %v3812_v25 = vpack.c.bf16 %v3780_v21, %v3778_v4  ;;  %v3483_v4 = vld [vmem:[#allocation4 + $0x320] sm:$0xff] }
 0x630   :  { %3328 = vst.msk [vmem:[#allocation6 + $0xb0] sm:$0xff] %vm3316_vm12, %v7360_v1 }
 0x631   :  { %5488 = vmatmul.msk.bf16.gmra.mxu3 %vm3937_vm14, %v3812_v25  ;;  %3455 = vst.msk [vmem:[#allocation6 + $0xa0] sm:$0xff] %vm3444_vm13, %v3402_v9 }
 0x632   :  { %3504 = vst.msk [vmem:[#allocation6 + $0x108] sm:$0xff] %vm178_vm1, %v3483_v4 }
 0x633   :  { %3419 = vrot.lane.b32.xlu1 %v3358_v43, %s7846_s9  ;;  %3417 = vrot.lane.b32.xlu0 %v3357_v22, %s7846_s9  ;;  %v3484_v43 = vld [vmem:[#allocation4 + $0x328] sm:$0xff] }
 0x634   :  { %3713 = vrot.lane.b32.xlu2 %v3653_v26, %s7845_s0  ;;  %3505 = vst.msk [vmem:[#allocation6 + $0x118] sm:$0xff] %vm178_vm1, %v3484_v43 }
 0x635   :  { %v3574_v28 = vpop.permute.xlu1 %3573  ;;  %v3572_v51 = vpop.permute.xlu0 %3571 }
 0x636   :  { %3625 = vst.msk [vmem:[#allocation6 + $0xb8] sm:$0xff] %vm611_vm4, %v3574_v28  ;;  %v3578_v30 = vpop.permute.xlu2 %3577 }
 0x637   :  { %3624 = vst.msk [vmem:[#allocation6 + $0xa8] sm:$0xff] %vm611_vm4, %v3572_v51 }
 0x638   :  { %3751 = vst.msk [vmem:[#allocation6 + $0xb8] sm:$0xff] %vm3316_vm12, %v3700_v6  ;;  %v3781_v52 = vld [vmem:[#allocation6 + $0xa0] sm:$0xff] }
 0x639   :  { %3627 = vst.msk [vmem:[#allocation6 + $0xd8] sm:$0xff] %vm611_vm4, %v3578_v30 }
 0x63b   :  { %3715 = vrot.lane.b32.xlu0 %v3654_v31, %s7845_s0  ;;  %3167 = vrot.lane.b32.xlu1 %v3105_v33, %s5703_s6  ;;  %v3062_v33 = vld [vmem:[#allocation4 + $0x98] sm:$0xff] }
 0x63c   :  { %3293 = vrot.lane.b32.xlu2 %v3231_v37, %s7845_s0  ;;  %3083 = vst.msk [vmem:[#allocation6 + $0x130] sm:$0xff] %vm178_vm1, %v3062_v33 }
 0x63d   :  { %v3698_v38 = vpop.permute.xlu1 %3697  ;;  %v3404_v5 = vpop.permute.xlu0 %3403 }
 0x63e   :  { %3750 = vst.msk [vmem:[#allocation6 + $0xa8] sm:$0xff] %vm3316_vm12, %v3698_v38  ;;  %v3702_v42 = vpop.permute.xlu2 %3701 }
 0x63f   :  { %3456 = vst.msk [vmem:[#allocation6 + $0xb0] sm:$0xff] %vm3444_vm13, %v3404_v5  ;;  %v3784_v49 = vld [vmem:[#allocation6 + $0xb8] sm:$0xff] }
 0x643   :  { %3421 = vrot.lane.b32.xlu1 %v3359_v45, %s7846_s9  ;;  %3591 = vrot.lane.b32.xlu0 %v3529_v47, %s5703_s6  ;;  %s5421_s6 = sld [smem:[#allocation9 + $0x467]] }
 0x644   :  { %3717 = vrot.lane.b32.xlu2 %v3655_v40, %s7845_s0  ;;  %v3980_v1 = vpop.f32.mrf.mxu2  ;;  %s5414_s0 = sld [smem:[#allocation9 + $0x460]] }
 0x645   :  { %v3154_v54 = vpop.permute.xlu1 %3153  ;;  %v3152_v57 = vpop.permute.xlu0 %3151  ;;  %v3782_v14 = vld [vmem:[#allocation6 + $0xa8] sm:$0xff] }
 0x646   :  { %3203 = vst.msk [vmem:[#allocation6 + $0xd0] sm:$0xff] %vm611_vm4, %v3154_v54  ;;  %v3783_v60 = vld [vmem:[#allocation6 + $0xb0] sm:$0xff]  ;;  %v3814_v15 = vpack.c.bf16 %v3784_v49, %v3782_v14  ;;  %v3158_v62 = vpop.permute.xlu2 %3157  ;;  %v3485_v54 = vld [vmem:[#allocation4 + $0x330] sm:$0xff] }
 0x647   :  { %3202 = vst.msk [vmem:[#allocation6 + $0xc0] sm:$0xff] %vm611_vm4, %v3152_v57  ;;  %v3813_v0 = vpack.c.bf16 %v3783_v60, %v3781_v52 }
 0x648   :  { %3329 = vst.msk [vmem:[#allocation6 + $0xc0] sm:$0xff] %vm3316_vm12, %v7395_v11  ;;  %5489 = vmatmul.msk.bf16.gmra.mxu3 %vm3937_vm14, %v3814_v15 }
 0x649   :  { %4004 = vmatmul.bf16.gmra.mxu2 %v3813_v0  ;;  %3205 = vst.msk [vmem:[#allocation6 + $0xf0] sm:$0xff] %vm611_vm4, %v3158_v62  ;;  %v3486_v62 = vld [vmem:[#allocation4 + $0x338] sm:$0xff]  ;;  %s3016_s9 = scalar_lea.vmem [#allocation7], %s5421_s6 }
 0x64a   :  { %3506 = vst.msk [vmem:[#allocation6 + $0x128] sm:$0xff] %vm178_vm1, %v3485_v54  ;;  %s2988_s14 = scalar_lea.vmem [#allocation7], %s5414_s0 }
 0x64b   :  { %3507 = vst.msk [vmem:[#allocation6 + $0x138] sm:$0xff] %vm178_vm1, %v3486_v62  ;;  %v2989_v2 = vld [vmem:[%s2988_s14] sm:$0x1] }
 0x64c   :  { %v4043_v3 = vpop.f32.mrf.mxu3  ;;  %v3982_v9 = vpop.f32.mrf.mxu2  ;;  %2990 = vst.msk [vmem:[#allocation4 + $0xa0] sm:$0x1] %vm335_vm3, %v2989_v2 }
 0x64d   :  { %v7436_v12 = vadd.f32 %v4043_v3, %v3980_v1  ;;  %v3576_v24 = vpop.permute.xlu1 %3575  ;;  %v3280_v58 = vpop.permute.xlu0 %3279  ;;  %v3017_v1 = vld [vmem:[%s3016_s9] sm:$0x1] }
 0x64e   :  { %3626 = vst.msk [vmem:[#allocation6 + $0xc8] sm:$0xff] %vm611_vm4, %v3576_v24  ;;  %v3580_v29 = vpop.permute.xlu2 %3579 }
 0x64f   :  { %3330 = vst.msk [vmem:[#allocation6 + $0xd0] sm:$0xff] %vm3316_vm12, %v3280_v58 }
 0x650   :  { %3752 = vst.msk [vmem:[#allocation6 + $0xc8] sm:$0xff] %vm3316_vm12, %v3702_v42 }
 0x651   :  { %3628 = vst.msk [vmem:[#allocation6 + $0xe8] sm:$0xff] %vm611_vm4, %v3580_v29 }
 0x652   :  { %3018 = vst.msk [vmem:[#allocation4 + $0xa1] sm:$0x1] %vm335_vm3, %v3017_v1 }
 0x654   :  { %v4045_v23 = vpop.f32.mrf.mxu3 }
 0x655   :  { %v7444_v10 = vadd.f32 %v4045_v23, %v3982_v9  ;;  %v3408_v55 = vpop.permute.xlu1 %3407  ;;  %v3406_v59 = vpop.permute.xlu0 %3405 }
 0x656   :  { %3458 = vst.msk [vmem:[#allocation6 + $0xd0] sm:$0xff] %vm3444_vm13, %v3408_v55  ;;  %v3412_v8 = vpop.permute.xlu2 %3411 }
 0x657   :  { %3457 = vst.msk [vmem:[#allocation6 + $0xc0] sm:$0xff] %vm3444_vm13, %v3406_v59  ;;  %v3786_v18 = vld [vmem:[#allocation6 + $0xc8] sm:$0xff] }
 0x659   :  { %v3063_v32 = vld [vmem:[#allocation4 + $0xa0] sm:$0x3] }
 0x65a   :  { %3084 = vst.msk [vmem:[#allocation6 + $0x140] sm:$0x3] %vm184_vm2, %v3063_v32 }
 0x65b   :  { %v3985_v6 = vpop.f32.mrf.mxu2 }
 0x65d   :  { %v3156_v16 = vpop.permute.xlu1 %3155  ;;  %v3704_v13 = vpop.permute.xlu0 %3703  ;;  %v3787_v17 = vld [vmem:[#allocation6 + $0xd0] sm:$0xff] }
 0x65e   :  { %3204 = vst.msk [vmem:[#allocation6 + $0xe0] sm:$0xff] %vm611_vm4, %v3156_v16  ;;  %v3785_v19 = vld [vmem:[#allocation6 + $0xc0] sm:$0xff]  ;;  %v3160_v39 = vpop.permute.xlu2 %3159 }
 0x65f   :  { %3753 = vst.msk [vmem:[#allocation6 + $0xd8] sm:$0xff] %vm3316_vm12, %v3704_v13  ;;  %v3815_v34 = vpack.c.bf16 %v3787_v17, %v3785_v19  ;;  %v3005_v13 = vld [vmem:[%s3004_s26] sm:$0x1] }
 0x660   :  { %3206 = vst.msk [vmem:[#allocation6 + $0x100] sm:$0xff] %vm611_vm4, %v3160_v39 }
 0x661   :  { %4009 = vmatmul.bf16.gmra.mxu2 %v3815_v34  ;;  %3006 = vst.msk [vmem:[#allocation4 + $0x340] sm:$0x1] %vm335_vm3, %v3005_v13 }
 0x663   :  { %v3987_v22 = vpop.f32.mrf.mxu2 }
 0x664   :  { %v4048_v48 = vpop.f32.mrf.mxu3 }
 0x665   :  { %v7452_v56 = vadd.f32 %v4048_v48, %v3985_v6  ;;  %v3284_v20 = vpop.permute.xlu1 %3283  ;;  %v3282_v63 = vpop.permute.xlu0 %3281 }
 0x666   :  { %3332 = vst.msk [vmem:[#allocation6 + $0xf0] sm:$0xff] %vm3316_vm12, %v3284_v20  ;;  %v3788_v21 = vld [vmem:[#allocation6 + $0xd8] sm:$0xff]  ;;  %v3288_v11 = vpop.permute.xlu2 %3287 }
 0x667   :  { %3331 = vst.msk [vmem:[#allocation6 + $0xe0] sm:$0xff] %vm3316_vm12, %v3282_v63  ;;  %v3816_v25 = vpack.c.bf16 %v3788_v21, %v3786_v18 }
 0x668   :  { %3460 = vst.msk [vmem:[#allocation6 + $0xf0] sm:$0xff] %vm3444_vm13, %v3412_v8  ;;  %v3033_v8 = vld [vmem:[%s3032_s21] sm:$0x1] }
 0x669   :  { %5490 = vmatmul.msk.bf16.gmra.mxu3 %vm3937_vm14, %v3816_v25  ;;  %3034 = vst.msk [vmem:[#allocation4 + $0x341] sm:$0x1] %vm335_vm3, %v3033_v8  ;;  %vm3337_vm3 = vcmask 779776  }
 0x66c   :  { %v4050_v53 = vpop.f32.mrf.mxu3 }
 0x66d   :  { %v7460_v50 = vadd.f32 %v4050_v53, %v3987_v22  ;;  %v3410_v26 = vpop.permute.xlu1 %3409  ;;  %v3582_v46 = vpop.permute.xlu0 %3581 }
 0x66e   :  { %3459 = vst.msk [vmem:[#allocation6 + $0xe0] sm:$0xff] %vm3444_vm13, %v3410_v26  ;;  %v3414_v44 = vpop.permute.xlu2 %3413 }
 0x66f   :  { %3629 = vst.msk [vmem:[#allocation6 + $0xf8] sm:$0xff] %vm611_vm4, %v3582_v46  ;;  %v3791_v28 = vld [vmem:[#allocation6 + $0xf0] sm:$0xff]  ;;  %v4147_v13 = vmul.f32 %v7460_v50, %v7460_v50 }
 0x670   :  { %v3487_v48 = vld [vmem:[#allocation4 + $0x340] sm:$0x3] }
 0x671   :  { %3508 = vst.msk [vmem:[#allocation6 + $0x148] sm:$0x3] %vm184_vm2, %v3487_v48 }
 0x675   :  { %v3708_v51 = vpop.permute.xlu1 %3707  ;;  %v3706_v30 = vpop.permute.xlu0 %3705  ;;  %v3789_v31 = vld [vmem:[#allocation6 + $0xe0] sm:$0xff] }
 0x676   :  { %3755 = vst.msk [vmem:[#allocation6 + $0xf8] sm:$0xff] %vm3316_vm12, %v3708_v51  ;;  %v3817_v35 = vpack.c.bf16 %v3791_v28, %v3789_v31  ;;  %v3712_v37 = vpop.permute.xlu2 %3711 }
 0x677   :  { %3754 = vst.msk [vmem:[#allocation6 + $0xe8] sm:$0xff] %vm3316_vm12, %v3706_v30 }
 0x678   :  { %4014 = vmatmul.bf16.gmra.mxu2 %v3817_v35 }
 0x67b   :  { %v4053_v38 = vpop.f32.mrf.mxu3 }
 0x67c   :  { %v3990_v5 = vpop.f32.mrf.mxu2 }
 0x67d   :  { %v7468_v7 = vadd.f32 %v4053_v38, %v3990_v5  ;;  %v3286_v41 = vpop.permute.xlu1 %3285  ;;  %v3162_v42 = vpop.permute.xlu0 %3161  ;;  %v3792_v45 = vld [vmem:[#allocation6 + $0xf8] sm:$0xff] }
 0x67e   :  { %3333 = vst.msk [vmem:[#allocation6 + $0x100] sm:$0xff] %vm3316_vm12, %v3286_v41  ;;  %v3790_v47 = vld [vmem:[#allocation6 + $0xe8] sm:$0xff]  ;;  %v3290_v52 = vpop.permute.xlu2 %3289 }
 0x67f   :  { %3207 = vst.msk [vmem:[#allocation6 + $0x110] sm:$0xff] %vm611_vm4, %v3162_v42  ;;  %v3818_v49 = vpack.c.bf16 %v3792_v45, %v3790_v47  ;;  %v4148_v48 = vmul.f32 %v7468_v7, %v7468_v7 }
 0x680   :  { %3334 = vst.msk [vmem:[#allocation6 + $0x110] sm:$0xff] %vm3316_vm12, %v3288_v11 }
 0x681   :  { %5491 = vmatmul.msk.bf16.gmra.mxu3 %vm3937_vm14, %v3818_v49  ;;  %3461 = vst.msk [vmem:[#allocation6 + $0x100] sm:$0xff] %vm3444_vm13, %v3414_v44 }
 0x683   :  { %v4055_v57 = vpop.f32.mrf.mxu3 }
 0x684   :  { %v3992_v14 = vpop.f32.mrf.mxu2 }
 0x685   :  { %v7476_v60 = vadd.f32 %v4055_v57, %v3992_v14  ;;  %v3586_v15 = vpop.permute.xlu1 %3585  ;;  %v3584_v0 = vpop.permute.xlu0 %3583 }
 0x686   :  { %3631 = vst.msk [vmem:[#allocation6 + $0x118] sm:$0xff] %vm611_vm4, %v3586_v15  ;;  %v3590_v40 = vpop.permute.xlu2 %3589 }
 0x687   :  { %3630 = vst.msk [vmem:[#allocation6 + $0x108] sm:$0xff] %vm611_vm4, %v3584_v0 }
 0x688   :  { %3757 = vst.msk [vmem:[#allocation6 + $0x118] sm:$0xff] %vm3316_vm12, %v3712_v37  ;;  %v3793_v29 = vld [vmem:[#allocation6 + $0x100] sm:$0xff] }
 0x689   :  { %3633 = vst.msk [vmem:[#allocation6 + $0x138] sm:$0xff] %vm611_vm4, %v3590_v40 }
 0x68d   :  { %v3710_v3 = vpop.permute.xlu1 %3709  ;;  %v3416_v24 = vpop.permute.xlu0 %3415 }
 0x68e   :  { %3756 = vst.msk [vmem:[#allocation6 + $0x108] sm:$0xff] %vm3316_vm12, %v3710_v3  ;;  %v3714_v27 = vpop.permute.xlu2 %3713 }
 0x68f   :  { %3462 = vst.msk [vmem:[#allocation6 + $0x110] sm:$0xff] %vm3444_vm13, %v3416_v24  ;;  %v3796_v58 = vld [vmem:[#allocation6 + $0x118] sm:$0xff] }
 0x694   :  { %v3995_v17 = vpop.f32.mrf.mxu2 }
 0x695   :  { %v3166_v61 = vpop.permute.xlu1 %3165  ;;  %v3164_v9 = vpop.permute.xlu0 %3163  ;;  %v3794_v23 = vld [vmem:[#allocation6 + $0x108] sm:$0xff] }
 0x696   :  { %3209 = vst.msk [vmem:[#allocation6 + $0x130] sm:$0xff] %vm611_vm4, %v3166_v61  ;;  %v3795_v55 = vld [vmem:[#allocation6 + $0x110] sm:$0xff]  ;;  %v3820_v59 = vpack.c.bf16 %v3796_v58, %v3794_v23  ;;  %v3294_v25 = vpop.permute.xlu2 %3293  ;;  %v4145_v61 = vmul.f32 %v7444_v10, %v7444_v10  ;;  %v4098_v23 = vsel %vm178_vm1, %v7444_v10, 0.0 }
 0x697   :  { %3208 = vst.msk [vmem:[#allocation6 + $0x120] sm:$0xff] %vm611_vm4, %v3164_v9  ;;  %v3819_v16 = vpack.c.bf16 %v3795_v55, %v3793_v29  ;;  %v4144_v9 = vmul.f32 %v7436_v12, %v7436_v12  ;;  %v4146_v55 = vmul.f32 %v7452_v56, %v7452_v56 }
 0x698   :  { %5492 = vmatmul.msk.bf16.gmra.mxu3 %vm3937_vm14, %v3820_v59  ;;  %3335 = vst.msk [vmem:[#allocation6 + $0x120] sm:$0xff] %vm3316_vm12, %v3290_v52  ;;  %v4097_v59 = vsel %vm178_vm1, %v7436_v12, 0.0  ;;  %v4166_v8 = vsel %vm178_vm1, %v4145_v61, 0.0 }
 0x699   :  { %4019 = vmatmul.bf16.gmra.mxu2 %v3819_v16  ;;  %v4100_v16 = vsel %vm178_vm1, %v7452_v56, 0.0 }
 0x69c   :  { %v4058_v19 = vpop.f32.mrf.mxu3  ;;  %v3997_v18 = vpop.f32.mrf.mxu2 }
 0x69d   :  { %v7494_v34 = vadd.f32 %v4058_v19, %v3995_v17  ;;  %v3588_v39 = vpop.permute.xlu1 %3587  ;;  %v3292_v6 = vpop.permute.xlu0 %3291  ;;  %v4099_v17 = vadd.f32 %v4098_v23, %v4097_v59 }
 0x69e   :  { %3632 = vst.msk [vmem:[#allocation6 + $0x128] sm:$0xff] %vm611_vm4, %v3588_v39  ;;  %vm3465_vm4 = vcmask 1042176   ;;  %v3718_v51 = vpop.permute.xlu2 %3717  ;;  %v4168_v39 = vsel %vm178_vm1, %v4146_v55, 0.0 }
 0x69f   :  { %3336 = vst.msk [vmem:[#allocation6 + $0x130] sm:$0xff] %vm3316_vm12, %v3292_v6  ;;  %v4102_v6 = vsel %vm178_vm1, %v7460_v50, 0.0 }
 0x6a0   :  { %3758 = vst.msk [vmem:[#allocation6 + $0x128] sm:$0xff] %vm3316_vm12, %v3714_v27  ;;  %v4165_v27 = vsel %vm178_vm1, %v4144_v9, 0.0 }
 0x6a4   :  { %v4060_v20 = vpop.f32.mrf.mxu3 }
 0x6a5   :  { %v7500_v63 = vadd.f32 %v4060_v20, %v3997_v18  ;;  %v3420_v21 = vpop.permute.xlu1 %3419  ;;  %v3418_v4 = vpop.permute.xlu0 %3417  ;;  %v4167_v18 = vadd.f32 %v4166_v8, %v4165_v27  ;;  %v4101_v20 = vadd.f32 %v4100_v16, %v4099_v17 }
 0x6a6   :  { %3464 = vst.msk [vmem:[#allocation6 + $0x130] sm:$0xff] %vm3444_vm13, %v3420_v21  ;;  %v4170_v21 = vsel %vm178_vm1, %v4147_v13, 0.0 }
 0x6a7   :  { %3463 = vst.msk [vmem:[#allocation6 + $0x120] sm:$0xff] %vm3444_vm13, %v3418_v4  ;;  %v3798_v44 = vld [vmem:[#allocation6 + $0x128] sm:$0xff]  ;;  %v4104_v4 = vsel %vm178_vm1, %v7468_v7, 0.0 }
 0x6ab   :  { %v4000_v46 = vpop.f32.mrf.mxu2 }
 0x6ad   :  { %v3716_v11 = vpop.permute.xlu0 %3715  ;;  %v3168_v43 = vpop.permute.xlu1 %3167  ;;  %v3799_v22 = vld [vmem:[#allocation6 + $0x130] sm:$0xff] }
 0x6ae   :  { %3759 = vst.msk [vmem:[#allocation6 + $0x138] sm:$0xff] %vm3316_vm12, %v3716_v11  ;;  %v3797_v53 = vld [vmem:[#allocation6 + $0x120] sm:$0xff] }
 0x6af   :  { %3210 = vst.msk [vmem:[#allocation6 + $0x140] sm:$0x3] %vm632_vm5, %v3168_v43  ;;  %v3821_v26 = vpack.c.bf16 %v3799_v22, %v3797_v53  ;;  %v4169_v43 = vadd.f32 %v4168_v39, %v4167_v18  ;;  %v4103_v22 = vadd.f32 %v4102_v6, %v4101_v20  ;;  %v4172_v53 = vsel %vm178_vm1, %v4148_v48, 0.0 }
 0x6b0   :  { %3338 = vst.msk [vmem:[#allocation6 + $0x140] sm:$0x3] %vm3337_vm3, %v3294_v25  ;;  %v4149_v25 = vmul.f32 %v7476_v60, %v7476_v60 }
 0x6b1   :  { %4024 = vmatmul.bf16.gmra.mxu2 %v3821_v26  ;;  %v4106_v26 = vsel %vm178_vm1, %v7476_v60, 0.0 }
 0x6b3   :  { %v4002_v37 = vpop.f32.mrf.mxu2 }
 0x6b4   :  { %v4063_v28 = vpop.f32.mrf.mxu3 }
 0x6b5   :  { %v7507_v30 = vadd.f32 %v4063_v28, %v4000_v46  ;;  %v3422_v31 = vpop.permute.xlu1 %3421  ;;  %v3800_v33 = vld [vmem:[#allocation6 + $0x138] sm:$0xff]  ;;  %v3592_v35 = vpop.permute.xlu0 %3591  ;;  %v4150_v46 = vmul.f32 %v7494_v34, %v7494_v34  ;;  %v4105_v28 = vadd.f32 %v4104_v4, %v4103_v22 }
 0x6b6   :  { %3466 = vst.msk [vmem:[#allocation6 + $0x140] sm:$0x3] %vm3465_vm4, %v3422_v31  ;;  %v3822_v36 = vpack.c.bf16 %v3800_v33, %v3798_v44  ;;  %v4171_v44 = vadd.f32 %v4170_v21, %v4169_v43  ;;  %v4108_v31 = vsel %vm178_vm1, %v7494_v34, 0.0  ;;  %v4151_v33 = vmul.f32 %v7500_v63, %v7500_v63 }
 0x6b7   :  { %3634 = vst.msk [vmem:[#allocation6 + $0x148] sm:$0x3] %vm632_vm5, %v3592_v35 }
 0x6b8   :  { %5493 = vmatmul.msk.bf16.gmra.mxu3 %vm3937_vm14, %v3822_v36  ;;  %3760 = vst.msk [vmem:[#allocation6 + $0x148] sm:$0x3] %vm3337_vm3, %v3718_v51  ;;  %v4174_v51 = vsel %vm178_vm1, %v4149_v25, 0.0  ;;  %v4173_v35 = vadd.f32 %v4172_v53, %v4171_v44  ;;  %v4107_v36 = vadd.f32 %v4106_v26, %v4105_v28 }
 0x6bc   :  { %v4065_v38 = vpop.f32.mrf.mxu3 }
 0x6bd   :  { %v7512_v5 = vadd.f32 %v4065_v38, %v4002_v37  ;;  %v3801_v41 = vld [vmem:[#allocation6 + $0x140] sm:$0x3]  ;;  %v4176_v37 = vsel %vm178_vm1, %v4150_v46, 0.0  ;;  %v4110_v38 = vsel %vm178_vm1, %v7500_v63, 0.0 }
 0x6be   :  { %v3823_v42 = vpack.c.bf16 %v3801_v41, %v3801_v41  ;;  %v4152_v41 = vmul.f32 %v7507_v30, %v7507_v30 }
 0x6bf   :  { %v3802_v45 = vld [vmem:[#allocation6 + $0x148] sm:$0x3]  ;;  %v4114_v9 = vsel %vm178_vm1, %v7512_v5, 0.0 }
 0x6c0   :  { %v3824_v47 = vpack.c.bf16 %v3802_v45, %v3802_v45  ;;  %v4109_v45 = vadd.f32 %v4108_v31, %v4107_v36  ;;  %v4180_v61 = vsel %vm178_vm1, %v4152_v41, 0.0 }
 0x6c1   :  { %4029 = vmatmul.bf16.gmra.mxu2 %v3823_v42  ;;  %v4175_v42 = vadd.f32 %v4174_v51, %v4173_v35 }
 0x6c8   :  { %5494 = vmatmul.msk.bf16.gmra.mxu3 %vm3937_vm14, %v3824_v47 }
 0x6cb   :  { %v4068_v49 = vpop.f32.mrf.mxu3 }
 0x6cc   :  { %v4005_v52 = vpop.f32.mrf.mxu2 }
 0x6cd   :  { %v7515_v54 = vadd.f32 %v4068_v49, %v4005_v52  ;;  %v4178_v49 = vsel %vm178_vm1, %v4151_v33, 0.0  ;;  %v4112_v52 = vsel %vm178_vm1, %v7507_v30, 0.0 }
 0x6cf   :  { %v4154_v23 = vmul.f32 %v7515_v54, %v7515_v54  ;;  %v4116_v16 = vsel %vm178_vm1, %v7515_v54, 0.0 }
 0x6d1   :  { %v4184_v6 = vsel %vm178_vm1, %v4154_v23, 0.0 }
 0x6d3   :  { %v4070_v57 = vpop.f32.mrf.mxu3 }
 0x6d4   :  { %v4007_v14 = vpop.f32.mrf.mxu2 }
 0x6d5   :  { %v7517_v15 = vadd.f32 %v4070_v57, %v4007_v14  ;;  %v4153_v57 = vmul.f32 %v7512_v5, %v7512_v5 }
 0x6d7   :  { %v4182_v8 = vsel %vm178_vm1, %v4153_v57, 0.0  ;;  %v4155_v13 = vmul.f32 %v7517_v15, %v7517_v15  ;;  %v4118_v48 = vsel %vm178_vm1, %v7517_v15, 0.0 }
 0x6d9   :  { %v4186_v43 = vsel %vm178_vm1, %v4155_v13, 0.0 }
 0x6e4   :  { %v4010_v0 = vpop.f32.mrf.mxu2 }
 0x6ec   :  { %v4073_v62 = vpop.f32.mrf.mxu3  ;;  %v4012_v1 = vpop.f32.mrf.mxu2 }
 0x6ed   :  { %v7519_v40 = vadd.f32 %v4073_v62, %v4010_v0  ;;  %v4177_v0 = vadd.f32 %v4176_v37, %v4175_v42  ;;  %v4111_v62 = vadd.f32 %v4110_v38, %v4109_v45 }
 0x6ef   :  { %v4179_v55 = vadd.f32 %v4178_v49, %v4177_v0  ;;  %v4113_v59 = vadd.f32 %v4112_v52, %v4111_v62  ;;  %v4156_v18 = vmul.f32 %v7519_v40, %v7519_v40 }
 0x6f1   :  { %v4181_v27 = vadd.f32 %v4180_v61, %v4179_v55  ;;  %v4115_v39 = vadd.f32 %v4114_v9, %v4113_v59 }
 0x6f3   :  { %v4183_v21 = vadd.f32 %v4182_v8, %v4181_v27  ;;  %v4117_v4 = vadd.f32 %v4116_v16, %v4115_v39 }
 0x6f4   :  { %v4075_v2 = vpop.f32.mrf.mxu3 }
 0x6f5   :  { %v7587_v17 = vadd.f32 %v4075_v2, %v4012_v1  ;;  %v4120_v1 = vsel %vm178_vm1, %v7519_v40, 0.0  ;;  %v4185_v26 = vadd.f32 %v4184_v6, %v4183_v21  ;;  %v4119_v46 = vadd.f32 %v4118_v48, %v4117_v4 }
 0x6f7   :  { %v4157_v2 = vmul.f32 %v7587_v17, %v7587_v17  ;;  %v4187_v51 = vadd.f32 %v4186_v43, %v4185_v26  ;;  %v4121_v31 = vadd.f32 %v4120_v1, %v4119_v46 }
 0x6fb   :  { %v7521_v3 = vpop.f32.mrf.mxu2 }
 0x703   :  { %v7523_v58 = vpop.f32.mrf.mxu2 }
 0x704   :  { %v4078_v24 = vpop.f32.mrf.mxu3 }
 0x705   :  { %v7595_v20 = vadd.f32 %v4078_v24, %v7521_v3  ;;  %v4188_v3 = vsel %vm178_vm1, %v4156_v18, 0.0  ;;  %v4122_v24 = vsel %vm178_vm1, %v7587_v17, 0.0 }
 0x706   :  { %v4189_v36 = vadd.f32 %v4188_v3, %v4187_v51  ;;  %v4123_v37 = vadd.f32 %v4122_v24, %v4121_v31 }
 0x707   :  { %v4158_v44 = vmul.f32 %v7595_v20, %v7595_v20 }
 0x709   :  { %v4192_v38 = vsel %vm178_vm1, %v4158_v44, 0.0 }
 0x70c   :  { %v7525_v29 = vpop.f32.mrf.mxu3 }
 0x70d   :  { %v7604_v22 = vadd.f32 %v7525_v29, %v7523_v58  ;;  %v4190_v58 = vsel %vm178_vm1, %v4157_v2, 0.0  ;;  %v4124_v29 = vsel %vm178_vm1, %v7595_v20, 0.0 }
 0x70e   :  { %v4191_v42 = vadd.f32 %v4190_v58, %v4189_v36  ;;  %v4125_v45 = vadd.f32 %v4124_v29, %v4123_v37 }
 0x70f   :  { %v4159_v33 = vmul.f32 %v7604_v22, %v7604_v22 }
 0x710   :  { %v4193_v62 = vadd.f32 %v4192_v38, %v4191_v42 }
 0x711   :  { %v4194_v52 = vsel %vm178_vm1, %v4159_v33, 0.0 }
 0x712   :  { %v4195_v55 = vadd.f32 %v4194_v52, %v4193_v62 }
 0x71b   :  { %v7544_v19 = vpop.f32.mrf.mxu3 }
 0x71c   :  { %v7527_v32 = vpop.f32.mrf.mxu2 }
 0x71d   :  { %v7613_v28 = vadd.f32 %v7544_v19, %v7527_v32  ;;  %v4126_v32 = vsel %vm178_vm1, %v7604_v22, 0.0 }
 0x71e   :  { %v4127_v61 = vadd.f32 %v4126_v32, %v4125_v45 }
 0x71f   :  { %v4160_v19 = vmul.f32 %v7613_v28, %v7613_v28 }
 0x721   :  { %v4196_v9 = vsel %vm178_vm1, %v4160_v19, 0.0 }
 0x722   :  { %v4197_v27 = vadd.f32 %v4196_v9, %v4195_v55 }
 0x723   :  { %v4085_v47 = vpop.f32.mrf.mxu3 }
 0x724   :  { %v4022_v11 = vpop.f32.mrf.mxu2 }
 0x725   :  { %v7620_v35 = vadd.f32 %v4085_v47, %v4022_v11  ;;  %v4128_v11 = vsel %vm178_vm1, %v7613_v28, 0.0 }
 0x726   :  { %v4129_v59 = vadd.f32 %v4128_v11, %v4127_v61 }
 0x727   :  { %v4161_v47 = vmul.f32 %v7620_v35, %v7620_v35 }
 0x729   :  { %v4198_v8 = vsel %vm178_vm1, %v4161_v47, 0.0 }
 0x72a   :  { %v4199_v18 = vadd.f32 %v4198_v8, %v4197_v27 }
 0x734   :  { %v4025_v14 = vpop.f32.mrf.mxu2 }
 0x73b   :  { %v4088_v25 = vpop.f32.mrf.mxu3 }
 0x73c   :  { %v4027_v53 = vpop.f32.mrf.mxu2  ;;  %v7627_v41 = vadd.f32 %v4088_v25, %v4025_v14  ;;  %v4130_v14 = vsel %vm178_vm1, %v7620_v35, 0.0 }
 0x73d   :  { %v4131_v39 = vadd.f32 %v4130_v14, %v4129_v59 }
 0x73e   :  { %v4162_v23 = vmul.f32 %v7627_v41, %v7627_v41  ;;  %v4132_v16 = vsel %vm178_vm1, %v7627_v41, 0.0 }
 0x73f   :  { %v4133_v21 = vadd.f32 %v4132_v16, %v4131_v39 }
 0x740   :  { %v4200_v6 = vsel %vm178_vm1, %v4162_v23, 0.0 }
 0x741   :  { %v4201_v2 = vadd.f32 %v4200_v6, %v4199_v18 }
 0x743   :  { %v4090_v49 = vpop.f32.mrf.mxu3 }
 0x744   :  { %v4030_v57 = vpop.f32.mrf.mxu2  ;;  %v7634_v0 = vadd.f32 %v4090_v49, %v4027_v53 }
 0x746   :  { %v4163_v13 = vmul.f32 %v7634_v0, %v7634_v0  ;;  %v4134_v48 = vsel %vm178_vm1, %v7634_v0, 0.0 }
 0x747   :  { %v4135_v53 = vadd.f32 %v4134_v48, %v4133_v21 }
 0x748   :  { %v4202_v25 = vsel %vm178_vm1, %v4163_v13, 0.0 }
 0x749   :  { %v4203_v3 = vadd.f32 %v4202_v25, %v4201_v2 }
 0x74b   :  { %v4093_v4 = vpop.f32.mrf.mxu3 }
 0x74c   :  { %v4032_v43 = vpop.f32.mrf.mxu2  ;;  %v7650_v1 = vadd.f32 %v4093_v4, %v4030_v57 }
 0x74e   :  { %v4136_v26 = vsel %vm184_vm2, %v7650_v1, 0.0  ;;  %v4164_v46 = vmul.f32 %v7650_v1, %v7650_v1 }
 0x74f   :  { %v4137_v24 = vadd.f32 %v4136_v26, %v4135_v53 }
 0x750   :  { %v4204_v44 = vsel %vm184_vm2, %v4164_v46, 0.0 }
 0x751   :  { %v4138_v51 = vrot.slane %v4137_v24, 4  ;;  %v4205_v31 = vadd.f32 %v4204_v44, %v4203_v3 }
 0x753   :  { %v4139_v58 = vadd.f32 %v4138_v51, %v4137_v24  ;;  %v4206_v29 = vrot.slane %v4205_v31, 4  ;;  %v4095_v33 = vpop.f32.mrf.mxu3 }
 0x755   :  { %v4140_v36 = vrot.slane %v4139_v58, 2  ;;  %v4207_v37 = vadd.f32 %v4206_v29, %v4205_v31 }
 0x757   :  { %v4141_v38 = vadd.f32 %v4140_v36, %v4139_v58  ;;  %v4208_v32 = vrot.slane %v4207_v37, 2 }
 0x759   :  { %v4142_v19 = vrot.slane %v4141_v38, 1  ;;  %v4209_v42 = vadd.f32 %v4208_v32, %v4207_v37 }
 0x75b   :  { %v4143_v45 = vadd.f32 %v4142_v19, %v4141_v38  ;;  %v4210_v49 = vrot.slane %v4209_v42, 1 }
 0x75d   :  { %v4211_v52 = vadd.f32 %v4210_v49, %v4209_v42  ;;  %v7657_v11 = vmul.f32 0.0061728396, %v4143_v45 }
 0x75f   :  { %v4213_v47 = vmul.f32 0.0061728396, %v4211_v52  ;;  %v4214_v57 = vmul.f32 %v7657_v11, %v7657_v11  ;;  %v4218_v16 = vsub.f32 %v7436_v12, %v7657_v11  ;;  %v4219_v13 = vsub.f32 %v7444_v10, %v7657_v11  ;;  %v5624_v10 = vld [vmem:[%s7834_s11] ss:$0 sm:$0xff] }
 0x760   :  { %v4220_v27 = vsub.f32 %v7452_v56, %v7657_v11  ;;  %v4221_v39 = vsub.f32 %v7460_v50, %v7657_v11  ;;  %v4222_v6 = vsub.f32 %v7468_v7, %v7657_v11  ;;  %v4223_v48 = vsub.f32 %v7476_v60, %v7657_v11 }
 0x761   :  { %v4215_v62 = vsub.f32 %v4213_v47, %v4214_v57  ;;  %v4224_v18 = vsub.f32 %v7494_v34, %v7657_v11  ;;  %v4225_v12 = vsub.f32 %v7500_v63, %v7657_v11  ;;  %v4226_v50 = vsub.f32 %v7507_v30, %v7657_v11 }
 0x762   :  { %v4227_v7 = vsub.f32 %v7512_v5, %v7657_v11  ;;  %v4228_v60 = vsub.f32 %v7515_v54, %v7657_v11  ;;  %v4229_v34 = vsub.f32 %v7517_v15, %v7657_v11  ;;  %v4230_v63 = vsub.f32 %v7519_v40, %v7657_v11 }
 0x763   :  { %v4216_v61 = vmax.f32 %v4215_v62, 0.0  ;;  %v4231_v21 = vsub.f32 %v7587_v17, %v7657_v11  ;;  %v4232_v4 = vsub.f32 %v7595_v20, %v7657_v11  ;;  %v4233_v30 = vsub.f32 %v7604_v22, %v7657_v11 }
 0x764   :  { %v4234_v5 = vsub.f32 %v7613_v28, %v7657_v11  ;;  %v4235_v54 = vsub.f32 %v7620_v35, %v7657_v11  ;;  %v4236_v15 = vsub.f32 %v7627_v41, %v7657_v11  ;;  %v4237_v40 = vsub.f32 %v7634_v0, %v7657_v11  ;;  %v7709_v0 = vld [vmem:[%s7835_s12] ss:$0 sm:$0xff] }
 0x765   :  { %v4263_v9 = vadd.f32 1e-05, %v4216_v61  ;;  %v4238_v17 = vsub.f32 %v7650_v1, %v7657_v11  ;;  %v4242_v20 = vmul.f32 %v5624_v10, %v4218_v16  ;;  %v4243_v43 = vmul.f32 %v5624_v10, %v4219_v13 }
 0x766   :  { %v4244_v22 = vmul.f32 %v5624_v10, %v4220_v27  ;;  %v4245_v2 = vmul.f32 %v5624_v10, %v4221_v39  ;;  %v4246_v53 = vmul.f32 %v5624_v10, %v4222_v6  ;;  %v4247_v28 = vmul.f32 %v5624_v10, %v4223_v48 }
 0x767   :  { %5626 = vrsqrt.f32 %v4263_v9  ;;  %vm4270_vm15 = vweird.f32 %v4263_v9  ;;  %v4248_v26 = vmul.f32 %v5624_v10, %v4224_v18  ;;  %v4249_v46 = vmul.f32 %v5624_v10, %v4225_v12 }
 0x768   :  { %v4250_v35 = vmul.f32 %v5624_v10, %v4226_v50  ;;  %v4251_v3 = vmul.f32 %v5624_v10, %v4227_v7  ;;  %v4252_v24 = vmul.f32 %v5624_v10, %v4228_v60  ;;  %v4253_v41 = vmul.f32 %v5624_v10, %v4229_v34 }
 0x769   :  { %v4254_v1 = vmul.f32 %v5624_v10, %v4230_v63  ;;  %v4255_v51 = vmul.f32 %v5624_v10, %v4231_v21  ;;  %v4256_v31 = vmul.f32 %v5624_v10, %v4232_v4  ;;  %v4257_v29 = vmul.f32 %v5624_v10, %v4233_v30 }
 0x76a   :  { %v4258_v33 = vmul.f32 %v5624_v10, %v4234_v5  ;;  %v4259_v36 = vmul.f32 %v5624_v10, %v4235_v54  ;;  %v4260_v38 = vmul.f32 %v5624_v10, %v4236_v15  ;;  %v4261_v32 = vmul.f32 %v5624_v10, %v4237_v40 }
 0x76b   :  { %v4262_v19 = vmul.f32 %v5624_v10, %v4238_v17 }
 0x76d   :  { %v5627_v14 = vpop.eup %5626 }
 0x76e   :  { %v4265_v23 = vmul.f32 %v5627_v14, %v4263_v9  ;;  %vm4271_vm5 = vweird.f32 %v5627_v14 }
 0x76f   :  { %vm4272_vm0 = vmor %vm4270_vm15, %vm4271_vm5 }
 0x770   :  { %v4266_v55 = vmul.f32 %v5627_v14, %v4265_v23 }
 0x772   :  { %v4267_v59 = vmul.f32 0.5, %v4266_v55 }
 0x774   :  { %v4268_v8 = vsub.f32 1.5, %v4267_v59 }
 0x776   :  { %v4269_v56 = vmul.f32 %v5627_v14, %v4268_v8 }
 0x778   :  { %v4273_v25 = vsel %vm4272_vm0, %v5627_v14, %v4269_v56 }
 0x779   :  { %v4274_v44 = vmul.f32 %v4273_v25, %v4242_v20  ;;  %v4275_v58 = vmul.f32 %v4273_v25, %v4243_v43  ;;  %v4276_v37 = vmul.f32 %v4273_v25, %v4244_v22  ;;  %v4277_v42 = vmul.f32 %v4273_v25, %v4245_v2 }
 0x77a   :  { %v4278_v45 = vmul.f32 %v4273_v25, %v4246_v53  ;;  %v4279_v49 = vmul.f32 %v4273_v25, %v4247_v28  ;;  %v4280_v52 = vmul.f32 %v4273_v25, %v4248_v26  ;;  %v4281_v47 = vmul.f32 %v4273_v25, %v4249_v46 }
 0x77b   :  { %v4299_v11 = vadd.f32 %v7709_v0, %v4274_v44  ;;  %v4282_v57 = vmul.f32 %v4273_v25, %v4250_v35  ;;  %v4283_v62 = vmul.f32 %v4273_v25, %v4251_v3  ;;  %v4300_v61 = vadd.f32 %v7709_v0, %v4275_v58 }
 0x77c   :  { %v4284_v9 = vmul.f32 %v4273_v25, %v4252_v24  ;;  %v4285_v14 = vmul.f32 %v4273_v25, %v4253_v41  ;;  %v4286_v23 = vmul.f32 %v4273_v25, %v4254_v1  ;;  %v4301_v55 = vadd.f32 %v7709_v0, %v4276_v37 }
 0x77d   :  { %v4287_v59 = vmul.f32 %v4273_v25, %v4255_v51  ;;  %v4288_v8 = vmul.f32 %v4273_v25, %v4256_v31  ;;  %v4289_v16 = vmul.f32 %v4273_v25, %v4257_v29  ;;  %v4302_v13 = vadd.f32 %v7709_v0, %v4277_v42 }
 0x77e   :  { %v4290_v27 = vmul.f32 %v4273_v25, %v4258_v33  ;;  %v4291_v39 = vmul.f32 %v4273_v25, %v4259_v36  ;;  %v4303_v6 = vadd.f32 %v7709_v0, %v4278_v45  ;;  %v4341_v48 = vmul.f32 0.2, %v4299_v11 }
 0x77f   :  { %v4292_v18 = vmul.f32 %v4273_v25, %v4260_v38  ;;  %v4304_v12 = vadd.f32 %v7709_v0, %v4279_v49  ;;  %vm4320_vm6 = vcmp.ge.f32.partialorder %v4299_v11, 0.0  ;;  %v4342_v10 = vmul.f32 0.2, %v4300_v61 }
 0x780   :  { %v4293_v56 = vmul.f32 %v4273_v25, %v4261_v32  ;;  %v4305_v50 = vadd.f32 %v7709_v0, %v4280_v52  ;;  %vm4321_vm7 = vcmp.ge.f32.partialorder %v4300_v61, 0.0  ;;  %v4343_v7 = vmul.f32 0.2, %v4301_v55 }
 0x781   :  { %v4294_v60 = vmul.f32 %v4273_v25, %v4262_v19  ;;  %v4306_v34 = vadd.f32 %v7709_v0, %v4281_v47  ;;  %vm4322_vm8 = vcmp.ge.f32.partialorder %v4301_v55, 0.0  ;;  %v4344_v63 = vmul.f32 0.2, %v4302_v13 }
 0x782   :  { %v4307_v21 = vadd.f32 %v7709_v0, %v4282_v57  ;;  %vm4323_vm9 = vcmp.ge.f32.partialorder %v4302_v13, 0.0  ;;  %v4345_v4 = vmul.f32 0.2, %v4303_v6  ;;  %v4362_v30 = vsel %vm4320_vm6, %v4299_v11, %v4341_v48 }
 0x783   :  { %v4308_v5 = vadd.f32 %v7709_v0, %v4283_v62  ;;  %vm4324_vm10 = vcmp.ge.f32.partialorder %v4303_v6, 0.0  ;;  %v4346_v54 = vmul.f32 0.2, %v4304_v12  ;;  %v4363_v15 = vsel %vm4321_vm7, %v4300_v61, %v4342_v10  ;;  %4383 = vst.msk [vmem:[%s7836_s13] sm:$0xff] %vm178_vm1, %v4362_v30 }
 0x784   :  { %v4309_v40 = vadd.f32 %v7709_v0, %v4284_v9  ;;  %vm4325_vm11 = vcmp.ge.f32.partialorder %v4304_v12, 0.0  ;;  %v4347_v17 = vmul.f32 0.2, %v4305_v50  ;;  %v4364_v20 = vsel %vm4322_vm8, %v4301_v55, %v4343_v7  ;;  %4384 = vst.msk [vmem:[%s7836_s13 + $0x8] sm:$0xff] %vm178_vm1, %v4363_v15 }
 0x785   :  { %v4310_v25 = vadd.f32 %v7709_v0, %v4285_v14  ;;  %vm4326_vm12 = vcmp.ge.f32.partialorder %v4305_v50, 0.0  ;;  %v4348_v43 = vmul.f32 0.2, %v4306_v34  ;;  %v4365_v22 = vsel %vm4323_vm9, %v4302_v13, %v4344_v63  ;;  %4385 = vst.msk [vmem:[%s7836_s13 + $0x10] sm:$0xff] %vm178_vm1, %v4364_v20 }
 0x786   :  { %v4311_v2 = vadd.f32 %v7709_v0, %v4286_v23  ;;  %vm4327_vm13 = vcmp.ge.f32.partialorder %v4306_v34, 0.0  ;;  %v4349_v53 = vmul.f32 0.2, %v4307_v21  ;;  %v4366_v28 = vsel %vm4324_vm10, %v4303_v6, %v4345_v4  ;;  %4386 = vst.msk [vmem:[%s7836_s13 + $0x18] sm:$0xff] %vm178_vm1, %v4365_v22 }
 0x787   :  { %v4312_v26 = vadd.f32 %v7709_v0, %v4287_v59  ;;  %vm4328_vm14 = vcmp.ge.f32.partialorder %v4307_v21, 0.0  ;;  %v4350_v46 = vmul.f32 0.2, %v4308_v5  ;;  %v4367_v35 = vsel %vm4325_vm11, %v4304_v12, %v4346_v54  ;;  %4387 = vst.msk [vmem:[%s7836_s13 + $0x20] sm:$0xff] %vm178_vm1, %v4366_v28 }
 0x788   :  { %v4313_v3 = vadd.f32 %v7709_v0, %v4288_v8  ;;  %vm4329_vm3 = vcmp.ge.f32.partialorder %v4308_v5, 0.0  ;;  %v4351_v24 = vmul.f32 0.2, %v4309_v40  ;;  %v4368_v41 = vsel %vm4326_vm12, %v4305_v50, %v4347_v17  ;;  %4388 = vst.msk [vmem:[%s7836_s13 + $0x28] sm:$0xff] %vm178_vm1, %v4367_v35 }
 0x789   :  { %v4314_v44 = vadd.f32 %v7709_v0, %v4289_v16  ;;  %vm4330_vm4 = vcmp.ge.f32.partialorder %v4309_v40, 0.0  ;;  %v4352_v1 = vmul.f32 0.2, %v4310_v25  ;;  %v4369_v51 = vsel %vm4327_vm13, %v4306_v34, %v4348_v43  ;;  %4389 = vst.msk [vmem:[%s7836_s13 + $0x30] sm:$0xff] %vm178_vm1, %v4368_v41 }
 0x78a   :  { %v4315_v31 = vadd.f32 %v7709_v0, %v4290_v27  ;;  %vm4331_vm5 = vcmp.ge.f32.partialorder %v4310_v25, 0.0  ;;  %v4353_v58 = vmul.f32 0.2, %v4311_v2  ;;  %v4370_v29 = vsel %vm4328_vm14, %v4307_v21, %v4349_v53  ;;  %4390 = vst.msk [vmem:[%s7836_s13 + $0x38] sm:$0xff] %vm178_vm1, %v4369_v51 }
 0x78b   :  { %v4316_v33 = vadd.f32 %v7709_v0, %v4291_v39  ;;  %vm4332_vm15 = vcmp.ge.f32.partialorder %v4311_v2, 0.0  ;;  %v4354_v36 = vmul.f32 0.2, %v4312_v26  ;;  %v4371_v37 = vsel %vm4329_vm3, %v4308_v5, %v4350_v46  ;;  %4391 = vst.msk [vmem:[%s7836_s13 + $0x40] sm:$0xff] %vm178_vm1, %v4370_v29 }
 0x78c   :  { %v4317_v38 = vadd.f32 %v7709_v0, %v4292_v18  ;;  %vm4333_vm0 = vcmp.ge.f32.partialorder %v4312_v26, 0.0  ;;  %v4355_v32 = vmul.f32 0.2, %v4313_v3  ;;  %v4372_v19 = vsel %vm4330_vm4, %v4309_v40, %v4351_v24  ;;  %4392 = vst.msk [vmem:[%s7836_s13 + $0x48] sm:$0xff] %vm178_vm1, %v4371_v37 }
 0x78d   :  { %v4318_v42 = vadd.f32 %v7709_v0, %v4293_v56  ;;  %vm4334_vm6 = vcmp.ge.f32.partialorder %v4313_v3, 0.0  ;;  %v4356_v45 = vmul.f32 0.2, %v4314_v44  ;;  %v4373_v49 = vsel %vm4331_vm5, %v4310_v25, %v4352_v1  ;;  %4393 = vst.msk [vmem:[%s7836_s13 + $0x50] sm:$0xff] %vm178_vm1, %v4372_v19 }
 0x78e   :  { %v4319_v52 = vadd.f32 %v7709_v0, %v4294_v60  ;;  %vm4335_vm7 = vcmp.ge.f32.partialorder %v4314_v44, 0.0  ;;  %v4357_v11 = vmul.f32 0.2, %v4315_v31  ;;  %v4374_v47 = vsel %vm4332_vm15, %v4311_v2, %v4353_v58  ;;  %4394 = vst.msk [vmem:[%s7836_s13 + $0x58] sm:$0xff] %vm178_vm1, %v4373_v49 }
 0x78f   :  { %vm4336_vm8 = vcmp.ge.f32.partialorder %v4315_v31, 0.0  ;;  %v4358_v57 = vmul.f32 0.2, %v4316_v33  ;;  %v4375_v62 = vsel %vm4333_vm0, %v4312_v26, %v4354_v36  ;;  %vm4337_vm9 = vcmp.ge.f32.partialorder %v4316_v33, 0.0  ;;  %4395 = vst.msk [vmem:[%s7836_s13 + $0x60] sm:$0xff] %vm178_vm1, %v4374_v47 }
 0x790   :  { %v4359_v0 = vmul.f32 0.2, %v4317_v38  ;;  %v4376_v61 = vsel %vm4334_vm6, %v4313_v3, %v4355_v32  ;;  %vm4338_vm10 = vcmp.ge.f32.partialorder %v4317_v38, 0.0  ;;  %v4360_v9 = vmul.f32 0.2, %v4318_v42  ;;  %4396 = vst.msk [vmem:[%s7836_s13 + $0x68] sm:$0xff] %vm178_vm1, %v4375_v62 }
 0x791   :  { %v4377_v14 = vsel %vm4335_vm7, %v4314_v44, %v4356_v45  ;;  %vm4339_vm11 = vcmp.ge.f32.partialorder %v4318_v42, 0.0  ;;  %v4361_v23 = vmul.f32 0.2, %v4319_v52  ;;  %v4378_v55 = vsel %vm4336_vm8, %v4315_v31, %v4357_v11  ;;  %4397 = vst.msk [vmem:[%s7836_s13 + $0x70] sm:$0xff] %vm178_vm1, %v4376_v61 }
 0x792   :  { %vm4340_vm12 = vcmp.ge.f32.partialorder %v4319_v52, 0.0  ;;  %v4379_v59 = vsel %vm4337_vm9, %v4316_v33, %v4358_v57  ;;  %v4380_v8 = vsel %vm4338_vm10, %v4317_v38, %v4359_v0  ;;  %4398 = vst.msk [vmem:[%s7836_s13 + $0x78] sm:$0xff] %vm178_vm1, %v4377_v14  ;;  %v4381_v16 = vsel %vm4339_vm11, %v4318_v42, %v4360_v9 }
 0x793   :  { %4399 = vst.msk [vmem:[%s7836_s13 + $0x80] sm:$0xff] %vm178_vm1, %v4378_v55  ;;  %v4382_v13 = vsel %vm4340_vm12, %v4319_v52, %v4361_v23 }
 0x794   :  { %4400 = vst.msk [vmem:[%s7836_s13 + $0x88] sm:$0xff] %vm178_vm1, %v4379_v59 }
 0x795   :  { %4401 = vst.msk [vmem:[%s7836_s13 + $0x90] sm:$0xff] %vm178_vm1, %v4380_v8 }
 0x796   :  { %4402 = vst.msk [vmem:[%s7836_s13 + $0x98] sm:$0xff] %vm178_vm1, %v4381_v16 }
 0x797   :  { %4403 = vst.msk [vmem:[%s7836_s13 + $0xa0] sm:$0x3] %vm184_vm2, %v4382_v13 }

</bundles_post_ra>
